<compile_context>
chip_gen: v7x
topology: tpu7x:2x2x1
jax: 0.10.0
libtpu: 0.0.40
codegen_flags: <defaults>
</compile_context>

<pallas_src>
import functools
import math

import jax
import jax.numpy as jnp
from jax.experimental import pallas as pl
from jax.experimental.pallas import tpu as pltpu

NUM_HEADS = 4
LN_EPS = 1e-5
_GELU_C = 0.7978845608028654  # sqrt(2/pi)
RELU_GAIN = math.sqrt(2.0)

# Order of packed weight arrays passed to the kernel (after the 4 data args).
WEIGHT_KEYS = (
    "wq", "wk", "wv", "wfr", "wfa", "bf", "gam", "bet",
    "lin_w", "lin_b", "pen_w", "pen_b", "mu_w", "mu_b", "ls_w", "ls_b",
    "din_w", "din_b", "ctx_w", "ctx_b", "tgt_w", "tgt_b",
    "dtg_w", "dtg_b",
    "dw1r", "dw1z", "dw1t", "db1", "dw2", "db2", "dw3", "db3",
    "dwf", "dbf",
)


def _gelu(x):
    # TODO(synk): tanh approximation; PyTorch F.gelu default is the exact erf form.
    return 0.5 * x * (1.0 + jnp.tanh(_GELU_C * (x + 0.044715 * x * x * x)))


# --------------------------------------------------------------------------- #
# Fused kernel (one batch element per grid step)
# --------------------------------------------------------------------------- #
def _anp_kernel(
    # data (per-batch blocks)
    cx_ref, cy_ref, tx_ref, eps_ref,
    # stacked attention-block weights; block order:
    #   0,1 latent self-attn | 2,3 det self-attn | 4,5 det cross-attn
    wq_ref, wk_ref, wv_ref, wfr_ref, wfa_ref, bf_ref, gam_ref, bet_ref,
    # latent encoder linears
    lin_w_ref, lin_b_ref, pen_w_ref, pen_b_ref, mu_w_ref, mu_b_ref, ls_w_ref, ls_b_ref,
    # deterministic encoder linears
    din_w_ref, din_b_ref, ctx_w_ref, ctx_b_ref, tgt_w_ref, tgt_b_ref,
    # decoder linears
    dtg_w_ref, dtg_b_ref,
    dw1r_ref, dw1z_ref, dw1t_ref, db1_ref, dw2_ref, db2_ref, dw3_ref, db3_ref,
    dwf_ref, dbf_ref,
    # output
    y_ref,
    *, Nc, Nt, H, nh):
    d = H // nh

    cx = cx_ref[0]      # (Nc, 2)  f32
    cy = cy_ref[0]      # (Nc, 1)  f32
    tx = tx_ref[0]      # (Nt, 2)  f32
    eps = eps_ref[0]    # (1, H)   f32

    def mxu(x, w):
        # bf16 MXU operands, f32 accumulate; elementwise math elsewhere stays f32.
        return jnp.dot(x.astype(jnp.bfloat16), w, preferred_element_type=jnp.float32)

    def small_proj(cols, w_ref, b_ref):
        # VPU broadcast mul-add for tiny-K (2..3) input projections (no K=2 matmul).
        w = w_ref[...]
        acc = cols[0] * w[0:1, :]
        for i in range(1, len(cols)):
            acc = acc + cols[i] * w[i:i + 1, :]
        return acc + b_ref[...]

    def layer_norm(x, gamma, beta):
        mean = jnp.mean(x, axis=-1, keepdims=True)
        var = jnp.mean((x - mean) ** 2, axis=-1, keepdims=True)
        return (x - mean) * jax.lax.rsqrt(var + LN_EPS) * gamma + beta

    def attention(key2d, val2d, qry2d, blk, Sk, Sq):
        # One `Attention` module. Full-width (H,H) projections (one MXU push each,
        # 1/sqrt(d) folded into Wq); per-head scores are tiny (Sq,d)x(d,Sk) products;
        # context heads are lane-concatenated back to (Sq,H) so the attention half
        # of final_linear is a single (H,H) matmul (no add chain).
        residual = qry2d                                   # (Sq, H)
        q = mxu(qry2d, wq_ref[blk])                        # (Sq, H)
        k = mxu(key2d, wk_ref[blk])                        # (Sk, H)
        v = mxu(val2d, wv_ref[blk])                        # (Sk, H)
        ctx_heads = []
        for h in range(nh):
            lo, hi = h * d, (h + 1) * d
            qh, kh, vh = q[:, lo:hi], k[:, lo:hi], v[:, lo:hi]
            s = jnp.einsum('qd,kd->qk', qh, kh, preferred_element_type=jnp.float32)
            s = s - jnp.max(s, axis=-1, keepdims=True)
            p = jnp.exp(s)
            p = p / jnp.sum(p, axis=-1, keepdims=True)     # exact softmax denom
            # TODO(synk): attn_dropout (p=0.1) is an eval-mode identity here.
            ctx_heads.append(jnp.dot(p, vh, preferred_element_type=jnp.float32))
        ctx = jnp.concatenate(ctx_heads, axis=-1)          # (Sq, H), head-major (torch order)
        # final_linear([residual || attn]) == residual @ wf_res + attn @ wf_attn + bf
        out = mxu(residual, wfr_ref[blk]) + mxu(ctx, wfa_ref[blk]) + bf_ref[blk]
        # TODO(synk): residual_dropout (p=0.1) is an eval-mode identity here.
        out = out + residual
        return layer_norm(out, gam_ref[blk], bet_ref[blk])

    cx0, cx1 = cx[:, 0:1], cx[:, 1:2]
    tx0, tx1 = tx[:, 0:1], tx[:, 1:2]

    # ------------------------- Latent encoder ------------------------------ #
    x = small_proj((cx0, cx1, cy), lin_w_ref, lin_b_ref)            # (Nc, H)
    x = attention(x, x, x, 0, Nc, Nc)
    x = attention(x, x, x, 1, Nc, Nc)
    hidden = jnp.mean(x, axis=0, keepdims=True)                     # (1, H)
    hidden = _gelu(mxu(hidden, pen_w_ref[...]) + pen_b_ref[...])
    mu = mxu(hidden, mu_w_ref[...]) + mu_b_ref[...]
    log_sigma = mxu(hidden, ls_w_ref[...]) + ls_b_ref[...]
    std = jnp.exp(0.5 * log_sigma)
    z = eps * std + mu                                              # (1, H)
    z2d = jnp.broadcast_to(z, (Nt, H))

    # ---------------------- Deterministic encoder -------------------------- #
    e = small_proj((cx0, cx1, cy), din_w_ref, din_b_ref)            # (Nc, H)
    e = attention(e, e, e, 2, Nc, Nc)
    e = attention(e, e, e, 3, Nc, Nc)
    qy = small_proj((tx0, tx1), tgt_w_ref, tgt_b_ref)               # (Nt, H)
    ky = small_proj((cx0, cx1), ctx_w_ref, ctx_b_ref)               # (Nc, H)
    qy = attention(ky, e, qy, 4, Nc, Nt)
    qy = attention(ky, e, qy, 5, Nc, Nt)

    # ------------------------------ Decoder -------------------------------- #
    t2d = small_proj((tx0, tx1), dtg_w_ref, dtg_b_ref)              # (Nt, H)
    # first decoder linear on [r || z || t] without the lane concat (dw1 pre-split)
    h1 = _gelu(mxu(qy, dw1r_ref[...]) + mxu(z2d, dw1z_ref[...])
               + mxu(t2d, dw1t_ref[...]) + db1_ref[...])            # (Nt, 3H)
    h2 = _gelu(mxu(h1, dw2_ref[...]) + db2_ref[...])
    h3 = _gelu(mxu(h2, dw3_ref[...]) + db3_ref[...])
    # final (3H -> 1) projection: VPU multiply + lane reduce (no 1-column matmul)
    y = jnp.sum(h3 * dwf_ref[...], axis=-1, keepdims=True) + dbf_ref[...]
    y_ref[0] = y.astype(y_ref.dtype)


# --------------------------------------------------------------------------- #
# Parameter init (xavier-uniform like nn.init.xavier_uniform_, (in,out) layout)
# --------------------------------------------------------------------------- #
def _xavier_uniform(key, in_dim, out_dim, gain=1.0):
    bound = gain * math.sqrt(6.0 / (in_dim + out_dim))
    return jax.random.uniform(key, (in_dim, out_dim), jnp.float32, -bound, bound)


def _linear_bias(key, in_dim, out_dim):
    bound = 1.0 / math.sqrt(in_dim)
    return jax.random.uniform(key, (1, out_dim), jnp.float32, -bound, bound)


def init_attention_params(key, H):
    ks = jax.random.split(key, 5)
    wk = _xavier_uniform(ks[0], H, H)
    wv = _xavier_uniform(ks[1], H, H)
    wq = _xavier_uniform(ks[2], H, H)
    wf = _xavier_uniform(ks[3], 2 * H, H)
    bf = _linear_bias(ks[4], 2 * H, H)
    gamma = jnp.ones((1, H), jnp.float32)
    beta = jnp.zeros((1, H), jnp.float32)
    return (wk, wv, wq, wf, bf, gamma, beta)


def init_anp_params(key, H, input_dim):
    ks = iter(jax.random.split(key, 30))
    nxt = lambda: next(ks)

    def lin(i_dim, o_dim, gain=1.0):
        return (_xavier_uniform(nxt(), i_dim, o_dim, gain),
                _linear_bias(nxt(), i_dim, o_dim))

    params = {}
    # latent encoder
    params["lat_input"] = lin(input_dim, H)
    params["lat_attn"] = [init_attention_params(nxt(), H) for _ in range(2)]
    params["penultimate"] = lin(H, H, RELU_GAIN)
    params["mu"] = lin(H, H)
    params["log_sigma"] = lin(H, H)
    # deterministic encoder
    params["det_input"] = lin(input_dim, H)
    params["det_self_attn"] = [init_attention_params(nxt(), H) for _ in range(2)]
    params["det_cross_attn"] = [init_attention_params(nxt(), H) for _ in range(2)]
    params["context_proj"] = lin(input_dim - 1, H)
    params["target_proj"] = lin(input_dim - 1, H)
    # decoder
    params["dec_target_proj"] = lin(input_dim - 1, H)
    params["dec_linears"] = [lin(3 * H, 3 * H, RELU_GAIN) for _ in range(3)]
    params["dec_final"] = lin(3 * H, 1)
    return params


# --------------------------------------------------------------------------- #
# One-time host-side packing (hoisted out of the per-call jitted path)
# --------------------------------------------------------------------------- #
def pack_anp_params(params, nh=NUM_HEADS):
    H = params["mu"][0].shape[0]
    d = H // nh
    scale = 1.0 / math.sqrt(d)
    bf16 = jnp.bfloat16

    blocks = params["lat_attn"] + params["det_self_attn"] + params["det_cross_attn"]
    p = {}
    # lane-dense stacked attention weights (nb, H, H); score scale folded into Wq
    p["wq"] = (jnp.stack([b[2] for b in blocks]) * scale).astype(bf16)
    p["wk"] = jnp.stack([b[0] for b in blocks]).astype(bf16)
    p["wv"] = jnp.stack([b[1] for b in blocks]).astype(bf16)
    p["wfr"] = jnp.stack([b[3][:H] for b in blocks]).astype(bf16)   # residual half of wf
    p["wfa"] = jnp.stack([b[3][H:] for b in blocks]).astype(bf16)   # attention half of wf
    p["bf"] = jnp.stack([b[4] for b in blocks])                     # (nb, 1, H) f32
    p["gam"] = jnp.stack([b[5] for b in blocks])
    p["bet"] = jnp.stack([b[6] for b in blocks])

    # tiny-K input projections stay f32 (VPU mul-adds in the kernel)
    p["lin_w"], p["lin_b"] = params["lat_input"]
    p["din_w"], p["din_b"] = params["det_input"]
    p["ctx_w"], p["ctx_b"] = params["context_proj"]
    p["tgt_w"], p["tgt_b"] = params["target_proj"]
    p["dtg_w"], p["dtg_b"] = params["dec_target_proj"]

    # MXU linears: bf16 weights, f32 biases
    p["pen_w"], p["pen_b"] = params["penultimate"][0].astype(bf16), params["penultimate"][1]
    p["mu_w"], p["mu_b"] = params["mu"][0].astype(bf16), params["mu"][1]
    p["ls_w"], p["ls_b"] = params["log_sigma"][0].astype(bf16), params["log_sigma"][1]

    (dw1, db1), (dw2, db2), (dw3, db3) = params["dec_linears"]
    p["dw1r"] = dw1[0:H].astype(bf16)         # rows multiplying r
    p["dw1z"] = dw1[H:2 * H].astype(bf16)     # rows multiplying z
    p["dw1t"] = dw1[2 * H:3 * H].astype(bf16)  # rows multiplying target projection
    p["db1"] = db1
    p["dw2"], p["db2"] = dw2.astype(bf16), db2
    p["dw3"], p["db3"] = dw3.astype(bf16), db3

    dwf, dbf = params["dec_final"]
    p["dwf"] = dwf.reshape(1, 3 * H)          # (1, 3H) f32 row for the VPU lane reduce
    p["dbf"] = dbf                            # (1, 1)
    return p


# --------------------------------------------------------------------------- #
# Wrapper
# --------------------------------------------------------------------------- #
def _batch_spec(shape):
    ndim = len(shape)

    def index_map(b):
        return (b,) + (0,) * (ndim - 1)

    return pl.BlockSpec((1,) + tuple(shape[1:]), index_map)


def _resident_spec(shape):
    ndim = len(shape)

    def index_map(b):
        return (0,) * ndim

    return pl.BlockSpec(tuple(shape), index_map)


def anp_forward(context_x, context_y, target_x, eps, packed):
    """Full AttentiveNeuralProcess forward. Returns y_pred of shape (B, Nt, 1)."""
    B, Nc, _ = context_x.shape
    Nt = target_x.shape[1]
    H = packed["pen_w"].shape[0]
    nh = NUM_HEADS

    cx = context_x.astype(jnp.float32)
    cy = context_y.astype(jnp.float32)
    tx = target_x.astype(jnp.float32)
    eps3 = eps.astype(jnp.float32).reshape(B, 1, H)

    data_args = (cx, cy, tx, eps3)
    weight_args = tuple(packed[k] for k in WEIGHT_KEYS)

    in_specs = ([_batch_spec(a.shape) for a in data_args]
                + [_resident_spec(a.shape) for a in weight_args])
    out_spec = pl.BlockSpec((1, Nt, 1), lambda b: (b, 0, 0))

    kernel = functools.partial(_anp_kernel, Nc=Nc, Nt=Nt, H=H, nh=nh)
    y = pl.pallas_call(
        kernel,
        grid=(B,),
        out_shape=jax.ShapeDtypeStruct((B, Nt, 1), jnp.float32),
        in_specs=in_specs,
        out_specs=out_spec,
        compiler_params=pltpu.CompilerParams(
            dimension_semantics=("parallel",)),
    )(*data_args, *weight_args)
    return y


# --------------------------------------------------------------------------- #
if __name__ == "__main__":
    num_hidden = 32          # d_model; must be divisible by NUM_HEADS
    input_dim = 3            # context_x dim = input_dim - 1 = 2, context_y dim = 1
    B, Nc, Nt = 2, 8, 8

    key = jax.random.PRNGKey(0)
    k_cx, k_cy, k_tx, k_eps, k_params = jax.random.split(key, 5)

    context_x = jax.random.normal(k_cx, (B, Nc, input_dim - 1), jnp.float32)
    context_y = jax.random.normal(k_cy, (B, Nc, 1), jnp.float32)
    target_x = jax.random.normal(k_tx, (B, Nt, input_dim - 1), jnp.float32)
    # eps ~ N(0,1) for the latent reparameterization (torch.randn_like in the spec)
    eps = jax.random.normal(k_eps, (B, num_hidden), jnp.float32)

    params = init_anp_params(k_params, num_hidden, input_dim)
    packed = pack_anp_params(params)   # one-time weight packing, outside the jitted path

    fwd = jax.jit(anp_forward)
    y_pred = fwd(context_x, context_y, target_x, eps, packed)
    y_pred = jax.block_until_ready(y_pred)
    assert y_pred.shape == (B, Nt, 1), y_pred.shape
    assert bool(jnp.all(jnp.isfinite(y_pred)))
    print("KERNEL_OK")
</pallas_src>

<mosaic_0001>
module attributes {stable_mosaic.version = 11 : i64} {
  func.func @_anp_kernel(%arg0: i32, %arg1: memref<1x8x2xf32, #tpu.memory_space<vmem>>, %arg2: memref<1x8x1xf32, #tpu.memory_space<vmem>>, %arg3: memref<1x8x2xf32, #tpu.memory_space<vmem>>, %arg4: memref<1x1x32xf32, #tpu.memory_space<vmem>>, %arg5: memref<6x32x32xbf16, #tpu.memory_space<vmem>>, %arg6: memref<6x32x32xbf16, #tpu.memory_space<vmem>>, %arg7: memref<6x32x32xbf16, #tpu.memory_space<vmem>>, %arg8: memref<6x32x32xbf16, #tpu.memory_space<vmem>>, %arg9: memref<6x32x32xbf16, #tpu.memory_space<vmem>>, %arg10: memref<6x1x32xf32, #tpu.memory_space<vmem>>, %arg11: memref<6x1x32xf32, #tpu.memory_space<vmem>>, %arg12: memref<6x1x32xf32, #tpu.memory_space<vmem>>, %arg13: memref<3x32xf32, #tpu.memory_space<vmem>>, %arg14: memref<1x32xf32, #tpu.memory_space<vmem>>, %arg15: memref<32x32xbf16, #tpu.memory_space<vmem>>, %arg16: memref<1x32xf32, #tpu.memory_space<vmem>>, %arg17: memref<32x32xbf16, #tpu.memory_space<vmem>>, %arg18: memref<1x32xf32, #tpu.memory_space<vmem>>, %arg19: memref<32x32xbf16, #tpu.memory_space<vmem>>, %arg20: memref<1x32xf32, #tpu.memory_space<vmem>>, %arg21: memref<3x32xf32, #tpu.memory_space<vmem>>, %arg22: memref<1x32xf32, #tpu.memory_space<vmem>>, %arg23: memref<2x32xf32, #tpu.memory_space<vmem>>, %arg24: memref<1x32xf32, #tpu.memory_space<vmem>>, %arg25: memref<2x32xf32, #tpu.memory_space<vmem>>, %arg26: memref<1x32xf32, #tpu.memory_space<vmem>>, %arg27: memref<2x32xf32, #tpu.memory_space<vmem>>, %arg28: memref<1x32xf32, #tpu.memory_space<vmem>>, %arg29: memref<32x96xbf16, #tpu.memory_space<vmem>>, %arg30: memref<32x96xbf16, #tpu.memory_space<vmem>>, %arg31: memref<32x96xbf16, #tpu.memory_space<vmem>>, %arg32: memref<1x96xf32, #tpu.memory_space<vmem>>, %arg33: memref<96x96xbf16, #tpu.memory_space<vmem>>, %arg34: memref<1x96xf32, #tpu.memory_space<vmem>>, %arg35: memref<96x96xbf16, #tpu.memory_space<vmem>>, %arg36: memref<1x96xf32, #tpu.memory_space<vmem>>, %arg37: memref<1x96xf32, #tpu.memory_space<vmem>>, %arg38: memref<1x1xf32, #tpu.memory_space<vmem>>, %arg39: memref<1x8x1xf32, #tpu.memory_space<vmem>>) attributes {dimension_semantics = [#tpu.dimension_semantics<parallel>], iteration_bounds = array<i64: 2>, scalar_prefetch = 0 : i64, scratch_operands = 0 : i64, tpu.core_type = #tpu.core_type<tc>, window_params = [{transform_indices = @transform_0, window_bounds = array<i64: 1, 8, 2>}, {transform_indices = @transform_1, window_bounds = array<i64: 1, 8, 1>}, {transform_indices = @transform_2, window_bounds = array<i64: 1, 8, 2>}, {transform_indices = @transform_3, window_bounds = array<i64: 1, 1, 32>}, {pipeline_mode = #tpu.pipeline_mode<synchronous>, transform_indices = @transform_4, window_bounds = array<i64: 6, 32, 32>}, {pipeline_mode = #tpu.pipeline_mode<synchronous>, transform_indices = @transform_5, window_bounds = array<i64: 6, 32, 32>}, {pipeline_mode = #tpu.pipeline_mode<synchronous>, transform_indices = @transform_6, window_bounds = array<i64: 6, 32, 32>}, {pipeline_mode = #tpu.pipeline_mode<synchronous>, transform_indices = @transform_7, window_bounds = array<i64: 6, 32, 32>}, {pipeline_mode = #tpu.pipeline_mode<synchronous>, transform_indices = @transform_8, window_bounds = array<i64: 6, 32, 32>}, {pipeline_mode = #tpu.pipeline_mode<synchronous>, transform_indices = @transform_9, window_bounds = array<i64: 6, 1, 32>}, {pipeline_mode = #tpu.pipeline_mode<synchronous>, transform_indices = @transform_10, window_bounds = array<i64: 6, 1, 32>}, {pipeline_mode = #tpu.pipeline_mode<synchronous>, transform_indices = @transform_11, window_bounds = array<i64: 6, 1, 32>}, {pipeline_mode = #tpu.pipeline_mode<synchronous>, transform_indices = @transform_12, window_bounds = array<i64: 3, 32>}, {pipeline_mode = #tpu.pipeline_mode<synchronous>, transform_indices = @transform_13, window_bounds = array<i64: 1, 32>}, {pipeline_mode = #tpu.pipeline_mode<synchronous>, transform_indices = @transform_14, window_bounds = array<i64: 32, 32>}, {pipeline_mode = #tpu.pipeline_mode<synchronous>, transform_indices = @transform_15, window_bounds = array<i64: 1, 32>}, {pipeline_mode = #tpu.pipeline_mode<synchronous>, transform_indices = @transform_16, window_bounds = array<i64: 32, 32>}, {pipeline_mode = #tpu.pipeline_mode<synchronous>, transform_indices = @transform_17, window_bounds = array<i64: 1, 32>}, {pipeline_mode = #tpu.pipeline_mode<synchronous>, transform_indices = @transform_18, window_bounds = array<i64: 32, 32>}, {pipeline_mode = #tpu.pipeline_mode<synchronous>, transform_indices = @transform_19, window_bounds = array<i64: 1, 32>}, {pipeline_mode = #tpu.pipeline_mode<synchronous>, transform_indices = @transform_20, window_bounds = array<i64: 3, 32>}, {pipeline_mode = #tpu.pipeline_mode<synchronous>, transform_indices = @transform_21, window_bounds = array<i64: 1, 32>}, {pipeline_mode = #tpu.pipeline_mode<synchronous>, transform_indices = @transform_22, window_bounds = array<i64: 2, 32>}, {pipeline_mode = #tpu.pipeline_mode<synchronous>, transform_indices = @transform_23, window_bounds = array<i64: 1, 32>}, {pipeline_mode = #tpu.pipeline_mode<synchronous>, transform_indices = @transform_24, window_bounds = array<i64: 2, 32>}, {pipeline_mode = #tpu.pipeline_mode<synchronous>, transform_indices = @transform_25, window_bounds = array<i64: 1, 32>}, {pipeline_mode = #tpu.pipeline_mode<synchronous>, transform_indices = @transform_26, window_bounds = array<i64: 2, 32>}, {pipeline_mode = #tpu.pipeline_mode<synchronous>, transform_indices = @transform_27, window_bounds = array<i64: 1, 32>}, {pipeline_mode = #tpu.pipeline_mode<synchronous>, transform_indices = @transform_28, window_bounds = array<i64: 32, 96>}, {pipeline_mode = #tpu.pipeline_mode<synchronous>, transform_indices = @transform_29, window_bounds = array<i64: 32, 96>}, {pipeline_mode = #tpu.pipeline_mode<synchronous>, transform_indices = @transform_30, window_bounds = array<i64: 32, 96>}, {pipeline_mode = #tpu.pipeline_mode<synchronous>, transform_indices = @transform_31, window_bounds = array<i64: 1, 96>}, {pipeline_mode = #tpu.pipeline_mode<synchronous>, transform_indices = @transform_32, window_bounds = array<i64: 96, 96>}, {pipeline_mode = #tpu.pipeline_mode<synchronous>, transform_indices = @transform_33, window_bounds = array<i64: 1, 96>}, {pipeline_mode = #tpu.pipeline_mode<synchronous>, transform_indices = @transform_34, window_bounds = array<i64: 96, 96>}, {pipeline_mode = #tpu.pipeline_mode<synchronous>, transform_indices = @transform_35, window_bounds = array<i64: 1, 96>}, {pipeline_mode = #tpu.pipeline_mode<synchronous>, transform_indices = @transform_36, window_bounds = array<i64: 1, 96>}, {pipeline_mode = #tpu.pipeline_mode<synchronous>, transform_indices = @transform_37, window_bounds = array<i64: 1, 1>}, {transform_indices = @transform_38, window_bounds = array<i64: 1, 8, 1>}]} {
    %c0 = arith.constant 0 : index
    %c0_0 = arith.constant 0 : index
    %c0_1 = arith.constant 0 : index
    %0 = vector.load %arg1[%c0, %c0_0, %c0_1] : memref<1x8x2xf32, #tpu.memory_space<vmem>>, vector<1x8x2xf32>
    %1 = vector.shape_cast %0 : vector<1x8x2xf32> to vector<8x2xf32>
    %c0_2 = arith.constant 0 : index
    %c0_3 = arith.constant 0 : index
    %c0_4 = arith.constant 0 : index
    %2 = vector.load %arg2[%c0_2, %c0_3, %c0_4] : memref<1x8x1xf32, #tpu.memory_space<vmem>>, vector<1x8x1xf32>
    %3 = vector.shape_cast %2 : vector<1x8x1xf32> to vector<8x1xf32>
    %c0_5 = arith.constant 0 : index
    %c0_6 = arith.constant 0 : index
    %c0_7 = arith.constant 0 : index
    %4 = vector.load %arg3[%c0_5, %c0_6, %c0_7] : memref<1x8x2xf32, #tpu.memory_space<vmem>>, vector<1x8x2xf32>
    %5 = vector.shape_cast %4 : vector<1x8x2xf32> to vector<8x2xf32>
    %c0_8 = arith.constant 0 : index
    %c0_9 = arith.constant 0 : index
    %c0_10 = arith.constant 0 : index
    %6 = vector.load %arg4[%c0_8, %c0_9, %c0_10] : memref<1x1x32xf32, #tpu.memory_space<vmem>>, vector<1x1x32xf32>
    %7 = vector.shape_cast %6 : vector<1x1x32xf32> to vector<1x32xf32>
    %8 = vector.extract_strided_slice %1 {offsets = [0, 0], sizes = [8, 1], strides = [1, 1]} : vector<8x2xf32> to vector<8x1xf32>
    %9 = vector.extract_strided_slice %1 {offsets = [0, 1], sizes = [8, 1], strides = [1, 1]} : vector<8x2xf32> to vector<8x1xf32>
    %10 = vector.extract_strided_slice %5 {offsets = [0, 0], sizes = [8, 1], strides = [1, 1]} : vector<8x2xf32> to vector<8x1xf32>
    %11 = vector.extract_strided_slice %5 {offsets = [0, 1], sizes = [8, 1], strides = [1, 1]} : vector<8x2xf32> to vector<8x1xf32>
    %c0_11 = arith.constant 0 : index
    %c0_12 = arith.constant 0 : index
    %12 = vector.load %arg13[%c0_11, %c0_12] : memref<3x32xf32, #tpu.memory_space<vmem>>, vector<3x32xf32>
    %13 = vector.extract_strided_slice %12 {offsets = [0, 0], sizes = [1, 32], strides = [1, 1]} : vector<3x32xf32> to vector<1x32xf32>
    %14 = vector.broadcast %8 : vector<8x1xf32> to vector<8x32xf32>
    %15 = vector.broadcast %13 : vector<1x32xf32> to vector<8x32xf32>
    %16 = arith.mulf %14, %15 : vector<8x32xf32>
    %17 = vector.extract_strided_slice %12 {offsets = [1, 0], sizes = [1, 32], strides = [1, 1]} : vector<3x32xf32> to vector<1x32xf32>
    %18 = vector.broadcast %9 : vector<8x1xf32> to vector<8x32xf32>
    %19 = vector.broadcast %17 : vector<1x32xf32> to vector<8x32xf32>
    %20 = arith.mulf %18, %19 : vector<8x32xf32>
    %21 = arith.addf %16, %20 : vector<8x32xf32>
    %22 = vector.extract_strided_slice %12 {offsets = [2, 0], sizes = [1, 32], strides = [1, 1]} : vector<3x32xf32> to vector<1x32xf32>
    %23 = vector.broadcast %3 : vector<8x1xf32> to vector<8x32xf32>
    %24 = vector.broadcast %22 : vector<1x32xf32> to vector<8x32xf32>
    %25 = arith.mulf %23, %24 : vector<8x32xf32>
    %26 = arith.addf %21, %25 : vector<8x32xf32>
    %c0_13 = arith.constant 0 : index
    %c0_14 = arith.constant 0 : index
    %27 = vector.load %arg14[%c0_13, %c0_14] : memref<1x32xf32, #tpu.memory_space<vmem>>, vector<1x32xf32>
    %28 = vector.broadcast %27 : vector<1x32xf32> to vector<8x32xf32>
    %29 = arith.addf %26, %28 : vector<8x32xf32>
    %c0_15 = arith.constant 0 : index
    %c0_16 = arith.constant 0 : index
    %c0_17 = arith.constant 0 : index
    %30 = vector.load %arg5[%c0_15, %c0_16, %c0_17] : memref<6x32x32xbf16, #tpu.memory_space<vmem>>, vector<1x32x32xbf16>
    %31 = vector.shape_cast %30 : vector<1x32x32xbf16> to vector<32x32xbf16>
    %32 = arith.truncf %29 : vector<8x32xf32> to vector<8x32xbf16>
    %cst = arith.constant dense<0.000000e+00> : vector<8x32xf32>
    %33 = tpu.matmul %32, %31, %cst {dimension_numbers = #tpu.dot_dimension_numbers<[1], [0], [0], [1], [0, 0, 1, 1], [], []>} : vector<8x32xbf16>, vector<32x32xbf16>, vector<8x32xf32> -> vector<8x32xf32>
    %c0_18 = arith.constant 0 : index
    %c0_19 = arith.constant 0 : index
    %c0_20 = arith.constant 0 : index
    %34 = vector.load %arg6[%c0_18, %c0_19, %c0_20] : memref<6x32x32xbf16, #tpu.memory_space<vmem>>, vector<1x32x32xbf16>
    %35 = vector.shape_cast %34 : vector<1x32x32xbf16> to vector<32x32xbf16>
    %36 = arith.truncf %29 : vector<8x32xf32> to vector<8x32xbf16>
    %cst_21 = arith.constant dense<0.000000e+00> : vector<8x32xf32>
    %37 = tpu.matmul %36, %35, %cst_21 {dimension_numbers = #tpu.dot_dimension_numbers<[1], [0], [0], [1], [0, 0, 1, 1], [], []>} : vector<8x32xbf16>, vector<32x32xbf16>, vector<8x32xf32> -> vector<8x32xf32>
    %c0_22 = arith.constant 0 : index
    %c0_23 = arith.constant 0 : index
    %c0_24 = arith.constant 0 : index
    %38 = vector.load %arg7[%c0_22, %c0_23, %c0_24] : memref<6x32x32xbf16, #tpu.memory_space<vmem>>, vector<1x32x32xbf16>
    %39 = vector.shape_cast %38 : vector<1x32x32xbf16> to vector<32x32xbf16>
    %40 = arith.truncf %29 : vector<8x32xf32> to vector<8x32xbf16>
    %cst_25 = arith.constant dense<0.000000e+00> : vector<8x32xf32>
    %41 = tpu.matmul %40, %39, %cst_25 {dimension_numbers = #tpu.dot_dimension_numbers<[1], [0], [0], [1], [0, 0, 1, 1], [], []>} : vector<8x32xbf16>, vector<32x32xbf16>, vector<8x32xf32> -> vector<8x32xf32>
    %42 = vector.extract_strided_slice %33 {offsets = [0, 0], sizes = [8, 8], strides = [1, 1]} : vector<8x32xf32> to vector<8x8xf32>
    %43 = vector.extract_strided_slice %37 {offsets = [0, 0], sizes = [8, 8], strides = [1, 1]} : vector<8x32xf32> to vector<8x8xf32>
    %44 = vector.extract_strided_slice %41 {offsets = [0, 0], sizes = [8, 8], strides = [1, 1]} : vector<8x32xf32> to vector<8x8xf32>
    "tpu.trace_start"() <{level = 10 : i32, message = "qd,kd->qk"}> : () -> ()
    %cst_26 = arith.constant dense<0.000000e+00> : vector<8x8xf32>
    %45 = tpu.matmul %42, %43, %cst_26 {dimension_numbers = #tpu.dot_dimension_numbers<[1], [1], [0], [0], [0, 0, 1, 0], [], []>} : vector<8x8xf32>, vector<8x8xf32>, vector<8x8xf32> -> vector<8x8xf32>
    "tpu.trace_stop"() : () -> ()
    %cst_27 = arith.constant dense<0xFF800000> : vector<8xf32>
    %46 = vector.multi_reduction <maximumf>, %45, %cst_27 [1] : vector<8x8xf32> to vector<8xf32>
    %47 = vector.shape_cast %46 : vector<8xf32> to vector<8x1xf32>
    %48 = vector.broadcast %47 : vector<8x1xf32> to vector<8x8xf32>
    %49 = arith.subf %45, %48 : vector<8x8xf32>
    %50 = math.exp %49 : vector<8x8xf32>
    %cst_28 = arith.constant dense<0.000000e+00> : vector<8xf32>
    %51 = vector.multi_reduction <add>, %50, %cst_28 [1] : vector<8x8xf32> to vector<8xf32>
    %52 = vector.shape_cast %51 : vector<8xf32> to vector<8x1xf32>
    %53 = vector.broadcast %52 : vector<8x1xf32> to vector<8x8xf32>
    %54 = arith.divf %50, %53 : vector<8x8xf32>
    %cst_29 = arith.constant dense<0.000000e+00> : vector<8x8xf32>
    %55 = tpu.matmul %54, %44, %cst_29 {dimension_numbers = #tpu.dot_dimension_numbers<[1], [0], [0], [1], [0, 0, 1, 1], [], []>} : vector<8x8xf32>, vector<8x8xf32>, vector<8x8xf32> -> vector<8x8xf32>
    %56 = vector.extract_strided_slice %33 {offsets = [0, 8], sizes = [8, 8], strides = [1, 1]} : vector<8x32xf32> to vector<8x8xf32>
    %57 = vector.extract_strided_slice %37 {offsets = [0, 8], sizes = [8, 8], strides = [1, 1]} : vector<8x32xf32> to vector<8x8xf32>
    %58 = vector.extract_strided_slice %41 {offsets = [0, 8], sizes = [8, 8], strides = [1, 1]} : vector<8x32xf32> to vector<8x8xf32>
    "tpu.trace_start"() <{level = 10 : i32, message = "qd,kd->qk"}> : () -> ()
    %cst_30 = arith.constant dense<0.000000e+00> : vector<8x8xf32>
    %59 = tpu.matmul %56, %57, %cst_30 {dimension_numbers = #tpu.dot_dimension_numbers<[1], [1], [0], [0], [0, 0, 1, 0], [], []>} : vector<8x8xf32>, vector<8x8xf32>, vector<8x8xf32> -> vector<8x8xf32>
    "tpu.trace_stop"() : () -> ()
    %cst_31 = arith.constant dense<0xFF800000> : vector<8xf32>
    %60 = vector.multi_reduction <maximumf>, %59, %cst_31 [1] : vector<8x8xf32> to vector<8xf32>
    %61 = vector.shape_cast %60 : vector<8xf32> to vector<8x1xf32>
    %62 = vector.broadcast %61 : vector<8x1xf32> to vector<8x8xf32>
    %63 = arith.subf %59, %62 : vector<8x8xf32>
    %64 = math.exp %63 : vector<8x8xf32>
    %cst_32 = arith.constant dense<0.000000e+00> : vector<8xf32>
    %65 = vector.multi_reduction <add>, %64, %cst_32 [1] : vector<8x8xf32> to vector<8xf32>
    %66 = vector.shape_cast %65 : vector<8xf32> to vector<8x1xf32>
    %67 = vector.broadcast %66 : vector<8x1xf32> to vector<8x8xf32>
    %68 = arith.divf %64, %67 : vector<8x8xf32>
    %cst_33 = arith.constant dense<0.000000e+00> : vector<8x8xf32>
    %69 = tpu.matmul %68, %58, %cst_33 {dimension_numbers = #tpu.dot_dimension_numbers<[1], [0], [0], [1], [0, 0, 1, 1], [], []>} : vector<8x8xf32>, vector<8x8xf32>, vector<8x8xf32> -> vector<8x8xf32>
    %70 = vector.extract_strided_slice %33 {offsets = [0, 16], sizes = [8, 8], strides = [1, 1]} : vector<8x32xf32> to vector<8x8xf32>
    %71 = vector.extract_strided_slice %37 {offsets = [0, 16], sizes = [8, 8], strides = [1, 1]} : vector<8x32xf32> to vector<8x8xf32>
    %72 = vector.extract_strided_slice %41 {offsets = [0, 16], sizes = [8, 8], strides = [1, 1]} : vector<8x32xf32> to vector<8x8xf32>
    "tpu.trace_start"() <{level = 10 : i32, message = "qd,kd->qk"}> : () -> ()
    %cst_34 = arith.constant dense<0.000000e+00> : vector<8x8xf32>
    %73 = tpu.matmul %70, %71, %cst_34 {dimension_numbers = #tpu.dot_dimension_numbers<[1], [1], [0], [0], [0, 0, 1, 0], [], []>} : vector<8x8xf32>, vector<8x8xf32>, vector<8x8xf32> -> vector<8x8xf32>
    "tpu.trace_stop"() : () -> ()
    %cst_35 = arith.constant dense<0xFF800000> : vector<8xf32>
    %74 = vector.multi_reduction <maximumf>, %73, %cst_35 [1] : vector<8x8xf32> to vector<8xf32>
    %75 = vector.shape_cast %74 : vector<8xf32> to vector<8x1xf32>
    %76 = vector.broadcast %75 : vector<8x1xf32> to vector<8x8xf32>
    %77 = arith.subf %73, %76 : vector<8x8xf32>
    %78 = math.exp %77 : vector<8x8xf32>
    %cst_36 = arith.constant dense<0.000000e+00> : vector<8xf32>
    %79 = vector.multi_reduction <add>, %78, %cst_36 [1] : vector<8x8xf32> to vector<8xf32>
    %80 = vector.shape_cast %79 : vector<8xf32> to vector<8x1xf32>
    %81 = vector.broadcast %80 : vector<8x1xf32> to vector<8x8xf32>
    %82 = arith.divf %78, %81 : vector<8x8xf32>
    %cst_37 = arith.constant dense<0.000000e+00> : vector<8x8xf32>
    %83 = tpu.matmul %82, %72, %cst_37 {dimension_numbers = #tpu.dot_dimension_numbers<[1], [0], [0], [1], [0, 0, 1, 1], [], []>} : vector<8x8xf32>, vector<8x8xf32>, vector<8x8xf32> -> vector<8x8xf32>
    %84 = vector.extract_strided_slice %33 {offsets = [0, 24], sizes = [8, 8], strides = [1, 1]} : vector<8x32xf32> to vector<8x8xf32>
    %85 = vector.extract_strided_slice %37 {offsets = [0, 24], sizes = [8, 8], strides = [1, 1]} : vector<8x32xf32> to vector<8x8xf32>
    %86 = vector.extract_strided_slice %41 {offsets = [0, 24], sizes = [8, 8], strides = [1, 1]} : vector<8x32xf32> to vector<8x8xf32>
    "tpu.trace_start"() <{level = 10 : i32, message = "qd,kd->qk"}> : () -> ()
    %cst_38 = arith.constant dense<0.000000e+00> : vector<8x8xf32>
    %87 = tpu.matmul %84, %85, %cst_38 {dimension_numbers = #tpu.dot_dimension_numbers<[1], [1], [0], [0], [0, 0, 1, 0], [], []>} : vector<8x8xf32>, vector<8x8xf32>, vector<8x8xf32> -> vector<8x8xf32>
    "tpu.trace_stop"() : () -> ()
    %cst_39 = arith.constant dense<0xFF800000> : vector<8xf32>
    %88 = vector.multi_reduction <maximumf>, %87, %cst_39 [1] : vector<8x8xf32> to vector<8xf32>
    %89 = vector.shape_cast %88 : vector<8xf32> to vector<8x1xf32>
    %90 = vector.broadcast %89 : vector<8x1xf32> to vector<8x8xf32>
    %91 = arith.subf %87, %90 : vector<8x8xf32>
    %92 = math.exp %91 : vector<8x8xf32>
    %cst_40 = arith.constant dense<0.000000e+00> : vector<8xf32>
    %93 = vector.multi_reduction <add>, %92, %cst_40 [1] : vector<8x8xf32> to vector<8xf32>
    %94 = vector.shape_cast %93 : vector<8xf32> to vector<8x1xf32>
    %95 = vector.broadcast %94 : vector<8x1xf32> to vector<8x8xf32>
    %96 = arith.divf %92, %95 : vector<8x8xf32>
    %cst_41 = arith.constant dense<0.000000e+00> : vector<8x8xf32>
    %97 = tpu.matmul %96, %86, %cst_41 {dimension_numbers = #tpu.dot_dimension_numbers<[1], [0], [0], [1], [0, 0, 1, 1], [], []>} : vector<8x8xf32>, vector<8x8xf32>, vector<8x8xf32> -> vector<8x8xf32>
    %98 = tpu.concatenate %55, %69, %83, %97 in 1 : vector<8x8xf32>, vector<8x8xf32>, vector<8x8xf32>, vector<8x8xf32> -> vector<8x32xf32>
    %c0_42 = arith.constant 0 : index
    %c0_43 = arith.constant 0 : index
    %c0_44 = arith.constant 0 : index
    %99 = vector.load %arg8[%c0_42, %c0_43, %c0_44] : memref<6x32x32xbf16, #tpu.memory_space<vmem>>, vector<1x32x32xbf16>
    %100 = vector.shape_cast %99 : vector<1x32x32xbf16> to vector<32x32xbf16>
    %101 = arith.truncf %29 : vector<8x32xf32> to vector<8x32xbf16>
    %cst_45 = arith.constant dense<0.000000e+00> : vector<8x32xf32>
    %102 = tpu.matmul %101, %100, %cst_45 {dimension_numbers = #tpu.dot_dimension_numbers<[1], [0], [0], [1], [0, 0, 1, 1], [], []>} : vector<8x32xbf16>, vector<32x32xbf16>, vector<8x32xf32> -> vector<8x32xf32>
    %c0_46 = arith.constant 0 : index
    %c0_47 = arith.constant 0 : index
    %c0_48 = arith.constant 0 : index
    %103 = vector.load %arg9[%c0_46, %c0_47, %c0_48] : memref<6x32x32xbf16, #tpu.memory_space<vmem>>, vector<1x32x32xbf16>
    %104 = vector.shape_cast %103 : vector<1x32x32xbf16> to vector<32x32xbf16>
    %105 = arith.truncf %98 : vector<8x32xf32> to vector<8x32xbf16>
    %cst_49 = arith.constant dense<0.000000e+00> : vector<8x32xf32>
    %106 = tpu.matmul %105, %104, %cst_49 {dimension_numbers = #tpu.dot_dimension_numbers<[1], [0], [0], [1], [0, 0, 1, 1], [], []>} : vector<8x32xbf16>, vector<32x32xbf16>, vector<8x32xf32> -> vector<8x32xf32>
    %107 = arith.addf %102, %106 : vector<8x32xf32>
    %c0_50 = arith.constant 0 : index
    %c0_51 = arith.constant 0 : index
    %c0_52 = arith.constant 0 : index
    %108 = vector.load %arg10[%c0_50, %c0_51, %c0_52] : memref<6x1x32xf32, #tpu.memory_space<vmem>>, vector<1x1x32xf32>
    %109 = vector.shape_cast %108 : vector<1x1x32xf32> to vector<1x32xf32>
    %110 = vector.broadcast %109 : vector<1x32xf32> to vector<8x32xf32>
    %111 = arith.addf %107, %110 : vector<8x32xf32>
    %112 = arith.addf %111, %29 : vector<8x32xf32>
    %c0_53 = arith.constant 0 : index
    %c0_54 = arith.constant 0 : index
    %c0_55 = arith.constant 0 : index
    %113 = vector.load %arg11[%c0_53, %c0_54, %c0_55] : memref<6x1x32xf32, #tpu.memory_space<vmem>>, vector<1x1x32xf32>
    %114 = vector.shape_cast %113 : vector<1x1x32xf32> to vector<1x32xf32>
    %c0_56 = arith.constant 0 : index
    %c0_57 = arith.constant 0 : index
    %c0_58 = arith.constant 0 : index
    %115 = vector.load %arg12[%c0_56, %c0_57, %c0_58] : memref<6x1x32xf32, #tpu.memory_space<vmem>>, vector<1x1x32xf32>
    %116 = vector.shape_cast %115 : vector<1x1x32xf32> to vector<1x32xf32>
    %cst_59 = arith.constant dense<0.000000e+00> : vector<8xf32>
    %117 = vector.multi_reduction <add>, %112, %cst_59 [1] : vector<8x32xf32> to vector<8xf32>
    %118 = vector.shape_cast %117 : vector<8xf32> to vector<8x1xf32>
    %cst_60 = arith.constant 3.200000e+01 : f32
    %119 = vector.broadcast %cst_60 : f32 to vector<8x1xf32>
    %120 = arith.divf %118, %119 : vector<8x1xf32>
    %121 = vector.broadcast %120 : vector<8x1xf32> to vector<8x32xf32>
    %122 = arith.subf %112, %121 : vector<8x32xf32>
    %123 = arith.mulf %122, %122 : vector<8x32xf32>
    %cst_61 = arith.constant dense<0.000000e+00> : vector<8xf32>
    %124 = vector.multi_reduction <add>, %123, %cst_61 [1] : vector<8x32xf32> to vector<8xf32>
    %125 = vector.shape_cast %124 : vector<8xf32> to vector<8x1xf32>
    %cst_62 = arith.constant 3.200000e+01 : f32
    %126 = vector.broadcast %cst_62 : f32 to vector<8x1xf32>
    %127 = arith.divf %125, %126 : vector<8x1xf32>
    %128 = vector.broadcast %120 : vector<8x1xf32> to vector<8x32xf32>
    %129 = arith.subf %112, %128 : vector<8x32xf32>
    %cst_63 = arith.constant 9.99999974E-6 : f32
    %130 = vector.broadcast %cst_63 : f32 to vector<8x1xf32>
    %131 = arith.addf %127, %130 : vector<8x1xf32>
    %132 = math.rsqrt %131 : vector<8x1xf32>
    %133 = vector.broadcast %132 : vector<8x1xf32> to vector<8x32xf32>
    %134 = arith.mulf %129, %133 : vector<8x32xf32>
    %135 = vector.broadcast %114 : vector<1x32xf32> to vector<8x32xf32>
    %136 = arith.mulf %134, %135 : vector<8x32xf32>
    %137 = vector.broadcast %116 : vector<1x32xf32> to vector<8x32xf32>
    %138 = arith.addf %136, %137 : vector<8x32xf32>
    %c1 = arith.constant 1 : index
    %c0_64 = arith.constant 0 : index
    %c0_65 = arith.constant 0 : index
    %139 = vector.load %arg5[%c1, %c0_64, %c0_65] : memref<6x32x32xbf16, #tpu.memory_space<vmem>>, vector<1x32x32xbf16>
    %140 = vector.shape_cast %139 : vector<1x32x32xbf16> to vector<32x32xbf16>
    %141 = arith.truncf %138 : vector<8x32xf32> to vector<8x32xbf16>
    %cst_66 = arith.constant dense<0.000000e+00> : vector<8x32xf32>
    %142 = tpu.matmul %141, %140, %cst_66 {dimension_numbers = #tpu.dot_dimension_numbers<[1], [0], [0], [1], [0, 0, 1, 1], [], []>} : vector<8x32xbf16>, vector<32x32xbf16>, vector<8x32xf32> -> vector<8x32xf32>
    %c1_67 = arith.constant 1 : index
    %c0_68 = arith.constant 0 : index
    %c0_69 = arith.constant 0 : index
    %143 = vector.load %arg6[%c1_67, %c0_68, %c0_69] : memref<6x32x32xbf16, #tpu.memory_space<vmem>>, vector<1x32x32xbf16>
    %144 = vector.shape_cast %143 : vector<1x32x32xbf16> to vector<32x32xbf16>
    %145 = arith.truncf %138 : vector<8x32xf32> to vector<8x32xbf16>
    %cst_70 = arith.constant dense<0.000000e+00> : vector<8x32xf32>
    %146 = tpu.matmul %145, %144, %cst_70 {dimension_numbers = #tpu.dot_dimension_numbers<[1], [0], [0], [1], [0, 0, 1, 1], [], []>} : vector<8x32xbf16>, vector<32x32xbf16>, vector<8x32xf32> -> vector<8x32xf32>
    %c1_71 = arith.constant 1 : index
    %c0_72 = arith.constant 0 : index
    %c0_73 = arith.constant 0 : index
    %147 = vector.load %arg7[%c1_71, %c0_72, %c0_73] : memref<6x32x32xbf16, #tpu.memory_space<vmem>>, vector<1x32x32xbf16>
    %148 = vector.shape_cast %147 : vector<1x32x32xbf16> to vector<32x32xbf16>
    %149 = arith.truncf %138 : vector<8x32xf32> to vector<8x32xbf16>
    %cst_74 = arith.constant dense<0.000000e+00> : vector<8x32xf32>
    %150 = tpu.matmul %149, %148, %cst_74 {dimension_numbers = #tpu.dot_dimension_numbers<[1], [0], [0], [1], [0, 0, 1, 1], [], []>} : vector<8x32xbf16>, vector<32x32xbf16>, vector<8x32xf32> -> vector<8x32xf32>
    %151 = vector.extract_strided_slice %142 {offsets = [0, 0], sizes = [8, 8], strides = [1, 1]} : vector<8x32xf32> to vector<8x8xf32>
    %152 = vector.extract_strided_slice %146 {offsets = [0, 0], sizes = [8, 8], strides = [1, 1]} : vector<8x32xf32> to vector<8x8xf32>
    %153 = vector.extract_strided_slice %150 {offsets = [0, 0], sizes = [8, 8], strides = [1, 1]} : vector<8x32xf32> to vector<8x8xf32>
    "tpu.trace_start"() <{level = 10 : i32, message = "qd,kd->qk"}> : () -> ()
    %cst_75 = arith.constant dense<0.000000e+00> : vector<8x8xf32>
    %154 = tpu.matmul %151, %152, %cst_75 {dimension_numbers = #tpu.dot_dimension_numbers<[1], [1], [0], [0], [0, 0, 1, 0], [], []>} : vector<8x8xf32>, vector<8x8xf32>, vector<8x8xf32> -> vector<8x8xf32>
    "tpu.trace_stop"() : () -> ()
    %cst_76 = arith.constant dense<0xFF800000> : vector<8xf32>
    %155 = vector.multi_reduction <maximumf>, %154, %cst_76 [1] : vector<8x8xf32> to vector<8xf32>
    %156 = vector.shape_cast %155 : vector<8xf32> to vector<8x1xf32>
    %157 = vector.broadcast %156 : vector<8x1xf32> to vector<8x8xf32>
    %158 = arith.subf %154, %157 : vector<8x8xf32>
    %159 = math.exp %158 : vector<8x8xf32>
    %cst_77 = arith.constant dense<0.000000e+00> : vector<8xf32>
    %160 = vector.multi_reduction <add>, %159, %cst_77 [1] : vector<8x8xf32> to vector<8xf32>
    %161 = vector.shape_cast %160 : vector<8xf32> to vector<8x1xf32>
    %162 = vector.broadcast %161 : vector<8x1xf32> to vector<8x8xf32>
    %163 = arith.divf %159, %162 : vector<8x8xf32>
    %cst_78 = arith.constant dense<0.000000e+00> : vector<8x8xf32>
    %164 = tpu.matmul %163, %153, %cst_78 {dimension_numbers = #tpu.dot_dimension_numbers<[1], [0], [0], [1], [0, 0, 1, 1], [], []>} : vector<8x8xf32>, vector<8x8xf32>, vector<8x8xf32> -> vector<8x8xf32>
    %165 = vector.extract_strided_slice %142 {offsets = [0, 8], sizes = [8, 8], strides = [1, 1]} : vector<8x32xf32> to vector<8x8xf32>
    %166 = vector.extract_strided_slice %146 {offsets = [0, 8], sizes = [8, 8], strides = [1, 1]} : vector<8x32xf32> to vector<8x8xf32>
    %167 = vector.extract_strided_slice %150 {offsets = [0, 8], sizes = [8, 8], strides = [1, 1]} : vector<8x32xf32> to vector<8x8xf32>
    "tpu.trace_start"() <{level = 10 : i32, message = "qd,kd->qk"}> : () -> ()
    %cst_79 = arith.constant dense<0.000000e+00> : vector<8x8xf32>
    %168 = tpu.matmul %165, %166, %cst_79 {dimension_numbers = #tpu.dot_dimension_numbers<[1], [1], [0], [0], [0, 0, 1, 0], [], []>} : vector<8x8xf32>, vector<8x8xf32>, vector<8x8xf32> -> vector<8x8xf32>
    "tpu.trace_stop"() : () -> ()
    %cst_80 = arith.constant dense<0xFF800000> : vector<8xf32>
    %169 = vector.multi_reduction <maximumf>, %168, %cst_80 [1] : vector<8x8xf32> to vector<8xf32>
    %170 = vector.shape_cast %169 : vector<8xf32> to vector<8x1xf32>
    %171 = vector.broadcast %170 : vector<8x1xf32> to vector<8x8xf32>
    %172 = arith.subf %168, %171 : vector<8x8xf32>
    %173 = math.exp %172 : vector<8x8xf32>
    %cst_81 = arith.constant dense<0.000000e+00> : vector<8xf32>
    %174 = vector.multi_reduction <add>, %173, %cst_81 [1] : vector<8x8xf32> to vector<8xf32>
    %175 = vector.shape_cast %174 : vector<8xf32> to vector<8x1xf32>
    %176 = vector.broadcast %175 : vector<8x1xf32> to vector<8x8xf32>
    %177 = arith.divf %173, %176 : vector<8x8xf32>
    %cst_82 = arith.constant dense<0.000000e+00> : vector<8x8xf32>
    %178 = tpu.matmul %177, %167, %cst_82 {dimension_numbers = #tpu.dot_dimension_numbers<[1], [0], [0], [1], [0, 0, 1, 1], [], []>} : vector<8x8xf32>, vector<8x8xf32>, vector<8x8xf32> -> vector<8x8xf32>
    %179 = vector.extract_strided_slice %142 {offsets = [0, 16], sizes = [8, 8], strides = [1, 1]} : vector<8x32xf32> to vector<8x8xf32>
    %180 = vector.extract_strided_slice %146 {offsets = [0, 16], sizes = [8, 8], strides = [1, 1]} : vector<8x32xf32> to vector<8x8xf32>
    %181 = vector.extract_strided_slice %150 {offsets = [0, 16], sizes = [8, 8], strides = [1, 1]} : vector<8x32xf32> to vector<8x8xf32>
    "tpu.trace_start"() <{level = 10 : i32, message = "qd,kd->qk"}> : () -> ()
    %cst_83 = arith.constant dense<0.000000e+00> : vector<8x8xf32>
    %182 = tpu.matmul %179, %180, %cst_83 {dimension_numbers = #tpu.dot_dimension_numbers<[1], [1], [0], [0], [0, 0, 1, 0], [], []>} : vector<8x8xf32>, vector<8x8xf32>, vector<8x8xf32> -> vector<8x8xf32>
    "tpu.trace_stop"() : () -> ()
    %cst_84 = arith.constant dense<0xFF800000> : vector<8xf32>
    %183 = vector.multi_reduction <maximumf>, %182, %cst_84 [1] : vector<8x8xf32> to vector<8xf32>
    %184 = vector.shape_cast %183 : vector<8xf32> to vector<8x1xf32>
    %185 = vector.broadcast %184 : vector<8x1xf32> to vector<8x8xf32>
    %186 = arith.subf %182, %185 : vector<8x8xf32>
    %187 = math.exp %186 : vector<8x8xf32>
    %cst_85 = arith.constant dense<0.000000e+00> : vector<8xf32>
    %188 = vector.multi_reduction <add>, %187, %cst_85 [1] : vector<8x8xf32> to vector<8xf32>
    %189 = vector.shape_cast %188 : vector<8xf32> to vector<8x1xf32>
    %190 = vector.broadcast %189 : vector<8x1xf32> to vector<8x8xf32>
    %191 = arith.divf %187, %190 : vector<8x8xf32>
    %cst_86 = arith.constant dense<0.000000e+00> : vector<8x8xf32>
    %192 = tpu.matmul %191, %181, %cst_86 {dimension_numbers = #tpu.dot_dimension_numbers<[1], [0], [0], [1], [0, 0, 1, 1], [], []>} : vector<8x8xf32>, vector<8x8xf32>, vector<8x8xf32> -> vector<8x8xf32>
    %193 = vector.extract_strided_slice %142 {offsets = [0, 24], sizes = [8, 8], strides = [1, 1]} : vector<8x32xf32> to vector<8x8xf32>
    %194 = vector.extract_strided_slice %146 {offsets = [0, 24], sizes = [8, 8], strides = [1, 1]} : vector<8x32xf32> to vector<8x8xf32>
    %195 = vector.extract_strided_slice %150 {offsets = [0, 24], sizes = [8, 8], strides = [1, 1]} : vector<8x32xf32> to vector<8x8xf32>
    "tpu.trace_start"() <{level = 10 : i32, message = "qd,kd->qk"}> : () -> ()
    %cst_87 = arith.constant dense<0.000000e+00> : vector<8x8xf32>
    %196 = tpu.matmul %193, %194, %cst_87 {dimension_numbers = #tpu.dot_dimension_numbers<[1], [1], [0], [0], [0, 0, 1, 0], [], []>} : vector<8x8xf32>, vector<8x8xf32>, vector<8x8xf32> -> vector<8x8xf32>
    "tpu.trace_stop"() : () -> ()
    %cst_88 = arith.constant dense<0xFF800000> : vector<8xf32>
    %197 = vector.multi_reduction <maximumf>, %196, %cst_88 [1] : vector<8x8xf32> to vector<8xf32>
    %198 = vector.shape_cast %197 : vector<8xf32> to vector<8x1xf32>
    %199 = vector.broadcast %198 : vector<8x1xf32> to vector<8x8xf32>
    %200 = arith.subf %196, %199 : vector<8x8xf32>
    %201 = math.exp %200 : vector<8x8xf32>
    %cst_89 = arith.constant dense<0.000000e+00> : vector<8xf32>
    %202 = vector.multi_reduction <add>, %201, %cst_89 [1] : vector<8x8xf32> to vector<8xf32>
    %203 = vector.shape_cast %202 : vector<8xf32> to vector<8x1xf32>
    %204 = vector.broadcast %203 : vector<8x1xf32> to vector<8x8xf32>
    %205 = arith.divf %201, %204 : vector<8x8xf32>
    %cst_90 = arith.constant dense<0.000000e+00> : vector<8x8xf32>
    %206 = tpu.matmul %205, %195, %cst_90 {dimension_numbers = #tpu.dot_dimension_numbers<[1], [0], [0], [1], [0, 0, 1, 1], [], []>} : vector<8x8xf32>, vector<8x8xf32>, vector<8x8xf32> -> vector<8x8xf32>
    %207 = tpu.concatenate %164, %178, %192, %206 in 1 : vector<8x8xf32>, vector<8x8xf32>, vector<8x8xf32>, vector<8x8xf32> -> vector<8x32xf32>
    %c1_91 = arith.constant 1 : index
    %c0_92 = arith.constant 0 : index
    %c0_93 = arith.constant 0 : index
    %208 = vector.load %arg8[%c1_91, %c0_92, %c0_93] : memref<6x32x32xbf16, #tpu.memory_space<vmem>>, vector<1x32x32xbf16>
    %209 = vector.shape_cast %208 : vector<1x32x32xbf16> to vector<32x32xbf16>
    %210 = arith.truncf %138 : vector<8x32xf32> to vector<8x32xbf16>
    %cst_94 = arith.constant dense<0.000000e+00> : vector<8x32xf32>
    %211 = tpu.matmul %210, %209, %cst_94 {dimension_numbers = #tpu.dot_dimension_numbers<[1], [0], [0], [1], [0, 0, 1, 1], [], []>} : vector<8x32xbf16>, vector<32x32xbf16>, vector<8x32xf32> -> vector<8x32xf32>
    %c1_95 = arith.constant 1 : index
    %c0_96 = arith.constant 0 : index
    %c0_97 = arith.constant 0 : index
    %212 = vector.load %arg9[%c1_95, %c0_96, %c0_97] : memref<6x32x32xbf16, #tpu.memory_space<vmem>>, vector<1x32x32xbf16>
    %213 = vector.shape_cast %212 : vector<1x32x32xbf16> to vector<32x32xbf16>
    %214 = arith.truncf %207 : vector<8x32xf32> to vector<8x32xbf16>
    %cst_98 = arith.constant dense<0.000000e+00> : vector<8x32xf32>
    %215 = tpu.matmul %214, %213, %cst_98 {dimension_numbers = #tpu.dot_dimension_numbers<[1], [0], [0], [1], [0, 0, 1, 1], [], []>} : vector<8x32xbf16>, vector<32x32xbf16>, vector<8x32xf32> -> vector<8x32xf32>
    %216 = arith.addf %211, %215 : vector<8x32xf32>
    %c1_99 = arith.constant 1 : index
    %c0_100 = arith.constant 0 : index
    %c0_101 = arith.constant 0 : index
    %217 = vector.load %arg10[%c1_99, %c0_100, %c0_101] : memref<6x1x32xf32, #tpu.memory_space<vmem>>, vector<1x1x32xf32>
    %218 = vector.shape_cast %217 : vector<1x1x32xf32> to vector<1x32xf32>
    %219 = vector.broadcast %218 : vector<1x32xf32> to vector<8x32xf32>
    %220 = arith.addf %216, %219 : vector<8x32xf32>
    %221 = arith.addf %220, %138 : vector<8x32xf32>
    %c1_102 = arith.constant 1 : index
    %c0_103 = arith.constant 0 : index
    %c0_104 = arith.constant 0 : index
    %222 = vector.load %arg11[%c1_102, %c0_103, %c0_104] : memref<6x1x32xf32, #tpu.memory_space<vmem>>, vector<1x1x32xf32>
    %223 = vector.shape_cast %222 : vector<1x1x32xf32> to vector<1x32xf32>
    %c1_105 = arith.constant 1 : index
    %c0_106 = arith.constant 0 : index
    %c0_107 = arith.constant 0 : index
    %224 = vector.load %arg12[%c1_105, %c0_106, %c0_107] : memref<6x1x32xf32, #tpu.memory_space<vmem>>, vector<1x1x32xf32>
    %225 = vector.shape_cast %224 : vector<1x1x32xf32> to vector<1x32xf32>
    %cst_108 = arith.constant dense<0.000000e+00> : vector<8xf32>
    %226 = vector.multi_reduction <add>, %221, %cst_108 [1] : vector<8x32xf32> to vector<8xf32>
    %227 = vector.shape_cast %226 : vector<8xf32> to vector<8x1xf32>
    %cst_109 = arith.constant 3.200000e+01 : f32
    %228 = vector.broadcast %cst_109 : f32 to vector<8x1xf32>
    %229 = arith.divf %227, %228 : vector<8x1xf32>
    %230 = vector.broadcast %229 : vector<8x1xf32> to vector<8x32xf32>
    %231 = arith.subf %221, %230 : vector<8x32xf32>
    %232 = arith.mulf %231, %231 : vector<8x32xf32>
    %cst_110 = arith.constant dense<0.000000e+00> : vector<8xf32>
    %233 = vector.multi_reduction <add>, %232, %cst_110 [1] : vector<8x32xf32> to vector<8xf32>
    %234 = vector.shape_cast %233 : vector<8xf32> to vector<8x1xf32>
    %cst_111 = arith.constant 3.200000e+01 : f32
    %235 = vector.broadcast %cst_111 : f32 to vector<8x1xf32>
    %236 = arith.divf %234, %235 : vector<8x1xf32>
    %237 = vector.broadcast %229 : vector<8x1xf32> to vector<8x32xf32>
    %238 = arith.subf %221, %237 : vector<8x32xf32>
    %cst_112 = arith.constant 9.99999974E-6 : f32
    %239 = vector.broadcast %cst_112 : f32 to vector<8x1xf32>
    %240 = arith.addf %236, %239 : vector<8x1xf32>
    %241 = math.rsqrt %240 : vector<8x1xf32>
    %242 = vector.broadcast %241 : vector<8x1xf32> to vector<8x32xf32>
    %243 = arith.mulf %238, %242 : vector<8x32xf32>
    %244 = vector.broadcast %223 : vector<1x32xf32> to vector<8x32xf32>
    %245 = arith.mulf %243, %244 : vector<8x32xf32>
    %246 = vector.broadcast %225 : vector<1x32xf32> to vector<8x32xf32>
    %247 = arith.addf %245, %246 : vector<8x32xf32>
    %cst_113 = arith.constant dense<0.000000e+00> : vector<32xf32>
    %248 = vector.multi_reduction <add>, %247, %cst_113 [0] : vector<8x32xf32> to vector<32xf32>
    %249 = vector.shape_cast %248 : vector<32xf32> to vector<1x32xf32>
    %cst_114 = arith.constant 8.000000e+00 : f32
    %250 = vector.broadcast %cst_114 : f32 to vector<1x32xf32>
    %251 = arith.divf %249, %250 : vector<1x32xf32>
    %c0_115 = arith.constant 0 : index
    %c0_116 = arith.constant 0 : index
    %252 = vector.load %arg15[%c0_115, %c0_116] : memref<32x32xbf16, #tpu.memory_space<vmem>>, vector<32x32xbf16>
    %253 = arith.truncf %251 : vector<1x32xf32> to vector<1x32xbf16>
    %cst_117 = arith.constant dense<0.000000e+00> : vector<1x32xf32>
    %254 = tpu.matmul %253, %252, %cst_117 {dimension_numbers = #tpu.dot_dimension_numbers<[1], [0], [0], [1], [0, 0, 1, 1], [], []>} : vector<1x32xbf16>, vector<32x32xbf16>, vector<1x32xf32> -> vector<1x32xf32>
    %c0_118 = arith.constant 0 : index
    %c0_119 = arith.constant 0 : index
    %255 = vector.load %arg16[%c0_118, %c0_119] : memref<1x32xf32, #tpu.memory_space<vmem>>, vector<1x32xf32>
    %256 = arith.addf %254, %255 : vector<1x32xf32>
    %cst_120 = arith.constant 5.000000e-01 : f32
    %257 = vector.broadcast %cst_120 : f32 to vector<1x32xf32>
    %258 = arith.mulf %257, %256 : vector<1x32xf32>
    %cst_121 = arith.constant 4.471500e-02 : f32
    %259 = vector.broadcast %cst_121 : f32 to vector<1x32xf32>
    %260 = arith.mulf %259, %256 : vector<1x32xf32>
    %261 = arith.mulf %260, %256 : vector<1x32xf32>
    %262 = arith.mulf %261, %256 : vector<1x32xf32>
    %263 = arith.addf %256, %262 : vector<1x32xf32>
    %cst_122 = arith.constant 0.797884583 : f32
    %264 = vector.broadcast %cst_122 : f32 to vector<1x32xf32>
    %265 = arith.mulf %264, %263 : vector<1x32xf32>
    %266 = math.tanh %265 : vector<1x32xf32>
    %cst_123 = arith.constant 1.000000e+00 : f32
    %267 = vector.broadcast %cst_123 : f32 to vector<1x32xf32>
    %268 = arith.addf %267, %266 : vector<1x32xf32>
    %269 = arith.mulf %258, %268 : vector<1x32xf32>
    %c0_124 = arith.constant 0 : index
    %c0_125 = arith.constant 0 : index
    %270 = vector.load %arg17[%c0_124, %c0_125] : memref<32x32xbf16, #tpu.memory_space<vmem>>, vector<32x32xbf16>
    %271 = arith.truncf %269 : vector<1x32xf32> to vector<1x32xbf16>
    %cst_126 = arith.constant dense<0.000000e+00> : vector<1x32xf32>
    %272 = tpu.matmul %271, %270, %cst_126 {dimension_numbers = #tpu.dot_dimension_numbers<[1], [0], [0], [1], [0, 0, 1, 1], [], []>} : vector<1x32xbf16>, vector<32x32xbf16>, vector<1x32xf32> -> vector<1x32xf32>
    %c0_127 = arith.constant 0 : index
    %c0_128 = arith.constant 0 : index
    %273 = vector.load %arg18[%c0_127, %c0_128] : memref<1x32xf32, #tpu.memory_space<vmem>>, vector<1x32xf32>
    %274 = arith.addf %272, %273 : vector<1x32xf32>
    %c0_129 = arith.constant 0 : index
    %c0_130 = arith.constant 0 : index
    %275 = vector.load %arg19[%c0_129, %c0_130] : memref<32x32xbf16, #tpu.memory_space<vmem>>, vector<32x32xbf16>
    %276 = arith.truncf %269 : vector<1x32xf32> to vector<1x32xbf16>
    %cst_131 = arith.constant dense<0.000000e+00> : vector<1x32xf32>
    %277 = tpu.matmul %276, %275, %cst_131 {dimension_numbers = #tpu.dot_dimension_numbers<[1], [0], [0], [1], [0, 0, 1, 1], [], []>} : vector<1x32xbf16>, vector<32x32xbf16>, vector<1x32xf32> -> vector<1x32xf32>
    %c0_132 = arith.constant 0 : index
    %c0_133 = arith.constant 0 : index
    %278 = vector.load %arg20[%c0_132, %c0_133] : memref<1x32xf32, #tpu.memory_space<vmem>>, vector<1x32xf32>
    %279 = arith.addf %277, %278 : vector<1x32xf32>
    %cst_134 = arith.constant 5.000000e-01 : f32
    %280 = vector.broadcast %cst_134 : f32 to vector<1x32xf32>
    %281 = arith.mulf %280, %279 : vector<1x32xf32>
    %282 = math.exp %281 : vector<1x32xf32>
    %283 = arith.mulf %7, %282 : vector<1x32xf32>
    %284 = arith.addf %283, %274 : vector<1x32xf32>
    %285 = vector.shape_cast %284 : vector<1x32xf32> to vector<1x32xf32>
    %286 = vector.broadcast %285 : vector<1x32xf32> to vector<8x32xf32>
    %c0_135 = arith.constant 0 : index
    %c0_136 = arith.constant 0 : index
    %287 = vector.load %arg21[%c0_135, %c0_136] : memref<3x32xf32, #tpu.memory_space<vmem>>, vector<3x32xf32>
    %288 = vector.extract_strided_slice %287 {offsets = [0, 0], sizes = [1, 32], strides = [1, 1]} : vector<3x32xf32> to vector<1x32xf32>
    %289 = vector.broadcast %8 : vector<8x1xf32> to vector<8x32xf32>
    %290 = vector.broadcast %288 : vector<1x32xf32> to vector<8x32xf32>
    %291 = arith.mulf %289, %290 : vector<8x32xf32>
    %292 = vector.extract_strided_slice %287 {offsets = [1, 0], sizes = [1, 32], strides = [1, 1]} : vector<3x32xf32> to vector<1x32xf32>
    %293 = vector.broadcast %9 : vector<8x1xf32> to vector<8x32xf32>
    %294 = vector.broadcast %292 : vector<1x32xf32> to vector<8x32xf32>
    %295 = arith.mulf %293, %294 : vector<8x32xf32>
    %296 = arith.addf %291, %295 : vector<8x32xf32>
    %297 = vector.extract_strided_slice %287 {offsets = [2, 0], sizes = [1, 32], strides = [1, 1]} : vector<3x32xf32> to vector<1x32xf32>
    %298 = vector.broadcast %3 : vector<8x1xf32> to vector<8x32xf32>
    %299 = vector.broadcast %297 : vector<1x32xf32> to vector<8x32xf32>
    %300 = arith.mulf %298, %299 : vector<8x32xf32>
    %301 = arith.addf %296, %300 : vector<8x32xf32>
    %c0_137 = arith.constant 0 : index
    %c0_138 = arith.constant 0 : index
    %302 = vector.load %arg22[%c0_137, %c0_138] : memref<1x32xf32, #tpu.memory_space<vmem>>, vector<1x32xf32>
    %303 = vector.broadcast %302 : vector<1x32xf32> to vector<8x32xf32>
    %304 = arith.addf %301, %303 : vector<8x32xf32>
    %c2 = arith.constant 2 : index
    %c0_139 = arith.constant 0 : index
    %c0_140 = arith.constant 0 : index
    %305 = vector.load %arg5[%c2, %c0_139, %c0_140] : memref<6x32x32xbf16, #tpu.memory_space<vmem>>, vector<1x32x32xbf16>
    %306 = vector.shape_cast %305 : vector<1x32x32xbf16> to vector<32x32xbf16>
    %307 = arith.truncf %304 : vector<8x32xf32> to vector<8x32xbf16>
    %cst_141 = arith.constant dense<0.000000e+00> : vector<8x32xf32>
    %308 = tpu.matmul %307, %306, %cst_141 {dimension_numbers = #tpu.dot_dimension_numbers<[1], [0], [0], [1], [0, 0, 1, 1], [], []>} : vector<8x32xbf16>, vector<32x32xbf16>, vector<8x32xf32> -> vector<8x32xf32>
    %c2_142 = arith.constant 2 : index
    %c0_143 = arith.constant 0 : index
    %c0_144 = arith.constant 0 : index
    %309 = vector.load %arg6[%c2_142, %c0_143, %c0_144] : memref<6x32x32xbf16, #tpu.memory_space<vmem>>, vector<1x32x32xbf16>
    %310 = vector.shape_cast %309 : vector<1x32x32xbf16> to vector<32x32xbf16>
    %311 = arith.truncf %304 : vector<8x32xf32> to vector<8x32xbf16>
    %cst_145 = arith.constant dense<0.000000e+00> : vector<8x32xf32>
    %312 = tpu.matmul %311, %310, %cst_145 {dimension_numbers = #tpu.dot_dimension_numbers<[1], [0], [0], [1], [0, 0, 1, 1], [], []>} : vector<8x32xbf16>, vector<32x32xbf16>, vector<8x32xf32> -> vector<8x32xf32>
    %c2_146 = arith.constant 2 : index
    %c0_147 = arith.constant 0 : index
    %c0_148 = arith.constant 0 : index
    %313 = vector.load %arg7[%c2_146, %c0_147, %c0_148] : memref<6x32x32xbf16, #tpu.memory_space<vmem>>, vector<1x32x32xbf16>
    %314 = vector.shape_cast %313 : vector<1x32x32xbf16> to vector<32x32xbf16>
    %315 = arith.truncf %304 : vector<8x32xf32> to vector<8x32xbf16>
    %cst_149 = arith.constant dense<0.000000e+00> : vector<8x32xf32>
    %316 = tpu.matmul %315, %314, %cst_149 {dimension_numbers = #tpu.dot_dimension_numbers<[1], [0], [0], [1], [0, 0, 1, 1], [], []>} : vector<8x32xbf16>, vector<32x32xbf16>, vector<8x32xf32> -> vector<8x32xf32>
    %317 = vector.extract_strided_slice %308 {offsets = [0, 0], sizes = [8, 8], strides = [1, 1]} : vector<8x32xf32> to vector<8x8xf32>
    %318 = vector.extract_strided_slice %312 {offsets = [0, 0], sizes = [8, 8], strides = [1, 1]} : vector<8x32xf32> to vector<8x8xf32>
    %319 = vector.extract_strided_slice %316 {offsets = [0, 0], sizes = [8, 8], strides = [1, 1]} : vector<8x32xf32> to vector<8x8xf32>
    "tpu.trace_start"() <{level = 10 : i32, message = "qd,kd->qk"}> : () -> ()
    %cst_150 = arith.constant dense<0.000000e+00> : vector<8x8xf32>
    %320 = tpu.matmul %317, %318, %cst_150 {dimension_numbers = #tpu.dot_dimension_numbers<[1], [1], [0], [0], [0, 0, 1, 0], [], []>} : vector<8x8xf32>, vector<8x8xf32>, vector<8x8xf32> -> vector<8x8xf32>
    "tpu.trace_stop"() : () -> ()
    %cst_151 = arith.constant dense<0xFF800000> : vector<8xf32>
    %321 = vector.multi_reduction <maximumf>, %320, %cst_151 [1] : vector<8x8xf32> to vector<8xf32>
    %322 = vector.shape_cast %321 : vector<8xf32> to vector<8x1xf32>
    %323 = vector.broadcast %322 : vector<8x1xf32> to vector<8x8xf32>
    %324 = arith.subf %320, %323 : vector<8x8xf32>
    %325 = math.exp %324 : vector<8x8xf32>
    %cst_152 = arith.constant dense<0.000000e+00> : vector<8xf32>
    %326 = vector.multi_reduction <add>, %325, %cst_152 [1] : vector<8x8xf32> to vector<8xf32>
    %327 = vector.shape_cast %326 : vector<8xf32> to vector<8x1xf32>
    %328 = vector.broadcast %327 : vector<8x1xf32> to vector<8x8xf32>
    %329 = arith.divf %325, %328 : vector<8x8xf32>
    %cst_153 = arith.constant dense<0.000000e+00> : vector<8x8xf32>
    %330 = tpu.matmul %329, %319, %cst_153 {dimension_numbers = #tpu.dot_dimension_numbers<[1], [0], [0], [1], [0, 0, 1, 1], [], []>} : vector<8x8xf32>, vector<8x8xf32>, vector<8x8xf32> -> vector<8x8xf32>
    %331 = vector.extract_strided_slice %308 {offsets = [0, 8], sizes = [8, 8], strides = [1, 1]} : vector<8x32xf32> to vector<8x8xf32>
    %332 = vector.extract_strided_slice %312 {offsets = [0, 8], sizes = [8, 8], strides = [1, 1]} : vector<8x32xf32> to vector<8x8xf32>
    %333 = vector.extract_strided_slice %316 {offsets = [0, 8], sizes = [8, 8], strides = [1, 1]} : vector<8x32xf32> to vector<8x8xf32>
    "tpu.trace_start"() <{level = 10 : i32, message = "qd,kd->qk"}> : () -> ()
    %cst_154 = arith.constant dense<0.000000e+00> : vector<8x8xf32>
    %334 = tpu.matmul %331, %332, %cst_154 {dimension_numbers = #tpu.dot_dimension_numbers<[1], [1], [0], [0], [0, 0, 1, 0], [], []>} : vector<8x8xf32>, vector<8x8xf32>, vector<8x8xf32> -> vector<8x8xf32>
    "tpu.trace_stop"() : () -> ()
    %cst_155 = arith.constant dense<0xFF800000> : vector<8xf32>
    %335 = vector.multi_reduction <maximumf>, %334, %cst_155 [1] : vector<8x8xf32> to vector<8xf32>
    %336 = vector.shape_cast %335 : vector<8xf32> to vector<8x1xf32>
    %337 = vector.broadcast %336 : vector<8x1xf32> to vector<8x8xf32>
    %338 = arith.subf %334, %337 : vector<8x8xf32>
    %339 = math.exp %338 : vector<8x8xf32>
    %cst_156 = arith.constant dense<0.000000e+00> : vector<8xf32>
    %340 = vector.multi_reduction <add>, %339, %cst_156 [1] : vector<8x8xf32> to vector<8xf32>
    %341 = vector.shape_cast %340 : vector<8xf32> to vector<8x1xf32>
    %342 = vector.broadcast %341 : vector<8x1xf32> to vector<8x8xf32>
    %343 = arith.divf %339, %342 : vector<8x8xf32>
    %cst_157 = arith.constant dense<0.000000e+00> : vector<8x8xf32>
    %344 = tpu.matmul %343, %333, %cst_157 {dimension_numbers = #tpu.dot_dimension_numbers<[1], [0], [0], [1], [0, 0, 1, 1], [], []>} : vector<8x8xf32>, vector<8x8xf32>, vector<8x8xf32> -> vector<8x8xf32>
    %345 = vector.extract_strided_slice %308 {offsets = [0, 16], sizes = [8, 8], strides = [1, 1]} : vector<8x32xf32> to vector<8x8xf32>
    %346 = vector.extract_strided_slice %312 {offsets = [0, 16], sizes = [8, 8], strides = [1, 1]} : vector<8x32xf32> to vector<8x8xf32>
    %347 = vector.extract_strided_slice %316 {offsets = [0, 16], sizes = [8, 8], strides = [1, 1]} : vector<8x32xf32> to vector<8x8xf32>
    "tpu.trace_start"() <{level = 10 : i32, message = "qd,kd->qk"}> : () -> ()
    %cst_158 = arith.constant dense<0.000000e+00> : vector<8x8xf32>
    %348 = tpu.matmul %345, %346, %cst_158 {dimension_numbers = #tpu.dot_dimension_numbers<[1], [1], [0], [0], [0, 0, 1, 0], [], []>} : vector<8x8xf32>, vector<8x8xf32>, vector<8x8xf32> -> vector<8x8xf32>
    "tpu.trace_stop"() : () -> ()
    %cst_159 = arith.constant dense<0xFF800000> : vector<8xf32>
    %349 = vector.multi_reduction <maximumf>, %348, %cst_159 [1] : vector<8x8xf32> to vector<8xf32>
    %350 = vector.shape_cast %349 : vector<8xf32> to vector<8x1xf32>
    %351 = vector.broadcast %350 : vector<8x1xf32> to vector<8x8xf32>
    %352 = arith.subf %348, %351 : vector<8x8xf32>
    %353 = math.exp %352 : vector<8x8xf32>
    %cst_160 = arith.constant dense<0.000000e+00> : vector<8xf32>
    %354 = vector.multi_reduction <add>, %353, %cst_160 [1] : vector<8x8xf32> to vector<8xf32>
    %355 = vector.shape_cast %354 : vector<8xf32> to vector<8x1xf32>
    %356 = vector.broadcast %355 : vector<8x1xf32> to vector<8x8xf32>
    %357 = arith.divf %353, %356 : vector<8x8xf32>
    %cst_161 = arith.constant dense<0.000000e+00> : vector<8x8xf32>
    %358 = tpu.matmul %357, %347, %cst_161 {dimension_numbers = #tpu.dot_dimension_numbers<[1], [0], [0], [1], [0, 0, 1, 1], [], []>} : vector<8x8xf32>, vector<8x8xf32>, vector<8x8xf32> -> vector<8x8xf32>
    %359 = vector.extract_strided_slice %308 {offsets = [0, 24], sizes = [8, 8], strides = [1, 1]} : vector<8x32xf32> to vector<8x8xf32>
    %360 = vector.extract_strided_slice %312 {offsets = [0, 24], sizes = [8, 8], strides = [1, 1]} : vector<8x32xf32> to vector<8x8xf32>
    %361 = vector.extract_strided_slice %316 {offsets = [0, 24], sizes = [8, 8], strides = [1, 1]} : vector<8x32xf32> to vector<8x8xf32>
    "tpu.trace_start"() <{level = 10 : i32, message = "qd,kd->qk"}> : () -> ()
    %cst_162 = arith.constant dense<0.000000e+00> : vector<8x8xf32>
    %362 = tpu.matmul %359, %360, %cst_162 {dimension_numbers = #tpu.dot_dimension_numbers<[1], [1], [0], [0], [0, 0, 1, 0], [], []>} : vector<8x8xf32>, vector<8x8xf32>, vector<8x8xf32> -> vector<8x8xf32>
    "tpu.trace_stop"() : () -> ()
    %cst_163 = arith.constant dense<0xFF800000> : vector<8xf32>
    %363 = vector.multi_reduction <maximumf>, %362, %cst_163 [1] : vector<8x8xf32> to vector<8xf32>
    %364 = vector.shape_cast %363 : vector<8xf32> to vector<8x1xf32>
    %365 = vector.broadcast %364 : vector<8x1xf32> to vector<8x8xf32>
    %366 = arith.subf %362, %365 : vector<8x8xf32>
    %367 = math.exp %366 : vector<8x8xf32>
    %cst_164 = arith.constant dense<0.000000e+00> : vector<8xf32>
    %368 = vector.multi_reduction <add>, %367, %cst_164 [1] : vector<8x8xf32> to vector<8xf32>
    %369 = vector.shape_cast %368 : vector<8xf32> to vector<8x1xf32>
    %370 = vector.broadcast %369 : vector<8x1xf32> to vector<8x8xf32>
    %371 = arith.divf %367, %370 : vector<8x8xf32>
    %cst_165 = arith.constant dense<0.000000e+00> : vector<8x8xf32>
    %372 = tpu.matmul %371, %361, %cst_165 {dimension_numbers = #tpu.dot_dimension_numbers<[1], [0], [0], [1], [0, 0, 1, 1], [], []>} : vector<8x8xf32>, vector<8x8xf32>, vector<8x8xf32> -> vector<8x8xf32>
    %373 = tpu.concatenate %330, %344, %358, %372 in 1 : vector<8x8xf32>, vector<8x8xf32>, vector<8x8xf32>, vector<8x8xf32> -> vector<8x32xf32>
    %c2_166 = arith.constant 2 : index
    %c0_167 = arith.constant 0 : index
    %c0_168 = arith.constant 0 : index
    %374 = vector.load %arg8[%c2_166, %c0_167, %c0_168] : memref<6x32x32xbf16, #tpu.memory_space<vmem>>, vector<1x32x32xbf16>
    %375 = vector.shape_cast %374 : vector<1x32x32xbf16> to vector<32x32xbf16>
    %376 = arith.truncf %304 : vector<8x32xf32> to vector<8x32xbf16>
    %cst_169 = arith.constant dense<0.000000e+00> : vector<8x32xf32>
    %377 = tpu.matmul %376, %375, %cst_169 {dimension_numbers = #tpu.dot_dimension_numbers<[1], [0], [0], [1], [0, 0, 1, 1], [], []>} : vector<8x32xbf16>, vector<32x32xbf16>, vector<8x32xf32> -> vector<8x32xf32>
    %c2_170 = arith.constant 2 : index
    %c0_171 = arith.constant 0 : index
    %c0_172 = arith.constant 0 : index
    %378 = vector.load %arg9[%c2_170, %c0_171, %c0_172] : memref<6x32x32xbf16, #tpu.memory_space<vmem>>, vector<1x32x32xbf16>
    %379 = vector.shape_cast %378 : vector<1x32x32xbf16> to vector<32x32xbf16>
    %380 = arith.truncf %373 : vector<8x32xf32> to vector<8x32xbf16>
    %cst_173 = arith.constant dense<0.000000e+00> : vector<8x32xf32>
    %381 = tpu.matmul %380, %379, %cst_173 {dimension_numbers = #tpu.dot_dimension_numbers<[1], [0], [0], [1], [0, 0, 1, 1], [], []>} : vector<8x32xbf16>, vector<32x32xbf16>, vector<8x32xf32> -> vector<8x32xf32>
    %382 = arith.addf %377, %381 : vector<8x32xf32>
    %c2_174 = arith.constant 2 : index
    %c0_175 = arith.constant 0 : index
    %c0_176 = arith.constant 0 : index
    %383 = vector.load %arg10[%c2_174, %c0_175, %c0_176] : memref<6x1x32xf32, #tpu.memory_space<vmem>>, vector<1x1x32xf32>
    %384 = vector.shape_cast %383 : vector<1x1x32xf32> to vector<1x32xf32>
    %385 = vector.broadcast %384 : vector<1x32xf32> to vector<8x32xf32>
    %386 = arith.addf %382, %385 : vector<8x32xf32>
    %387 = arith.addf %386, %304 : vector<8x32xf32>
    %c2_177 = arith.constant 2 : index
    %c0_178 = arith.constant 0 : index
    %c0_179 = arith.constant 0 : index
    %388 = vector.load %arg11[%c2_177, %c0_178, %c0_179] : memref<6x1x32xf32, #tpu.memory_space<vmem>>, vector<1x1x32xf32>
    %389 = vector.shape_cast %388 : vector<1x1x32xf32> to vector<1x32xf32>
    %c2_180 = arith.constant 2 : index
    %c0_181 = arith.constant 0 : index
    %c0_182 = arith.constant 0 : index
    %390 = vector.load %arg12[%c2_180, %c0_181, %c0_182] : memref<6x1x32xf32, #tpu.memory_space<vmem>>, vector<1x1x32xf32>
    %391 = vector.shape_cast %390 : vector<1x1x32xf32> to vector<1x32xf32>
    %cst_183 = arith.constant dense<0.000000e+00> : vector<8xf32>
    %392 = vector.multi_reduction <add>, %387, %cst_183 [1] : vector<8x32xf32> to vector<8xf32>
    %393 = vector.shape_cast %392 : vector<8xf32> to vector<8x1xf32>
    %cst_184 = arith.constant 3.200000e+01 : f32
    %394 = vector.broadcast %cst_184 : f32 to vector<8x1xf32>
    %395 = arith.divf %393, %394 : vector<8x1xf32>
    %396 = vector.broadcast %395 : vector<8x1xf32> to vector<8x32xf32>
    %397 = arith.subf %387, %396 : vector<8x32xf32>
    %398 = arith.mulf %397, %397 : vector<8x32xf32>
    %cst_185 = arith.constant dense<0.000000e+00> : vector<8xf32>
    %399 = vector.multi_reduction <add>, %398, %cst_185 [1] : vector<8x32xf32> to vector<8xf32>
    %400 = vector.shape_cast %399 : vector<8xf32> to vector<8x1xf32>
    %cst_186 = arith.constant 3.200000e+01 : f32
    %401 = vector.broadcast %cst_186 : f32 to vector<8x1xf32>
    %402 = arith.divf %400, %401 : vector<8x1xf32>
    %403 = vector.broadcast %395 : vector<8x1xf32> to vector<8x32xf32>
    %404 = arith.subf %387, %403 : vector<8x32xf32>
    %cst_187 = arith.constant 9.99999974E-6 : f32
    %405 = vector.broadcast %cst_187 : f32 to vector<8x1xf32>
    %406 = arith.addf %402, %405 : vector<8x1xf32>
    %407 = math.rsqrt %406 : vector<8x1xf32>
    %408 = vector.broadcast %407 : vector<8x1xf32> to vector<8x32xf32>
    %409 = arith.mulf %404, %408 : vector<8x32xf32>
    %410 = vector.broadcast %389 : vector<1x32xf32> to vector<8x32xf32>
    %411 = arith.mulf %409, %410 : vector<8x32xf32>
    %412 = vector.broadcast %391 : vector<1x32xf32> to vector<8x32xf32>
    %413 = arith.addf %411, %412 : vector<8x32xf32>
    %c3 = arith.constant 3 : index
    %c0_188 = arith.constant 0 : index
    %c0_189 = arith.constant 0 : index
    %414 = vector.load %arg5[%c3, %c0_188, %c0_189] : memref<6x32x32xbf16, #tpu.memory_space<vmem>>, vector<1x32x32xbf16>
    %415 = vector.shape_cast %414 : vector<1x32x32xbf16> to vector<32x32xbf16>
    %416 = arith.truncf %413 : vector<8x32xf32> to vector<8x32xbf16>
    %cst_190 = arith.constant dense<0.000000e+00> : vector<8x32xf32>
    %417 = tpu.matmul %416, %415, %cst_190 {dimension_numbers = #tpu.dot_dimension_numbers<[1], [0], [0], [1], [0, 0, 1, 1], [], []>} : vector<8x32xbf16>, vector<32x32xbf16>, vector<8x32xf32> -> vector<8x32xf32>
    %c3_191 = arith.constant 3 : index
    %c0_192 = arith.constant 0 : index
    %c0_193 = arith.constant 0 : index
    %418 = vector.load %arg6[%c3_191, %c0_192, %c0_193] : memref<6x32x32xbf16, #tpu.memory_space<vmem>>, vector<1x32x32xbf16>
    %419 = vector.shape_cast %418 : vector<1x32x32xbf16> to vector<32x32xbf16>
    %420 = arith.truncf %413 : vector<8x32xf32> to vector<8x32xbf16>
    %cst_194 = arith.constant dense<0.000000e+00> : vector<8x32xf32>
    %421 = tpu.matmul %420, %419, %cst_194 {dimension_numbers = #tpu.dot_dimension_numbers<[1], [0], [0], [1], [0, 0, 1, 1], [], []>} : vector<8x32xbf16>, vector<32x32xbf16>, vector<8x32xf32> -> vector<8x32xf32>
    %c3_195 = arith.constant 3 : index
    %c0_196 = arith.constant 0 : index
    %c0_197 = arith.constant 0 : index
    %422 = vector.load %arg7[%c3_195, %c0_196, %c0_197] : memref<6x32x32xbf16, #tpu.memory_space<vmem>>, vector<1x32x32xbf16>
    %423 = vector.shape_cast %422 : vector<1x32x32xbf16> to vector<32x32xbf16>
    %424 = arith.truncf %413 : vector<8x32xf32> to vector<8x32xbf16>
    %cst_198 = arith.constant dense<0.000000e+00> : vector<8x32xf32>
    %425 = tpu.matmul %424, %423, %cst_198 {dimension_numbers = #tpu.dot_dimension_numbers<[1], [0], [0], [1], [0, 0, 1, 1], [], []>} : vector<8x32xbf16>, vector<32x32xbf16>, vector<8x32xf32> -> vector<8x32xf32>
    %426 = vector.extract_strided_slice %417 {offsets = [0, 0], sizes = [8, 8], strides = [1, 1]} : vector<8x32xf32> to vector<8x8xf32>
    %427 = vector.extract_strided_slice %421 {offsets = [0, 0], sizes = [8, 8], strides = [1, 1]} : vector<8x32xf32> to vector<8x8xf32>
    %428 = vector.extract_strided_slice %425 {offsets = [0, 0], sizes = [8, 8], strides = [1, 1]} : vector<8x32xf32> to vector<8x8xf32>
    "tpu.trace_start"() <{level = 10 : i32, message = "qd,kd->qk"}> : () -> ()
    %cst_199 = arith.constant dense<0.000000e+00> : vector<8x8xf32>
    %429 = tpu.matmul %426, %427, %cst_199 {dimension_numbers = #tpu.dot_dimension_numbers<[1], [1], [0], [0], [0, 0, 1, 0], [], []>} : vector<8x8xf32>, vector<8x8xf32>, vector<8x8xf32> -> vector<8x8xf32>
    "tpu.trace_stop"() : () -> ()
    %cst_200 = arith.constant dense<0xFF800000> : vector<8xf32>
    %430 = vector.multi_reduction <maximumf>, %429, %cst_200 [1] : vector<8x8xf32> to vector<8xf32>
    %431 = vector.shape_cast %430 : vector<8xf32> to vector<8x1xf32>
    %432 = vector.broadcast %431 : vector<8x1xf32> to vector<8x8xf32>
    %433 = arith.subf %429, %432 : vector<8x8xf32>
    %434 = math.exp %433 : vector<8x8xf32>
    %cst_201 = arith.constant dense<0.000000e+00> : vector<8xf32>
    %435 = vector.multi_reduction <add>, %434, %cst_201 [1] : vector<8x8xf32> to vector<8xf32>
    %436 = vector.shape_cast %435 : vector<8xf32> to vector<8x1xf32>
    %437 = vector.broadcast %436 : vector<8x1xf32> to vector<8x8xf32>
    %438 = arith.divf %434, %437 : vector<8x8xf32>
    %cst_202 = arith.constant dense<0.000000e+00> : vector<8x8xf32>
    %439 = tpu.matmul %438, %428, %cst_202 {dimension_numbers = #tpu.dot_dimension_numbers<[1], [0], [0], [1], [0, 0, 1, 1], [], []>} : vector<8x8xf32>, vector<8x8xf32>, vector<8x8xf32> -> vector<8x8xf32>
    %440 = vector.extract_strided_slice %417 {offsets = [0, 8], sizes = [8, 8], strides = [1, 1]} : vector<8x32xf32> to vector<8x8xf32>
    %441 = vector.extract_strided_slice %421 {offsets = [0, 8], sizes = [8, 8], strides = [1, 1]} : vector<8x32xf32> to vector<8x8xf32>
    %442 = vector.extract_strided_slice %425 {offsets = [0, 8], sizes = [8, 8], strides = [1, 1]} : vector<8x32xf32> to vector<8x8xf32>
    "tpu.trace_start"() <{level = 10 : i32, message = "qd,kd->qk"}> : () -> ()
    %cst_203 = arith.constant dense<0.000000e+00> : vector<8x8xf32>
    %443 = tpu.matmul %440, %441, %cst_203 {dimension_numbers = #tpu.dot_dimension_numbers<[1], [1], [0], [0], [0, 0, 1, 0], [], []>} : vector<8x8xf32>, vector<8x8xf32>, vector<8x8xf32> -> vector<8x8xf32>
    "tpu.trace_stop"() : () -> ()
    %cst_204 = arith.constant dense<0xFF800000> : vector<8xf32>
    %444 = vector.multi_reduction <maximumf>, %443, %cst_204 [1] : vector<8x8xf32> to vector<8xf32>
    %445 = vector.shape_cast %444 : vector<8xf32> to vector<8x1xf32>
    %446 = vector.broadcast %445 : vector<8x1xf32> to vector<8x8xf32>
    %447 = arith.subf %443, %446 : vector<8x8xf32>
    %448 = math.exp %447 : vector<8x8xf32>
    %cst_205 = arith.constant dense<0.000000e+00> : vector<8xf32>
    %449 = vector.multi_reduction <add>, %448, %cst_205 [1] : vector<8x8xf32> to vector<8xf32>
    %450 = vector.shape_cast %449 : vector<8xf32> to vector<8x1xf32>
    %451 = vector.broadcast %450 : vector<8x1xf32> to vector<8x8xf32>
    %452 = arith.divf %448, %451 : vector<8x8xf32>
    %cst_206 = arith.constant dense<0.000000e+00> : vector<8x8xf32>
    %453 = tpu.matmul %452, %442, %cst_206 {dimension_numbers = #tpu.dot_dimension_numbers<[1], [0], [0], [1], [0, 0, 1, 1], [], []>} : vector<8x8xf32>, vector<8x8xf32>, vector<8x8xf32> -> vector<8x8xf32>
    %454 = vector.extract_strided_slice %417 {offsets = [0, 16], sizes = [8, 8], strides = [1, 1]} : vector<8x32xf32> to vector<8x8xf32>
    %455 = vector.extract_strided_slice %421 {offsets = [0, 16], sizes = [8, 8], strides = [1, 1]} : vector<8x32xf32> to vector<8x8xf32>
    %456 = vector.extract_strided_slice %425 {offsets = [0, 16], sizes = [8, 8], strides = [1, 1]} : vector<8x32xf32> to vector<8x8xf32>
    "tpu.trace_start"() <{level = 10 : i32, message = "qd,kd->qk"}> : () -> ()
    %cst_207 = arith.constant dense<0.000000e+00> : vector<8x8xf32>
    %457 = tpu.matmul %454, %455, %cst_207 {dimension_numbers = #tpu.dot_dimension_numbers<[1], [1], [0], [0], [0, 0, 1, 0], [], []>} : vector<8x8xf32>, vector<8x8xf32>, vector<8x8xf32> -> vector<8x8xf32>
    "tpu.trace_stop"() : () -> ()
    %cst_208 = arith.constant dense<0xFF800000> : vector<8xf32>
    %458 = vector.multi_reduction <maximumf>, %457, %cst_208 [1] : vector<8x8xf32> to vector<8xf32>
    %459 = vector.shape_cast %458 : vector<8xf32> to vector<8x1xf32>
    %460 = vector.broadcast %459 : vector<8x1xf32> to vector<8x8xf32>
    %461 = arith.subf %457, %460 : vector<8x8xf32>
    %462 = math.exp %461 : vector<8x8xf32>
    %cst_209 = arith.constant dense<0.000000e+00> : vector<8xf32>
    %463 = vector.multi_reduction <add>, %462, %cst_209 [1] : vector<8x8xf32> to vector<8xf32>
    %464 = vector.shape_cast %463 : vector<8xf32> to vector<8x1xf32>
    %465 = vector.broadcast %464 : vector<8x1xf32> to vector<8x8xf32>
    %466 = arith.divf %462, %465 : vector<8x8xf32>
    %cst_210 = arith.constant dense<0.000000e+00> : vector<8x8xf32>
    %467 = tpu.matmul %466, %456, %cst_210 {dimension_numbers = #tpu.dot_dimension_numbers<[1], [0], [0], [1], [0, 0, 1, 1], [], []>} : vector<8x8xf32>, vector<8x8xf32>, vector<8x8xf32> -> vector<8x8xf32>
    %468 = vector.extract_strided_slice %417 {offsets = [0, 24], sizes = [8, 8], strides = [1, 1]} : vector<8x32xf32> to vector<8x8xf32>
    %469 = vector.extract_strided_slice %421 {offsets = [0, 24], sizes = [8, 8], strides = [1, 1]} : vector<8x32xf32> to vector<8x8xf32>
    %470 = vector.extract_strided_slice %425 {offsets = [0, 24], sizes = [8, 8], strides = [1, 1]} : vector<8x32xf32> to vector<8x8xf32>
    "tpu.trace_start"() <{level = 10 : i32, message = "qd,kd->qk"}> : () -> ()
    %cst_211 = arith.constant dense<0.000000e+00> : vector<8x8xf32>
    %471 = tpu.matmul %468, %469, %cst_211 {dimension_numbers = #tpu.dot_dimension_numbers<[1], [1], [0], [0], [0, 0, 1, 0], [], []>} : vector<8x8xf32>, vector<8x8xf32>, vector<8x8xf32> -> vector<8x8xf32>
    "tpu.trace_stop"() : () -> ()
    %cst_212 = arith.constant dense<0xFF800000> : vector<8xf32>
    %472 = vector.multi_reduction <maximumf>, %471, %cst_212 [1] : vector<8x8xf32> to vector<8xf32>
    %473 = vector.shape_cast %472 : vector<8xf32> to vector<8x1xf32>
    %474 = vector.broadcast %473 : vector<8x1xf32> to vector<8x8xf32>
    %475 = arith.subf %471, %474 : vector<8x8xf32>
    %476 = math.exp %475 : vector<8x8xf32>
    %cst_213 = arith.constant dense<0.000000e+00> : vector<8xf32>
    %477 = vector.multi_reduction <add>, %476, %cst_213 [1] : vector<8x8xf32> to vector<8xf32>
    %478 = vector.shape_cast %477 : vector<8xf32> to vector<8x1xf32>
    %479 = vector.broadcast %478 : vector<8x1xf32> to vector<8x8xf32>
    %480 = arith.divf %476, %479 : vector<8x8xf32>
    %cst_214 = arith.constant dense<0.000000e+00> : vector<8x8xf32>
    %481 = tpu.matmul %480, %470, %cst_214 {dimension_numbers = #tpu.dot_dimension_numbers<[1], [0], [0], [1], [0, 0, 1, 1], [], []>} : vector<8x8xf32>, vector<8x8xf32>, vector<8x8xf32> -> vector<8x8xf32>
    %482 = tpu.concatenate %439, %453, %467, %481 in 1 : vector<8x8xf32>, vector<8x8xf32>, vector<8x8xf32>, vector<8x8xf32> -> vector<8x32xf32>
    %c3_215 = arith.constant 3 : index
    %c0_216 = arith.constant 0 : index
    %c0_217 = arith.constant 0 : index
    %483 = vector.load %arg8[%c3_215, %c0_216, %c0_217] : memref<6x32x32xbf16, #tpu.memory_space<vmem>>, vector<1x32x32xbf16>
    %484 = vector.shape_cast %483 : vector<1x32x32xbf16> to vector<32x32xbf16>
    %485 = arith.truncf %413 : vector<8x32xf32> to vector<8x32xbf16>
    %cst_218 = arith.constant dense<0.000000e+00> : vector<8x32xf32>
    %486 = tpu.matmul %485, %484, %cst_218 {dimension_numbers = #tpu.dot_dimension_numbers<[1], [0], [0], [1], [0, 0, 1, 1], [], []>} : vector<8x32xbf16>, vector<32x32xbf16>, vector<8x32xf32> -> vector<8x32xf32>
    %c3_219 = arith.constant 3 : index
    %c0_220 = arith.constant 0 : index
    %c0_221 = arith.constant 0 : index
    %487 = vector.load %arg9[%c3_219, %c0_220, %c0_221] : memref<6x32x32xbf16, #tpu.memory_space<vmem>>, vector<1x32x32xbf16>
    %488 = vector.shape_cast %487 : vector<1x32x32xbf16> to vector<32x32xbf16>
    %489 = arith.truncf %482 : vector<8x32xf32> to vector<8x32xbf16>
    %cst_222 = arith.constant dense<0.000000e+00> : vector<8x32xf32>
    %490 = tpu.matmul %489, %488, %cst_222 {dimension_numbers = #tpu.dot_dimension_numbers<[1], [0], [0], [1], [0, 0, 1, 1], [], []>} : vector<8x32xbf16>, vector<32x32xbf16>, vector<8x32xf32> -> vector<8x32xf32>
    %491 = arith.addf %486, %490 : vector<8x32xf32>
    %c3_223 = arith.constant 3 : index
    %c0_224 = arith.constant 0 : index
    %c0_225 = arith.constant 0 : index
    %492 = vector.load %arg10[%c3_223, %c0_224, %c0_225] : memref<6x1x32xf32, #tpu.memory_space<vmem>>, vector<1x1x32xf32>
    %493 = vector.shape_cast %492 : vector<1x1x32xf32> to vector<1x32xf32>
    %494 = vector.broadcast %493 : vector<1x32xf32> to vector<8x32xf32>
    %495 = arith.addf %491, %494 : vector<8x32xf32>
    %496 = arith.addf %495, %413 : vector<8x32xf32>
    %c3_226 = arith.constant 3 : index
    %c0_227 = arith.constant 0 : index
    %c0_228 = arith.constant 0 : index
    %497 = vector.load %arg11[%c3_226, %c0_227, %c0_228] : memref<6x1x32xf32, #tpu.memory_space<vmem>>, vector<1x1x32xf32>
    %498 = vector.shape_cast %497 : vector<1x1x32xf32> to vector<1x32xf32>
    %c3_229 = arith.constant 3 : index
    %c0_230 = arith.constant 0 : index
    %c0_231 = arith.constant 0 : index
    %499 = vector.load %arg12[%c3_229, %c0_230, %c0_231] : memref<6x1x32xf32, #tpu.memory_space<vmem>>, vector<1x1x32xf32>
    %500 = vector.shape_cast %499 : vector<1x1x32xf32> to vector<1x32xf32>
    %cst_232 = arith.constant dense<0.000000e+00> : vector<8xf32>
    %501 = vector.multi_reduction <add>, %496, %cst_232 [1] : vector<8x32xf32> to vector<8xf32>
    %502 = vector.shape_cast %501 : vector<8xf32> to vector<8x1xf32>
    %cst_233 = arith.constant 3.200000e+01 : f32
    %503 = vector.broadcast %cst_233 : f32 to vector<8x1xf32>
    %504 = arith.divf %502, %503 : vector<8x1xf32>
    %505 = vector.broadcast %504 : vector<8x1xf32> to vector<8x32xf32>
    %506 = arith.subf %496, %505 : vector<8x32xf32>
    %507 = arith.mulf %506, %506 : vector<8x32xf32>
    %cst_234 = arith.constant dense<0.000000e+00> : vector<8xf32>
    %508 = vector.multi_reduction <add>, %507, %cst_234 [1] : vector<8x32xf32> to vector<8xf32>
    %509 = vector.shape_cast %508 : vector<8xf32> to vector<8x1xf32>
    %cst_235 = arith.constant 3.200000e+01 : f32
    %510 = vector.broadcast %cst_235 : f32 to vector<8x1xf32>
    %511 = arith.divf %509, %510 : vector<8x1xf32>
    %512 = vector.broadcast %504 : vector<8x1xf32> to vector<8x32xf32>
    %513 = arith.subf %496, %512 : vector<8x32xf32>
    %cst_236 = arith.constant 9.99999974E-6 : f32
    %514 = vector.broadcast %cst_236 : f32 to vector<8x1xf32>
    %515 = arith.addf %511, %514 : vector<8x1xf32>
    %516 = math.rsqrt %515 : vector<8x1xf32>
    %517 = vector.broadcast %516 : vector<8x1xf32> to vector<8x32xf32>
    %518 = arith.mulf %513, %517 : vector<8x32xf32>
    %519 = vector.broadcast %498 : vector<1x32xf32> to vector<8x32xf32>
    %520 = arith.mulf %518, %519 : vector<8x32xf32>
    %521 = vector.broadcast %500 : vector<1x32xf32> to vector<8x32xf32>
    %522 = arith.addf %520, %521 : vector<8x32xf32>
    %c0_237 = arith.constant 0 : index
    %c0_238 = arith.constant 0 : index
    %523 = vector.load %arg25[%c0_237, %c0_238] : memref<2x32xf32, #tpu.memory_space<vmem>>, vector<2x32xf32>
    %524 = vector.extract_strided_slice %523 {offsets = [0, 0], sizes = [1, 32], strides = [1, 1]} : vector<2x32xf32> to vector<1x32xf32>
    %525 = vector.broadcast %10 : vector<8x1xf32> to vector<8x32xf32>
    %526 = vector.broadcast %524 : vector<1x32xf32> to vector<8x32xf32>
    %527 = arith.mulf %525, %526 : vector<8x32xf32>
    %528 = vector.extract_strided_slice %523 {offsets = [1, 0], sizes = [1, 32], strides = [1, 1]} : vector<2x32xf32> to vector<1x32xf32>
    %529 = vector.broadcast %11 : vector<8x1xf32> to vector<8x32xf32>
    %530 = vector.broadcast %528 : vector<1x32xf32> to vector<8x32xf32>
    %531 = arith.mulf %529, %530 : vector<8x32xf32>
    %532 = arith.addf %527, %531 : vector<8x32xf32>
    %c0_239 = arith.constant 0 : index
    %c0_240 = arith.constant 0 : index
    %533 = vector.load %arg26[%c0_239, %c0_240] : memref<1x32xf32, #tpu.memory_space<vmem>>, vector<1x32xf32>
    %534 = vector.broadcast %533 : vector<1x32xf32> to vector<8x32xf32>
    %535 = arith.addf %532, %534 : vector<8x32xf32>
    %c0_241 = arith.constant 0 : index
    %c0_242 = arith.constant 0 : index
    %536 = vector.load %arg23[%c0_241, %c0_242] : memref<2x32xf32, #tpu.memory_space<vmem>>, vector<2x32xf32>
    %537 = vector.extract_strided_slice %536 {offsets = [0, 0], sizes = [1, 32], strides = [1, 1]} : vector<2x32xf32> to vector<1x32xf32>
    %538 = vector.broadcast %8 : vector<8x1xf32> to vector<8x32xf32>
    %539 = vector.broadcast %537 : vector<1x32xf32> to vector<8x32xf32>
    %540 = arith.mulf %538, %539 : vector<8x32xf32>
    %541 = vector.extract_strided_slice %536 {offsets = [1, 0], sizes = [1, 32], strides = [1, 1]} : vector<2x32xf32> to vector<1x32xf32>
    %542 = vector.broadcast %9 : vector<8x1xf32> to vector<8x32xf32>
    %543 = vector.broadcast %541 : vector<1x32xf32> to vector<8x32xf32>
    %544 = arith.mulf %542, %543 : vector<8x32xf32>
    %545 = arith.addf %540, %544 : vector<8x32xf32>
    %c0_243 = arith.constant 0 : index
    %c0_244 = arith.constant 0 : index
    %546 = vector.load %arg24[%c0_243, %c0_244] : memref<1x32xf32, #tpu.memory_space<vmem>>, vector<1x32xf32>
    %547 = vector.broadcast %546 : vector<1x32xf32> to vector<8x32xf32>
    %548 = arith.addf %545, %547 : vector<8x32xf32>
    %c4 = arith.constant 4 : index
    %c0_245 = arith.constant 0 : index
    %c0_246 = arith.constant 0 : index
    %549 = vector.load %arg5[%c4, %c0_245, %c0_246] : memref<6x32x32xbf16, #tpu.memory_space<vmem>>, vector<1x32x32xbf16>
    %550 = vector.shape_cast %549 : vector<1x32x32xbf16> to vector<32x32xbf16>
    %551 = arith.truncf %535 : vector<8x32xf32> to vector<8x32xbf16>
    %cst_247 = arith.constant dense<0.000000e+00> : vector<8x32xf32>
    %552 = tpu.matmul %551, %550, %cst_247 {dimension_numbers = #tpu.dot_dimension_numbers<[1], [0], [0], [1], [0, 0, 1, 1], [], []>} : vector<8x32xbf16>, vector<32x32xbf16>, vector<8x32xf32> -> vector<8x32xf32>
    %c4_248 = arith.constant 4 : index
    %c0_249 = arith.constant 0 : index
    %c0_250 = arith.constant 0 : index
    %553 = vector.load %arg6[%c4_248, %c0_249, %c0_250] : memref<6x32x32xbf16, #tpu.memory_space<vmem>>, vector<1x32x32xbf16>
    %554 = vector.shape_cast %553 : vector<1x32x32xbf16> to vector<32x32xbf16>
    %555 = arith.truncf %548 : vector<8x32xf32> to vector<8x32xbf16>
    %cst_251 = arith.constant dense<0.000000e+00> : vector<8x32xf32>
    %556 = tpu.matmul %555, %554, %cst_251 {dimension_numbers = #tpu.dot_dimension_numbers<[1], [0], [0], [1], [0, 0, 1, 1], [], []>} : vector<8x32xbf16>, vector<32x32xbf16>, vector<8x32xf32> -> vector<8x32xf32>
    %c4_252 = arith.constant 4 : index
    %c0_253 = arith.constant 0 : index
    %c0_254 = arith.constant 0 : index
    %557 = vector.load %arg7[%c4_252, %c0_253, %c0_254] : memref<6x32x32xbf16, #tpu.memory_space<vmem>>, vector<1x32x32xbf16>
    %558 = vector.shape_cast %557 : vector<1x32x32xbf16> to vector<32x32xbf16>
    %559 = arith.truncf %522 : vector<8x32xf32> to vector<8x32xbf16>
    %cst_255 = arith.constant dense<0.000000e+00> : vector<8x32xf32>
    %560 = tpu.matmul %559, %558, %cst_255 {dimension_numbers = #tpu.dot_dimension_numbers<[1], [0], [0], [1], [0, 0, 1, 1], [], []>} : vector<8x32xbf16>, vector<32x32xbf16>, vector<8x32xf32> -> vector<8x32xf32>
    %561 = vector.extract_strided_slice %552 {offsets = [0, 0], sizes = [8, 8], strides = [1, 1]} : vector<8x32xf32> to vector<8x8xf32>
    %562 = vector.extract_strided_slice %556 {offsets = [0, 0], sizes = [8, 8], strides = [1, 1]} : vector<8x32xf32> to vector<8x8xf32>
    %563 = vector.extract_strided_slice %560 {offsets = [0, 0], sizes = [8, 8], strides = [1, 1]} : vector<8x32xf32> to vector<8x8xf32>
    "tpu.trace_start"() <{level = 10 : i32, message = "qd,kd->qk"}> : () -> ()
    %cst_256 = arith.constant dense<0.000000e+00> : vector<8x8xf32>
    %564 = tpu.matmul %561, %562, %cst_256 {dimension_numbers = #tpu.dot_dimension_numbers<[1], [1], [0], [0], [0, 0, 1, 0], [], []>} : vector<8x8xf32>, vector<8x8xf32>, vector<8x8xf32> -> vector<8x8xf32>
    "tpu.trace_stop"() : () -> ()
    %cst_257 = arith.constant dense<0xFF800000> : vector<8xf32>
    %565 = vector.multi_reduction <maximumf>, %564, %cst_257 [1] : vector<8x8xf32> to vector<8xf32>
    %566 = vector.shape_cast %565 : vector<8xf32> to vector<8x1xf32>
    %567 = vector.broadcast %566 : vector<8x1xf32> to vector<8x8xf32>
    %568 = arith.subf %564, %567 : vector<8x8xf32>
    %569 = math.exp %568 : vector<8x8xf32>
    %cst_258 = arith.constant dense<0.000000e+00> : vector<8xf32>
    %570 = vector.multi_reduction <add>, %569, %cst_258 [1] : vector<8x8xf32> to vector<8xf32>
    %571 = vector.shape_cast %570 : vector<8xf32> to vector<8x1xf32>
    %572 = vector.broadcast %571 : vector<8x1xf32> to vector<8x8xf32>
    %573 = arith.divf %569, %572 : vector<8x8xf32>
    %cst_259 = arith.constant dense<0.000000e+00> : vector<8x8xf32>
    %574 = tpu.matmul %573, %563, %cst_259 {dimension_numbers = #tpu.dot_dimension_numbers<[1], [0], [0], [1], [0, 0, 1, 1], [], []>} : vector<8x8xf32>, vector<8x8xf32>, vector<8x8xf32> -> vector<8x8xf32>
    %575 = vector.extract_strided_slice %552 {offsets = [0, 8], sizes = [8, 8], strides = [1, 1]} : vector<8x32xf32> to vector<8x8xf32>
    %576 = vector.extract_strided_slice %556 {offsets = [0, 8], sizes = [8, 8], strides = [1, 1]} : vector<8x32xf32> to vector<8x8xf32>
    %577 = vector.extract_strided_slice %560 {offsets = [0, 8], sizes = [8, 8], strides = [1, 1]} : vector<8x32xf32> to vector<8x8xf32>
    "tpu.trace_start"() <{level = 10 : i32, message = "qd,kd->qk"}> : () -> ()
    %cst_260 = arith.constant dense<0.000000e+00> : vector<8x8xf32>
    %578 = tpu.matmul %575, %576, %cst_260 {dimension_numbers = #tpu.dot_dimension_numbers<[1], [1], [0], [0], [0, 0, 1, 0], [], []>} : vector<8x8xf32>, vector<8x8xf32>, vector<8x8xf32> -> vector<8x8xf32>
    "tpu.trace_stop"() : () -> ()
    %cst_261 = arith.constant dense<0xFF800000> : vector<8xf32>
    %579 = vector.multi_reduction <maximumf>, %578, %cst_261 [1] : vector<8x8xf32> to vector<8xf32>
    %580 = vector.shape_cast %579 : vector<8xf32> to vector<8x1xf32>
    %581 = vector.broadcast %580 : vector<8x1xf32> to vector<8x8xf32>
    %582 = arith.subf %578, %581 : vector<8x8xf32>
    %583 = math.exp %582 : vector<8x8xf32>
    %cst_262 = arith.constant dense<0.000000e+00> : vector<8xf32>
    %584 = vector.multi_reduction <add>, %583, %cst_262 [1] : vector<8x8xf32> to vector<8xf32>
    %585 = vector.shape_cast %584 : vector<8xf32> to vector<8x1xf32>
    %586 = vector.broadcast %585 : vector<8x1xf32> to vector<8x8xf32>
    %587 = arith.divf %583, %586 : vector<8x8xf32>
    %cst_263 = arith.constant dense<0.000000e+00> : vector<8x8xf32>
    %588 = tpu.matmul %587, %577, %cst_263 {dimension_numbers = #tpu.dot_dimension_numbers<[1], [0], [0], [1], [0, 0, 1, 1], [], []>} : vector<8x8xf32>, vector<8x8xf32>, vector<8x8xf32> -> vector<8x8xf32>
    %589 = vector.extract_strided_slice %552 {offsets = [0, 16], sizes = [8, 8], strides = [1, 1]} : vector<8x32xf32> to vector<8x8xf32>
    %590 = vector.extract_strided_slice %556 {offsets = [0, 16], sizes = [8, 8], strides = [1, 1]} : vector<8x32xf32> to vector<8x8xf32>
    %591 = vector.extract_strided_slice %560 {offsets = [0, 16], sizes = [8, 8], strides = [1, 1]} : vector<8x32xf32> to vector<8x8xf32>
    "tpu.trace_start"() <{level = 10 : i32, message = "qd,kd->qk"}> : () -> ()
    %cst_264 = arith.constant dense<0.000000e+00> : vector<8x8xf32>
    %592 = tpu.matmul %589, %590, %cst_264 {dimension_numbers = #tpu.dot_dimension_numbers<[1], [1], [0], [0], [0, 0, 1, 0], [], []>} : vector<8x8xf32>, vector<8x8xf32>, vector<8x8xf32> -> vector<8x8xf32>
    "tpu.trace_stop"() : () -> ()
    %cst_265 = arith.constant dense<0xFF800000> : vector<8xf32>
    %593 = vector.multi_reduction <maximumf>, %592, %cst_265 [1] : vector<8x8xf32> to vector<8xf32>
    %594 = vector.shape_cast %593 : vector<8xf32> to vector<8x1xf32>
    %595 = vector.broadcast %594 : vector<8x1xf32> to vector<8x8xf32>
    %596 = arith.subf %592, %595 : vector<8x8xf32>
    %597 = math.exp %596 : vector<8x8xf32>
    %cst_266 = arith.constant dense<0.000000e+00> : vector<8xf32>
    %598 = vector.multi_reduction <add>, %597, %cst_266 [1] : vector<8x8xf32> to vector<8xf32>
    %599 = vector.shape_cast %598 : vector<8xf32> to vector<8x1xf32>
    %600 = vector.broadcast %599 : vector<8x1xf32> to vector<8x8xf32>
    %601 = arith.divf %597, %600 : vector<8x8xf32>
    %cst_267 = arith.constant dense<0.000000e+00> : vector<8x8xf32>
    %602 = tpu.matmul %601, %591, %cst_267 {dimension_numbers = #tpu.dot_dimension_numbers<[1], [0], [0], [1], [0, 0, 1, 1], [], []>} : vector<8x8xf32>, vector<8x8xf32>, vector<8x8xf32> -> vector<8x8xf32>
    %603 = vector.extract_strided_slice %552 {offsets = [0, 24], sizes = [8, 8], strides = [1, 1]} : vector<8x32xf32> to vector<8x8xf32>
    %604 = vector.extract_strided_slice %556 {offsets = [0, 24], sizes = [8, 8], strides = [1, 1]} : vector<8x32xf32> to vector<8x8xf32>
    %605 = vector.extract_strided_slice %560 {offsets = [0, 24], sizes = [8, 8], strides = [1, 1]} : vector<8x32xf32> to vector<8x8xf32>
    "tpu.trace_start"() <{level = 10 : i32, message = "qd,kd->qk"}> : () -> ()
    %cst_268 = arith.constant dense<0.000000e+00> : vector<8x8xf32>
    %606 = tpu.matmul %603, %604, %cst_268 {dimension_numbers = #tpu.dot_dimension_numbers<[1], [1], [0], [0], [0, 0, 1, 0], [], []>} : vector<8x8xf32>, vector<8x8xf32>, vector<8x8xf32> -> vector<8x8xf32>
    "tpu.trace_stop"() : () -> ()
    %cst_269 = arith.constant dense<0xFF800000> : vector<8xf32>
    %607 = vector.multi_reduction <maximumf>, %606, %cst_269 [1] : vector<8x8xf32> to vector<8xf32>
    %608 = vector.shape_cast %607 : vector<8xf32> to vector<8x1xf32>
    %609 = vector.broadcast %608 : vector<8x1xf32> to vector<8x8xf32>
    %610 = arith.subf %606, %609 : vector<8x8xf32>
    %611 = math.exp %610 : vector<8x8xf32>
    %cst_270 = arith.constant dense<0.000000e+00> : vector<8xf32>
    %612 = vector.multi_reduction <add>, %611, %cst_270 [1] : vector<8x8xf32> to vector<8xf32>
    %613 = vector.shape_cast %612 : vector<8xf32> to vector<8x1xf32>
    %614 = vector.broadcast %613 : vector<8x1xf32> to vector<8x8xf32>
    %615 = arith.divf %611, %614 : vector<8x8xf32>
    %cst_271 = arith.constant dense<0.000000e+00> : vector<8x8xf32>
    %616 = tpu.matmul %615, %605, %cst_271 {dimension_numbers = #tpu.dot_dimension_numbers<[1], [0], [0], [1], [0, 0, 1, 1], [], []>} : vector<8x8xf32>, vector<8x8xf32>, vector<8x8xf32> -> vector<8x8xf32>
    %617 = tpu.concatenate %574, %588, %602, %616 in 1 : vector<8x8xf32>, vector<8x8xf32>, vector<8x8xf32>, vector<8x8xf32> -> vector<8x32xf32>
    %c4_272 = arith.constant 4 : index
    %c0_273 = arith.constant 0 : index
    %c0_274 = arith.constant 0 : index
    %618 = vector.load %arg8[%c4_272, %c0_273, %c0_274] : memref<6x32x32xbf16, #tpu.memory_space<vmem>>, vector<1x32x32xbf16>
    %619 = vector.shape_cast %618 : vector<1x32x32xbf16> to vector<32x32xbf16>
    %620 = arith.truncf %535 : vector<8x32xf32> to vector<8x32xbf16>
    %cst_275 = arith.constant dense<0.000000e+00> : vector<8x32xf32>
    %621 = tpu.matmul %620, %619, %cst_275 {dimension_numbers = #tpu.dot_dimension_numbers<[1], [0], [0], [1], [0, 0, 1, 1], [], []>} : vector<8x32xbf16>, vector<32x32xbf16>, vector<8x32xf32> -> vector<8x32xf32>
    %c4_276 = arith.constant 4 : index
    %c0_277 = arith.constant 0 : index
    %c0_278 = arith.constant 0 : index
    %622 = vector.load %arg9[%c4_276, %c0_277, %c0_278] : memref<6x32x32xbf16, #tpu.memory_space<vmem>>, vector<1x32x32xbf16>
    %623 = vector.shape_cast %622 : vector<1x32x32xbf16> to vector<32x32xbf16>
    %624 = arith.truncf %617 : vector<8x32xf32> to vector<8x32xbf16>
    %cst_279 = arith.constant dense<0.000000e+00> : vector<8x32xf32>
    %625 = tpu.matmul %624, %623, %cst_279 {dimension_numbers = #tpu.dot_dimension_numbers<[1], [0], [0], [1], [0, 0, 1, 1], [], []>} : vector<8x32xbf16>, vector<32x32xbf16>, vector<8x32xf32> -> vector<8x32xf32>
    %626 = arith.addf %621, %625 : vector<8x32xf32>
    %c4_280 = arith.constant 4 : index
    %c0_281 = arith.constant 0 : index
    %c0_282 = arith.constant 0 : index
    %627 = vector.load %arg10[%c4_280, %c0_281, %c0_282] : memref<6x1x32xf32, #tpu.memory_space<vmem>>, vector<1x1x32xf32>
    %628 = vector.shape_cast %627 : vector<1x1x32xf32> to vector<1x32xf32>
    %629 = vector.broadcast %628 : vector<1x32xf32> to vector<8x32xf32>
    %630 = arith.addf %626, %629 : vector<8x32xf32>
    %631 = arith.addf %630, %535 : vector<8x32xf32>
    %c4_283 = arith.constant 4 : index
    %c0_284 = arith.constant 0 : index
    %c0_285 = arith.constant 0 : index
    %632 = vector.load %arg11[%c4_283, %c0_284, %c0_285] : memref<6x1x32xf32, #tpu.memory_space<vmem>>, vector<1x1x32xf32>
    %633 = vector.shape_cast %632 : vector<1x1x32xf32> to vector<1x32xf32>
    %c4_286 = arith.constant 4 : index
    %c0_287 = arith.constant 0 : index
    %c0_288 = arith.constant 0 : index
    %634 = vector.load %arg12[%c4_286, %c0_287, %c0_288] : memref<6x1x32xf32, #tpu.memory_space<vmem>>, vector<1x1x32xf32>
    %635 = vector.shape_cast %634 : vector<1x1x32xf32> to vector<1x32xf32>
    %cst_289 = arith.constant dense<0.000000e+00> : vector<8xf32>
    %636 = vector.multi_reduction <add>, %631, %cst_289 [1] : vector<8x32xf32> to vector<8xf32>
    %637 = vector.shape_cast %636 : vector<8xf32> to vector<8x1xf32>
    %cst_290 = arith.constant 3.200000e+01 : f32
    %638 = vector.broadcast %cst_290 : f32 to vector<8x1xf32>
    %639 = arith.divf %637, %638 : vector<8x1xf32>
    %640 = vector.broadcast %639 : vector<8x1xf32> to vector<8x32xf32>
    %641 = arith.subf %631, %640 : vector<8x32xf32>
    %642 = arith.mulf %641, %641 : vector<8x32xf32>
    %cst_291 = arith.constant dense<0.000000e+00> : vector<8xf32>
    %643 = vector.multi_reduction <add>, %642, %cst_291 [1] : vector<8x32xf32> to vector<8xf32>
    %644 = vector.shape_cast %643 : vector<8xf32> to vector<8x1xf32>
    %cst_292 = arith.constant 3.200000e+01 : f32
    %645 = vector.broadcast %cst_292 : f32 to vector<8x1xf32>
    %646 = arith.divf %644, %645 : vector<8x1xf32>
    %647 = vector.broadcast %639 : vector<8x1xf32> to vector<8x32xf32>
    %648 = arith.subf %631, %647 : vector<8x32xf32>
    %cst_293 = arith.constant 9.99999974E-6 : f32
    %649 = vector.broadcast %cst_293 : f32 to vector<8x1xf32>
    %650 = arith.addf %646, %649 : vector<8x1xf32>
    %651 = math.rsqrt %650 : vector<8x1xf32>
    %652 = vector.broadcast %651 : vector<8x1xf32> to vector<8x32xf32>
    %653 = arith.mulf %648, %652 : vector<8x32xf32>
    %654 = vector.broadcast %633 : vector<1x32xf32> to vector<8x32xf32>
    %655 = arith.mulf %653, %654 : vector<8x32xf32>
    %656 = vector.broadcast %635 : vector<1x32xf32> to vector<8x32xf32>
    %657 = arith.addf %655, %656 : vector<8x32xf32>
    %c5 = arith.constant 5 : index
    %c0_294 = arith.constant 0 : index
    %c0_295 = arith.constant 0 : index
    %658 = vector.load %arg5[%c5, %c0_294, %c0_295] : memref<6x32x32xbf16, #tpu.memory_space<vmem>>, vector<1x32x32xbf16>
    %659 = vector.shape_cast %658 : vector<1x32x32xbf16> to vector<32x32xbf16>
    %660 = arith.truncf %657 : vector<8x32xf32> to vector<8x32xbf16>
    %cst_296 = arith.constant dense<0.000000e+00> : vector<8x32xf32>
    %661 = tpu.matmul %660, %659, %cst_296 {dimension_numbers = #tpu.dot_dimension_numbers<[1], [0], [0], [1], [0, 0, 1, 1], [], []>} : vector<8x32xbf16>, vector<32x32xbf16>, vector<8x32xf32> -> vector<8x32xf32>
    %c5_297 = arith.constant 5 : index
    %c0_298 = arith.constant 0 : index
    %c0_299 = arith.constant 0 : index
    %662 = vector.load %arg6[%c5_297, %c0_298, %c0_299] : memref<6x32x32xbf16, #tpu.memory_space<vmem>>, vector<1x32x32xbf16>
    %663 = vector.shape_cast %662 : vector<1x32x32xbf16> to vector<32x32xbf16>
    %664 = arith.truncf %548 : vector<8x32xf32> to vector<8x32xbf16>
    %cst_300 = arith.constant dense<0.000000e+00> : vector<8x32xf32>
    %665 = tpu.matmul %664, %663, %cst_300 {dimension_numbers = #tpu.dot_dimension_numbers<[1], [0], [0], [1], [0, 0, 1, 1], [], []>} : vector<8x32xbf16>, vector<32x32xbf16>, vector<8x32xf32> -> vector<8x32xf32>
    %c5_301 = arith.constant 5 : index
    %c0_302 = arith.constant 0 : index
    %c0_303 = arith.constant 0 : index
    %666 = vector.load %arg7[%c5_301, %c0_302, %c0_303] : memref<6x32x32xbf16, #tpu.memory_space<vmem>>, vector<1x32x32xbf16>
    %667 = vector.shape_cast %666 : vector<1x32x32xbf16> to vector<32x32xbf16>
    %668 = arith.truncf %522 : vector<8x32xf32> to vector<8x32xbf16>
    %cst_304 = arith.constant dense<0.000000e+00> : vector<8x32xf32>
    %669 = tpu.matmul %668, %667, %cst_304 {dimension_numbers = #tpu.dot_dimension_numbers<[1], [0], [0], [1], [0, 0, 1, 1], [], []>} : vector<8x32xbf16>, vector<32x32xbf16>, vector<8x32xf32> -> vector<8x32xf32>
    %670 = vector.extract_strided_slice %661 {offsets = [0, 0], sizes = [8, 8], strides = [1, 1]} : vector<8x32xf32> to vector<8x8xf32>
    %671 = vector.extract_strided_slice %665 {offsets = [0, 0], sizes = [8, 8], strides = [1, 1]} : vector<8x32xf32> to vector<8x8xf32>
    %672 = vector.extract_strided_slice %669 {offsets = [0, 0], sizes = [8, 8], strides = [1, 1]} : vector<8x32xf32> to vector<8x8xf32>
    "tpu.trace_start"() <{level = 10 : i32, message = "qd,kd->qk"}> : () -> ()
    %cst_305 = arith.constant dense<0.000000e+00> : vector<8x8xf32>
    %673 = tpu.matmul %670, %671, %cst_305 {dimension_numbers = #tpu.dot_dimension_numbers<[1], [1], [0], [0], [0, 0, 1, 0], [], []>} : vector<8x8xf32>, vector<8x8xf32>, vector<8x8xf32> -> vector<8x8xf32>
    "tpu.trace_stop"() : () -> ()
    %cst_306 = arith.constant dense<0xFF800000> : vector<8xf32>
    %674 = vector.multi_reduction <maximumf>, %673, %cst_306 [1] : vector<8x8xf32> to vector<8xf32>
    %675 = vector.shape_cast %674 : vector<8xf32> to vector<8x1xf32>
    %676 = vector.broadcast %675 : vector<8x1xf32> to vector<8x8xf32>
    %677 = arith.subf %673, %676 : vector<8x8xf32>
    %678 = math.exp %677 : vector<8x8xf32>
    %cst_307 = arith.constant dense<0.000000e+00> : vector<8xf32>
    %679 = vector.multi_reduction <add>, %678, %cst_307 [1] : vector<8x8xf32> to vector<8xf32>
    %680 = vector.shape_cast %679 : vector<8xf32> to vector<8x1xf32>
    %681 = vector.broadcast %680 : vector<8x1xf32> to vector<8x8xf32>
    %682 = arith.divf %678, %681 : vector<8x8xf32>
    %cst_308 = arith.constant dense<0.000000e+00> : vector<8x8xf32>
    %683 = tpu.matmul %682, %672, %cst_308 {dimension_numbers = #tpu.dot_dimension_numbers<[1], [0], [0], [1], [0, 0, 1, 1], [], []>} : vector<8x8xf32>, vector<8x8xf32>, vector<8x8xf32> -> vector<8x8xf32>
    %684 = vector.extract_strided_slice %661 {offsets = [0, 8], sizes = [8, 8], strides = [1, 1]} : vector<8x32xf32> to vector<8x8xf32>
    %685 = vector.extract_strided_slice %665 {offsets = [0, 8], sizes = [8, 8], strides = [1, 1]} : vector<8x32xf32> to vector<8x8xf32>
    %686 = vector.extract_strided_slice %669 {offsets = [0, 8], sizes = [8, 8], strides = [1, 1]} : vector<8x32xf32> to vector<8x8xf32>
    "tpu.trace_start"() <{level = 10 : i32, message = "qd,kd->qk"}> : () -> ()
    %cst_309 = arith.constant dense<0.000000e+00> : vector<8x8xf32>
    %687 = tpu.matmul %684, %685, %cst_309 {dimension_numbers = #tpu.dot_dimension_numbers<[1], [1], [0], [0], [0, 0, 1, 0], [], []>} : vector<8x8xf32>, vector<8x8xf32>, vector<8x8xf32> -> vector<8x8xf32>
    "tpu.trace_stop"() : () -> ()
    %cst_310 = arith.constant dense<0xFF800000> : vector<8xf32>
    %688 = vector.multi_reduction <maximumf>, %687, %cst_310 [1] : vector<8x8xf32> to vector<8xf32>
    %689 = vector.shape_cast %688 : vector<8xf32> to vector<8x1xf32>
    %690 = vector.broadcast %689 : vector<8x1xf32> to vector<8x8xf32>
    %691 = arith.subf %687, %690 : vector<8x8xf32>
    %692 = math.exp %691 : vector<8x8xf32>
    %cst_311 = arith.constant dense<0.000000e+00> : vector<8xf32>
    %693 = vector.multi_reduction <add>, %692, %cst_311 [1] : vector<8x8xf32> to vector<8xf32>
    %694 = vector.shape_cast %693 : vector<8xf32> to vector<8x1xf32>
    %695 = vector.broadcast %694 : vector<8x1xf32> to vector<8x8xf32>
    %696 = arith.divf %692, %695 : vector<8x8xf32>
    %cst_312 = arith.constant dense<0.000000e+00> : vector<8x8xf32>
    %697 = tpu.matmul %696, %686, %cst_312 {dimension_numbers = #tpu.dot_dimension_numbers<[1], [0], [0], [1], [0, 0, 1, 1], [], []>} : vector<8x8xf32>, vector<8x8xf32>, vector<8x8xf32> -> vector<8x8xf32>
    %698 = vector.extract_strided_slice %661 {offsets = [0, 16], sizes = [8, 8], strides = [1, 1]} : vector<8x32xf32> to vector<8x8xf32>
    %699 = vector.extract_strided_slice %665 {offsets = [0, 16], sizes = [8, 8], strides = [1, 1]} : vector<8x32xf32> to vector<8x8xf32>
    %700 = vector.extract_strided_slice %669 {offsets = [0, 16], sizes = [8, 8], strides = [1, 1]} : vector<8x32xf32> to vector<8x8xf32>
    "tpu.trace_start"() <{level = 10 : i32, message = "qd,kd->qk"}> : () -> ()
    %cst_313 = arith.constant dense<0.000000e+00> : vector<8x8xf32>
    %701 = tpu.matmul %698, %699, %cst_313 {dimension_numbers = #tpu.dot_dimension_numbers<[1], [1], [0], [0], [0, 0, 1, 0], [], []>} : vector<8x8xf32>, vector<8x8xf32>, vector<8x8xf32> -> vector<8x8xf32>
    "tpu.trace_stop"() : () -> ()
    %cst_314 = arith.constant dense<0xFF800000> : vector<8xf32>
    %702 = vector.multi_reduction <maximumf>, %701, %cst_314 [1] : vector<8x8xf32> to vector<8xf32>
    %703 = vector.shape_cast %702 : vector<8xf32> to vector<8x1xf32>
    %704 = vector.broadcast %703 : vector<8x1xf32> to vector<8x8xf32>
    %705 = arith.subf %701, %704 : vector<8x8xf32>
    %706 = math.exp %705 : vector<8x8xf32>
    %cst_315 = arith.constant dense<0.000000e+00> : vector<8xf32>
    %707 = vector.multi_reduction <add>, %706, %cst_315 [1] : vector<8x8xf32> to vector<8xf32>
    %708 = vector.shape_cast %707 : vector<8xf32> to vector<8x1xf32>
    %709 = vector.broadcast %708 : vector<8x1xf32> to vector<8x8xf32>
    %710 = arith.divf %706, %709 : vector<8x8xf32>
    %cst_316 = arith.constant dense<0.000000e+00> : vector<8x8xf32>
    %711 = tpu.matmul %710, %700, %cst_316 {dimension_numbers = #tpu.dot_dimension_numbers<[1], [0], [0], [1], [0, 0, 1, 1], [], []>} : vector<8x8xf32>, vector<8x8xf32>, vector<8x8xf32> -> vector<8x8xf32>
    %712 = vector.extract_strided_slice %661 {offsets = [0, 24], sizes = [8, 8], strides = [1, 1]} : vector<8x32xf32> to vector<8x8xf32>
    %713 = vector.extract_strided_slice %665 {offsets = [0, 24], sizes = [8, 8], strides = [1, 1]} : vector<8x32xf32> to vector<8x8xf32>
    %714 = vector.extract_strided_slice %669 {offsets = [0, 24], sizes = [8, 8], strides = [1, 1]} : vector<8x32xf32> to vector<8x8xf32>
    "tpu.trace_start"() <{level = 10 : i32, message = "qd,kd->qk"}> : () -> ()
    %cst_317 = arith.constant dense<0.000000e+00> : vector<8x8xf32>
    %715 = tpu.matmul %712, %713, %cst_317 {dimension_numbers = #tpu.dot_dimension_numbers<[1], [1], [0], [0], [0, 0, 1, 0], [], []>} : vector<8x8xf32>, vector<8x8xf32>, vector<8x8xf32> -> vector<8x8xf32>
    "tpu.trace_stop"() : () -> ()
    %cst_318 = arith.constant dense<0xFF800000> : vector<8xf32>
    %716 = vector.multi_reduction <maximumf>, %715, %cst_318 [1] : vector<8x8xf32> to vector<8xf32>
    %717 = vector.shape_cast %716 : vector<8xf32> to vector<8x1xf32>
    %718 = vector.broadcast %717 : vector<8x1xf32> to vector<8x8xf32>
    %719 = arith.subf %715, %718 : vector<8x8xf32>
    %720 = math.exp %719 : vector<8x8xf32>
    %cst_319 = arith.constant dense<0.000000e+00> : vector<8xf32>
    %721 = vector.multi_reduction <add>, %720, %cst_319 [1] : vector<8x8xf32> to vector<8xf32>
    %722 = vector.shape_cast %721 : vector<8xf32> to vector<8x1xf32>
    %723 = vector.broadcast %722 : vector<8x1xf32> to vector<8x8xf32>
    %724 = arith.divf %720, %723 : vector<8x8xf32>
    %cst_320 = arith.constant dense<0.000000e+00> : vector<8x8xf32>
    %725 = tpu.matmul %724, %714, %cst_320 {dimension_numbers = #tpu.dot_dimension_numbers<[1], [0], [0], [1], [0, 0, 1, 1], [], []>} : vector<8x8xf32>, vector<8x8xf32>, vector<8x8xf32> -> vector<8x8xf32>
    %726 = tpu.concatenate %683, %697, %711, %725 in 1 : vector<8x8xf32>, vector<8x8xf32>, vector<8x8xf32>, vector<8x8xf32> -> vector<8x32xf32>
    %c5_321 = arith.constant 5 : index
    %c0_322 = arith.constant 0 : index
    %c0_323 = arith.constant 0 : index
    %727 = vector.load %arg8[%c5_321, %c0_322, %c0_323] : memref<6x32x32xbf16, #tpu.memory_space<vmem>>, vector<1x32x32xbf16>
    %728 = vector.shape_cast %727 : vector<1x32x32xbf16> to vector<32x32xbf16>
    %729 = arith.truncf %657 : vector<8x32xf32> to vector<8x32xbf16>
    %cst_324 = arith.constant dense<0.000000e+00> : vector<8x32xf32>
    %730 = tpu.matmul %729, %728, %cst_324 {dimension_numbers = #tpu.dot_dimension_numbers<[1], [0], [0], [1], [0, 0, 1, 1], [], []>} : vector<8x32xbf16>, vector<32x32xbf16>, vector<8x32xf32> -> vector<8x32xf32>
    %c5_325 = arith.constant 5 : index
    %c0_326 = arith.constant 0 : index
    %c0_327 = arith.constant 0 : index
    %731 = vector.load %arg9[%c5_325, %c0_326, %c0_327] : memref<6x32x32xbf16, #tpu.memory_space<vmem>>, vector<1x32x32xbf16>
    %732 = vector.shape_cast %731 : vector<1x32x32xbf16> to vector<32x32xbf16>
    %733 = arith.truncf %726 : vector<8x32xf32> to vector<8x32xbf16>
    %cst_328 = arith.constant dense<0.000000e+00> : vector<8x32xf32>
    %734 = tpu.matmul %733, %732, %cst_328 {dimension_numbers = #tpu.dot_dimension_numbers<[1], [0], [0], [1], [0, 0, 1, 1], [], []>} : vector<8x32xbf16>, vector<32x32xbf16>, vector<8x32xf32> -> vector<8x32xf32>
    %735 = arith.addf %730, %734 : vector<8x32xf32>
    %c5_329 = arith.constant 5 : index
    %c0_330 = arith.constant 0 : index
    %c0_331 = arith.constant 0 : index
    %736 = vector.load %arg10[%c5_329, %c0_330, %c0_331] : memref<6x1x32xf32, #tpu.memory_space<vmem>>, vector<1x1x32xf32>
    %737 = vector.shape_cast %736 : vector<1x1x32xf32> to vector<1x32xf32>
    %738 = vector.broadcast %737 : vector<1x32xf32> to vector<8x32xf32>
    %739 = arith.addf %735, %738 : vector<8x32xf32>
    %740 = arith.addf %739, %657 : vector<8x32xf32>
    %c5_332 = arith.constant 5 : index
    %c0_333 = arith.constant 0 : index
    %c0_334 = arith.constant 0 : index
    %741 = vector.load %arg11[%c5_332, %c0_333, %c0_334] : memref<6x1x32xf32, #tpu.memory_space<vmem>>, vector<1x1x32xf32>
    %742 = vector.shape_cast %741 : vector<1x1x32xf32> to vector<1x32xf32>
    %c5_335 = arith.constant 5 : index
    %c0_336 = arith.constant 0 : index
    %c0_337 = arith.constant 0 : index
    %743 = vector.load %arg12[%c5_335, %c0_336, %c0_337] : memref<6x1x32xf32, #tpu.memory_space<vmem>>, vector<1x1x32xf32>
    %744 = vector.shape_cast %743 : vector<1x1x32xf32> to vector<1x32xf32>
    %cst_338 = arith.constant dense<0.000000e+00> : vector<8xf32>
    %745 = vector.multi_reduction <add>, %740, %cst_338 [1] : vector<8x32xf32> to vector<8xf32>
    %746 = vector.shape_cast %745 : vector<8xf32> to vector<8x1xf32>
    %cst_339 = arith.constant 3.200000e+01 : f32
    %747 = vector.broadcast %cst_339 : f32 to vector<8x1xf32>
    %748 = arith.divf %746, %747 : vector<8x1xf32>
    %749 = vector.broadcast %748 : vector<8x1xf32> to vector<8x32xf32>
    %750 = arith.subf %740, %749 : vector<8x32xf32>
    %751 = arith.mulf %750, %750 : vector<8x32xf32>
    %cst_340 = arith.constant dense<0.000000e+00> : vector<8xf32>
    %752 = vector.multi_reduction <add>, %751, %cst_340 [1] : vector<8x32xf32> to vector<8xf32>
    %753 = vector.shape_cast %752 : vector<8xf32> to vector<8x1xf32>
    %cst_341 = arith.constant 3.200000e+01 : f32
    %754 = vector.broadcast %cst_341 : f32 to vector<8x1xf32>
    %755 = arith.divf %753, %754 : vector<8x1xf32>
    %756 = vector.broadcast %748 : vector<8x1xf32> to vector<8x32xf32>
    %757 = arith.subf %740, %756 : vector<8x32xf32>
    %cst_342 = arith.constant 9.99999974E-6 : f32
    %758 = vector.broadcast %cst_342 : f32 to vector<8x1xf32>
    %759 = arith.addf %755, %758 : vector<8x1xf32>
    %760 = math.rsqrt %759 : vector<8x1xf32>
    %761 = vector.broadcast %760 : vector<8x1xf32> to vector<8x32xf32>
    %762 = arith.mulf %757, %761 : vector<8x32xf32>
    %763 = vector.broadcast %742 : vector<1x32xf32> to vector<8x32xf32>
    %764 = arith.mulf %762, %763 : vector<8x32xf32>
    %765 = vector.broadcast %744 : vector<1x32xf32> to vector<8x32xf32>
    %766 = arith.addf %764, %765 : vector<8x32xf32>
    %c0_343 = arith.constant 0 : index
    %c0_344 = arith.constant 0 : index
    %767 = vector.load %arg27[%c0_343, %c0_344] : memref<2x32xf32, #tpu.memory_space<vmem>>, vector<2x32xf32>
    %768 = vector.extract_strided_slice %767 {offsets = [0, 0], sizes = [1, 32], strides = [1, 1]} : vector<2x32xf32> to vector<1x32xf32>
    %769 = vector.broadcast %10 : vector<8x1xf32> to vector<8x32xf32>
    %770 = vector.broadcast %768 : vector<1x32xf32> to vector<8x32xf32>
    %771 = arith.mulf %769, %770 : vector<8x32xf32>
    %772 = vector.extract_strided_slice %767 {offsets = [1, 0], sizes = [1, 32], strides = [1, 1]} : vector<2x32xf32> to vector<1x32xf32>
    %773 = vector.broadcast %11 : vector<8x1xf32> to vector<8x32xf32>
    %774 = vector.broadcast %772 : vector<1x32xf32> to vector<8x32xf32>
    %775 = arith.mulf %773, %774 : vector<8x32xf32>
    %776 = arith.addf %771, %775 : vector<8x32xf32>
    %c0_345 = arith.constant 0 : index
    %c0_346 = arith.constant 0 : index
    %777 = vector.load %arg28[%c0_345, %c0_346] : memref<1x32xf32, #tpu.memory_space<vmem>>, vector<1x32xf32>
    %778 = vector.broadcast %777 : vector<1x32xf32> to vector<8x32xf32>
    %779 = arith.addf %776, %778 : vector<8x32xf32>
    %c0_347 = arith.constant 0 : index
    %c0_348 = arith.constant 0 : index
    %780 = vector.load %arg29[%c0_347, %c0_348] : memref<32x96xbf16, #tpu.memory_space<vmem>>, vector<32x96xbf16>
    %781 = arith.truncf %766 : vector<8x32xf32> to vector<8x32xbf16>
    %cst_349 = arith.constant dense<0.000000e+00> : vector<8x96xf32>
    %782 = tpu.matmul %781, %780, %cst_349 {dimension_numbers = #tpu.dot_dimension_numbers<[1], [0], [0], [1], [0, 0, 1, 1], [], []>} : vector<8x32xbf16>, vector<32x96xbf16>, vector<8x96xf32> -> vector<8x96xf32>
    %c0_350 = arith.constant 0 : index
    %c0_351 = arith.constant 0 : index
    %783 = vector.load %arg30[%c0_350, %c0_351] : memref<32x96xbf16, #tpu.memory_space<vmem>>, vector<32x96xbf16>
    %784 = arith.truncf %286 : vector<8x32xf32> to vector<8x32xbf16>
    %cst_352 = arith.constant dense<0.000000e+00> : vector<8x96xf32>
    %785 = tpu.matmul %784, %783, %cst_352 {dimension_numbers = #tpu.dot_dimension_numbers<[1], [0], [0], [1], [0, 0, 1, 1], [], []>} : vector<8x32xbf16>, vector<32x96xbf16>, vector<8x96xf32> -> vector<8x96xf32>
    %786 = arith.addf %782, %785 : vector<8x96xf32>
    %c0_353 = arith.constant 0 : index
    %c0_354 = arith.constant 0 : index
    %787 = vector.load %arg31[%c0_353, %c0_354] : memref<32x96xbf16, #tpu.memory_space<vmem>>, vector<32x96xbf16>
    %788 = arith.truncf %779 : vector<8x32xf32> to vector<8x32xbf16>
    %cst_355 = arith.constant dense<0.000000e+00> : vector<8x96xf32>
    %789 = tpu.matmul %788, %787, %cst_355 {dimension_numbers = #tpu.dot_dimension_numbers<[1], [0], [0], [1], [0, 0, 1, 1], [], []>} : vector<8x32xbf16>, vector<32x96xbf16>, vector<8x96xf32> -> vector<8x96xf32>
    %790 = arith.addf %786, %789 : vector<8x96xf32>
    %c0_356 = arith.constant 0 : index
    %c0_357 = arith.constant 0 : index
    %791 = vector.load %arg32[%c0_356, %c0_357] : memref<1x96xf32, #tpu.memory_space<vmem>>, vector<1x96xf32>
    %792 = vector.broadcast %791 : vector<1x96xf32> to vector<8x96xf32>
    %793 = arith.addf %790, %792 : vector<8x96xf32>
    %cst_358 = arith.constant 5.000000e-01 : f32
    %794 = vector.broadcast %cst_358 : f32 to vector<8x96xf32>
    %795 = arith.mulf %794, %793 : vector<8x96xf32>
    %cst_359 = arith.constant 4.471500e-02 : f32
    %796 = vector.broadcast %cst_359 : f32 to vector<8x96xf32>
    %797 = arith.mulf %796, %793 : vector<8x96xf32>
    %798 = arith.mulf %797, %793 : vector<8x96xf32>
    %799 = arith.mulf %798, %793 : vector<8x96xf32>
    %800 = arith.addf %793, %799 : vector<8x96xf32>
    %cst_360 = arith.constant 0.797884583 : f32
    %801 = vector.broadcast %cst_360 : f32 to vector<8x96xf32>
    %802 = arith.mulf %801, %800 : vector<8x96xf32>
    %803 = math.tanh %802 : vector<8x96xf32>
    %cst_361 = arith.constant 1.000000e+00 : f32
    %804 = vector.broadcast %cst_361 : f32 to vector<8x96xf32>
    %805 = arith.addf %804, %803 : vector<8x96xf32>
    %806 = arith.mulf %795, %805 : vector<8x96xf32>
    %c0_362 = arith.constant 0 : index
    %c0_363 = arith.constant 0 : index
    %807 = vector.load %arg33[%c0_362, %c0_363] : memref<96x96xbf16, #tpu.memory_space<vmem>>, vector<96x96xbf16>
    %808 = arith.truncf %806 : vector<8x96xf32> to vector<8x96xbf16>
    %cst_364 = arith.constant dense<0.000000e+00> : vector<8x96xf32>
    %809 = tpu.matmul %808, %807, %cst_364 {dimension_numbers = #tpu.dot_dimension_numbers<[1], [0], [0], [1], [0, 0, 1, 1], [], []>} : vector<8x96xbf16>, vector<96x96xbf16>, vector<8x96xf32> -> vector<8x96xf32>
    %c0_365 = arith.constant 0 : index
    %c0_366 = arith.constant 0 : index
    %810 = vector.load %arg34[%c0_365, %c0_366] : memref<1x96xf32, #tpu.memory_space<vmem>>, vector<1x96xf32>
    %811 = vector.broadcast %810 : vector<1x96xf32> to vector<8x96xf32>
    %812 = arith.addf %809, %811 : vector<8x96xf32>
    %cst_367 = arith.constant 5.000000e-01 : f32
    %813 = vector.broadcast %cst_367 : f32 to vector<8x96xf32>
    %814 = arith.mulf %813, %812 : vector<8x96xf32>
    %cst_368 = arith.constant 4.471500e-02 : f32
    %815 = vector.broadcast %cst_368 : f32 to vector<8x96xf32>
    %816 = arith.mulf %815, %812 : vector<8x96xf32>
    %817 = arith.mulf %816, %812 : vector<8x96xf32>
    %818 = arith.mulf %817, %812 : vector<8x96xf32>
    %819 = arith.addf %812, %818 : vector<8x96xf32>
    %cst_369 = arith.constant 0.797884583 : f32
    %820 = vector.broadcast %cst_369 : f32 to vector<8x96xf32>
    %821 = arith.mulf %820, %819 : vector<8x96xf32>
    %822 = math.tanh %821 : vector<8x96xf32>
    %cst_370 = arith.constant 1.000000e+00 : f32
    %823 = vector.broadcast %cst_370 : f32 to vector<8x96xf32>
    %824 = arith.addf %823, %822 : vector<8x96xf32>
    %825 = arith.mulf %814, %824 : vector<8x96xf32>
    %c0_371 = arith.constant 0 : index
    %c0_372 = arith.constant 0 : index
    %826 = vector.load %arg35[%c0_371, %c0_372] : memref<96x96xbf16, #tpu.memory_space<vmem>>, vector<96x96xbf16>
    %827 = arith.truncf %825 : vector<8x96xf32> to vector<8x96xbf16>
    %cst_373 = arith.constant dense<0.000000e+00> : vector<8x96xf32>
    %828 = tpu.matmul %827, %826, %cst_373 {dimension_numbers = #tpu.dot_dimension_numbers<[1], [0], [0], [1], [0, 0, 1, 1], [], []>} : vector<8x96xbf16>, vector<96x96xbf16>, vector<8x96xf32> -> vector<8x96xf32>
    %c0_374 = arith.constant 0 : index
    %c0_375 = arith.constant 0 : index
    %829 = vector.load %arg36[%c0_374, %c0_375] : memref<1x96xf32, #tpu.memory_space<vmem>>, vector<1x96xf32>
    %830 = vector.broadcast %829 : vector<1x96xf32> to vector<8x96xf32>
    %831 = arith.addf %828, %830 : vector<8x96xf32>
    %cst_376 = arith.constant 5.000000e-01 : f32
    %832 = vector.broadcast %cst_376 : f32 to vector<8x96xf32>
    %833 = arith.mulf %832, %831 : vector<8x96xf32>
    %cst_377 = arith.constant 4.471500e-02 : f32
    %834 = vector.broadcast %cst_377 : f32 to vector<8x96xf32>
    %835 = arith.mulf %834, %831 : vector<8x96xf32>
    %836 = arith.mulf %835, %831 : vector<8x96xf32>
    %837 = arith.mulf %836, %831 : vector<8x96xf32>
    %838 = arith.addf %831, %837 : vector<8x96xf32>
    %cst_378 = arith.constant 0.797884583 : f32
    %839 = vector.broadcast %cst_378 : f32 to vector<8x96xf32>
    %840 = arith.mulf %839, %838 : vector<8x96xf32>
    %841 = math.tanh %840 : vector<8x96xf32>
    %cst_379 = arith.constant 1.000000e+00 : f32
    %842 = vector.broadcast %cst_379 : f32 to vector<8x96xf32>
    %843 = arith.addf %842, %841 : vector<8x96xf32>
    %844 = arith.mulf %833, %843 : vector<8x96xf32>
    %c0_380 = arith.constant 0 : index
    %c0_381 = arith.constant 0 : index
    %845 = vector.load %arg37[%c0_380, %c0_381] : memref<1x96xf32, #tpu.memory_space<vmem>>, vector<1x96xf32>
    %846 = vector.broadcast %845 : vector<1x96xf32> to vector<8x96xf32>
    %847 = arith.mulf %844, %846 : vector<8x96xf32>
    %cst_382 = arith.constant dense<0.000000e+00> : vector<8xf32>
    %848 = vector.multi_reduction <add>, %847, %cst_382 [1] : vector<8x96xf32> to vector<8xf32>
    %849 = vector.shape_cast %848 : vector<8xf32> to vector<8x1xf32>
    %c0_383 = arith.constant 0 : index
    %c0_384 = arith.constant 0 : index
    %850 = vector.load %arg38[%c0_383, %c0_384] : memref<1x1xf32, #tpu.memory_space<vmem>>, vector<1x1xf32>
    %851 = vector.broadcast %850 : vector<1x1xf32> to vector<8x1xf32>
    %852 = arith.addf %849, %851 : vector<8x1xf32>
    %c0_385 = arith.constant 0 : index
    %c0_386 = arith.constant 0 : index
    %c0_387 = arith.constant 0 : index
    %853 = vector.load %arg39[%c0_385, %c0_386, %c0_387] : memref<1x8x1xf32, #tpu.memory_space<vmem>>, vector<1x8x1xf32>
    %854 = vector.shape_cast %853 : vector<1x8x1xf32> to vector<8x1xf32>
    %855 = vector.shape_cast %852 : vector<8x1xf32> to vector<1x8x1xf32>
    tpu.vector_store %arg39[%c0_385, %c0_386, %c0_387], %855 {strides = array<i32>} : memref<1x8x1xf32, #tpu.memory_space<vmem>>, vector<1x8x1xf32>,
    return
  }
  func.func @transform_0(%arg0: i32) -> (i32, i32, i32) {
    %c0_i32 = arith.constant 0 : i32
    %c0_i32_0 = arith.constant 0 : i32
    %c0_i32_1 = arith.constant 0 : i32
    return %arg0, %c0_i32, %c0_i32_0 : i32, i32, i32
  }
  func.func @transform_1(%arg0: i32) -> (i32, i32, i32) {
    %c0_i32 = arith.constant 0 : i32
    %c0_i32_0 = arith.constant 0 : i32
    %c0_i32_1 = arith.constant 0 : i32
    return %arg0, %c0_i32, %c0_i32_0 : i32, i32, i32
  }
  func.func @transform_2(%arg0: i32) -> (i32, i32, i32) {
    %c0_i32 = arith.constant 0 : i32
    %c0_i32_0 = arith.constant 0 : i32
    %c0_i32_1 = arith.constant 0 : i32
    return %arg0, %c0_i32, %c0_i32_0 : i32, i32, i32
  }
  func.func @transform_3(%arg0: i32) -> (i32, i32, i32) {
    %c0_i32 = arith.constant 0 : i32
    %c0_i32_0 = arith.constant 0 : i32
    %c0_i32_1 = arith.constant 0 : i32
    return %arg0, %c0_i32, %c0_i32_0 : i32, i32, i32
  }
  func.func @transform_4(%arg0: i32) -> (i32, i32, i32) {
    %c0_i32 = arith.constant 0 : i32
    %c0_i32_0 = arith.constant 0 : i32
    %c0_i32_1 = arith.constant 0 : i32
    %c0_i32_2 = arith.constant 0 : i32
    return %c0_i32, %c0_i32_0, %c0_i32_1 : i32, i32, i32
  }
  func.func @transform_5(%arg0: i32) -> (i32, i32, i32) {
    %c0_i32 = arith.constant 0 : i32
    %c0_i32_0 = arith.constant 0 : i32
    %c0_i32_1 = arith.constant 0 : i32
    %c0_i32_2 = arith.constant 0 : i32
    return %c0_i32, %c0_i32_0, %c0_i32_1 : i32, i32, i32
  }
  func.func @transform_6(%arg0: i32) -> (i32, i32, i32) {
    %c0_i32 = arith.constant 0 : i32
    %c0_i32_0 = arith.constant 0 : i32
    %c0_i32_1 = arith.constant 0 : i32
    %c0_i32_2 = arith.constant 0 : i32
    return %c0_i32, %c0_i32_0, %c0_i32_1 : i32, i32, i32
  }
  func.func @transform_7(%arg0: i32) -> (i32, i32, i32) {
    %c0_i32 = arith.constant 0 : i32
    %c0_i32_0 = arith.constant 0 : i32
    %c0_i32_1 = arith.constant 0 : i32
    %c0_i32_2 = arith.constant 0 : i32
    return %c0_i32, %c0_i32_0, %c0_i32_1 : i32, i32, i32
  }
  func.func @transform_8(%arg0: i32) -> (i32, i32, i32) {
    %c0_i32 = arith.constant 0 : i32
    %c0_i32_0 = arith.constant 0 : i32
    %c0_i32_1 = arith.constant 0 : i32
    %c0_i32_2 = arith.constant 0 : i32
    return %c0_i32, %c0_i32_0, %c0_i32_1 : i32, i32, i32
  }
  func.func @transform_9(%arg0: i32) -> (i32, i32, i32) {
    %c0_i32 = arith.constant 0 : i32
    %c0_i32_0 = arith.constant 0 : i32
    %c0_i32_1 = arith.constant 0 : i32
    %c0_i32_2 = arith.constant 0 : i32
    return %c0_i32, %c0_i32_0, %c0_i32_1 : i32, i32, i32
  }
  func.func @transform_10(%arg0: i32) -> (i32, i32, i32) {
    %c0_i32 = arith.constant 0 : i32
    %c0_i32_0 = arith.constant 0 : i32
    %c0_i32_1 = arith.constant 0 : i32
    %c0_i32_2 = arith.constant 0 : i32
    return %c0_i32, %c0_i32_0, %c0_i32_1 : i32, i32, i32
  }
  func.func @transform_11(%arg0: i32) -> (i32, i32, i32) {
    %c0_i32 = arith.constant 0 : i32
    %c0_i32_0 = arith.constant 0 : i32
    %c0_i32_1 = arith.constant 0 : i32
    %c0_i32_2 = arith.constant 0 : i32
    return %c0_i32, %c0_i32_0, %c0_i32_1 : i32, i32, i32
  }
  func.func @transform_12(%arg0: i32) -> (i32, i32) {
    %c0_i32 = arith.constant 0 : i32
    %c0_i32_0 = arith.constant 0 : i32
    %c0_i32_1 = arith.constant 0 : i32
    return %c0_i32, %c0_i32_0 : i32, i32
  }
  func.func @transform_13(%arg0: i32) -> (i32, i32) {
    %c0_i32 = arith.constant 0 : i32
    %c0_i32_0 = arith.constant 0 : i32
    %c0_i32_1 = arith.constant 0 : i32
    return %c0_i32, %c0_i32_0 : i32, i32
  }
  func.func @transform_14(%arg0: i32) -> (i32, i32) {
    %c0_i32 = arith.constant 0 : i32
    %c0_i32_0 = arith.constant 0 : i32
    %c0_i32_1 = arith.constant 0 : i32
    return %c0_i32, %c0_i32_0 : i32, i32
  }
  func.func @transform_15(%arg0: i32) -> (i32, i32) {
    %c0_i32 = arith.constant 0 : i32
    %c0_i32_0 = arith.constant 0 : i32
    %c0_i32_1 = arith.constant 0 : i32
    return %c0_i32, %c0_i32_0 : i32, i32
  }
  func.func @transform_16(%arg0: i32) -> (i32, i32) {
    %c0_i32 = arith.constant 0 : i32
    %c0_i32_0 = arith.constant 0 : i32
    %c0_i32_1 = arith.constant 0 : i32
    return %c0_i32, %c0_i32_0 : i32, i32
  }
  func.func @transform_17(%arg0: i32) -> (i32, i32) {
    %c0_i32 = arith.constant 0 : i32
    %c0_i32_0 = arith.constant 0 : i32
    %c0_i32_1 = arith.constant 0 : i32
    return %c0_i32, %c0_i32_0 : i32, i32
  }
  func.func @transform_18(%arg0: i32) -> (i32, i32) {
    %c0_i32 = arith.constant 0 : i32
    %c0_i32_0 = arith.constant 0 : i32
    %c0_i32_1 = arith.constant 0 : i32
    return %c0_i32, %c0_i32_0 : i32, i32
  }
  func.func @transform_19(%arg0: i32) -> (i32, i32) {
    %c0_i32 = arith.constant 0 : i32
    %c0_i32_0 = arith.constant 0 : i32
    %c0_i32_1 = arith.constant 0 : i32
    return %c0_i32, %c0_i32_0 : i32, i32
  }
  func.func @transform_20(%arg0: i32) -> (i32, i32) {
    %c0_i32 = arith.constant 0 : i32
    %c0_i32_0 = arith.constant 0 : i32
    %c0_i32_1 = arith.constant 0 : i32
    return %c0_i32, %c0_i32_0 : i32, i32
  }
  func.func @transform_21(%arg0: i32) -> (i32, i32) {
    %c0_i32 = arith.constant 0 : i32
    %c0_i32_0 = arith.constant 0 : i32
    %c0_i32_1 = arith.constant 0 : i32
    return %c0_i32, %c0_i32_0 : i32, i32
  }
  func.func @transform_22(%arg0: i32) -> (i32, i32) {
    %c0_i32 = arith.constant 0 : i32
    %c0_i32_0 = arith.constant 0 : i32
    %c0_i32_1 = arith.constant 0 : i32
    return %c0_i32, %c0_i32_0 : i32, i32
  }
  func.func @transform_23(%arg0: i32) -> (i32, i32) {
    %c0_i32 = arith.constant 0 : i32
    %c0_i32_0 = arith.constant 0 : i32
    %c0_i32_1 = arith.constant 0 : i32
    return %c0_i32, %c0_i32_0 : i32, i32
  }
  func.func @transform_24(%arg0: i32) -> (i32, i32) {
    %c0_i32 = arith.constant 0 : i32
    %c0_i32_0 = arith.constant 0 : i32
    %c0_i32_1 = arith.constant 0 : i32
    return %c0_i32, %c0_i32_0 : i32, i32
  }
  func.func @transform_25(%arg0: i32) -> (i32, i32) {
    %c0_i32 = arith.constant 0 : i32
    %c0_i32_0 = arith.constant 0 : i32
    %c0_i32_1 = arith.constant 0 : i32
    return %c0_i32, %c0_i32_0 : i32, i32
  }
  func.func @transform_26(%arg0: i32) -> (i32, i32) {
    %c0_i32 = arith.constant 0 : i32
    %c0_i32_0 = arith.constant 0 : i32
    %c0_i32_1 = arith.constant 0 : i32
    return %c0_i32, %c0_i32_0 : i32, i32
  }
  func.func @transform_27(%arg0: i32) -> (i32, i32) {
    %c0_i32 = arith.constant 0 : i32
    %c0_i32_0 = arith.constant 0 : i32
    %c0_i32_1 = arith.constant 0 : i32
    return %c0_i32, %c0_i32_0 : i32, i32
  }
  func.func @transform_28(%arg0: i32) -> (i32, i32) {
    %c0_i32 = arith.constant 0 : i32
    %c0_i32_0 = arith.constant 0 : i32
    %c0_i32_1 = arith.constant 0 : i32
    return %c0_i32, %c0_i32_0 : i32, i32
  }
  func.func @transform_29(%arg0: i32) -> (i32, i32) {
    %c0_i32 = arith.constant 0 : i32
    %c0_i32_0 = arith.constant 0 : i32
    %c0_i32_1 = arith.constant 0 : i32
    return %c0_i32, %c0_i32_0 : i32, i32
  }
  func.func @transform_30(%arg0: i32) -> (i32, i32) {
    %c0_i32 = arith.constant 0 : i32
    %c0_i32_0 = arith.constant 0 : i32
    %c0_i32_1 = arith.constant 0 : i32
    return %c0_i32, %c0_i32_0 : i32, i32
  }
  func.func @transform_31(%arg0: i32) -> (i32, i32) {
    %c0_i32 = arith.constant 0 : i32
    %c0_i32_0 = arith.constant 0 : i32
    %c0_i32_1 = arith.constant 0 : i32
    return %c0_i32, %c0_i32_0 : i32, i32
  }
  func.func @transform_32(%arg0: i32) -> (i32, i32) {
    %c0_i32 = arith.constant 0 : i32
    %c0_i32_0 = arith.constant 0 : i32
    %c0_i32_1 = arith.constant 0 : i32
    return %c0_i32, %c0_i32_0 : i32, i32
  }
  func.func @transform_33(%arg0: i32) -> (i32, i32) {
    %c0_i32 = arith.constant 0 : i32
    %c0_i32_0 = arith.constant 0 : i32
    %c0_i32_1 = arith.constant 0 : i32
    return %c0_i32, %c0_i32_0 : i32, i32
  }
  func.func @transform_34(%arg0: i32) -> (i32, i32) {
    %c0_i32 = arith.constant 0 : i32
    %c0_i32_0 = arith.constant 0 : i32
    %c0_i32_1 = arith.constant 0 : i32
    return %c0_i32, %c0_i32_0 : i32, i32
  }
  func.func @transform_35(%arg0: i32) -> (i32, i32) {
    %c0_i32 = arith.constant 0 : i32
    %c0_i32_0 = arith.constant 0 : i32
    %c0_i32_1 = arith.constant 0 : i32
    return %c0_i32, %c0_i32_0 : i32, i32
  }
  func.func @transform_36(%arg0: i32) -> (i32, i32) {
    %c0_i32 = arith.constant 0 : i32
    %c0_i32_0 = arith.constant 0 : i32
    %c0_i32_1 = arith.constant 0 : i32
    return %c0_i32, %c0_i32_0 : i32, i32
  }
  func.func @transform_37(%arg0: i32) -> (i32, i32) {
    %c0_i32 = arith.constant 0 : i32
    %c0_i32_0 = arith.constant 0 : i32
    %c0_i32_1 = arith.constant 0 : i32
    return %c0_i32, %c0_i32_0 : i32, i32
  }
  func.func @transform_38(%arg0: i32) -> (i32, i32, i32) {
    %c0_i32 = arith.constant 0 : i32
    %c0_i32_0 = arith.constant 0 : i32
    %c0_i32_1 = arith.constant 0 : i32
    return %arg0, %c0_i32, %c0_i32_0 : i32, i32, i32
  }
}

</mosaic_0001>

<bundles_post_ra>
// kernel: anp_forward.1
= control target key start
LH: loop header
LB: loop body
LE: loop exit
PB: predicated region body
PF: predicated region fallthrough
CT: control target
= control target key end

     0   :  { %s11488_s6 = smov 1   ;;  %s11489_s10 = smov 2   ;;  %s13048_s0 = inlined_call_operand.smem [shape: u32[39], index: -1, kind: input, shape index: {}] }
   0x1   :  { %s11579_s5 = sld [smem:[%s13048_s0]]   ;;  %s11490_s14 = smov 3  }
   0x2   :  { %s11584_s9 = sld [smem:[%s13048_s0 + %s11488_s6]]   ;;  %s11491_s18 = smov 4  }
   0x3   :  { %s11589_s13 = sld [smem:[%s13048_s0 + %s11489_s10]]   ;;  %s11492_s22 = smov 5  }
   0x4   :  { %s11594_s17 = sld [smem:[%s13048_s0 + %s11490_s14]]   ;;  %s11493_s26 = smov 6  }
   0x5   :  { %s11599_s21 = sld [smem:[%s13048_s0 + %s11491_s18]]   ;;  %s11494_s30 = smov 7  }
   0x6   :  { %s11604_s25 = sld [smem:[%s13048_s0 + %s11492_s22]]   ;;  %s11495_s4 = smov 8  }
   0x7   :  { %13088 = sst [smem:[#allocation66_spill]] %s11579_s5  ;;  %s11496_s10 = smov 9  }
   0x8   :  { %13089 = sst [smem:[#allocation67_spill]] %s11584_s9  ;;  %s11497_s15 = smov 10  }
   0x9   :  { %13090 = sst [smem:[#allocation68_spill]] %s11589_s13  ;;  %s11498_s20 = smov 11  }
   0xa   :  { %13091 = sst [smem:[#allocation69_spill]] %s11594_s17  ;;  %s11500_s1 = smov 13  }
   0xb   :  { %13092 = sst [smem:[#allocation70_spill]] %s11599_s21  ;;  %s11501_s7 = smov 14  }
   0xc   :  { %13093 = sst [smem:[#allocation71_spill]] %s11604_s25  ;;  %s11503_s22 = smov 16  }
   0xd   :  { %s11609_s29 = sld [smem:[%s13048_s0 + %s11493_s26]]   ;;  %s11499_s26 = smov 12  }
   0xe   :  { %s11614_s3 = sld [smem:[%s13048_s0 + %s11494_s30]]   ;;  %s11504_s28 = smov 17  }
   0xf   :  { %s11619_s8 = sld [smem:[%s13048_s0 + %s11495_s4]]  }
  0x10   :  { %s11624_s14 = sld [smem:[%s13048_s0 + %s11496_s10]]   ;;  %s11525_s10 = smov 38  }
  0x11   :  { %s11629_s19 = sld [smem:[%s13048_s0 + %s11497_s15]]   ;;  %s11502_s15 = smov 15  }
  0x12   :  { %s11634_s24 = sld [smem:[%s13048_s0 + %s11498_s20]]  }
  0x13   :  { %13094 = sst [smem:[#allocation72_spill]] %s11609_s29 }
  0x14   :  { %13095 = sst [smem:[#allocation73_spill]] %s11614_s3 }
  0x15   :  { %13096 = sst [smem:[#allocation74_spill]] %s11619_s8 }
  0x16   :  { %s11639_s30 = sld [smem:[%s13048_s0 + %s11499_s26]]  }
  0x17   :  { %13097 = sst [smem:[#allocation75_spill]] %s11629_s19 }
  0x18   :  { %s11644_s6 = sld [smem:[%s13048_s0 + %s11500_s1]]  }
  0x19   :  { %s11649_s12 = sld [smem:[%s13048_s0 + %s11501_s7]]   ;;  %s11505_s7 = smov 18  }
  0x1a   :  { %s11654_s20 = sld [smem:[%s13048_s0 + %s11502_s15]]   ;;  %s11506_s15 = smov 19  }
  0x1b   :  { %s11659_s27 = sld [smem:[%s13048_s0 + %s11503_s22]]   ;;  %s11507_s22 = smov 20  }
  0x1c   :  { %13098 = sst [smem:[#allocation76_spill]] %s11639_s30 }
  0x1d   :  { %s11664_s4 = sld [smem:[%s13048_s0 + %s11504_s28]]   ;;  %s11508_s28 = smov 21  }
  0x1e   :  { %13099 = sst [smem:[#allocation77_spill]] %s11644_s6 }
  0x1f   :  { %13100 = sst [smem:[#allocation78_spill]] %s11649_s12 }
  0x20   :  { %s11669_s13 = sld [smem:[%s13048_s0 + %s11505_s7]]   ;;  %s11509_s7 = smov 22  }
  0x21   :  { %13101 = sst [smem:[#allocation79_spill]] %s11659_s27 }
  0x22   :  { %s11674_s17 = sld [smem:[%s13048_s0 + %s11506_s15]]   ;;  %s11510_s15 = smov 23  }
  0x23   :  { %13102 = sst [smem:[#allocation80_spill]] %s11664_s4 }
  0x24   :  { %s11679_s25 = sld [smem:[%s13048_s0 + %s11507_s22]]   ;;  %s11511_s22 = smov 24  }
  0x25   :  { %s11684_s21 = sld [smem:[%s13048_s0 + %s11508_s28]]   ;;  %s11512_s28 = smov 25  }
  0x26   :  { %13103 = sst [smem:[#allocation81_spill]] %s11669_s13 }
  0x27   :  { %s11689_s9 = sld [smem:[%s13048_s0 + %s11509_s7]]   ;;  %s11513_s7 = smov 26  }
  0x28   :  { %s11694_s5 = sld [smem:[%s13048_s0 + %s11510_s15]]   ;;  %s11514_s15 = smov 27  }
  0x29   :  { %s11704_s13 = sld [smem:[%s13048_s0 + %s11512_s28]]   ;;  %s11516_s28 = smov 29  }
  0x2a   :  { %13104 = sst [smem:[#allocation82_spill]] %s11679_s25 }
  0x2b   :  { %s11699_s25 = sld [smem:[%s13048_s0 + %s11511_s22]]   ;;  %s11515_s22 = smov 28  }
  0x2c   :  { %s11714_s27 = sld [smem:[%s13048_s0 + %s11514_s15]]   ;;  %s11518_s15 = smov 31  }
  0x2d   :  { %13105 = sst [smem:[#allocation83_spill]] %s11689_s9 }
  0x2e   :  { %13106 = sst [smem:[#allocation84_spill]] %s11694_s5 }
  0x2f   :  { %s11709_s9 = sld [smem:[%s13048_s0 + %s11513_s7]]   ;;  %s11517_s7 = smov 30  }
  0x30   :  { %s11724_s12 = sld [smem:[%s13048_s0 + %s11516_s28]]   ;;  %s11520_s28 = smov 33  }
  0x31   :  { %13107 = sst [smem:[#allocation85_spill]] %s11699_s25 }
  0x32   :  { %s11719_s25 = sld [smem:[%s13048_s0 + %s11515_s22]]   ;;  %s11519_s22 = smov 32  }
  0x33   :  { %s11734_s30 = sld [smem:[%s13048_s0 + %s11518_s15]]   ;;  %s11522_s15 = smov 35  }
  0x34   :  { %s11744_s19 = sld [smem:[%s13048_s0 + %s11520_s28]]   ;;  %s11524_s28 = smov 37  }
  0x35   :  { %13108 = sst [smem:[#allocation86_spill]] %s11709_s9 }
  0x36   :  { %s11729_s9 = sld [smem:[%s13048_s0 + %s11517_s7]]   ;;  %s11521_s7 = smov 34  }
  0x37   :  { %s11754_s8 = sld [smem:[%s13048_s0 + %s11522_s15]]  }
  0x38   :  { %13109 = sst [smem:[#allocation87_spill]] %s11719_s25 }
  0x39   :  { %s11739_s25 = sld [smem:[%s13048_s0 + %s11519_s22]]   ;;  %s11523_s22 = smov 36  }
  0x3a   :  { %s8854_s29 = sld [smem:[%s13048_s0 + %s11524_s28]]  }
  0x3c   :  { %13110 = sst [smem:[#allocation88_spill]] %s11729_s9 }
  0x3d   :  { %s11749_s9 = sld [smem:[%s13048_s0 + %s11521_s7]]  }
  0x3e   :  { %13113 = sst [smem:[#allocation91_spill]] %s11754_s8 }
  0x3f   :  { %13111 = sst [smem:[#allocation89_spill]] %s11739_s25 }
  0x40   :  { %s11759_s25 = sld [smem:[%s13048_s0 + %s11523_s22]]   ;;  %v82_v0 = vstv %s8854_s29 }
  0x41   :  { %83 = vst [vmem:[#allocation2] sm:$0x1] %v82_v0 }
  0x43   :  { %13112 = sst [smem:[#allocation90_spill]] %s11749_s9 }
  0x44   :  { %s11767_s9 = sld [smem:[%s13048_s0 + %s11525_s10]]  }
  0x45   :  { %84 = vsyncpa [#allocation4], 0 }
  0x46   :  { %85 = vsyncpa [#allocation6], 0 }
  0x47   :  { %86 = vsyncpa [#allocation9], 0 }
  0x48   :  { %87 = vsyncpa [#allocation12], 0 }
  0x49   :  { %88 = vsyncpa [#allocation15], 0 }
  0x4a   :  { %89 = vsyncpa [#allocation18], 0 }
  0x4b   :  { %90 = vsyncpa [#allocation21], 0 }
  0x4c   :  { %91 = vsyncpa [#allocation24], 0 }
  0x4d   :  { %92 = vsyncpa [#allocation27], 0 }
  0x4e   :  { %93 = vsyncpa [#allocation30], 0 }
  0x4f   :  { %94 = vsyncpa [#allocation33], 0 }
  0x50   :  { %95 = vsyncpa [#allocation36], 0 }
  0x51   :  { %96 = vsyncpa [#allocation39], 0 }
  0x52   :  { %97 = vsyncpa [#allocation42], 0 }
  0x53   :  { %98 = vsyncpa [#allocation45], 0 }
  0x54   :  { %99 = vsyncpa [#allocation48], 0  ;;  %s11769_s0 = smov 0  }
  0x55 LB: > { %s13114_s8 = sld [smem:[#allocation91_spill]]  ;;  %s13115_s6 = sld [smem:[#allocation77_spill]]  ;;  %s11486_s0 = sphi %s11769_s0, %s105_s0  }
  0x56   : > { %s13116_s5 = sld [smem:[#allocation84_spill]]  ;;  %s13117_s4 = sld [smem:[#allocation80_spill]] }
  0x57   : > { %s13118_s3 = sld [smem:[#allocation73_spill]]  ;;  %s11775_s29 = sadd.s32 4294967295, %s11486_s0  }
  0x58   : > { %p8858_p0 = scmp.ge.s32.totalorder %s11486_s0, 1  ;;  %p954_p1 = scmp.lt.s32.totalorder %s11486_s0, 3 }
  0x59   : > { %p13066_p2 = scmp.eq.s32.totalorder %s11775_s29, 0  ;;  %s11526_s16 = smov [#allocation5]  }
  0x5a   : > { %p11780_p3 = pnand %p8858_p0, %p954_p1  ;;  %s985_s18 = sshll.u32 %s11526_s16, 4  ;;  %s986_s18 = int_to_ptr.vmem [resolvable:$true] %s985_s18 }
  0x5b   : > { %s11527_s22 = smov [#allocation8]  }
  0x5c   : > { %s13119_s15 = scalar_select %p11780_p3, 1, 0 }
  0x5d   : > { %p10093_p4 = pneg %p11780_p3  ;;  %s1011_s23 = sshll.u32 %s11527_s22, 4  ;;  %s11786_s23 = int_to_ptr.vmem [resolvable:$true] %s1011_s23 }
  0x5e   : > { %s10548_s28 = scalar_lea.hbm %s13118_s3, 1536 }
  0x5f   : > { %p11790_p5 = pnand %p13066_p2, %p10093_p4  ;;  %p10549_p6 = scmp.ne.s32.totalorder %s13118_s3, %s10548_s28 }
  0x60   : > { %p10555_p10 = scmp.lt.u32.totalorder %s10548_s28, %s13118_s3 }
  0x61   : > { %p11798_p7 = pneg %p11790_p5 }
  0x63   : > { %p10551_p8 = pnand %p11798_p7, %p10549_p6 }
  0x65   : > { %p10552_p9 = pneg %p10551_p8 }
  0x67   : > { %p10557_p11 = pnand %p10555_p10, %p10552_p9 }
  0x69   : > { %10560 = shalt.err (!%p10557_p11)
}
  0x6a   : > { %s10561_s2 = scalar_lea.vmem %s986_s18, 1536  ;;  %p10569_p1 = scmp.lt.s32.totalorder %s986_s18, %s986_s18 }
  0x6b   : > { %p10562_p12 = scmp.ne.s32.totalorder %s986_s18, %s10561_s2  ;;  %p10570_p4 = scmp.lt.s32.totalorder %s10561_s2, %s10561_s2 }
  0x6d   : > { %p10564_p13 = pnand %p10562_p12, %p11798_p7  ;;  %p10571_p2 = por %p10570_p4, %p10569_p1 }
  0x6f   : > { %p10565_p0 = pneg %p10564_p13 }
  0x71   : > { %p10572_p3 = pnand %p10571_p2, %p10565_p0 }
  0x73   : > { %10575 = shalt.err (!%p10572_p3)
}
  0x74   : > { %s13068_s10 = smov 64   ;;  %s13070_s7 = smov 4  }
  0x75   : > { %10099 = dma.hbm_to_vmem [thread:$0]  (!%p11790_p5), %s13118_s3, 1536, %s986_s18, [#allocation6], %s13068_s10, %s13068_s10, %s13070_s7  }
  0x76   : > { %s10576_s11 = scalar_lea.hbm %s11624_s14, 96 }
  0x77   : > { %p10577_p6 = scmp.ne.s32.totalorder %s11624_s14, %s10576_s11  ;;  %p10583_p2 = scmp.lt.u32.totalorder %s10576_s11, %s11624_s14 }
  0x79   : > { %p10579_p8 = pnand %p10577_p6, %p11798_p7 }
  0x7b   : > { %p10580_p9 = pneg %p10579_p8 }
  0x7d   : > { %p10585_p3 = pnand %p10583_p2, %p10580_p9 }
  0x7f   : > { %10588 = shalt.err (!%p10585_p3)
}
  0x80   : > { %s10589_s16 = scalar_lea.vmem %s11786_s23, 96  ;;  %p10597_p13 = scmp.lt.s32.totalorder %s11786_s23, %s11786_s23 }
  0x81   : > { %p10590_p10 = scmp.ne.s32.totalorder %s11786_s23, %s10589_s16  ;;  %p10598_p0 = scmp.lt.s32.totalorder %s10589_s16, %s10589_s16 }
  0x83   : > { %p10592_p11 = pnand %p10590_p10, %p11798_p7  ;;  %p10599_p1 = por %p10598_p0, %p10597_p13 }
  0x85   : > { %p10593_p12 = pneg %p10592_p11 }
  0x87   : > { %p10600_p4 = pnand %p10599_p1, %p10593_p12 }
  0x89   : > { %10603 = shalt.err (!%p10600_p4)
}
  0x8a   : > { %s13072_s18 = smov 16   ;;  %s13073_s22 = smov 1  }
  0x8b   : > { %10105 = dma.hbm_to_vmem [thread:$0]  (!%p11790_p5), %s11624_s14, 96, %s11786_s23, [#allocation9], %s13072_s18, %s13072_s18, %s13073_s22  }
  0x8c   : > { %s11532_s28 = smov [#allocation11]   ;;  %s11533_s11 = smov [#allocation14]  }
  0x8d   : > { %s1037_s2 = sshll.u32 %s11532_s28, 4  ;;  %s1062_s16 = sshll.u32 %s11533_s11, 4  ;;  %s1038_s2 = int_to_ptr.vmem [resolvable:$true] %s1037_s2  ;;  %s11831_s16 = int_to_ptr.vmem [resolvable:$true] %s1062_s16 }
  0x8e   : > { %s10604_s10 = scalar_lea.hbm %s11634_s24, 96 }
  0x8f   : > { %p10605_p6 = scmp.ne.s32.totalorder %s11634_s24, %s10604_s10  ;;  %p10611_p2 = scmp.lt.u32.totalorder %s10604_s10, %s11634_s24 }
  0x91   : > { %p10607_p8 = pnand %p10605_p6, %p11798_p7 }
  0x93   : > { %p10608_p9 = pneg %p10607_p8 }
  0x95   : > { %p10613_p3 = pnand %p10611_p2, %p10608_p9 }
  0x97   : > { %10616 = shalt.err (!%p10613_p3)
}
  0x98   : > { %s10617_s7 = scalar_lea.vmem %s1038_s2, 96  ;;  %p10625_p13 = scmp.lt.s32.totalorder %s1038_s2, %s1038_s2 }
  0x99   : > { %p10618_p10 = scmp.ne.s32.totalorder %s1038_s2, %s10617_s7  ;;  %p10626_p0 = scmp.lt.s32.totalorder %s10617_s7, %s10617_s7 }
  0x9b   : > { %p10620_p11 = pnand %p10618_p10, %p11798_p7  ;;  %p10627_p1 = por %p10626_p0, %p10625_p13 }
  0x9d   : > { %p10621_p12 = pneg %p10620_p11 }
  0x9f   : > { %p10628_p4 = pnand %p10627_p1, %p10621_p12 }
  0xa1   : > { %10631 = shalt.err (!%p10628_p4)
}
  0xa2   : > { %10111 = dma.hbm_to_vmem [thread:$0]  (!%p11790_p5), %s11634_s24, 96, %s1038_s2, [#allocation12], %s13072_s18, %s13072_s18, %s13073_s22  }
  0xa3   : > { %s10632_s23 = scalar_lea.hbm %s13115_s6, 16 }
  0xa4   : > { %p10633_p6 = scmp.ne.s32.totalorder %s13115_s6, %s10632_s23  ;;  %p10639_p2 = scmp.lt.u32.totalorder %s10632_s23, %s13115_s6 }
  0xa6   : > { %p10635_p8 = pnand %p10633_p6, %p11798_p7 }
  0xa8   : > { %p10636_p9 = pneg %p10635_p8 }
  0xaa   : > { %p10641_p3 = pnand %p10639_p2, %p10636_p9 }
  0xac   : > { %10644 = shalt.err (!%p10641_p3)
}
  0xad   : > { %s10645_s10 = scalar_lea.vmem %s11831_s16, 16  ;;  %s10652_s7 = scalar_lea.vmem %s11831_s16, 32 }
  0xae   : > { %p10646_p10 = scmp.ne.s32.totalorder %s11831_s16, %s10645_s10  ;;  %p10653_p13 = scmp.lt.s32.totalorder %s11831_s16, %s11831_s16 }
  0xaf   : > { %p10654_p0 = scmp.lt.s32.totalorder %s10652_s7, %s10645_s10 }
  0xb0   : > { %p10648_p11 = pnand %p10646_p10, %p11798_p7 }
  0xb1   : > { %p10655_p1 = por %p10654_p0, %p10653_p13 }
  0xb2   : > { %p10649_p12 = pneg %p10648_p11 }
  0xb4   : > { %p10656_p4 = pnand %p10655_p1, %p10649_p12 }
  0xb6   : > { %10659 = shalt.err (!%p10656_p4)
}
  0xb7   : > { %10117 = dma.hbm_to_vmem [thread:$0]  (!%p11790_p5), %s13115_s6, 16, %s11831_s16, [#allocation15]  }
  0xb8   : > { %s11534_s28 = smov [#allocation17]   ;;  %s11535_s11 = smov [#allocation20]  }
  0xb9   : > { %s1086_s2 = sshll.u32 %s11534_s28, 4  ;;  %s1110_s23 = sshll.u32 %s11535_s11, 4  ;;  %s1087_s2 = int_to_ptr.vmem [resolvable:$true] %s1086_s2  ;;  %s11862_s23 = int_to_ptr.vmem [resolvable:$true] %s1110_s23 }
  0xba   : > { %s10660_s10 = scalar_lea.hbm %s11654_s20, 16 }
  0xbb   : > { %p10661_p6 = scmp.ne.s32.totalorder %s11654_s20, %s10660_s10  ;;  %p10667_p2 = scmp.lt.u32.totalorder %s10660_s10, %s11654_s20 }
  0xbd   : > { %p10663_p8 = pnand %p10661_p6, %p11798_p7 }
  0xbf   : > { %p10664_p9 = pneg %p10663_p8 }
  0xc1   : > { %p10669_p3 = pnand %p10667_p2, %p10664_p9 }
  0xc3   : > { %10672 = shalt.err (!%p10669_p3)
}
  0xc4   : > { %s10673_s7 = scalar_lea.vmem %s1087_s2, 16  ;;  %s10680_s16 = scalar_lea.vmem %s1087_s2, 32 }
  0xc5   : > { %p10674_p10 = scmp.ne.s32.totalorder %s1087_s2, %s10673_s7  ;;  %p10681_p13 = scmp.lt.s32.totalorder %s1087_s2, %s1087_s2 }
  0xc6   : > { %p10682_p0 = scmp.lt.s32.totalorder %s10680_s16, %s10673_s7 }
  0xc7   : > { %p10676_p11 = pnand %p10674_p10, %p11798_p7 }
  0xc8   : > { %p10683_p1 = por %p10682_p0, %p10681_p13 }
  0xc9   : > { %p10677_p12 = pneg %p10676_p11 }
  0xcb   : > { %p10684_p4 = pnand %p10683_p1, %p10677_p12 }
  0xcd   : > { %10687 = shalt.err (!%p10684_p4)
}
  0xce   : > { %10123 = dma.hbm_to_vmem [thread:$0]  (!%p11790_p5), %s11654_s20, 16, %s1087_s2, [#allocation18]  }
  0xcf   : > { %s10688_s28 = scalar_lea.hbm %s13117_s4, 16 }
  0xd0   : > { %p10689_p6 = scmp.ne.s32.totalorder %s13117_s4, %s10688_s28  ;;  %p10695_p2 = scmp.lt.u32.totalorder %s10688_s28, %s13117_s4 }
  0xd2   : > { %p10691_p8 = pnand %p10689_p6, %p11798_p7 }
  0xd4   : > { %p10692_p9 = pneg %p10691_p8 }
  0xd6   : > { %p10697_p3 = pnand %p10695_p2, %p10692_p9 }
  0xd8   : > { %10700 = shalt.err (!%p10697_p3)
}
  0xd9   : > { %s10701_s11 = scalar_lea.vmem %s11862_s23, 16  ;;  %s10708_s10 = scalar_lea.vmem %s11862_s23, 32 }
  0xda   : > { %p10702_p10 = scmp.ne.s32.totalorder %s11862_s23, %s10701_s11  ;;  %p10709_p13 = scmp.lt.s32.totalorder %s11862_s23, %s11862_s23 }
  0xdb   : > { %p10710_p0 = scmp.lt.s32.totalorder %s10708_s10, %s10701_s11 }
  0xdc   : > { %p10704_p11 = pnand %p10702_p10, %p11798_p7 }
  0xdd   : > { %p10711_p1 = por %p10710_p0, %p10709_p13 }
  0xde   : > { %p10705_p12 = pneg %p10704_p11 }
  0xe0   : > { %p10712_p4 = pnand %p10711_p1, %p10705_p12 }
  0xe2   : > { %10715 = shalt.err (!%p10712_p4)
}
  0xe3   : > { %10129 = dma.hbm_to_vmem [thread:$0]  (!%p11790_p5), %s13117_s4, 16, %s11862_s23, [#allocation21]  }
  0xe4   : > { %s11536_s2 = smov [#allocation23]   ;;  %s11537_s16 = smov [#allocation26]  }
  0xe5   : > { %s1134_s7 = sshll.u32 %s11536_s2, 4  ;;  %s1156_s28 = sshll.u32 %s11537_s16, 4  ;;  %s1135_s7 = int_to_ptr.vmem [resolvable:$true] %s1134_s7  ;;  %s11890_s28 = int_to_ptr.vmem [resolvable:$true] %s1156_s28 }
  0xe6   : > { %s10716_s11 = scalar_lea.hbm %s11674_s17, 16 }
  0xe7   : > { %p10717_p6 = scmp.ne.s32.totalorder %s11674_s17, %s10716_s11  ;;  %p10723_p2 = scmp.lt.u32.totalorder %s10716_s11, %s11674_s17 }
  0xe9   : > { %p10719_p8 = pnand %p10717_p6, %p11798_p7 }
  0xeb   : > { %p10720_p9 = pneg %p10719_p8 }
  0xed   : > { %p10725_p3 = pnand %p10723_p2, %p10720_p9 }
  0xef   : > { %10728 = shalt.err (!%p10725_p3)
}
  0xf0   : > { %s10729_s10 = scalar_lea.vmem %s1135_s7, 16  ;;  %s10736_s23 = scalar_lea.vmem %s1135_s7, 32 }
  0xf1   : > { %p10730_p10 = scmp.ne.s32.totalorder %s1135_s7, %s10729_s10  ;;  %p10737_p13 = scmp.lt.s32.totalorder %s1135_s7, %s1135_s7 }
  0xf2   : > { %p10738_p0 = scmp.lt.s32.totalorder %s10736_s23, %s10729_s10 }
  0xf3   : > { %p10732_p11 = pnand %p10730_p10, %p11798_p7 }
  0xf4   : > { %p10739_p1 = por %p10738_p0, %p10737_p13 }
  0xf5   : > { %p10733_p12 = pneg %p10732_p11 }
  0xf7   : > { %p10740_p4 = pnand %p10739_p1, %p10733_p12 }
  0xf9   : > { %10743 = shalt.err (!%p10740_p4)
}
  0xfa   : > { %10135 = dma.hbm_to_vmem [thread:$0]  (!%p11790_p5), %s11674_s17, 16, %s1135_s7, [#allocation24]  }
  0xfb   : > { %s10744_s2 = scalar_lea.hbm %s11684_s21, 16 }
  0xfc   : > { %p10745_p6 = scmp.ne.s32.totalorder %s11684_s21, %s10744_s2  ;;  %p10751_p2 = scmp.lt.u32.totalorder %s10744_s2, %s11684_s21 }
  0xfe   : > { %p10747_p8 = pnand %p10745_p6, %p11798_p7 }
 0x100   : > { %p10748_p9 = pneg %p10747_p8 }
 0x102   : > { %p10753_p3 = pnand %p10751_p2, %p10748_p9 }
 0x104   : > { %10756 = shalt.err (!%p10753_p3)
}
 0x105   : > { %s10757_s16 = scalar_lea.vmem %s11890_s28, 16  ;;  %s10764_s11 = scalar_lea.vmem %s11890_s28, 32 }
 0x106   : > { %p10758_p10 = scmp.ne.s32.totalorder %s11890_s28, %s10757_s16  ;;  %p10765_p13 = scmp.lt.s32.totalorder %s11890_s28, %s11890_s28 }
 0x107   : > { %p10766_p0 = scmp.lt.s32.totalorder %s10764_s11, %s10757_s16 }
 0x108   : > { %p10760_p11 = pnand %p10758_p10, %p11798_p7 }
 0x109   : > { %p10767_p1 = por %p10766_p0, %p10765_p13 }
 0x10a   : > { %p10761_p12 = pneg %p10760_p11 }
 0x10c   : > { %p10768_p4 = pnand %p10767_p1, %p10761_p12 }
 0x10e   : > { %10771 = shalt.err (!%p10768_p4)
}
 0x10f   : > { %10141 = dma.hbm_to_vmem [thread:$0]  (!%p11790_p5), %s11684_s21, 16, %s11890_s28, [#allocation27]  }
 0x110   : > { %s11538_s7 = smov [#allocation29]   ;;  %s11539_s23 = smov [#allocation32]  }
 0x111   : > { %s1178_s10 = sshll.u32 %s11538_s7, 4  ;;  %s1200_s2 = sshll.u32 %s11539_s23, 4  ;;  %s1179_s10 = int_to_ptr.vmem [resolvable:$true] %s1178_s10  ;;  %s11918_s2 = int_to_ptr.vmem [resolvable:$true] %s1200_s2 }
 0x112   : > { %s10772_s16 = scalar_lea.hbm %s13116_s5, 16 }
 0x113   : > { %p10773_p6 = scmp.ne.s32.totalorder %s13116_s5, %s10772_s16  ;;  %p10779_p2 = scmp.lt.u32.totalorder %s10772_s16, %s13116_s5 }
 0x115   : > { %p10775_p8 = pnand %p10773_p6, %p11798_p7 }
 0x117   : > { %p10776_p9 = pneg %p10775_p8 }
 0x119   : > { %p10781_p3 = pnand %p10779_p2, %p10776_p9 }
 0x11b   : > { %10784 = shalt.err (!%p10781_p3)
}
 0x11c   : > { %s10785_s11 = scalar_lea.vmem %s1179_s10, 16  ;;  %s10792_s28 = scalar_lea.vmem %s1179_s10, 32 }
 0x11d   : > { %p10786_p10 = scmp.ne.s32.totalorder %s1179_s10, %s10785_s11  ;;  %p10793_p13 = scmp.lt.s32.totalorder %s1179_s10, %s1179_s10 }
 0x11e   : > { %p10794_p0 = scmp.lt.s32.totalorder %s10792_s28, %s10785_s11 }
 0x11f   : > { %p10788_p11 = pnand %p10786_p10, %p11798_p7 }
 0x120   : > { %p10795_p1 = por %p10794_p0, %p10793_p13 }
 0x121   : > { %p10789_p12 = pneg %p10788_p11 }
 0x123   : > { %p10796_p4 = pnand %p10795_p1, %p10789_p12 }
 0x125   : > { %10799 = shalt.err (!%p10796_p4)
}
 0x126   : > { %10147 = dma.hbm_to_vmem [thread:$0]  (!%p11790_p5), %s13116_s5, 16, %s1179_s10, [#allocation30]  }
 0x127   : > { %s10800_s7 = scalar_lea.hbm %s11704_s13, 16 }
 0x128   : > { %p10801_p6 = scmp.ne.s32.totalorder %s11704_s13, %s10800_s7  ;;  %p10807_p2 = scmp.lt.u32.totalorder %s10800_s7, %s11704_s13 }
 0x12a   : > { %p10803_p8 = pnand %p10801_p6, %p11798_p7 }
 0x12c   : > { %p10804_p9 = pneg %p10803_p8 }
 0x12e   : > { %p10809_p3 = pnand %p10807_p2, %p10804_p9 }
 0x130   : > { %10812 = shalt.err (!%p10809_p3)
}
 0x131   : > { %s10813_s23 = scalar_lea.vmem %s11918_s2, 16  ;;  %s10820_s16 = scalar_lea.vmem %s11918_s2, 32 }
 0x132   : > { %p10814_p10 = scmp.ne.s32.totalorder %s11918_s2, %s10813_s23  ;;  %p10821_p13 = scmp.lt.s32.totalorder %s11918_s2, %s11918_s2 }
 0x133   : > { %p10822_p0 = scmp.lt.s32.totalorder %s10820_s16, %s10813_s23 }
 0x134   : > { %p10816_p11 = pnand %p10814_p10, %p11798_p7 }
 0x135   : > { %p10823_p1 = por %p10822_p0, %p10821_p13 }
 0x136   : > { %p10817_p12 = pneg %p10816_p11 }
 0x138   : > { %p10824_p4 = pnand %p10823_p1, %p10817_p12 }
 0x13a   : > { %10827 = shalt.err (!%p10824_p4)
}
 0x13b   : > { %10153 = dma.hbm_to_vmem [thread:$0]  (!%p11790_p5), %s11704_s13, 16, %s11918_s2, [#allocation33]  }
 0x13c   : > { %s11540_s10 = smov [#allocation35]   ;;  %s11541_s28 = smov [#allocation38]  }
 0x13d   : > { %s1222_s11 = sshll.u32 %s11540_s10, 4  ;;  %s1245_s7 = sshll.u32 %s11541_s28, 4  ;;  %s1223_s11 = int_to_ptr.vmem [resolvable:$true] %s1222_s11  ;;  %s11946_s7 = int_to_ptr.vmem [resolvable:$true] %s1245_s7 }
 0x13e   : > { %s10828_s23 = scalar_lea.hbm %s11714_s27, 16 }
 0x13f   : > { %p10829_p6 = scmp.ne.s32.totalorder %s11714_s27, %s10828_s23  ;;  %p10835_p2 = scmp.lt.u32.totalorder %s10828_s23, %s11714_s27 }
 0x141   : > { %p10831_p8 = pnand %p10829_p6, %p11798_p7 }
 0x143   : > { %p10832_p9 = pneg %p10831_p8 }
 0x145   : > { %p10837_p3 = pnand %p10835_p2, %p10832_p9 }
 0x147   : > { %10840 = shalt.err (!%p10837_p3)
}
 0x148   : > { %s10841_s16 = scalar_lea.vmem %s1223_s11, 16  ;;  %s10848_s2 = scalar_lea.vmem %s1223_s11, 32 }
 0x149   : > { %p10842_p10 = scmp.ne.s32.totalorder %s1223_s11, %s10841_s16  ;;  %p10849_p13 = scmp.lt.s32.totalorder %s1223_s11, %s1223_s11 }
 0x14a   : > { %p10850_p0 = scmp.lt.s32.totalorder %s10848_s2, %s10841_s16 }
 0x14b   : > { %p10844_p11 = pnand %p10842_p10, %p11798_p7 }
 0x14c   : > { %p10851_p1 = por %p10850_p0, %p10849_p13 }
 0x14d   : > { %p10845_p12 = pneg %p10844_p11 }
 0x14f   : > { %p10852_p4 = pnand %p10851_p1, %p10845_p12 }
 0x151   : > { %10855 = shalt.err (!%p10852_p4)
}
 0x152   : > { %10159 = dma.hbm_to_vmem [thread:$0]  (!%p11790_p5), %s11714_s27, 16, %s1223_s11, [#allocation36]  }
 0x153   : > { %s10856_s10 = scalar_lea.hbm %s11724_s12, 256 }
 0x154   : > { %p10857_p6 = scmp.ne.s32.totalorder %s11724_s12, %s10856_s10  ;;  %p10863_p2 = scmp.lt.u32.totalorder %s10856_s10, %s11724_s12 }
 0x156   : > { %p10859_p8 = pnand %p10857_p6, %p11798_p7 }
 0x158   : > { %p10860_p9 = pneg %p10859_p8 }
 0x15a   : > { %p10865_p3 = pnand %p10863_p2, %p10860_p9 }
 0x15c   : > { %10868 = shalt.err (!%p10865_p3)
}
 0x15d   : > { %s10869_s28 = scalar_lea.vmem %s11946_s7, 256  ;;  %p10877_p13 = scmp.lt.s32.totalorder %s11946_s7, %s11946_s7 }
 0x15e   : > { %p10870_p10 = scmp.ne.s32.totalorder %s11946_s7, %s10869_s28  ;;  %p10878_p0 = scmp.lt.s32.totalorder %s10869_s28, %s10869_s28 }
 0x160   : > { %p10872_p11 = pnand %p10870_p10, %p11798_p7  ;;  %p10879_p1 = por %p10878_p0, %p10877_p13 }
 0x162   : > { %p10873_p12 = pneg %p10872_p11 }
 0x164   : > { %p10880_p4 = pnand %p10879_p1, %p10873_p12 }
 0x166   : > { %10883 = shalt.err (!%p10880_p4)
}
 0x167   : > { %s13122_s11 = smov 4   ;;  %s13123_s23 = smov 64  }
 0x168   : > { %10165 = dma.hbm_to_vmem [thread:$0]  (!%p11790_p5), %s11724_s12, 256, %s11946_s7, [#allocation39], %s13123_s23, %s13123_s23, %s13122_s11  }
 0x169   : > { %s11542_s16 = smov [#allocation41]   ;;  %s11543_s10 = smov [#allocation44]  }
 0x16a   : > { %s1272_s2 = sshll.u32 %s11542_s16, 4  ;;  %s1296_s18 = sshll.u32 %s11543_s10, 4  ;;  %s1273_s2 = int_to_ptr.vmem [resolvable:$true] %s1272_s2  ;;  %s11976_s18 = int_to_ptr.vmem [resolvable:$true] %s1296_s18 }
 0x16b   : > { %s10884_s28 = scalar_lea.hbm %s11734_s30, 16 }
 0x16c   : > { %p10885_p6 = scmp.ne.s32.totalorder %s11734_s30, %s10884_s28  ;;  %p10891_p2 = scmp.lt.u32.totalorder %s10884_s28, %s11734_s30 }
 0x16e   : > { %p10887_p8 = pnand %p10885_p6, %p11798_p7 }
 0x170   : > { %p10888_p9 = pneg %p10887_p8 }
 0x172   : > { %p10893_p3 = pnand %p10891_p2, %p10888_p9 }
 0x174   : > { %10896 = shalt.err (!%p10893_p3)
}
 0x175   : > { %s10897_s22 = scalar_lea.vmem %s1273_s2, 16  ;;  %s10904_s7 = scalar_lea.vmem %s1273_s2, 32 }
 0x176   : > { %p10898_p10 = scmp.ne.s32.totalorder %s1273_s2, %s10897_s22  ;;  %p10905_p13 = scmp.lt.s32.totalorder %s1273_s2, %s1273_s2 }
 0x177   : > { %p10906_p0 = scmp.lt.s32.totalorder %s10904_s7, %s10897_s22 }
 0x178   : > { %p10900_p11 = pnand %p10898_p10, %p11798_p7 }
 0x179   : > { %p10907_p1 = por %p10906_p0, %p10905_p13 }
 0x17a   : > { %p10901_p12 = pneg %p10900_p11 }
 0x17c   : > { %p10908_p4 = pnand %p10907_p1, %p10901_p12 }
 0x17e   : > { %10911 = shalt.err (!%p10908_p4)
}
 0x17f   : > { %10171 = dma.hbm_to_vmem [thread:$0]  (!%p11790_p5), %s11734_s30, 16, %s1273_s2, [#allocation42]  }
 0x180   : > { %s10912_s16 = scalar_lea.hbm %s11744_s19, 16 }
 0x181   : > { %p10913_p6 = scmp.ne.s32.totalorder %s11744_s19, %s10912_s16  ;;  %p10919_p2 = scmp.lt.u32.totalorder %s10912_s16, %s11744_s19 }
 0x183   : > { %p10915_p8 = pnand %p10913_p6, %p11798_p7 }
 0x185   : > { %p10916_p9 = pneg %p10915_p8 }
 0x187   : > { %p10921_p3 = pnand %p10919_p2, %p10916_p9 }
 0x189   : > { %10924 = shalt.err (!%p10921_p3)
}
 0x18a   : > { %s10925_s22 = scalar_lea.vmem %s11976_s18, 16  ;;  %s10932_s10 = scalar_lea.vmem %s11976_s18, 32 }
 0x18b   : > { %p10926_p10 = scmp.ne.s32.totalorder %s11976_s18, %s10925_s22  ;;  %p10933_p13 = scmp.lt.s32.totalorder %s11976_s18, %s11976_s18 }
 0x18c   : > { %p10934_p0 = scmp.lt.s32.totalorder %s10932_s10, %s10925_s22 }
 0x18d   : > { %p10928_p11 = pnand %p10926_p10, %p11798_p7 }
 0x18e   : > { %p10935_p1 = por %p10934_p0, %p10933_p13 }
 0x18f   : > { %p10929_p12 = pneg %p10928_p11 }
 0x191   : > { %p10936_p4 = pnand %p10935_p1, %p10929_p12 }
 0x193   : > { %10939 = shalt.err (!%p10936_p4)
}
 0x194   : > { %10177 = dma.hbm_to_vmem [thread:$0]  (!%p11790_p5), %s11744_s19, 16, %s11976_s18, [#allocation45]  }
 0x195   : > { %s11544_s2 = smov [#allocation47]   ;;  %s11545_s7 = smov [#allocation3]  }
 0x196   : > { %s1320_s28 = sshll.u32 %s11544_s2, 4  ;;  %s972_s16 = sshll.u32 %s11545_s7, 4  ;;  %s1321_s28 = int_to_ptr.vmem [resolvable:$true] %s1320_s28  ;;  %s12004_s16 = int_to_ptr.vmem [resolvable:$true] %s972_s16 }
 0x197   : > { %s10940_s22 = scalar_lea.hbm %s13114_s8, 16 }
 0x198   : > { %p10941_p6 = scmp.ne.s32.totalorder %s13114_s8, %s10940_s22  ;;  %p10947_p2 = scmp.lt.u32.totalorder %s10940_s22, %s13114_s8 }
 0x19a   : > { %p10943_p8 = pnand %p10941_p6, %p11798_p7 }
 0x19c   : > { %p10944_p9 = pneg %p10943_p8 }
 0x19e   : > { %p10949_p3 = pnand %p10947_p2, %p10944_p9 }
 0x1a0   : > { %10952 = shalt.err (!%p10949_p3)
}
 0x1a1   : > { %s10953_s10 = scalar_lea.vmem %s1321_s28, 16  ;;  %s10960_s18 = scalar_lea.vmem %s1321_s28, 32 }
 0x1a2   : > { %p10954_p10 = scmp.ne.s32.totalorder %s1321_s28, %s10953_s10  ;;  %p10961_p13 = scmp.lt.s32.totalorder %s1321_s28, %s1321_s28 }
 0x1a3   : > { %p10962_p0 = scmp.lt.s32.totalorder %s10960_s18, %s10953_s10 }
 0x1a4   : > { %p10956_p11 = pnand %p10954_p10, %p11798_p7 }
 0x1a5   : > { %p10963_p1 = por %p10962_p0, %p10961_p13 }
 0x1a6   : > { %p10957_p12 = pneg %p10956_p11 }
 0x1a8   : > { %p10964_p4 = pnand %p10963_p1, %p10957_p12 }
 0x1aa   : > { %10967 = shalt.err (!%p10964_p4)
}
 0x1ab   : > { %s13124_s2 = sld [smem:[#allocation72_spill]] }
 0x1ac   : > { %10183 = dma.hbm_to_vmem [thread:$0]  (!%p11790_p5), %s13114_s8, 16, %s1321_s28, [#allocation48]  }
 0x1b1   : > { %s10968_s7 = scalar_lea.hbm %s13124_s2, 1536 }
 0x1b2   : > { %p10969_p6 = scmp.ne.s32.totalorder %s13124_s2, %s10968_s7  ;;  %p10975_p2 = scmp.lt.u32.totalorder %s10968_s7, %s13124_s2 }
 0x1b4   : > { %p10971_p8 = pnand %p10969_p6, %p11798_p7 }
 0x1b6   : > { %p10972_p9 = pneg %p10971_p8 }
 0x1b8   : > { %p10977_p3 = pnand %p10975_p2, %p10972_p9 }
 0x1ba   : > { %10980 = shalt.err (!%p10977_p3)
}
 0x1bb   : > { %s10981_s22 = scalar_lea.vmem %s12004_s16, 1536  ;;  %p10989_p13 = scmp.lt.s32.totalorder %s12004_s16, %s12004_s16 }
 0x1bc   : > { %p10982_p10 = scmp.ne.s32.totalorder %s12004_s16, %s10981_s22  ;;  %p10990_p0 = scmp.lt.s32.totalorder %s10981_s22, %s10981_s22 }
 0x1be   : > { %p10984_p11 = pnand %p10982_p10, %p11798_p7  ;;  %p10991_p1 = por %p10990_p0, %p10989_p13 }
 0x1c0   : > { %p10985_p12 = pneg %p10984_p11 }
 0x1c2   : > { %p10992_p4 = pnand %p10991_p1, %p10985_p12 }
 0x1c4   : > { %10995 = shalt.err (!%p10992_p4)
}
 0x1c5   : > { %s13125_s28 = sld [smem:[#allocation74_spill]]  ;;  %s11546_s10 = smov [#allocation7]  }
 0x1c6   : > { %10096 = dma.hbm_to_vmem [thread:$0]  (!%p11790_p5), %s13124_s2, 1536, %s12004_s16, [#allocation4], %s13123_s23, %s13123_s23, %s13122_s11  }
 0x1c7   : > { %s998_s18 = sshll.u32 %s11546_s10, 4  ;;  %s11547_s7 = smov [#allocation10]   ;;  %s999_s18 = int_to_ptr.vmem [resolvable:$true] %s998_s18 }
 0x1c8   : > { %s1024_s22 = sshll.u32 %s11547_s7, 4  ;;  %s1025_s22 = int_to_ptr.vmem [resolvable:$true] %s1024_s22 }
 0x1cb   : > { %s10996_s3 = scalar_lea.hbm %s13125_s28, 1536 }
 0x1cc   : > { %p10997_p6 = scmp.ne.s32.totalorder %s13125_s28, %s10996_s3  ;;  %p11003_p2 = scmp.lt.u32.totalorder %s10996_s3, %s13125_s28 }
 0x1ce   : > { %p10999_p8 = pnand %p10997_p6, %p11798_p7 }
 0x1d0   : > { %p11000_p9 = pneg %p10999_p8 }
 0x1d2   : > { %p11005_p3 = pnand %p11003_p2, %p11000_p9 }
 0x1d4   : > { %11008 = shalt.err (!%p11005_p3)
}
 0x1d5   : > { %s11009_s4 = scalar_lea.vmem %s999_s18, 1536  ;;  %p11017_p13 = scmp.lt.s32.totalorder %s999_s18, %s999_s18 }
 0x1d6   : > { %p11010_p10 = scmp.ne.s32.totalorder %s999_s18, %s11009_s4  ;;  %p11018_p0 = scmp.lt.s32.totalorder %s11009_s4, %s11009_s4 }
 0x1d8   : > { %p11012_p11 = pnand %p11010_p10, %p11798_p7  ;;  %p11019_p1 = por %p11018_p0, %p11017_p13 }
 0x1da   : > { %p11013_p12 = pneg %p11012_p11 }
 0x1dc   : > { %p11020_p4 = pnand %p11019_p1, %p11013_p12 }
 0x1de   : > { %11023 = shalt.err (!%p11020_p4)
}
 0x1df   : > { %s13126_s3 = sld [smem:[#allocation75_spill]] }
 0x1e0   : > { %10102 = dma.hbm_to_vmem [thread:$0]  (!%p11790_p5), %s13125_s28, 1536, %s999_s18, [#allocation6], %s13123_s23, %s13123_s23, %s13122_s11  }
 0x1e5   : > { %s11024_s16 = scalar_lea.hbm %s13126_s3, 96 }
 0x1e6   : > { %p11025_p6 = scmp.ne.s32.totalorder %s13126_s3, %s11024_s16  ;;  %p11031_p2 = scmp.lt.u32.totalorder %s11024_s16, %s13126_s3 }
 0x1e8   : > { %p11027_p8 = pnand %p11025_p6, %p11798_p7 }
 0x1ea   : > { %p11028_p9 = pneg %p11027_p8 }
 0x1ec   : > { %p11033_p3 = pnand %p11031_p2, %p11028_p9 }
 0x1ee   : > { %11036 = shalt.err (!%p11033_p3)
}
 0x1ef   : > { %s11037_s4 = scalar_lea.vmem %s1025_s22, 96  ;;  %p11045_p13 = scmp.lt.s32.totalorder %s1025_s22, %s1025_s22 }
 0x1f0   : > { %p11038_p10 = scmp.ne.s32.totalorder %s1025_s22, %s11037_s4  ;;  %p11046_p0 = scmp.lt.s32.totalorder %s11037_s4, %s11037_s4 }
 0x1f2   : > { %p11040_p11 = pnand %p11038_p10, %p11798_p7  ;;  %p11047_p1 = por %p11046_p0, %p11045_p13 }
 0x1f4   : > { %p11041_p12 = pneg %p11040_p11 }
 0x1f6   : > { %p11048_p4 = pnand %p11047_p1, %p11041_p12 }
 0x1f8   : > { %11051 = shalt.err (!%p11048_p4)
}
 0x1f9   : > { %s13127_s10 = smov 1   ;;  %s13128_s18 = smov 16  }
 0x1fa   : > { %s13129_s7 = sld [smem:[#allocation76_spill]]  ;;  %s11548_s16 = smov [#allocation13]  }
 0x1fb   : > { %10108 = dma.hbm_to_vmem [thread:$0]  (!%p11790_p5), %s13126_s3, 96, %s1025_s22, [#allocation9], %s13128_s18, %s13128_s18, %s13127_s10  }
 0x1fc   : > { %s1051_s2 = sshll.u32 %s11548_s16, 4  ;;  %s11549_s5 = smov [#allocation16]   ;;  %s1052_s2 = int_to_ptr.vmem [resolvable:$true] %s1051_s2 }
 0x1fd   : > { %s1072_s6 = sshll.u32 %s11549_s5, 4  ;;  %s1073_s6 = int_to_ptr.vmem [resolvable:$true] %s1072_s6 }
 0x200   : > { %s11052_s4 = scalar_lea.hbm %s13129_s7, 64 }
 0x201   : > { %p11053_p6 = scmp.ne.s32.totalorder %s13129_s7, %s11052_s4  ;;  %p11059_p2 = scmp.lt.u32.totalorder %s11052_s4, %s13129_s7 }
 0x203   : > { %p11055_p8 = pnand %p11053_p6, %p11798_p7 }
 0x205   : > { %p11056_p9 = pneg %p11055_p8 }
 0x207   : > { %p11061_p3 = pnand %p11059_p2, %p11056_p9 }
 0x209   : > { %11064 = shalt.err (!%p11061_p3)
}
 0x20a   : > { %s11065_s8 = scalar_lea.vmem %s1052_s2, 64  ;;  %p11073_p13 = scmp.lt.s32.totalorder %s1052_s2, %s1052_s2 }
 0x20b   : > { %p11066_p10 = scmp.ne.s32.totalorder %s1052_s2, %s11065_s8  ;;  %p11074_p0 = scmp.lt.s32.totalorder %s11065_s8, %s11065_s8 }
 0x20d   : > { %p11068_p11 = pnand %p11066_p10, %p11798_p7  ;;  %p11075_p1 = por %p11074_p0, %p11073_p13 }
 0x20f   : > { %p11069_p12 = pneg %p11068_p11 }
 0x211   : > { %p11076_p4 = pnand %p11075_p1, %p11069_p12 }
 0x213   : > { %11079 = shalt.err (!%p11076_p4)
}
 0x214   : > { %s13130_s5 = sld [smem:[#allocation78_spill]] }
 0x215   : > { %10114 = dma.hbm_to_vmem [thread:$0]  (!%p11790_p5), %s13129_s7, 64, %s1052_s2, [#allocation12]  }
 0x21a   : > { %s11080_s22 = scalar_lea.hbm %s13130_s5, 256 }
 0x21b   : > { %p11081_p6 = scmp.ne.s32.totalorder %s13130_s5, %s11080_s22  ;;  %p11087_p2 = scmp.lt.u32.totalorder %s11080_s22, %s13130_s5 }
 0x21d   : > { %p11083_p8 = pnand %p11081_p6, %p11798_p7 }
 0x21f   : > { %p11084_p9 = pneg %p11083_p8 }
 0x221   : > { %p11089_p3 = pnand %p11087_p2, %p11084_p9 }
 0x223   : > { %11092 = shalt.err (!%p11089_p3)
}
 0x224   : > { %s11093_s8 = scalar_lea.vmem %s1073_s6, 256  ;;  %p11101_p13 = scmp.lt.s32.totalorder %s1073_s6, %s1073_s6 }
 0x225   : > { %p11094_p10 = scmp.ne.s32.totalorder %s1073_s6, %s11093_s8  ;;  %p11102_p0 = scmp.lt.s32.totalorder %s11093_s8, %s11093_s8 }
 0x227   : > { %p11096_p11 = pnand %p11094_p10, %p11798_p7  ;;  %p11103_p1 = por %p11102_p0, %p11101_p13 }
 0x229   : > { %p11097_p12 = pneg %p11096_p11 }
 0x22b   : > { %p11104_p4 = pnand %p11103_p1, %p11097_p12 }
 0x22d   : > { %11107 = shalt.err (!%p11104_p4)
}
 0x22e   : > { %s13131_s2 = sld [smem:[#allocation79_spill]]  ;;  %s11550_s10 = smov [#allocation19]  }
 0x22f   : > { %10120 = dma.hbm_to_vmem [thread:$0]  (!%p11790_p5), %s13130_s5, 256, %s1073_s6, [#allocation15], %s13123_s23, %s13123_s23, %s13122_s11  }
 0x230   : > { %s1096_s18 = sshll.u32 %s11550_s10, 4  ;;  %s11551_s16 = smov [#allocation22]   ;;  %s1097_s18 = int_to_ptr.vmem [resolvable:$true] %s1096_s18 }
 0x231   : > { %s1120_s4 = sshll.u32 %s11551_s16, 4  ;;  %s1121_s4 = int_to_ptr.vmem [resolvable:$true] %s1120_s4 }
 0x234   : > { %s11108_s22 = scalar_lea.hbm %s13131_s2, 256 }
 0x235   : > { %p11109_p6 = scmp.ne.s32.totalorder %s13131_s2, %s11108_s22  ;;  %p11115_p2 = scmp.lt.u32.totalorder %s11108_s22, %s13131_s2 }
 0x237   : > { %p11111_p8 = pnand %p11109_p6, %p11798_p7 }
 0x239   : > { %p11112_p9 = pneg %p11111_p8 }
 0x23b   : > { %p11117_p3 = pnand %p11115_p2, %p11112_p9 }
 0x23d   : > { %11120 = shalt.err (!%p11117_p3)
}
 0x23e   : > { %s11121_s8 = scalar_lea.vmem %s1097_s18, 256  ;;  %p11129_p13 = scmp.lt.s32.totalorder %s1097_s18, %s1097_s18 }
 0x23f   : > { %p11122_p10 = scmp.ne.s32.totalorder %s1097_s18, %s11121_s8  ;;  %p11130_p0 = scmp.lt.s32.totalorder %s11121_s8, %s11121_s8 }
 0x241   : > { %p11124_p11 = pnand %p11122_p10, %p11798_p7  ;;  %p11131_p1 = por %p11130_p0, %p11129_p13 }
 0x243   : > { %p11125_p12 = pneg %p11124_p11 }
 0x245   : > { %p11132_p4 = pnand %p11131_p1, %p11125_p12 }
 0x247   : > { %11135 = shalt.err (!%p11132_p4)
}
 0x248   : > { %s13132_s6 = sld [smem:[#allocation81_spill]] }
 0x249   : > { %10126 = dma.hbm_to_vmem [thread:$0]  (!%p11790_p5), %s13131_s2, 256, %s1097_s18, [#allocation18], %s13123_s23, %s13123_s23, %s13122_s11  }
 0x24e   : > { %s11136_s10 = scalar_lea.hbm %s13132_s6, 256 }
 0x24f   : > { %p11137_p6 = scmp.ne.s32.totalorder %s13132_s6, %s11136_s10  ;;  %p11143_p2 = scmp.lt.u32.totalorder %s11136_s10, %s13132_s6 }
 0x251   : > { %p11139_p8 = pnand %p11137_p6, %p11798_p7 }
 0x253   : > { %p11140_p9 = pneg %p11139_p8 }
 0x255   : > { %p11145_p3 = pnand %p11143_p2, %p11140_p9 }
 0x257   : > { %11148 = shalt.err (!%p11145_p3)
}
 0x258   : > { %s11149_s16 = scalar_lea.vmem %s1121_s4, 256  ;;  %p11157_p13 = scmp.lt.s32.totalorder %s1121_s4, %s1121_s4 }
 0x259   : > { %p11150_p10 = scmp.ne.s32.totalorder %s1121_s4, %s11149_s16  ;;  %p11158_p0 = scmp.lt.s32.totalorder %s11149_s16, %s11149_s16 }
 0x25b   : > { %p11152_p11 = pnand %p11150_p10, %p11798_p7  ;;  %p11159_p1 = por %p11158_p0, %p11157_p13 }
 0x25d   : > { %p11153_p12 = pneg %p11152_p11 }
 0x25f   : > { %p11160_p4 = pnand %p11159_p1, %p11153_p12 }
 0x261   : > { %11163 = shalt.err (!%p11160_p4)
}
 0x262   : > { %s13133_s18 = sld [smem:[#allocation82_spill]]  ;;  %s11552_s22 = smov [#allocation25]  }
 0x263   : > { %10132 = dma.hbm_to_vmem [thread:$0]  (!%p11790_p5), %s13132_s6, 256, %s1121_s4, [#allocation21], %s13123_s23, %s13123_s23, %s13122_s11  }
 0x264   : > { %s1145_s8 = sshll.u32 %s11552_s22, 4  ;;  %s11553_s10 = smov [#allocation28]   ;;  %s1146_s8 = int_to_ptr.vmem [resolvable:$true] %s1145_s8 }
 0x265   : > { %s1167_s2 = sshll.u32 %s11553_s10, 4  ;;  %s1168_s2 = int_to_ptr.vmem [resolvable:$true] %s1167_s2 }
 0x268   : > { %s11164_s16 = scalar_lea.hbm %s13133_s18, 64 }
 0x269   : > { %p11165_p6 = scmp.ne.s32.totalorder %s13133_s18, %s11164_s16  ;;  %p11171_p2 = scmp.lt.u32.totalorder %s11164_s16, %s13133_s18 }
 0x26b   : > { %p11167_p8 = pnand %p11165_p6, %p11798_p7 }
 0x26d   : > { %p11168_p9 = pneg %p11167_p8 }
 0x26f   : > { %p11173_p3 = pnand %p11171_p2, %p11168_p9 }
 0x271   : > { %11176 = shalt.err (!%p11173_p3)
}
 0x272   : > { %s11177_s3 = scalar_lea.vmem %s1146_s8, 64  ;;  %p11185_p13 = scmp.lt.s32.totalorder %s1146_s8, %s1146_s8 }
 0x273   : > { %p11178_p10 = scmp.ne.s32.totalorder %s1146_s8, %s11177_s3  ;;  %p11186_p0 = scmp.lt.s32.totalorder %s11177_s3, %s11177_s3 }
 0x275   : > { %p11180_p11 = pnand %p11178_p10, %p11798_p7  ;;  %p11187_p1 = por %p11186_p0, %p11185_p13 }
 0x277   : > { %p11181_p12 = pneg %p11180_p11 }
 0x279   : > { %p11188_p4 = pnand %p11187_p1, %p11181_p12 }
 0x27b   : > { %11191 = shalt.err (!%p11188_p4)
}
 0x27c   : > { %s13134_s4 = sld [smem:[#allocation83_spill]] }
 0x27d   : > { %10138 = dma.hbm_to_vmem [thread:$0]  (!%p11790_p5), %s13133_s18, 64, %s1146_s8, [#allocation24]  }
 0x282   : > { %s11192_s22 = scalar_lea.hbm %s13134_s4, 32 }
 0x283   : > { %p11193_p6 = scmp.ne.s32.totalorder %s13134_s4, %s11192_s22  ;;  %p11199_p2 = scmp.lt.u32.totalorder %s11192_s22, %s13134_s4 }
 0x285   : > { %p11195_p8 = pnand %p11193_p6, %p11798_p7 }
 0x287   : > { %p11196_p9 = pneg %p11195_p8 }
 0x289   : > { %p11201_p3 = pnand %p11199_p2, %p11196_p9 }
 0x28b   : > { %11204 = shalt.err (!%p11201_p3)
}
 0x28c   : > { %s11205_s3 = scalar_lea.vmem %s1168_s2, 32  ;;  %p11213_p13 = scmp.lt.s32.totalorder %s1168_s2, %s1168_s2 }
 0x28d   : > { %p11206_p10 = scmp.ne.s32.totalorder %s1168_s2, %s11205_s3  ;;  %p11214_p0 = scmp.lt.s32.totalorder %s11205_s3, %s11205_s3 }
 0x28f   : > { %p11208_p11 = pnand %p11206_p10, %p11798_p7  ;;  %p11215_p1 = por %p11214_p0, %p11213_p13 }
 0x291   : > { %p11209_p12 = pneg %p11208_p11 }
 0x293   : > { %p11216_p4 = pnand %p11215_p1, %p11209_p12 }
 0x295   : > { %11219 = shalt.err (!%p11216_p4)
}
 0x296   : > { %s13135_s8 = sld [smem:[#allocation85_spill]]  ;;  %s11554_s10 = smov [#allocation31]  }
 0x297   : > { %10144 = dma.hbm_to_vmem [thread:$0]  (!%p11790_p5), %s13134_s4, 32, %s1168_s2, [#allocation27]  }
 0x298   : > { %s1189_s16 = sshll.u32 %s11554_s10, 4  ;;  %s11555_s22 = smov [#allocation34]   ;;  %s1190_s16 = int_to_ptr.vmem [resolvable:$true] %s1189_s16 }
 0x299   : > { %s1211_s5 = sshll.u32 %s11555_s22, 4  ;;  %s1212_s5 = int_to_ptr.vmem [resolvable:$true] %s1211_s5 }
 0x29c   : > { %s11220_s6 = scalar_lea.hbm %s13135_s8, 32 }
 0x29d   : > { %p11221_p6 = scmp.ne.s32.totalorder %s13135_s8, %s11220_s6  ;;  %p11227_p2 = scmp.lt.u32.totalorder %s11220_s6, %s13135_s8 }
 0x29f   : > { %p11223_p8 = pnand %p11221_p6, %p11798_p7 }
 0x2a1   : > { %p11224_p9 = pneg %p11223_p8 }
 0x2a3   : > { %p11229_p3 = pnand %p11227_p2, %p11224_p9 }
 0x2a5   : > { %11232 = shalt.err (!%p11229_p3)
}
 0x2a6   : > { %s11233_s3 = scalar_lea.vmem %s1190_s16, 32  ;;  %p11241_p13 = scmp.lt.s32.totalorder %s1190_s16, %s1190_s16 }
 0x2a7   : > { %p11234_p10 = scmp.ne.s32.totalorder %s1190_s16, %s11233_s3  ;;  %p11242_p0 = scmp.lt.s32.totalorder %s11233_s3, %s11233_s3 }
 0x2a9   : > { %p11236_p11 = pnand %p11234_p10, %p11798_p7  ;;  %p11243_p1 = por %p11242_p0, %p11241_p13 }
 0x2ab   : > { %p11237_p12 = pneg %p11236_p11 }
 0x2ad   : > { %p11244_p4 = pnand %p11243_p1, %p11237_p12 }
 0x2af   : > { %11247 = shalt.err (!%p11244_p4)
}
 0x2b0   : > { %s13136_s2 = sld [smem:[#allocation86_spill]] }
 0x2b1   : > { %10150 = dma.hbm_to_vmem [thread:$0]  (!%p11790_p5), %s13135_s8, 32, %s1190_s16, [#allocation30]  }
 0x2b6   : > { %s11248_s6 = scalar_lea.hbm %s13136_s2, 32 }
 0x2b7   : > { %p11249_p6 = scmp.ne.s32.totalorder %s13136_s2, %s11248_s6  ;;  %p11255_p2 = scmp.lt.u32.totalorder %s11248_s6, %s13136_s2 }
 0x2b9   : > { %p11251_p8 = pnand %p11249_p6, %p11798_p7 }
 0x2bb   : > { %p11252_p9 = pneg %p11251_p8 }
 0x2bd   : > { %p11257_p3 = pnand %p11255_p2, %p11252_p9 }
 0x2bf   : > { %11260 = shalt.err (!%p11257_p3)
}
 0x2c0   : > { %s11261_s10 = scalar_lea.vmem %s1212_s5, 32  ;;  %p11269_p13 = scmp.lt.s32.totalorder %s1212_s5, %s1212_s5 }
 0x2c1   : > { %p11262_p10 = scmp.ne.s32.totalorder %s1212_s5, %s11261_s10  ;;  %p11270_p0 = scmp.lt.s32.totalorder %s11261_s10, %s11261_s10 }
 0x2c3   : > { %p11264_p11 = pnand %p11262_p10, %p11798_p7  ;;  %p11271_p1 = por %p11270_p0, %p11269_p13 }
 0x2c5   : > { %p11265_p12 = pneg %p11264_p11 }
 0x2c7   : > { %p11272_p4 = pnand %p11271_p1, %p11265_p12 }
 0x2c9   : > { %11275 = shalt.err (!%p11272_p4)
}
 0x2ca   : > { %s13137_s16 = sld [smem:[#allocation87_spill]]  ;;  %s11556_s22 = smov [#allocation37]  }
 0x2cb   : > { %10156 = dma.hbm_to_vmem [thread:$0]  (!%p11790_p5), %s13136_s2, 32, %s1212_s5, [#allocation33]  }
 0x2cc   : > { %s1232_s3 = sshll.u32 %s11556_s22, 4  ;;  %s11557_s6 = smov [#allocation40]   ;;  %s1233_s3 = int_to_ptr.vmem [resolvable:$true] %s1232_s3 }
 0x2cd   : > { %s1258_s4 = sshll.u32 %s11557_s6, 4  ;;  %s1259_s4 = int_to_ptr.vmem [resolvable:$true] %s1258_s4 }
 0x2d0   : > { %s11276_s7 = scalar_lea.hbm %s13137_s16, 256 }
 0x2d1   : > { %p11277_p6 = scmp.ne.s32.totalorder %s13137_s16, %s11276_s7  ;;  %p11283_p2 = scmp.lt.u32.totalorder %s11276_s7, %s13137_s16 }
 0x2d3   : > { %p11279_p8 = pnand %p11277_p6, %p11798_p7 }
 0x2d5   : > { %p11280_p9 = pneg %p11279_p8 }
 0x2d7   : > { %p11285_p3 = pnand %p11283_p2, %p11280_p9 }
 0x2d9   : > { %11288 = shalt.err (!%p11285_p3)
}
 0x2da   : > { %s11289_s10 = scalar_lea.vmem %s1233_s3, 256  ;;  %p11297_p13 = scmp.lt.s32.totalorder %s1233_s3, %s1233_s3 }
 0x2db   : > { %p11290_p10 = scmp.ne.s32.totalorder %s1233_s3, %s11289_s10  ;;  %p11298_p0 = scmp.lt.s32.totalorder %s11289_s10, %s11289_s10 }
 0x2dd   : > { %p11292_p11 = pnand %p11290_p10, %p11798_p7  ;;  %p11299_p1 = por %p11298_p0, %p11297_p13 }
 0x2df   : > { %p11293_p12 = pneg %p11292_p11 }
 0x2e1   : > { %p11300_p4 = pnand %p11299_p1, %p11293_p12 }
 0x2e3   : > { %11303 = shalt.err (!%p11300_p4)
}
 0x2e4   : > { %s13138_s7 = sld [smem:[#allocation88_spill]] }
 0x2e5   : > { %10162 = dma.hbm_to_vmem [thread:$0]  (!%p11790_p5), %s13137_s16, 256, %s1233_s3, [#allocation36], %s13123_s23, %s13123_s23, %s13122_s11  }
 0x2ea   : > { %s11304_s5 = scalar_lea.hbm %s13138_s7, 256 }
 0x2eb   : > { %p11305_p6 = scmp.ne.s32.totalorder %s13138_s7, %s11304_s5  ;;  %p11311_p2 = scmp.lt.u32.totalorder %s11304_s5, %s13138_s7 }
 0x2ed   : > { %p11307_p8 = pnand %p11305_p6, %p11798_p7 }
 0x2ef   : > { %p11308_p9 = pneg %p11307_p8 }
 0x2f1   : > { %p11313_p3 = pnand %p11311_p2, %p11308_p9 }
 0x2f3   : > { %11316 = shalt.err (!%p11313_p3)
}
 0x2f4   : > { %s11317_s22 = scalar_lea.vmem %s1259_s4, 256  ;;  %p11325_p13 = scmp.lt.s32.totalorder %s1259_s4, %s1259_s4 }
 0x2f5   : > { %p11318_p10 = scmp.ne.s32.totalorder %s1259_s4, %s11317_s22  ;;  %p11326_p0 = scmp.lt.s32.totalorder %s11317_s22, %s11317_s22 }
 0x2f7   : > { %p11320_p11 = pnand %p11318_p10, %p11798_p7  ;;  %p11327_p1 = por %p11326_p0, %p11325_p13 }
 0x2f9   : > { %p11321_p12 = pneg %p11320_p11 }
 0x2fb   : > { %p11328_p4 = pnand %p11327_p1, %p11321_p12 }
 0x2fd   : > { %11331 = shalt.err (!%p11328_p4)
}
 0x2fe   : > { %s13139_s3 = sld [smem:[#allocation89_spill]]  ;;  %s11558_s6 = smov [#allocation43]  }
 0x2ff   : > { %10168 = dma.hbm_to_vmem [thread:$0]  (!%p11790_p5), %s13138_s7, 256, %s1259_s4, [#allocation39], %s13123_s23, %s13123_s23, %s13122_s11  }
 0x300   : > { %s1282_s10 = sshll.u32 %s11558_s6, 4  ;;  %s11559_s5 = smov [#allocation46]   ;;  %s1283_s10 = int_to_ptr.vmem [resolvable:$true] %s1282_s10 }
 0x301   : > { %s1306_s2 = sshll.u32 %s11559_s5, 4  ;;  %s1307_s2 = int_to_ptr.vmem [resolvable:$true] %s1306_s2 }
 0x304   : > { %s11332_s22 = scalar_lea.hbm %s13139_s3, 768 }
 0x305   : > { %p11333_p6 = scmp.ne.s32.totalorder %s13139_s3, %s11332_s22  ;;  %p11339_p2 = scmp.lt.u32.totalorder %s11332_s22, %s13139_s3 }
 0x307   : > { %p11335_p8 = pnand %p11333_p6, %p11798_p7 }
 0x309   : > { %p11336_p9 = pneg %p11335_p8 }
 0x30b   : > { %p11341_p3 = pnand %p11339_p2, %p11336_p9 }
 0x30d   : > { %11344 = shalt.err (!%p11341_p3)
}
 0x30e   : > { %s11345_s8 = scalar_lea.vmem %s1283_s10, 768  ;;  %p11353_p13 = scmp.lt.s32.totalorder %s1283_s10, %s1283_s10 }
 0x30f   : > { %p11346_p10 = scmp.ne.s32.totalorder %s1283_s10, %s11345_s8  ;;  %p11354_p0 = scmp.lt.s32.totalorder %s11345_s8, %s11345_s8 }
 0x311   : > { %p11348_p11 = pnand %p11346_p10, %p11798_p7  ;;  %p11355_p1 = por %p11354_p0, %p11353_p13 }
 0x313   : > { %p11349_p12 = pneg %p11348_p11 }
 0x315   : > { %p11356_p4 = pnand %p11355_p1, %p11349_p12 }
 0x317   : > { %11359 = shalt.err (!%p11356_p4)
}
 0x318   : > { %s13140_s4 = sld [smem:[#allocation90_spill]] }
 0x319   : > { %10174 = dma.hbm_to_vmem [thread:$0]  (!%p11790_p5), %s13139_s3, 768, %s1283_s10, [#allocation42], %s13123_s23, %s13123_s23, %s13122_s11  }
 0x31e   : > { %s11360_s6 = scalar_lea.hbm %s13140_s4, 768 }
 0x31f   : > { %p11361_p6 = scmp.ne.s32.totalorder %s13140_s4, %s11360_s6  ;;  %p11367_p2 = scmp.lt.u32.totalorder %s11360_s6, %s13140_s4 }
 0x321   : > { %p11363_p8 = pnand %p11361_p6, %p11798_p7 }
 0x323   : > { %p11364_p9 = pneg %p11363_p8 }
 0x325   : > { %p11369_p3 = pnand %p11367_p2, %p11364_p9 }
 0x327   : > { %11372 = shalt.err (!%p11369_p3)
}
 0x328   : > { %s11373_s8 = scalar_lea.vmem %s1307_s2, 768  ;;  %p11381_p13 = scmp.lt.s32.totalorder %s1307_s2, %s1307_s2 }
 0x329   : > { %p11374_p10 = scmp.ne.s32.totalorder %s1307_s2, %s11373_s8  ;;  %p11382_p0 = scmp.lt.s32.totalorder %s11373_s8, %s11373_s8 }
 0x32b   : > { %p11376_p11 = pnand %p11374_p10, %p11798_p7  ;;  %p11383_p1 = por %p11382_p0, %p11381_p13 }
 0x32d   : > { %p11377_p12 = pneg %p11376_p11 }
 0x32f   : > { %p11384_p4 = pnand %p11383_p1, %p11377_p12 }
 0x331   : > { %11387 = shalt.err (!%p11384_p4)
}
 0x332   : > { %10180 = dma.hbm_to_vmem [thread:$0]  (!%p11790_p5), %s13140_s4, 768, %s1307_s2, [#allocation45], %s13123_s23, %s13123_s23, %s13122_s11  }
 0x333   : > { %s11560_s10 = smov [#allocation49]   ;;  %s11388_s22 = scalar_lea.hbm %s11759_s25, 16 }
 0x334   : > { %s1331_s5 = sshll.u32 %s11560_s10, 4  ;;  %p11389_p6 = scmp.ne.s32.totalorder %s11759_s25, %s11388_s22  ;;  %s1332_s5 = int_to_ptr.vmem [resolvable:$true] %s1331_s5 }
 0x335   : > { %p11395_p2 = scmp.lt.u32.totalorder %s11388_s22, %s11759_s25 }
 0x336   : > { %p11391_p8 = pnand %p11389_p6, %p11798_p7 }
 0x338   : > { %p11392_p9 = pneg %p11391_p8 }
 0x33a   : > { %p11397_p3 = pnand %p11395_p2, %p11392_p9 }
 0x33c   : > { %11400 = shalt.err (!%p11397_p3)
}
 0x33d   : > { %s11401_s6 = scalar_lea.vmem %s1332_s5, 16  ;;  %s11408_s8 = scalar_lea.vmem %s1332_s5, 32 }
 0x33e   : > { %p11402_p10 = scmp.ne.s32.totalorder %s1332_s5, %s11401_s6  ;;  %p11409_p13 = scmp.lt.s32.totalorder %s1332_s5, %s1332_s5 }
 0x33f   : > { %p11410_p0 = scmp.lt.s32.totalorder %s11408_s8, %s11401_s6 }
 0x340   : > { %p11404_p11 = pnand %p11402_p10, %p11798_p7 }
 0x341   : > { %p11411_p1 = por %p11410_p0, %p11409_p13 }
 0x342   : > { %p11405_p12 = pneg %p11404_p11 }
 0x344   : > { %p11412_p4 = pnand %p11411_p1, %p11405_p12 }
 0x346   : > { %11415 = shalt.err (!%p11412_p4)
}
 0x347   : > { %10186 = dma.hbm_to_vmem [thread:$0]  (!%p11790_p5), %s11759_s25, 16, %s1332_s5, [#allocation48]  }
 0x348   : > { %p13141_p6 = scmp.ne.s32.totalorder %s13119_s15, 0 }
 0x349   : > { %p13142_p8 = scmp.eq.s32.totalorder (!%p13141_p6), %s11775_s29, 0 }
 0x34a   : > { %1374 = sbr.rel (%p13141_p6) target bundleno = 12735 (0x31bf), region = 172 }
 0x351   : > { %11421 = dma.done.wait (%p13142_p8), [#allocation4], 1536   ;;  %p13143_p9 = pmov %p13142_p8 }
 0x352   : > { %p13144_p7 = pmov %p13142_p8 }
 0x353   : > { %11423 = vsyncadd (%p13143_p9), [#allocation4], 4294965760 }
 0x354   : > { %11425 = dma.done.wait (%p13144_p7), [#allocation6], 3072   ;;  %p13145_p2 = pmov %p13144_p7 }
 0x356   : > { %11427 = vsyncadd (%p13145_p2), [#allocation6], 4294964224  ;;  %p13146_p3 = pmov %p13145_p2 }
 0x357   : > { %p13147_p5 = pmov %p13145_p2 }
 0x358   : > { %11429 = dma.done.wait (%p13146_p3), [#allocation9], 192  }
 0x359   : > { %11431 = vsyncadd (%p13147_p5), [#allocation9], 4294967104  ;;  %p13148_p10 = pmov %p13145_p2 }
 0x35a   : > { %p13149_p11 = pmov %p13145_p2 }
 0x35b   : > { %11433 = dma.done.wait (%p13148_p10), [#allocation12], 160  }
 0x35c   : > { %11435 = vsyncadd (%p13149_p11), [#allocation12], 4294967136  ;;  %p13150_p12 = pmov %p13145_p2 }
 0x35d   : > { %p13151_p13 = pmov %p13145_p2 }
 0x35e   : > { %11437 = dma.done.wait (%p13150_p12), [#allocation15], 272  }
 0x35f   : > { %11439 = vsyncadd (%p13151_p13), [#allocation15], 4294967024  ;;  %p13152_p0 = pmov %p13145_p2 }
 0x361   : > { %11441 = dma.done.wait (%p13152_p0), [#allocation18], 272   ;;  %p13153_p1 = pmov %p13152_p0 }
 0x362   : > { %p13154_p4 = pmov %p13152_p0 }
 0x363   : > { %11443 = vsyncadd (%p13153_p1), [#allocation18], 4294967024 }
 0x364   : > { %11445 = dma.done.wait (%p13154_p4), [#allocation21], 272   ;;  %p13155_p6 = pmov %p13152_p0 }
 0x365   : > { %p13156_p8 = pmov %p13152_p0 }
 0x366   : > { %11447 = vsyncadd (%p13155_p6), [#allocation21], 4294967024 }
 0x367   : > { %11449 = dma.done.wait (%p13156_p8), [#allocation24], 80   ;;  %p13157_p9 = pmov %p13152_p0 }
 0x368   : > { %p13158_p7 = pmov %p13152_p0 }
 0x369   : > { %11451 = vsyncadd (%p13157_p9), [#allocation24], 4294967216 }
 0x36a   : > { %11453 = dma.done.wait (%p13158_p7), [#allocation27], 48   ;;  %p13159_p2 = pmov %p13152_p0 }
 0x36b   : > { %p13160_p3 = pmov %p13152_p0 }
 0x36c   : > { %11455 = vsyncadd (%p13159_p2), [#allocation27], 4294967248 }
 0x36d   : > { %11457 = dma.done.wait (%p13160_p3), [#allocation30], 48   ;;  %p13161_p5 = pmov %p13152_p0 }
 0x36e   : > { %p13162_p10 = pmov %p13152_p0 }
 0x36f   : > { %11459 = vsyncadd (%p13161_p5), [#allocation30], 4294967248 }
 0x370   : > { %11461 = dma.done.wait (%p13162_p10), [#allocation33], 48   ;;  %p13163_p11 = pmov %p13152_p0 }
 0x371   : > { %p13164_p12 = pmov %p13152_p0 }
 0x372   : > { %11463 = vsyncadd (%p13163_p11), [#allocation33], 4294967248 }
 0x373   : > { %11465 = dma.done.wait (%p13164_p12), [#allocation36], 272   ;;  %p13165_p13 = pmov %p13152_p0 }
 0x375   : > { %11467 = vsyncadd (%p13165_p13), [#allocation36], 4294967024 }
 0x376   : > { %11469 = dma.done.wait (%p13152_p0), [#allocation39], 512   ;;  %p13166_p1 = pmov %p13152_p0 }
 0x377   : > { %p13167_p4 = pmov %p13152_p0 }
 0x378   : > { %11471 = vsyncadd (%p13166_p1), [#allocation39], 4294966784 }
 0x379   : > { %11473 = dma.done.wait (%p13167_p4), [#allocation42], 784   ;;  %p13168_p6 = pmov %p13152_p0 }
 0x37a   : > { %p13169_p8 = pmov %p13152_p0 }
 0x37b   : > { %11475 = vsyncadd (%p13168_p6), [#allocation42], 4294966512 }
 0x37c   : > { %11477 = dma.done.wait (%p13169_p8), [#allocation45], 784   ;;  %p13170_p9 = pmov %p13152_p0 }
 0x37d   : > { %p13171_p7 = pmov %p13152_p0 }
 0x37e   : > { %11479 = vsyncadd (%p13170_p9), [#allocation45], 4294966512 }
 0x37f   : > { %11481 = dma.done.wait (%p13171_p7), [#allocation48], 32   ;;  %p13172_p2 = pmov %p13152_p0 }
 0x380   : > { %s13173_s15 = sld [smem:[#allocation66_spill]]  ;;  %s13174_s26 = sld [smem:[#allocation67_spill]]  ;;  %v11561_v1 = vmov 0   ;;  %v11562_v4 = vmov 1   ;;  %v11563_v7 = vmov 0.0   ;;  %vm11564_vm0 = vmmov 0  }
 0x381   : > { %11483 = vsyncadd (%p13172_p2), [#allocation48], 4294967264  ;;  %p1597_p3 = scmp.lt.s32.totalorder %s11775_s29, 1  ;;  %s13175_s1 = sld [smem:[#allocation70_spill]]  ;;  %10340 = vset.pattern.permute.xlu0 %v11561_v1  ;;  %10342 = vset.pattern.permute.xlu1 %v11561_v1  ;;  %v1627_v10 = vlaneseq  ;;  %v1621_v15 = vld [vmem:[#allocation13] sm:$0x7] }
 0x382   : > { %s13176_s11 = sld [smem:[#allocation71_spill]]  ;;  %9409 = vmatprep.subr.bf16.mxu0 %v11563_v7  ;;  %9417 = vmatprep.subr.bf16.mxu1 %v11563_v7  ;;  %v8927_v26 = vld [vmem:[#allocation14] ss:$0 sm:$0xff]  ;;  %vm1678_vm1 = vcmask 261120   ;;  %v10350_v29 = vld [vmem:[#allocation3] sm:$0xff]   ;;  %v10351_v31 = vld [vmem:[#allocation3 + $0x8] sm:$0xff]  }
 0x383   : > { %s13180_s29 = smov (!%p1597_p3, %s11775_s29), 1  ;;  %9413 = vmatprep.mubr.msk.bf16.mxu0 %vm11564_vm0, %v11563_v7  ;;  %9421 = vmatprep.mubr.msk.bf16.mxu1 %vm11564_vm0, %v11563_v7  ;;  %v12304_v11 = vshrl.u32 %v1627_v10, 7  ;;  %vm1834_vm2 = vcmask 64512   ;;  %s11565_s5 = smov 120   ;;  %vm2504_vm3 = vcmask 130048   ;;  %vm2506_vm4 = vcmask 195584  }
 0x384   : > { %s12282_s23 = sshll.u32 %s13180_s29, 3  ;;  %s11566_s22 = smov 112   ;;  %vm8253_vm5 = vcmask 785408   ;;  %vm8433_vm6 = vcmask 7168  }
 0x385   : > { %v12307_v12 = vsub.s32 0, %v12304_v11  ;;  %v12310_v13 = vsub.s32 1, %v12304_v11  ;;  %v1649_v14 = vsub.s32 2, %v12304_v11  ;;  %s11567_s6 = smov 104   ;;  %s11568_s8 = smov 8  }
 0x386   : > { %s1600_s2 = scalar_lea.vmem %s13173_s15, %s12282_s23  ;;  %s1604_s10 = scalar_lea.vmem %s13174_s26, %s12282_s23 }
 0x387   : > { %v1617_v2 = vld [vmem:[%s1600_s2] sm:$0xff]  ;;  %v10348_v8 = vld [vmem:[%s13175_s1 + $0x8] sm:$0xff]   ;;  %v1630_v17 = vrot.slane %v1621_v15, %v12307_v12  ;;  %v1639_v18 = vrot.slane %v1621_v15, %v12310_v13  ;;  %v1650_v19 = vrot.slane %v1621_v15, %v1649_v14  ;;  %s11569_s15 = smov 16   ;;  %s11570_s26 = smov 24  }
 0x388   : > { %v1618_v3 = vld [vmem:[%s1604_s10] sm:$0xff]  ;;  %1624 = vperm.xlu0 %10340, %v1617_v2   ;;  %v10349_v9 = vld [vmem:[%s13176_s11 + $0x8] sm:$0xff]   ;;  %s13177_s2 = sld [smem:[#allocation69_spill]] }
 0x389   : > { %1644 = vperm.xlu1 %10342, %v1618_v3   ;;  %v10346_v5 = vld [vmem:[%s13175_s1] sm:$0xff]   ;;  %v10374_v11 = vld [vmem:[%s13175_s1 + $0x28] sm:$0xff]  }
 0x38a   : > { %v10347_v6 = vld [vmem:[%s13176_s11] sm:$0xff]   ;;  %9410 = vmatpush3.bf16.msra.mxu0 %v10346_v5 }
 0x38b   : > { %9418 = vmatpush3.bf16.msra.mxu1 %v10347_v6  ;;  %9411 = vmatprep.subr.bf16.mxu0 %v11563_v7 }
 0x38c   : > { %10341 = vset.pattern.permute.xlu0 %v11562_v4  ;;  %9419 = vmatprep.subr.bf16.mxu1 %v11563_v7 }
 0x38d   : > { %10344 = vset.pattern.permute.xlu1 %v11562_v4  ;;  %1633 = vperm.xlu0 %10341, %v1617_v2  }
 0x38e   : > { %9412 = vmatpush3.bf16.msra.mxu0 %v10348_v8  ;;  %s1611_s10 = scalar_lea.vmem %s13177_s2, %s13180_s29  ;;  %s13178_s29 = sld [smem:[#allocation68_spill]] }
 0x38f   : > { %9420 = vmatpush3.bf16.msra.mxu1 %v10349_v9  ;;  %9425 = vmatprep.subr.bf16.mxu0 %v11563_v7 }
 0x390   : > { %9433 = vmatprep.subr.mxu1 %v11563_v7 }
 0x391   : > { %10343 = vset.pattern.permute.xlu0 %v11561_v1 }
 0x394   : > { %s1608_s2 = scalar_lea.vmem %s13178_s29, %s12282_s23 }
 0x407   : > { %v12313_v16 = vpop.permute.xlu0 %1624 }
 0x408   : > { %v12319_v20 = vpop.permute.xlu1 %1644  ;;  %v1631_v22 = vmul.f32 %v1630_v17, %v12313_v16 }
 0x409   : > { %v1651_v24 = vmul.f32 %v1650_v19, %v12319_v20 }
 0x40c   : > { %v12321_v21 = vpop.permute.xlu0 %1633 }
 0x40d   : > { %v1640_v23 = vmul.f32 %v1639_v18, %v12321_v21 }
 0x40f   : > { %v1641_v25 = vadd.f32 %v1640_v23, %v1631_v22 }
 0x411   : > { %v1652_v27 = vadd.f32 %v1651_v24, %v1641_v25 }
 0x413   : > { %v12326_v28 = vadd.f32 %v8927_v26, %v1652_v27 }
 0x415   : > { %v12330_v30 = vpack.c.bf16 %v12326_v28, %v12326_v28 }
 0x417   : > { %9414 = vmatmul.mubr.msk.bf16.vlgmr.msra.gmra.mrb[0].mxu0 %vm1678_vm1, %v12330_v30  ;;  %9422 = vmatmul.mubr.msk.bf16.vlgmr.msra.gmra.mrb[0].mxu1 %vm1678_vm1, %v12330_v30 }
 0x418   : > { %9426 = vmatpush3.bf16.msra.mxu0 %v10350_v29  ;;  %9429 = vmatprep.mubr.msk.bf16.mxu0 %vm11564_vm0, %v11563_v7 }
 0x419   : > { %9427 = vmatprep.subr.bf16.mxu0 %v11563_v7  ;;  %9435 = vmatprep.mubr.msk.f32.mxu1 %vm11564_vm0, %v11563_v7 }
 0x41c   : > { %9428 = vmatpush3.bf16.msra.mxu0 %v10351_v31 }
 0x41d   : > { %9453 = vmatprep.subr.mxu0 %v11563_v7 }
 0x41f   : > { %9430 = vmatmul.mubr.msk.bf16.vlgmr.msra.gmra.mrb[4].mxu0 %vm1678_vm1, %v12330_v30 }
 0x420   : > { %9455 = vmatprep.mubr.msk.f32.mxu0 %vm11564_vm0, %v11563_v7 }
 0x4ea   : > { %v1716_v32 = vpop.f32.mrb[0].mxu0  ;;  %v1772_v33 = vpop.f32.mrb[0].mxu1 }
 0x4eb   : > { %v9415_v34 = vpop.f32.mrb[1].mxu0  ;;  %v9423_v35 = vpop.f32.mrb[1].mxu1  ;;  %9434 = vmatpush3.xpose.msk.msra.mxu1 %vm1834_vm2, %v1772_v33 }
 0x4ec   : > { %v1719_v36 = vpop.f32.mrb[2].mxu0  ;;  %v1775_v37 = vpop.f32.mrb[2].mxu1  ;;  %9438 = vmatprep.subr.mxu1 %v11563_v7 }
 0x4ed   : > { %v9416_v38 = vpop.f32.mrb[3].mxu0  ;;  %v9424_v39 = vpop.f32.mrb[3].mxu1 }
 0x4ee   : > { %9436 = vmatmul.mubr.msk.f32.vlgmr.msra.gmra.mrb[4].mxu1 %vm1834_vm2, %v1716_v32 }
 0x4ef   : > { %9440 = vmatprep.mubr.msk.f32.mxu1 %vm11564_vm0, %v11563_v7 }
 0x4f2   : > { %v12351_v40 = vpop.f32.mrb[4].mxu0 }
 0x4f3   : > { %v9431_v41 = vpop.f32.mrb[5].mxu0  ;;  %9439 = vmatpush3.msra.mxu1 %v12351_v40 }
 0x4f4   : > { %v1831_v42 = vpop.f32.mrb[6].mxu0  ;;  %9443 = vmatprep.subr.mxu1 %v11563_v7 }
 0x4f5   : > { %v9432_v43 = vpop.f32.mrb[7].mxu0 }
 0x5c1   : > { %v1907_v44 = vpop.f32.mrb[4].mxu1 }
 0x5c2   : > { %v9437_v45 = vpop.f32.mrb[5].mxu1  ;;  %v1911_v46 = vsel %vm1834_vm2, %v1907_v44, -inf }
 0x5c3   : > { %1912 = vmax.xlane.f32.xlu1 %v1911_v46  ;;  %v10352_v45 = vld [vmem:[#allocation5] sm:$0xff]  }
 0x5d4   : > { %1997 = vrot.lane.b32.xlu1 %v1772_v33, %s11565_s5 }
 0x5d8   : > { %2163 = vrot.lane.b32.xlu1 %v1772_v33, %s11566_s22 }
 0x5dc   : > { %2161 = vrot.lane.b32.xlu1 %v1716_v32, %s11566_s22 }
 0x5e0   : > { %2326 = vrot.lane.b32.xlu1 %v1716_v32, %s11567_s6 }
 0x650   : > { %v1913_v47 = vpop.xlane.xlu1 %1912 }
 0x651   : > { %v1914_v48 = vsub.f32 %v1907_v44, %v1913_v47  ;;  %v10353_v47 = vld [vmem:[#allocation5 + $0x8] sm:$0xff]  }
 0x653   : > { %v1915_v49 = vmul.f32 1.442695, %v1914_v48  ;;  %v10354_v48 = vld [vmem:[#allocation7] sm:$0xff]  }
 0x654   : > { %v1998_v50 = vpop.permute.xlu1 %1997 }
 0x655   : > { %10430 = vpow2.f32 %v1915_v49  ;;  %v10355_v49 = vld [vmem:[#allocation7 + $0x8] sm:$0xff]  }
 0x658   : > { %v2164_v51 = vpop.permute.xlu1 %2163 }
 0x659   : > { %9454 = vmatpush3.xpose.msk.msra.mxu0 %vm1834_vm2, %v2164_v51 }
 0x65a   : > { %9463 = vmatprep.subr.mxu0 %v11563_v7 }
 0x65c   : > { %v2162_v52 = vpop.permute.xlu1 %2161 }
 0x65d   : > { %9456 = vmatmul.mubr.msk.f32.vlgmr.msra.gmra.mrb[8].mxu0 %vm1834_vm2, %v2162_v52 }
 0x65e   : > { %9465 = vmatprep.mubr.msk.f32.mxu0 %vm11564_vm0, %v11563_v7 }
 0x65f   : > { %v10431_v53 = vpop.eup %10430 }
 0x660   : > { %v1917_v54 = vsel %vm1834_vm2, %v10431_v53, 0.0  ;;  %v2327_v59 = vpop.permute.xlu1 %2326 }
 0x661   : > { %1918 = vadd.xlane.f32.xlu0 %v1917_v54 }
 0x677   : > { %1995 = vrot.lane.b32.xlu0 %v1716_v32, %s11565_s5 }
 0x67b   : > { %2328 = vrot.lane.b32.xlu0 %v1772_v33, %s11567_s6 }
 0x6ee   : > { %v1919_v55 = vpop.xlane.xlu0 %1918 }
 0x6ef   : > { %10432 = vrcp.f32 %v1919_v55 }
 0x6f2   : > { %v1996_v56 = vpop.permute.xlu0 %1995 }
 0x6f6   : > { %v2329_v57 = vpop.permute.xlu0 %2328 }
 0x6f7   : > { %9464 = vmatpush3.xpose.msk.msra.mxu0 %vm1834_vm2, %v2329_v57 }
 0x6f8   : > { %9473 = vmatprep.subr.bf16.mxu0 %v11563_v7 }
 0x6f9   : > { %v10433_v58 = vpop.eup %10432 }
 0x6fa   : > { %9466 = vmatmul.mubr.msk.f32.vlgmr.msra.gmra.mrb[10].mxu0 %vm1834_vm2, %v2327_v59  ;;  %v1921_v60 = vmul.f32 %v10433_v58, %v10431_v53 }
 0x6fb   : > { %9477 = vmatprep.mubr.msk.bf16.mxu0 %vm11564_vm0, %v11563_v7  ;;  %9474 = vmatpush3.bf16.msra.mxu0 %v10354_v48 }
 0x6fc   : > { %9441 = vmatmul.mubr.msk.f32.vlgmr.msra.gmra.mrb[6].mxu1 %vm1834_vm2, %v1921_v60  ;;  %9475 = vmatprep.subr.bf16.mxu0 %v11563_v7 }
 0x6fd   : > { %9444 = vmatpush3.xpose.msk.msra.mxu1 %vm1834_vm2, %v1998_v50  ;;  %9445 = vmatprep.mubr.msk.f32.mxu1 %vm11564_vm0, %v11563_v7 }
 0x6fe   : > { %9448 = vmatprep.subr.mxu1 %v11563_v7 }
 0x6ff   : > { %9476 = vmatpush3.bf16.msra.mxu0 %v10355_v49 }
 0x700   : > { %9446 = vmatmul.mubr.msk.f32.vlgmr.msra.gmra.mrb[8].mxu1 %vm1834_vm2, %v1996_v56  ;;  %9489 = vmatprep.subr.bf16.mxu0 %v11563_v7 }
 0x701   : > { %9450 = vmatprep.mubr.msk.f32.mxu1 %vm11564_vm0, %v11563_v7 }
 0x730   : > { %v2235_v61 = vpop.f32.mrb[8].mxu0 }
 0x731   : > { %v9457_v62 = vpop.f32.mrb[9].mxu0  ;;  %v2239_v63 = vsel %vm1834_vm2, %v2235_v61, -inf }
 0x732   : > { %2240 = vmax.xlane.f32.xlu1 %v2239_v63 }
 0x7bf   : > { %v2241_v0 = vpop.xlane.xlu1 %2240 }
 0x7c0   : > { %v2242_v1 = vsub.f32 %v2235_v61, %v2241_v0 }
 0x7c2   : > { %v2243_v2 = vmul.f32 1.442695, %v2242_v1 }
 0x7c4   : > { %10434 = vpow2.f32 %v2243_v2 }
 0x7cd   : > { %v2400_v3 = vpop.f32.mrb[10].mxu0 }
 0x7ce   : > { %v10435_v5 = vpop.eup %10434  ;;  %v9467_v6 = vpop.f32.mrb[11].mxu0  ;;  %v2404_v19 = vsel %vm1834_vm2, %v2400_v3, -inf }
 0x7cf   : > { %v12382_v8 = vpop.f32.mrb[6].mxu1  ;;  %v2245_v9 = vsel %vm1834_vm2, %v10435_v5, 0.0 }
 0x7d0   : > { %v9442_v10 = vpop.f32.mrb[7].mxu1  ;;  %2246 = vadd.xlane.f32.xlu1 %v2245_v9 }
 0x7d3   : > { %v2069_v15 = vpop.f32.mrb[8].mxu1 }
 0x7d4   : > { %v9447_v17 = vpop.f32.mrb[9].mxu1  ;;  %v2073_v18 = vsel %vm1834_vm2, %v2069_v15, -inf }
 0x7d5   : > { %2074 = vmax.xlane.f32.xlu0 %v2073_v18 }
 0x7d9   : > { %2405 = vmax.xlane.f32.xlu0 %v2404_v19 }
 0x7e1   : > { %2085 = vrot.lane.b32.xlu1 %v12351_v40, %s11565_s5 }
 0x7e5   : > { %2415 = vrot.lane.b32.xlu1 %v12351_v40, %s11567_s6 }
 0x85d   : > { %v2247_v22 = vpop.xlane.xlu1 %2246 }
 0x861   : > { %v2086_v23 = vpop.permute.xlu1 %2085 }
 0x862   : > { %v2075_v24 = vpop.xlane.xlu0 %2074  ;;  %9449 = vmatpush3.msra.mxu1 %v2086_v23 }
 0x863   : > { %9458 = vmatprep.subr.mxu1 %v11563_v7  ;;  %v2076_v25 = vsub.f32 %v2069_v15, %v2075_v24 }
 0x865   : > { %v2077_v29 = vmul.f32 1.442695, %v2076_v25  ;;  %v10356_v25 = vld [vmem:[%s13175_s1 + $0x10] sm:$0xff]  }
 0x866   : > { %v2406_v26 = vpop.xlane.xlu0 %2405 }
 0x867   : > { %v2407_v27 = vsub.f32 %v2400_v3, %v2406_v26  ;;  %v8955_v3 = vld [vmem:[#allocation8] ss:$0 sm:$0xff]  ;;  %v10357_v26 = vld [vmem:[%s13176_s11 + $0x10] sm:$0xff]  }
 0x869   : > { %v2408_v31 = vmul.f32 1.442695, %v2407_v27  ;;  %v10358_v27 = vld [vmem:[%s13175_s1 + $0x18] sm:$0xff]  }
 0x86b   : > { %10436 = vpow2.f32 %v2408_v31 }
 0x86c   : > { %10438 = vpow2.f32 %v2077_v29  ;;  %v10359_v29 = vld [vmem:[%s13176_s11 + $0x18] sm:$0xff]  }
 0x875   : > { %v10437_v32 = vpop.eup %10436 }
 0x876   : > { %v2410_v33 = vsel %vm1834_vm2, %v10437_v32, 0.0  ;;  %v10439_v34 = vpop.eup %10438 }
 0x877   : > { %2411 = vadd.xlane.f32.xlu0 %v2410_v33  ;;  %v2079_v35 = vsel %vm1834_vm2, %v10439_v34, 0.0 }
 0x87b   : > { %2080 = vadd.xlane.f32.xlu0 %v2079_v35 }
 0x891   : > { %2250 = vrot.lane.b32.xlu0 %v12351_v40, %s11566_s22  ;;  %v2416_v40 = vpop.permute.xlu1 %2415 }
 0x904   : > { %v2412_v36 = vpop.xlane.xlu0 %2411 }
 0x908   : > { %v2081_v37 = vpop.xlane.xlu0 %2080 }
 0x909   : > { %10440 = vrcp.f32 %v2081_v37 }
 0x90a   : > { %10442 = vrcp.f32 %v2247_v22 }
 0x90b   : > { %10444 = vrcp.f32 %v2412_v36  ;;  %v8957_v36 = vld [vmem:[#allocation11] ss:$0 sm:$0xff] }
 0x90c   : > { %v2251_v42 = vpop.permute.xlu0 %2250 }
 0x913   : > { %v10441_v38 = vpop.eup %10440 }
 0x914   : > { %v2083_v39 = vmul.f32 %v10441_v38, %v10439_v34  ;;  %v10443_v41 = vpop.eup %10442  ;;  %v8956_v34 = vld [vmem:[#allocation10] ss:$0 sm:$0xff] }
 0x915   : > { %v2249_v43 = vmul.f32 %v10443_v41, %v10435_v5  ;;  %v10445_v44 = vpop.eup %10444 }
 0x916   : > { %9451 = vmatmul.mubr.msk.f32.vlgmr.msra.gmra.mrb[10].mxu1 %vm1834_vm2, %v2083_v39  ;;  %v2414_v46 = vmul.f32 %v10445_v44, %v10437_v32  ;;  %v10360_v39 = vld [vmem:[#allocation3 + $0x10] sm:$0xff]  }
 0x917   : > { %9459 = vmatpush3.msra.mxu1 %v2251_v42  ;;  %9460 = vmatprep.mubr.msk.f32.mxu1 %vm11564_vm0, %v11563_v7  ;;  %v10361_v42 = vld [vmem:[#allocation3 + $0x18] sm:$0xff]  }
 0x918   : > { %9468 = vmatprep.subr.mxu1 %v11563_v7 }
 0x91a   : > { %9461 = vmatmul.mubr.msk.f32.vlgmr.msra.gmra.mrb[12].mxu1 %vm1834_vm2, %v2249_v43 }
 0x91b   : > { %9469 = vmatpush3.msra.mxu1 %v2416_v40  ;;  %9470 = vmatprep.mubr.msk.f32.mxu1 %vm11564_vm0, %v11563_v7 }
 0x91c   : > { %9481 = vmatprep.subr.bf16.mxu1 %v11563_v7 }
 0x91e   : > { %9471 = vmatmul.mubr.msk.f32.vlgmr.msra.gmra.mrb[14].mxu1 %vm1834_vm2, %v2414_v46 }
 0x91f   : > { %9482 = vmatpush3.bf16.msra.mxu1 %v10352_v45  ;;  %9485 = vmatprep.mubr.msk.bf16.mxu1 %vm11564_vm0, %v11563_v7 }
 0x920   : > { %9483 = vmatprep.subr.bf16.mxu1 %v11563_v7 }
 0x923   : > { %9484 = vmatpush3.bf16.msra.mxu1 %v10353_v47 }
 0x924   : > { %9497 = vmatprep.subr.bf16.mxu1 %v11563_v7 }
 0x926   : > { %9486 = vmatmul.mubr.msk.bf16.vlgmr.msra.gmra.mrb[16].mxu1 %vm1678_vm1, %v12330_v30 }
 0x927   : > { %9501 = vmatprep.mubr.msk.bf16.mxu1 %vm11564_vm0, %v11563_v7  ;;  %9498 = vmatpush3.bf16.msra.mxu1 %v10357_v26 }
 0x928   : > { %9499 = vmatprep.subr.bf16.mxu1 %v11563_v7 }
 0x92b   : > { %9500 = vmatpush3.bf16.msra.mxu1 %v10359_v29 }
 0x92c   : > { %9513 = vmatprep.subr.mxu1 %v11563_v7 }
 0x9e9   : > { %v2157_v50 = vpop.f32.mrb[10].mxu1 }
 0x9ea   : > { %2492 = vrot.lane.b32.xlu1 %v2157_v50, %s11568_s8  ;;  %v9452_v51 = vpop.f32.mrb[11].mxu1 }
 0x9ed   : > { %v2322_v52 = vpop.f32.mrb[12].mxu1 }
 0x9ee   : > { %2496 = vrot.lane.b32.xlu0 %v2322_v52, %s11569_s15  ;;  %v9462_v30 = vpop.f32.mrb[13].mxu1 }
 0x9f1   : > { %v2487_v53 = vpop.f32.mrb[14].mxu1 }
 0x9f2   : > { %2500 = vrot.lane.b32.xlu1 %v2487_v53, %s11570_s26  ;;  %v9472_v54 = vpop.f32.mrb[15].mxu1 }
 0x9f9   : > { %v2618_v55 = vpop.f32.mrb[16].mxu1 }
 0x9fa   : > { %v9487_v56 = vpop.f32.mrb[17].mxu1 }
 0x9fb   : > { %v2621_v57 = vpop.f32.mrb[18].mxu1 }
 0x9fc   : > { %v9488_v58 = vpop.f32.mrb[19].mxu1 }
 0xa5c   : > { %v2493_v59 = vpop.permute.xlu1 %2492 }
 0xa5d   : > { %v2503_v61 = vsel %vm1834_vm2, %v12382_v8, %v2493_v59 }
 0xa60   : > { %v2497_v60 = vpop.permute.xlu0 %2496 }
 0xa61   : > { %v2505_v62 = vsel %vm2504_vm3, %v2503_v61, %v2497_v60 }
 0xa64   : > { %v2501_v63 = vpop.permute.xlu1 %2500 }
 0xa65   : > { %v2507_v0 = vsel %vm2506_vm4, %v2505_v62, %v2501_v63 }
 0xa66   : > { %v2516_v1 = vpack.c.bf16 %v2507_v0, %v2507_v0 }
 0xa68   : > { %9478 = vmatmul.mubr.msk.bf16.vlgmr.msra.gmra.mrb[12].mxu0 %vm1678_vm1, %v2516_v1 }
 0xa69   : > { %9493 = vmatprep.mubr.msk.bf16.mxu0 %vm11564_vm0, %v11563_v7  ;;  %9490 = vmatpush3.bf16.msra.mxu0 %v10356_v25 }
 0xa6a   : > { %9491 = vmatprep.subr.bf16.mxu0 %v11563_v7 }
 0xa6d   : > { %9492 = vmatpush3.bf16.msra.mxu0 %v10358_v27 }
 0xa6e   : > { %9505 = vmatprep.subr.bf16.mxu0 %v11563_v7 }
 0xb3b   : > { %v2566_v2 = vpop.f32.mrb[12].mxu0 }
 0xb3c   : > { %v2619_v5 = vadd.f32 %v2618_v55, %v2566_v2  ;;  %v9479_v6 = vpop.f32.mrb[13].mxu0 }
 0xb3d   : > { %v2569_v9 = vpop.f32.mrb[14].mxu0 }
 0xb3e   : > { %v2631_v8 = vadd.f32 %v8955_v3, %v2619_v5  ;;  %v9480_v10 = vpop.f32.mrb[15].mxu0 }
 0xb40   : > { %v2632_v15 = vadd.f32 %v2631_v8, %v12326_v28 }
 0xb42   : > { %v2635_v17 = vsel %vm1678_vm1, %v2632_v15, 0.0 }
 0xb43   : > { %2636 = vadd.xlane.f32.xlu0 %v2635_v17 }
 0xbd0   : > { %v2637_v18 = vpop.xlane.xlu0 %2636 }
 0xbd1   : > { %v2639_v19 = vmul.f32 0.03125, %v2637_v18 }
 0xbd3   : > { %v2640_v22 = vsub.f32 %v2632_v15, %v2639_v19 }
 0xbd5   : > { %v2641_v23 = vmul.f32 %v2640_v22, %v2640_v22 }
 0xbd7   : > { %v2642_v24 = vsel %vm1678_vm1, %v2641_v23, 0.0 }
 0xbd8   : > { %2643 = vadd.xlane.f32.xlu1 %v2642_v24 }
 0xc65   : > { %v2644_v28 = vpop.xlane.xlu1 %2643 }
 0xc66   : > { %v2645_v31 = vmul.f32 0.03125, %v2644_v28 }
 0xc68   : > { %v2646_v32 = vadd.f32 1e-05, %v2645_v31 }
 0xc6a   : > { %10446 = vrsqrt.f32 %v2646_v32 }
 0xc74   : > { %v10447_v33 = vpop.eup %10446 }
 0xc75   : > { %v2648_v35 = vmul.f32 %v10447_v33, %v2640_v22 }
 0xc77   : > { %v2655_v37 = vmul.f32 %v8956_v34, %v2648_v35 }
 0xc79   : > { %v12436_v38 = vadd.f32 %v8957_v36, %v2655_v37 }
 0xc7b   : > { %v12440_v41 = vpack.c.bf16 %v12436_v38, %v12436_v38 }
 0xc7d   : > { %9494 = vmatmul.mubr.msk.bf16.vlgmr.msra.gmra.mrb[16].mxu0 %vm1678_vm1, %v12440_v41  ;;  %9502 = vmatmul.mubr.msk.bf16.vlgmr.msra.gmra.mrb[20].mxu1 %vm1678_vm1, %v12440_v41 }
 0xc7e   : > { %9506 = vmatpush3.bf16.msra.mxu0 %v10360_v39  ;;  %9509 = vmatprep.mubr.msk.bf16.mxu0 %vm11564_vm0, %v11563_v7 }
 0xc7f   : > { %9507 = vmatprep.subr.bf16.mxu0 %v11563_v7  ;;  %9515 = vmatprep.mubr.msk.f32.mxu1 %vm11564_vm0, %v11563_v7 }
 0xc82   : > { %9508 = vmatpush3.bf16.msra.mxu0 %v10361_v42 }
 0xc83   : > { %9523 = vmatprep.subr.mxu0 %v11563_v7 }
 0xc85   : > { %9510 = vmatmul.mubr.msk.bf16.vlgmr.msra.gmra.mrb[20].mxu0 %vm1678_vm1, %v12440_v41 }
 0xc86   : > { %9525 = vmatprep.mubr.msk.f32.mxu0 %vm11564_vm0, %v11563_v7 }
 0xd50   : > { %v2718_v43 = vpop.f32.mrb[16].mxu0  ;;  %v2775_v44 = vpop.f32.mrb[20].mxu1 }
 0xd51   : > { %3000 = vrot.lane.b32.xlu0 %v2775_v44, %s11565_s5  ;;  %v9503_v40 = vpop.f32.mrb[21].mxu1  ;;  %9514 = vmatpush3.xpose.msk.msra.mxu1 %vm1834_vm2, %v2775_v44  ;;  %v9495_v45 = vpop.f32.mrb[17].mxu0 }
 0xd52   : > { %2998 = vrot.lane.b32.xlu1 %v2718_v43, %s11565_s5  ;;  %v2721_v46 = vpop.f32.mrb[18].mxu0  ;;  %v2778_v47 = vpop.f32.mrb[22].mxu1  ;;  %9518 = vmatprep.subr.mxu1 %v11563_v7 }
 0xd53   : > { %v9496_v48 = vpop.f32.mrb[19].mxu0  ;;  %v9504_v49 = vpop.f32.mrb[23].mxu1 }
 0xd54   : > { %9516 = vmatmul.mubr.msk.f32.vlgmr.msra.gmra.mrb[24].mxu1 %vm1834_vm2, %v2718_v43 }
 0xd55   : > { %3166 = vrot.lane.b32.xlu0 %v2775_v44, %s11566_s22  ;;  %9520 = vmatprep.mubr.msk.f32.mxu1 %vm11564_vm0, %v11563_v7 }
 0xd56   : > { %3164 = vrot.lane.b32.xlu1 %v2718_v43, %s11566_s22 }
 0xd58   : > { %v12465_v50 = vpop.f32.mrb[20].mxu0 }
 0xd59   : > { %3331 = vrot.lane.b32.xlu0 %v2775_v44, %s11567_s6  ;;  %v9511_v51 = vpop.f32.mrb[21].mxu0  ;;  %9519 = vmatpush3.msra.mxu1 %v12465_v50 }
 0xd5a   : > { %3329 = vrot.lane.b32.xlu1 %v2718_v43, %s11567_s6  ;;  %v2835_v52 = vpop.f32.mrb[22].mxu0  ;;  %9528 = vmatprep.subr.mxu1 %v11563_v7 }
 0xd5b   : > { %v9512_v30 = vpop.f32.mrb[23].mxu0 }
 0xd5c   : > { %v10362_v30 = vld [vmem:[#allocation5 + $0x10] sm:$0xff]  }
 0xdc3   : > { %v3001_v53 = vpop.permute.xlu0 %3000 }
 0xdc4   : > { %v2999_v54 = vpop.permute.xlu1 %2998  ;;  %9524 = vmatpush3.xpose.msk.msra.mxu0 %vm1834_vm2, %v3001_v53 }
 0xdc5   : > { %9533 = vmatprep.subr.mxu0 %v11563_v7 }
 0xdc7   : > { %v3167_v55 = vpop.permute.xlu0 %3166  ;;  %9526 = vmatmul.mubr.msk.f32.vlgmr.msra.gmra.mrb[24].mxu0 %vm1834_vm2, %v2999_v54  ;;  %v10363_v54 = vld [vmem:[#allocation5 + $0x18] sm:$0xff]  }
 0xdc8   : > { %v3165_v56 = vpop.permute.xlu1 %3164  ;;  %9534 = vmatpush3.xpose.msk.msra.mxu0 %vm1834_vm2, %v3167_v55  ;;  %9535 = vmatprep.mubr.msk.f32.mxu0 %vm11564_vm0, %v11563_v7 }
 0xdc9   : > { %9543 = vmatprep.subr.mxu0 %v11563_v7 }
 0xdcb   : > { %v3332_v57 = vpop.permute.xlu0 %3331  ;;  %9536 = vmatmul.mubr.msk.f32.vlgmr.msra.gmra.mrb[26].mxu0 %vm1834_vm2, %v3165_v56 }
 0xdcc   : > { %9544 = vmatpush3.xpose.msk.msra.mxu0 %vm1834_vm2, %v3332_v57  ;;  %9545 = vmatprep.mubr.msk.f32.mxu0 %vm11564_vm0, %v11563_v7  ;;  %v3330_v58 = vpop.permute.xlu1 %3329  ;;  %v10364_v57 = vld [vmem:[#allocation7 + $0x10] sm:$0xff]  }
 0xdcd   : > { %9553 = vmatprep.subr.bf16.mxu0 %v11563_v7 }
 0xdcf   : > { %9546 = vmatmul.mubr.msk.f32.vlgmr.msra.gmra.mrb[28].mxu0 %vm1834_vm2, %v3330_v58  ;;  %v10365_v58 = vld [vmem:[#allocation7 + $0x18] sm:$0xff]  }
 0xdd0   : > { %9557 = vmatprep.mubr.msk.bf16.mxu0 %vm11564_vm0, %v11563_v7  ;;  %9554 = vmatpush3.bf16.msra.mxu0 %v10364_v57  ;;  %v10370_v57 = vld [vmem:[#allocation19 + $0x8] sm:$0xff]  }
 0xdd1   : > { %9555 = vmatprep.subr.bf16.mxu0 %v11563_v7 }
 0xdd4   : > { %9556 = vmatpush3.bf16.msra.mxu0 %v10365_v58  ;;  %v10371_v58 = vld [vmem:[#allocation22 + $0x8] sm:$0xff]  }
 0xdd5   : > { %9569 = vmatprep.subr.bf16.mxu0 %v11563_v7 }
 0xe27   : > { %v2910_v59 = vpop.f32.mrb[24].mxu1 }
 0xe28   : > { %v9517_v60 = vpop.f32.mrb[25].mxu1  ;;  %v2914_v61 = vsel %vm1834_vm2, %v2910_v59, -inf }
 0xe29   : > { %2915 = vmax.xlane.f32.xlu0 %v2914_v61 }
 0xe9a   : > { %v3072_v62 = vpop.f32.mrb[24].mxu0 }
 0xe9b   : > { %v9527_v63 = vpop.f32.mrb[25].mxu0  ;;  %v3076_v0 = vsel %vm1834_vm2, %v3072_v62, -inf }
 0xe9c   : > { %3077 = vmax.xlane.f32.xlu1 %v3076_v0 }
 0xe9e   : > { %v3238_v1 = vpop.f32.mrb[26].mxu0 }
 0xe9f   : > { %v9537_v2 = vpop.f32.mrb[27].mxu0  ;;  %v3242_v3 = vsel %vm1834_vm2, %v3238_v1, -inf }
 0xea0   : > { %3243 = vmax.xlane.f32.xlu0 %v3242_v3 }
 0xea2   : > { %v3403_v5 = vpop.f32.mrb[28].mxu0 }
 0xea3   : > { %v9547_v6 = vpop.f32.mrb[29].mxu0  ;;  %v3407_v9 = vsel %vm1834_vm2, %v3403_v5, -inf }
 0xea4   : > { %3408 = vmax.xlane.f32.xlu0 %v3407_v9 }
 0xead   : > { %3088 = vrot.lane.b32.xlu1 %v12465_v50, %s11565_s5 }
 0xeb6   : > { %v2916_v8 = vpop.xlane.xlu0 %2915 }
 0xeb7   : > { %v2917_v10 = vsub.f32 %v2910_v59, %v2916_v8 }
 0xeb9   : > { %v2918_v15 = vmul.f32 1.442695, %v2917_v10 }
 0xebb   : > { %10448 = vpow2.f32 %v2918_v15 }
 0xec5   : > { %v10449_v17 = vpop.eup %10448 }
 0xec6   : > { %v2920_v18 = vsel %vm1834_vm2, %v10449_v17, 0.0 }
 0xed1   : > { %2921 = vadd.xlane.f32.xlu1 %v2920_v18 }
 0xf29   : > { %v3078_v19 = vpop.xlane.xlu1 %3077 }
 0xf2a   : > { %v3079_v22 = vsub.f32 %v3072_v62, %v3078_v19  ;;  %v8993_v19 = vld [vmem:[#allocation8 + $0x1] ss:$0 sm:$0xff] }
 0xf2c   : > { %v3080_v23 = vmul.f32 1.442695, %v3079_v22 }
 0xf2d   : > { %v3244_v24 = vpop.xlane.xlu0 %3243  ;;  %v3089_v37 = vpop.permute.xlu1 %3088 }
 0xf2e   : > { %10450 = vpow2.f32 %v3080_v23  ;;  %v3245_v25 = vsub.f32 %v3238_v1, %v3244_v24 }
 0xf30   : > { %v3246_v26 = vmul.f32 1.442695, %v3245_v25 }
 0xf31   : > { %v3409_v27 = vpop.xlane.xlu0 %3408 }
 0xf32   : > { %10452 = vpow2.f32 %v3246_v26  ;;  %v3410_v29 = vsub.f32 %v3403_v5, %v3409_v27 }
 0xf34   : > { %v3411_v28 = vmul.f32 1.442695, %v3410_v29 }
 0xf36   : > { %10454 = vpow2.f32 %v3411_v28 }
 0xf38   : > { %v10451_v31 = vpop.eup %10450 }
 0xf39   : > { %v3082_v32 = vsel %vm1834_vm2, %v10451_v31, 0.0 }
 0xf3a   : > { %3083 = vadd.xlane.f32.xlu0 %v3082_v32 }
 0xf3c   : > { %v10453_v33 = vpop.eup %10452 }
 0xf3d   : > { %v3248_v34 = vsel %vm1834_vm2, %v10453_v33, 0.0 }
 0xf3e   : > { %3249 = vadd.xlane.f32.xlu1 %v3248_v34 }
 0xf40   : > { %v10455_v35 = vpop.eup %10454 }
 0xf41   : > { %v3413_v36 = vsel %vm1834_vm2, %v10455_v35, 0.0 }
 0xf42   : > { %3414 = vadd.xlane.f32.xlu0 %v3413_v36  ;;  %v10367_v36 = vld [vmem:[#allocation16 + $0x8] sm:$0xff]  }
 0xf4f   : > { %3418 = vrot.lane.b32.xlu1 %v12465_v50, %s11567_s6 }
 0xf58   : > { %3253 = vrot.lane.b32.xlu0 %v12465_v50, %s11566_s22 }
 0xf5e   : > { %v2922_v39 = vpop.xlane.xlu1 %2921 }
 0xf5f   : > { %10456 = vrcp.f32 %v2922_v39 }
 0xf69   : > { %v10457_v42 = vpop.eup %10456 }
 0xf6a   : > { %v2924_v43 = vmul.f32 %v10457_v42, %v10449_v17 }
 0xf6c   : > { %9521 = vmatmul.mubr.msk.f32.vlgmr.msra.gmra.mrb[26].mxu1 %vm1834_vm2, %v2924_v43  ;;  %v8994_v43 = vld [vmem:[#allocation10 + $0x1] ss:$0 sm:$0xff] }
 0xf6d   : > { %9529 = vmatpush3.msra.mxu1 %v3089_v37  ;;  %9530 = vmatprep.mubr.msk.f32.mxu1 %vm11564_vm0, %v11563_v7 }
 0xf6e   : > { %9538 = vmatprep.subr.mxu1 %v11563_v7 }
 0xfc7   : > { %v3084_v44 = vpop.xlane.xlu0 %3083 }
 0xfc8   : > { %10458 = vrcp.f32 %v3084_v44 }
 0xfcb   : > { %v3250_v40 = vpop.xlane.xlu1 %3249 }
 0xfcc   : > { %10460 = vrcp.f32 %v3250_v40  ;;  %v8995_v40 = vld [vmem:[#allocation11 + $0x1] ss:$0 sm:$0xff] }
 0xfcf   : > { %v3415_v45 = vpop.xlane.xlu0 %3414  ;;  %v3419_v51 = vpop.permute.xlu1 %3418 }
 0xfd0   : > { %10462 = vrcp.f32 %v3415_v45 }
 0xfd2   : > { %v10459_v46 = vpop.eup %10458 }
 0xfd3   : > { %v3254_v47 = vpop.permute.xlu0 %3253  ;;  %v3086_v48 = vmul.f32 %v10459_v46, %v10451_v31 }
 0xfd5   : > { %9531 = vmatmul.mubr.msk.f32.vlgmr.msra.gmra.mrb[28].mxu1 %vm1834_vm2, %v3086_v48 }
 0xfd6   : > { %v10461_v49 = vpop.eup %10460  ;;  %9539 = vmatpush3.msra.mxu1 %v3254_v47  ;;  %9540 = vmatprep.mubr.msk.f32.mxu1 %vm11564_vm0, %v11563_v7 }
 0xfd7   : > { %9548 = vmatprep.subr.mxu1 %v11563_v7  ;;  %v3252_v50 = vmul.f32 %v10461_v49, %v10453_v33 }
 0xfd9   : > { %9541 = vmatmul.mubr.msk.f32.vlgmr.msra.gmra.mrb[30].mxu1 %vm1834_vm2, %v3252_v50 }
 0xfda   : > { %v10463_v52 = vpop.eup %10462  ;;  %9549 = vmatpush3.msra.mxu1 %v3419_v51  ;;  %9550 = vmatprep.mubr.msk.f32.mxu1 %vm11564_vm0, %v11563_v7 }
 0xfdb   : > { %9561 = vmatprep.subr.bf16.mxu1 %v11563_v7  ;;  %v3417_v53 = vmul.f32 %v10463_v52, %v10455_v35  ;;  %v10366_v35 = vld [vmem:[#allocation16] sm:$0xff]  }
 0xfdd   : > { %9551 = vmatmul.mubr.msk.f32.vlgmr.msra.gmra.mrb[32].mxu1 %vm1834_vm2, %v3417_v53 }
 0xfde   : > { %9562 = vmatpush3.bf16.msra.mxu1 %v10362_v30  ;;  %9565 = vmatprep.mubr.msk.bf16.mxu1 %vm11564_vm0, %v11563_v7 }
 0xfdf   : > { %9563 = vmatprep.subr.bf16.mxu1 %v11563_v7 }
 0xfe2   : > { %9564 = vmatpush3.bf16.msra.mxu1 %v10363_v54 }
 0xfe3   : > { %9577 = vmatprep.subr.bf16.mxu1 %v11563_v7 }
 0xfe5   : > { %9566 = vmatmul.mubr.msk.bf16.vlgmr.msra.gmra.mrb[36].mxu1 %vm1678_vm1, %v12440_v41 }
 0xfe6   : > { %9581 = vmatprep.mubr.msk.bf16.mxu1 %vm11564_vm0, %v11563_v7 }
0x103f   : > { %v2994_v55 = vpop.f32.mrb[26].mxu1 }
0x1040   : > { %v9522_v56 = vpop.f32.mrb[27].mxu1 }
0x1041   : > { %v10369_v56 = vld [vmem:[#allocation22] sm:$0xff]  }
0x10a8   : > { %v3160_v59 = vpop.f32.mrb[28].mxu1 }
0x10a9   : > { %3495 = vrot.lane.b32.xlu1 %v3160_v59, %s11568_s8  ;;  %v9532_v60 = vpop.f32.mrb[29].mxu1  ;;  %v3682_v59 = vld [vmem:[#allocation17] sm:$0x1] }
0x10ac   : > { %v3325_v61 = vpop.f32.mrb[30].mxu1 }
0x10ad   : > { %3499 = vrot.lane.b32.xlu0 %v3325_v61, %s11569_s15  ;;  %v9542_v41 = vpop.f32.mrb[31].mxu1 }
0x10b0   : > { %v3490_v62 = vpop.f32.mrb[32].mxu1 }
0x10b1   : > { %3503 = vrot.lane.b32.xlu1 %v3490_v62, %s11570_s26  ;;  %v9552_v63 = vpop.f32.mrb[33].mxu1 }
0x10b8   : > { %v3621_v0 = vpop.f32.mrb[36].mxu1 }
0x10b9   : > { %v9567_v1 = vpop.f32.mrb[37].mxu1 }
0x10ba   : > { %v3624_v2 = vpop.f32.mrb[38].mxu1 }
0x10bb   : > { %v9568_v3 = vpop.f32.mrb[39].mxu1 }
0x111b   : > { %v3496_v5 = vpop.permute.xlu1 %3495 }
0x111c   : > { %v3506_v9 = vsel %vm1834_vm2, %v2994_v55, %v3496_v5  ;;  %v10368_v55 = vld [vmem:[#allocation19] sm:$0xff]  }
0x111d   : > { %9578 = vmatpush3.bf16.msra.mxu1 %v10368_v55  ;;  %v1620_v55 = vld [vmem:[%s1611_s10] sm:$0x1] }
0x111e   : > { %9579 = vmatprep.subr.bf16.mxu1 %v11563_v7 }
0x111f   : > { %v3500_v6 = vpop.permute.xlu0 %3499 }
0x1120   : > { %v3507_v8 = vsel %vm2504_vm3, %v3506_v9, %v3500_v6  ;;  %v3876_v6 = vld [vmem:[#allocation25] sm:$0x7] }
0x1121   : > { %9580 = vmatpush3.bf16.msra.mxu1 %v10370_v57  ;;  %v3885_v9 = vrot.slane %v3876_v6, %v12310_v13 }
0x1122   : > { %9593 = vmatprep.subr.bf16.mxu1 %v11563_v7 }
0x1123   : > { %v3504_v10 = vpop.permute.xlu1 %3503 }
0x1124   : > { %v3508_v15 = vsel %vm2506_vm4, %v3507_v8, %v3504_v10  ;;  %v3880_v8 = vrot.slane %v3876_v6, %v12307_v12  ;;  %v3886_v10 = vmul.f32 %v3885_v9, %v12321_v21 }
0x1125   : > { %v3519_v17 = vpack.c.bf16 %v3508_v15, %v3508_v15  ;;  %v3891_v15 = vrot.slane %v3876_v6, %v1649_v14  ;;  %v10375_v14 = vld [vmem:[%s13176_s11 + $0x28] sm:$0xff]  }
0x1127   : > { %9558 = vmatmul.mubr.msk.bf16.vlgmr.msra.gmra.mrb[32].mxu0 %vm1678_vm1, %v3519_v17  ;;  %v3881_v17 = vmul.f32 %v3880_v8, %v12313_v16 }
0x1128   : > { %9573 = vmatprep.mubr.msk.bf16.mxu0 %vm11564_vm0, %v11563_v7  ;;  %9570 = vmatpush3.bf16.msra.mxu0 %v10366_v35  ;;  %v3812_v35 = vld [vmem:[#allocation23] sm:$0x1] }
0x1129   : > { %9571 = vmatprep.subr.bf16.mxu0 %v11563_v7 }
0x112c   : > { %9572 = vmatpush3.bf16.msra.mxu0 %v10367_v36 }
0x112d   : > { %9585 = vmatprep.subr.bf16.mxu0 %v11563_v7 }
0x11fa   : > { %v3569_v18 = vpop.f32.mrb[32].mxu0 }
0x11fb   : > { %v3622_v22 = vadd.f32 %v3621_v0, %v3569_v18  ;;  %v9559_v23 = vpop.f32.mrb[33].mxu0 }
0x11fc   : > { %v3572_v24 = vpop.f32.mrb[34].mxu0 }
0x11fd   : > { %v3635_v25 = vadd.f32 %v8993_v19, %v3622_v22  ;;  %v9560_v26 = vpop.f32.mrb[35].mxu0  ;;  %v3887_v19 = vadd.f32 %v3886_v10, %v3881_v17  ;;  %v3892_v22 = vmul.f32 %v3891_v15, %v12319_v20  ;;  %v10376_v20 = vld [vmem:[#allocation3 + $0x20] sm:$0xff]  }
0x11fe   : > { %v10372_v26 = vld [vmem:[%s13175_s1 + $0x20] sm:$0xff]  }
0x11ff   : > { %v3636_v27 = vadd.f32 %v3635_v25, %v12436_v38 }
0x1201   : > { %v3641_v29 = vsel %vm1678_vm1, %v3636_v27, 0.0 }
0x1202   : > { %3642 = vadd.xlane.f32.xlu0 %v3641_v29  ;;  %v3893_v29 = vadd.f32 %v3892_v22, %v3887_v19 }
0x128f   : > { %v3643_v28 = vpop.xlane.xlu0 %3642 }
0x1290   : > { %v3644_v31 = vmul.f32 0.03125, %v3643_v28 }
0x1292   : > { %v3645_v32 = vsub.f32 %v3636_v27, %v3644_v31  ;;  %v10373_v27 = vld [vmem:[%s13176_s11 + $0x20] sm:$0xff]   ;;  %v9005_v31 = vld [vmem:[#allocation26] ss:$0 sm:$0xff] }
0x1294   : > { %v3646_v33 = vmul.f32 %v3645_v32, %v3645_v32 }
0x1296   : > { %v3647_v34 = vsel %vm1678_vm1, %v3646_v33, 0.0 }
0x1297   : > { %3648 = vadd.xlane.f32.xlu1 %v3647_v34  ;;  %v10377_v34 = vld [vmem:[#allocation3 + $0x28] sm:$0xff]  }
0x1324   : > { %v3649_v37 = vpop.xlane.xlu1 %3648 }
0x1325   : > { %v3650_v38 = vmul.f32 0.03125, %v3649_v37 }
0x1327   : > { %v3651_v39 = vadd.f32 1e-05, %v3650_v38 }
0x1329   : > { %10464 = vrsqrt.f32 %v3651_v39 }
0x1333   : > { %v10465_v42 = vpop.eup %10464 }
0x1334   : > { %v3653_v44 = vmul.f32 %v10465_v42, %v3645_v32  ;;  %v12558_v32 = vadd.f32 %v9005_v31, %v3893_v29 }
0x1336   : > { %v3660_v45 = vmul.f32 %v8994_v43, %v3653_v44  ;;  %v12568_v33 = vpack.c.bf16 %v12558_v32, %v12558_v32 }
0x1338   : > { %v3667_v46 = vadd.f32 %v8995_v40, %v3660_v45 }
0x133a   : > { %v3668_v47 = vsel %vm1678_vm1, %v3667_v46, 0.0 }
0x133b   : > { %v3669_v48 = vrot.slane %v3668_v47, 4 }
0x133d   : > { %v3670_v49 = vadd.f32 %v3669_v48, %v3668_v47 }
0x133f   : > { %v3671_v50 = vrot.slane %v3670_v49, 2 }
0x1341   : > { %v3672_v51 = vadd.f32 %v3671_v50, %v3670_v49 }
0x1343   : > { %v3673_v52 = vrot.slane %v3672_v51, 1 }
0x1345   : > { %v3674_v30 = vadd.f32 %v3673_v52, %v3672_v51 }
0x1347   : > { %v3676_v53 = vmul.f32 0.125, %v3674_v30 }
0x1349   : > { %v3681_v54 = vpack.c.bf16 %v3676_v53, %v3676_v53 }
0x134b   : > { %9574 = vmatmul.mubr.msk.bf16.vlgmr.msra.gmra.mrb[36].mxu0 %vm1678_vm1, %v3681_v54 }
0x134c   : > { %9589 = vmatprep.mubr.msk.bf16.mxu0 %vm11564_vm0, %v11563_v7  ;;  %9586 = vmatpush3.bf16.msra.mxu0 %v10369_v56  ;;  %v3752_v56 = vld [vmem:[#allocation20] sm:$0x1] }
0x134d   : > { %9587 = vmatprep.subr.bf16.mxu0 %v11563_v7 }
0x1350   : > { %9588 = vmatpush3.bf16.msra.mxu0 %v10371_v58 }
0x1351   : > { %9601 = vmatprep.subr.bf16.mxu0 %v11563_v7 }
0x141e   : > { %v3732_v60 = vpop.f32.mrb[36].mxu0 }
0x141f   : > { %v3733_v61 = vadd.f32 %v3732_v60, %v3682_v59  ;;  %v9575_v41 = vpop.f32.mrb[37].mxu0 }
0x1420   : > { %v3735_v62 = vpop.f32.mrb[38].mxu0 }
0x1421   : > { %v3739_v63 = vmul.f32 0.044715, %v3733_v61  ;;  %v9576_v0 = vpop.f32.mrb[39].mxu0  ;;  %v3738_v23 = vmul.f32 0.5, %v3733_v61 }
0x1423   : > { %v3740_v1 = vmul.f32 %v3739_v63, %v3733_v61 }
0x1425   : > { %v3741_v2 = vmul.f32 %v3740_v1, %v3733_v61 }
0x1427   : > { %v3742_v3 = vadd.f32 %v3741_v2, %v3733_v61 }
0x1429   : > { %v3743_v5 = vmul.f32 0.7978846, %v3742_v3 }
0x142b   : > { %10466 = vtanh.f32 %v3743_v5 }
0x1435   : > { %v10467_v18 = vpop.eup %10466 }
0x1436   : > { %v3745_v24 = vadd.f32 1.0, %v10467_v18 }
0x1438   : > { %v3746_v25 = vmul.f32 %v3745_v24, %v3738_v23 }
0x143a   : > { %v3751_v28 = vpack.c.bf16 %v3746_v25, %v3746_v25 }
0x143c   : > { %9582 = vmatmul.mubr.msk.bf16.vlgmr.msra.gmra.mrb[40].mxu1 %vm1678_vm1, %v3751_v28  ;;  %9590 = vmatmul.mubr.msk.bf16.vlgmr.msra.gmra.mrb[40].mxu0 %vm1678_vm1, %v3751_v28 }
0x143d   : > { %9594 = vmatpush3.bf16.msra.mxu1 %v10372_v26  ;;  %9602 = vmatpush3.bf16.msra.mxu0 %v10373_v27 }
0x143e   : > { %9595 = vmatprep.subr.bf16.mxu1 %v11563_v7  ;;  %9603 = vmatprep.subr.bf16.mxu0 %v11563_v7 }
0x143f   : > { %9597 = vmatprep.mubr.msk.bf16.mxu1 %vm11564_vm0, %v11563_v7  ;;  %9605 = vmatprep.mubr.msk.bf16.mxu0 %vm11564_vm0, %v11563_v7 }
0x1441   : > { %9596 = vmatpush3.bf16.msra.mxu1 %v10374_v11  ;;  %9604 = vmatpush3.bf16.msra.mxu0 %v10375_v14 }
0x1442   : > { %9609 = vmatprep.subr.bf16.mxu1 %v11563_v7  ;;  %9617 = vmatprep.subr.mxu0 %v11563_v7 }
0x1444   : > { %9598 = vmatmul.mubr.msk.bf16.vlgmr.msra.gmra.mrb[44].mxu1 %vm1678_vm1, %v12568_v33  ;;  %9606 = vmatmul.mubr.msk.bf16.vlgmr.msra.gmra.mrb[44].mxu0 %vm1678_vm1, %v12568_v33 }
0x1445   : > { %9610 = vmatpush3.bf16.msra.mxu1 %v10376_v20  ;;  %9613 = vmatprep.mubr.msk.bf16.mxu1 %vm11564_vm0, %v11563_v7 }
0x1446   : > { %9611 = vmatprep.subr.bf16.mxu1 %v11563_v7  ;;  %9619 = vmatprep.mubr.msk.f32.mxu0 %vm11564_vm0, %v11563_v7 }
0x1449   : > { %9612 = vmatpush3.bf16.msra.mxu1 %v10377_v34 }
0x144a   : > { %9622 = vmatprep.subr.mxu1 %v11563_v7 }
0x144c   : > { %9614 = vmatmul.mubr.msk.bf16.vlgmr.msra.gmra.mrb[48].mxu1 %vm1678_vm1, %v12568_v33 }
0x144d   : > { %9624 = vmatprep.mubr.msk.f32.mxu1 %vm11564_vm0, %v11563_v7 }
0x150f   : > { %v3802_v36 = vpop.f32.mrb[40].mxu1  ;;  %v3859_v37 = vpop.f32.mrb[40].mxu0 }
0x1510   : > { %v3860_v38 = vadd.f32 %v3859_v37, %v3812_v35  ;;  %v9583_v39 = vpop.f32.mrb[41].mxu1  ;;  %v9591_v42 = vpop.f32.mrb[41].mxu0  ;;  %v3803_v60 = vadd.f32 %v3802_v36, %v3752_v56 }
0x1511   : > { %v3805_v43 = vpop.f32.mrb[42].mxu1  ;;  %v3862_v44 = vpop.f32.mrb[42].mxu0 }
0x1512   : > { %v3865_v40 = vmul.f32 0.5, %v3860_v38  ;;  %v9584_v45 = vpop.f32.mrb[43].mxu1  ;;  %v9592_v46 = vpop.f32.mrb[43].mxu0 }
0x1514   : > { %v3866_v47 = vmul.f32 1.442695, %v3865_v40 }
0x1516   : > { %10468 = vpow2.f32 %v3866_v47 }
0x1517   : > { %v3957_v48 = vpop.f32.mrb[44].mxu1  ;;  %v4014_v49 = vpop.f32.mrb[44].mxu0 }
0x1518   : > { %4237 = vrot.lane.b32.xlu1 %v3957_v48, %s11565_s5  ;;  %v9599_v50 = vpop.f32.mrb[45].mxu1  ;;  %4239 = vrot.lane.b32.xlu0 %v4014_v49, %s11565_s5  ;;  %v9607_v51 = vpop.f32.mrb[45].mxu0 }
0x1519   : > { %9618 = vmatpush3.xpose.msk.msra.mxu0 %vm1834_vm2, %v4014_v49  ;;  %v3960_v52 = vpop.f32.mrb[46].mxu1  ;;  %v4017_v30 = vpop.f32.mrb[46].mxu0 }
0x151a   : > { %v9600_v53 = vpop.f32.mrb[47].mxu1  ;;  %v9608_v54 = vpop.f32.mrb[47].mxu0  ;;  %9627 = vmatprep.subr.mxu0 %v11563_v7 }
0x151c   : > { %9620 = vmatmul.mubr.msk.f32.vlgmr.msra.gmra.mrb[30].mxu0 %vm1834_vm2, %v3957_v48  ;;  %4403 = vrot.lane.b32.xlu1 %v3957_v48, %s11566_s22 }
0x151d   : > { %4405 = vrot.lane.b32.xlu0 %v4014_v49, %s11566_s22  ;;  %9629 = vmatprep.mubr.msk.f32.mxu0 %vm11564_vm0, %v11563_v7 }
0x151f   : > { %v12597_v57 = vpop.f32.mrb[48].mxu1 }
0x1520   : > { %v10469_v58 = vpop.eup %10468  ;;  %4568 = vrot.lane.b32.xlu1 %v3957_v48, %s11567_s6  ;;  %v9615_v59 = vpop.f32.mrb[49].mxu1  ;;  %9623 = vmatpush3.msra.mxu1 %v12597_v57 }
0x1521   : > { %v3868_v61 = vmul.f32 %v10469_v58, %v1620_v55  ;;  %4570 = vrot.lane.b32.xlu0 %v4014_v49, %s11567_s6  ;;  %v4074_v41 = vpop.f32.mrb[50].mxu1  ;;  %9632 = vmatprep.subr.mxu1 %v11563_v7 }
0x1522   : > { %v9616_v62 = vpop.f32.mrb[51].mxu1 }
0x1523   : > { %v12603_v63 = vadd.f32 %v3868_v61, %v3803_v60  ;;  %v10378_v61 = vld [vmem:[#allocation5 + $0x20] sm:$0xff]   ;;  %v10379_v62 = vld [vmem:[#allocation5 + $0x28] sm:$0xff]  }
0x158a   : > { %v4238_v0 = vpop.permute.xlu1 %4237  ;;  %v4240_v1 = vpop.permute.xlu0 %4239 }
0x158b   : > { %9628 = vmatpush3.xpose.msk.msra.mxu0 %vm1834_vm2, %v4240_v1 }
0x158c   : > { %9637 = vmatprep.subr.mxu0 %v11563_v7 }
0x158e   : > { %9630 = vmatmul.mubr.msk.f32.vlgmr.msra.gmra.mrb[48].mxu0 %vm1834_vm2, %v4238_v0  ;;  %v4404_v3 = vpop.permute.xlu1 %4403 }
0x158f   : > { %v4406_v2 = vpop.permute.xlu0 %4405  ;;  %9639 = vmatprep.mubr.msk.f32.mxu0 %vm11564_vm0, %v11563_v7 }
0x1590   : > { %9638 = vmatpush3.xpose.msk.msra.mxu0 %vm1834_vm2, %v4406_v2  ;;  %v10380_v2 = vld [vmem:[#allocation7 + $0x20] sm:$0xff]  }
0x1591   : > { %9647 = vmatprep.subr.mxu0 %v11563_v7 }
0x1592   : > { %v4569_v6 = vpop.permute.xlu1 %4568 }
0x1593   : > { %v4571_v5 = vpop.permute.xlu0 %4570  ;;  %9640 = vmatmul.mubr.msk.f32.vlgmr.msra.gmra.mrb[50].mxu0 %vm1834_vm2, %v4404_v3  ;;  %v10381_v3 = vld [vmem:[#allocation7 + $0x28] sm:$0xff]  }
0x1594   : > { %9648 = vmatpush3.xpose.msk.msra.mxu0 %vm1834_vm2, %v4571_v5  ;;  %9649 = vmatprep.mubr.msk.f32.mxu0 %vm11564_vm0, %v11563_v7 }
0x1595   : > { %9657 = vmatprep.subr.bf16.mxu0 %v11563_v7 }
0x1597   : > { %9650 = vmatmul.mubr.msk.f32.vlgmr.msra.gmra.mrb[52].mxu0 %vm1834_vm2, %v4569_v6 }
0x1598   : > { %9661 = vmatprep.mubr.msk.bf16.mxu0 %vm11564_vm0, %v11563_v7  ;;  %9658 = vmatpush3.bf16.msra.mxu0 %v10380_v2 }
0x1599   : > { %9659 = vmatprep.subr.bf16.mxu0 %v11563_v7 }
0x159c   : > { %9660 = vmatpush3.bf16.msra.mxu0 %v10381_v3 }
0x159d   : > { %9673 = vmatprep.subr.bf16.mxu0 %v11563_v7 }
0x15ef   : > { %v4149_v9 = vpop.f32.mrb[30].mxu0 }
0x15f0   : > { %v9621_v8 = vpop.f32.mrb[31].mxu0  ;;  %v4153_v10 = vsel %vm1834_vm2, %v4149_v9, -inf }
0x15f1   : > { %4154 = vmax.xlane.f32.xlu0 %v4153_v10 }
0x1661   : > { %v4311_v15 = vpop.f32.mrb[48].mxu0 }
0x1662   : > { %v9631_v17 = vpop.f32.mrb[49].mxu0  ;;  %v4315_v18 = vsel %vm1834_vm2, %v4311_v15, -inf }
0x1663   : > { %4316 = vmax.xlane.f32.xlu1 %v4315_v18 }
0x1666   : > { %v4477_v19 = vpop.f32.mrb[50].mxu0 }
0x1667   : > { %v9641_v22 = vpop.f32.mrb[51].mxu0  ;;  %v4481_v23 = vsel %vm1834_vm2, %v4477_v19, -inf }
0x1668   : > { %4482 = vmax.xlane.f32.xlu0 %v4481_v23 }
0x166a   : > { %v4642_v24 = vpop.f32.mrb[52].mxu0 }
0x166b   : > { %v9651_v25 = vpop.f32.mrb[53].mxu0  ;;  %v4646_v26 = vsel %vm1834_vm2, %v4642_v24, -inf }
0x166c   : > { %4647 = vmax.xlane.f32.xlu0 %v4646_v26 }
0x1674   : > { %4327 = vrot.lane.b32.xlu1 %v12597_v57, %s11565_s5 }
0x167e   : > { %v4155_v27 = vpop.xlane.xlu0 %4154 }
0x167f   : > { %v4156_v29 = vsub.f32 %v4149_v9, %v4155_v27 }
0x1681   : > { %v4157_v28 = vmul.f32 1.442695, %v4156_v29 }
0x1683   : > { %10470 = vpow2.f32 %v4157_v28 }
0x168d   : > { %v10471_v31 = vpop.eup %10470 }
0x168e   : > { %v4159_v11 = vsel %vm1834_vm2, %v10471_v31, 0.0 }
0x1698   : > { %4160 = vadd.xlane.f32.xlu1 %v4159_v11 }
0x16f0   : > { %v4317_v14 = vpop.xlane.xlu1 %4316 }
0x16f1   : > { %v4318_v20 = vsub.f32 %v4311_v15, %v4317_v14 }
0x16f3   : > { %v4319_v34 = vmul.f32 1.442695, %v4318_v20 }
0x16f4   : > { %v4328_v48 = vpop.permute.xlu1 %4327 }
0x16f5   : > { %10472 = vpow2.f32 %v4319_v34  ;;  %v4483_v35 = vpop.xlane.xlu0 %4482 }
0x16f6   : > { %v4484_v36 = vsub.f32 %v4477_v19, %v4483_v35 }
0x16f8   : > { %v4485_v37 = vmul.f32 1.442695, %v4484_v36 }
0x16f9   : > { %v4648_v38 = vpop.xlane.xlu0 %4647 }
0x16fa   : > { %10474 = vpow2.f32 %v4485_v37  ;;  %v4649_v39 = vsub.f32 %v4642_v24, %v4648_v38 }
0x16fc   : > { %v4650_v42 = vmul.f32 1.442695, %v4649_v39 }
0x16fe   : > { %10476 = vpow2.f32 %v4650_v42 }
0x16ff   : > { %v10473_v43 = vpop.eup %10472 }
0x1700   : > { %v4321_v44 = vsel %vm1834_vm2, %v10473_v43, 0.0 }
0x1701   : > { %4322 = vadd.xlane.f32.xlu0 %v4321_v44 }
0x1704   : > { %v10475_v40 = vpop.eup %10474 }
0x1705   : > { %v4487_v45 = vsel %vm1834_vm2, %v10475_v40, 0.0 }
0x1706   : > { %4488 = vadd.xlane.f32.xlu1 %v4487_v45  ;;  %v10383_v45 = vld [vmem:[%s13176_s11 + $0x30] sm:$0xff]  }
0x1708   : > { %v10477_v46 = vpop.eup %10476 }
0x1709   : > { %v4652_v47 = vsel %vm1834_vm2, %v10477_v46, 0.0 }
0x170a   : > { %4653 = vadd.xlane.f32.xlu0 %v4652_v47  ;;  %v10385_v47 = vld [vmem:[%s13176_s11 + $0x38] sm:$0xff]  }
0x1717   : > { %4657 = vrot.lane.b32.xlu1 %v12597_v57, %s11567_s6 }
0x1720   : > { %4492 = vrot.lane.b32.xlu0 %v12597_v57, %s11566_s22 }
0x1725   : > { %v4161_v49 = vpop.xlane.xlu1 %4160 }
0x1726   : > { %10478 = vrcp.f32 %v4161_v49 }
0x1730   : > { %v10479_v50 = vpop.eup %10478 }
0x1731   : > { %v4163_v51 = vmul.f32 %v10479_v50, %v10471_v31  ;;  %v9041_v31 = vld [vmem:[#allocation8 + $0x2] ss:$0 sm:$0xff] }
0x1733   : > { %9625 = vmatmul.mubr.msk.f32.vlgmr.msra.gmra.mrb[34].mxu1 %vm1834_vm2, %v4163_v51  ;;  %v9042_v51 = vld [vmem:[#allocation10 + $0x2] ss:$0 sm:$0xff] }
0x1734   : > { %9633 = vmatpush3.msra.mxu1 %v4328_v48  ;;  %9634 = vmatprep.mubr.msk.f32.mxu1 %vm11564_vm0, %v11563_v7 }
0x1735   : > { %9642 = vmatprep.subr.mxu1 %v11563_v7 }
0x178e   : > { %v4323_v52 = vpop.xlane.xlu0 %4322 }
0x178f   : > { %10480 = vrcp.f32 %v4323_v52 }
0x1793   : > { %v4489_v30 = vpop.xlane.xlu1 %4488 }
0x1794   : > { %10482 = vrcp.f32 %v4489_v30  ;;  %v9043_v30 = vld [vmem:[#allocation11 + $0x2] ss:$0 sm:$0xff] }
0x1797   : > { %v4654_v53 = vpop.xlane.xlu0 %4653  ;;  %v4658_v59 = vpop.permute.xlu1 %4657 }
0x1798   : > { %10484 = vrcp.f32 %v4654_v53 }
0x1799   : > { %v10481_v54 = vpop.eup %10480 }
0x179a   : > { %v4325_v55 = vmul.f32 %v10481_v54, %v10473_v43 }
0x179b   : > { %v4493_v56 = vpop.permute.xlu0 %4492 }
0x179c   : > { %9635 = vmatmul.mubr.msk.f32.vlgmr.msra.gmra.mrb[52].mxu1 %vm1834_vm2, %v4325_v55  ;;  %v10386_v55 = vld [vmem:[#allocation3 + $0x30] sm:$0xff]  }
0x179d   : > { %9643 = vmatpush3.msra.mxu1 %v4493_v56  ;;  %9644 = vmatprep.mubr.msk.f32.mxu1 %vm11564_vm0, %v11563_v7 }
0x179e   : > { %v10483_v57 = vpop.eup %10482  ;;  %9652 = vmatprep.subr.mxu1 %v11563_v7 }
0x179f   : > { %v4491_v58 = vmul.f32 %v10483_v57, %v10475_v40  ;;  %v10382_v40 = vld [vmem:[%s13175_s1 + $0x30] sm:$0xff]   ;;  %v10387_v57 = vld [vmem:[#allocation3 + $0x38] sm:$0xff]  }
0x17a1   : > { %9645 = vmatmul.mubr.msk.f32.vlgmr.msra.gmra.mrb[54].mxu1 %vm1834_vm2, %v4491_v58 }
0x17a2   : > { %v10485_v60 = vpop.eup %10484  ;;  %9653 = vmatpush3.msra.mxu1 %v4658_v59  ;;  %9654 = vmatprep.mubr.msk.f32.mxu1 %vm11564_vm0, %v11563_v7 }
0x17a3   : > { %v4656_v41 = vmul.f32 %v10485_v60, %v10477_v46  ;;  %9665 = vmatprep.subr.bf16.mxu1 %v11563_v7  ;;  %v10384_v46 = vld [vmem:[%s13175_s1 + $0x38] sm:$0xff]  }
0x17a5   : > { %9655 = vmatmul.mubr.msk.f32.vlgmr.msra.gmra.mrb[56].mxu1 %vm1834_vm2, %v4656_v41 }
0x17a6   : > { %9666 = vmatpush3.bf16.msra.mxu1 %v10378_v61  ;;  %9669 = vmatprep.mubr.msk.bf16.mxu1 %vm11564_vm0, %v11563_v7 }
0x17a7   : > { %9667 = vmatprep.subr.bf16.mxu1 %v11563_v7 }
0x17aa   : > { %9668 = vmatpush3.bf16.msra.mxu1 %v10379_v62 }
0x17ab   : > { %9681 = vmatprep.subr.bf16.mxu1 %v11563_v7 }
0x17ad   : > { %9670 = vmatmul.mubr.msk.bf16.vlgmr.msra.gmra.mrb[60].mxu1 %vm1678_vm1, %v12568_v33 }
0x17ae   : > { %9685 = vmatprep.mubr.msk.bf16.mxu1 %vm11564_vm0, %v11563_v7  ;;  %9682 = vmatpush3.bf16.msra.mxu1 %v10383_v45 }
0x17af   : > { %9683 = vmatprep.subr.bf16.mxu1 %v11563_v7 }
0x17b2   : > { %9684 = vmatpush3.bf16.msra.mxu1 %v10385_v47 }
0x17b3   : > { %9697 = vmatprep.subr.mxu1 %v11563_v7 }
0x1806   : > { %v4233_v0 = vpop.f32.mrb[34].mxu1 }
0x1807   : > { %v9626_v1 = vpop.f32.mrb[35].mxu1 }
0x186f   : > { %v4399_v5 = vpop.f32.mrb[52].mxu1 }
0x1870   : > { %4734 = vrot.lane.b32.xlu1 %v4399_v5, %s11568_s8  ;;  %v9636_v6 = vpop.f32.mrb[53].mxu1 }
0x1874   : > { %v4564_v9 = vpop.f32.mrb[54].mxu1 }
0x1875   : > { %4738 = vrot.lane.b32.xlu0 %v4564_v9, %s11569_s15  ;;  %v9646_v33 = vpop.f32.mrb[55].mxu1 }
0x1878   : > { %v4729_v8 = vpop.f32.mrb[56].mxu1 }
0x1879   : > { %4742 = vrot.lane.b32.xlu1 %v4729_v8, %s11570_s26  ;;  %v9656_v10 = vpop.f32.mrb[57].mxu1 }
0x1880   : > { %v4860_v15 = vpop.f32.mrb[60].mxu1 }
0x1881   : > { %v9671_v17 = vpop.f32.mrb[61].mxu1 }
0x1882   : > { %v4863_v18 = vpop.f32.mrb[62].mxu1 }
0x1883   : > { %v9672_v19 = vpop.f32.mrb[63].mxu1 }
0x18e2   : > { %v4735_v22 = vpop.permute.xlu1 %4734 }
0x18e3   : > { %v4745_v24 = vsel %vm1834_vm2, %v4233_v0, %v4735_v22 }
0x18e7   : > { %v4739_v23 = vpop.permute.xlu0 %4738 }
0x18e8   : > { %v4746_v25 = vsel %vm2504_vm3, %v4745_v24, %v4739_v23 }
0x18eb   : > { %v4743_v26 = vpop.permute.xlu1 %4742 }
0x18ec   : > { %v4747_v27 = vsel %vm2506_vm4, %v4746_v25, %v4743_v26 }
0x18ed   : > { %v4758_v29 = vpack.c.bf16 %v4747_v27, %v4747_v27 }
0x18ef   : > { %9662 = vmatmul.mubr.msk.bf16.vlgmr.msra.gmra.mrb[56].mxu0 %vm1678_vm1, %v4758_v29 }
0x18f0   : > { %9677 = vmatprep.mubr.msk.bf16.mxu0 %vm11564_vm0, %v11563_v7  ;;  %9674 = vmatpush3.bf16.msra.mxu0 %v10382_v40 }
0x18f1   : > { %9675 = vmatprep.subr.bf16.mxu0 %v11563_v7 }
0x18f4   : > { %9676 = vmatpush3.bf16.msra.mxu0 %v10384_v46 }
0x18f5   : > { %9689 = vmatprep.subr.bf16.mxu0 %v11563_v7 }
0x19c2   : > { %v4808_v28 = vpop.f32.mrb[56].mxu0 }
0x19c3   : > { %v4861_v11 = vadd.f32 %v4860_v15, %v4808_v28  ;;  %v9663_v14 = vpop.f32.mrb[57].mxu0 }
0x19c4   : > { %v4811_v20 = vpop.f32.mrb[58].mxu0 }
0x19c5   : > { %v4874_v34 = vadd.f32 %v9041_v31, %v4861_v11  ;;  %v9664_v35 = vpop.f32.mrb[59].mxu0 }
0x19c7   : > { %v4875_v36 = vadd.f32 %v4874_v34, %v12558_v32 }
0x19c9   : > { %v4880_v37 = vsel %vm1678_vm1, %v4875_v36, 0.0 }
0x19ca   : > { %4881 = vadd.xlane.f32.xlu0 %v4880_v37 }
0x1a57   : > { %v4882_v38 = vpop.xlane.xlu0 %4881 }
0x1a58   : > { %v4883_v39 = vmul.f32 0.03125, %v4882_v38 }
0x1a5a   : > { %v4884_v42 = vsub.f32 %v4875_v36, %v4883_v39 }
0x1a5c   : > { %v4885_v43 = vmul.f32 %v4884_v42, %v4884_v42 }
0x1a5e   : > { %v4886_v44 = vsel %vm1678_vm1, %v4885_v43, 0.0 }
0x1a5f   : > { %4887 = vadd.xlane.f32.xlu1 %v4886_v44 }
0x1aec   : > { %v4888_v32 = vpop.xlane.xlu1 %4887 }
0x1aed   : > { %v4889_v48 = vmul.f32 0.03125, %v4888_v32 }
0x1aef   : > { %v4890_v49 = vadd.f32 1e-05, %v4889_v48 }
0x1af1   : > { %10486 = vrsqrt.f32 %v4890_v49 }
0x1afb   : > { %v10487_v50 = vpop.eup %10486 }
0x1afc   : > { %v4892_v52 = vmul.f32 %v10487_v50, %v4884_v42 }
0x1afe   : > { %v4899_v53 = vmul.f32 %v9042_v51, %v4892_v52 }
0x1b00   : > { %v12677_v54 = vadd.f32 %v9043_v30, %v4899_v53 }
0x1b02   : > { %v12681_v56 = vpack.c.bf16 %v12677_v54, %v12677_v54 }
0x1b04   : > { %9678 = vmatmul.mubr.msk.bf16.vlgmr.msra.gmra.mrb[60].mxu0 %vm1678_vm1, %v12681_v56  ;;  %9686 = vmatmul.mubr.msk.bf16.vlgmr.msra.gmra.mrb[64].mxu1 %vm1678_vm1, %v12681_v56 }
0x1b05   : > { %9690 = vmatpush3.bf16.msra.mxu0 %v10386_v55  ;;  %9693 = vmatprep.mubr.msk.bf16.mxu0 %vm11564_vm0, %v11563_v7 }
0x1b06   : > { %9691 = vmatprep.subr.bf16.mxu0 %v11563_v7  ;;  %9699 = vmatprep.mubr.msk.f32.mxu1 %vm11564_vm0, %v11563_v7 }
0x1b09   : > { %9692 = vmatpush3.bf16.msra.mxu0 %v10387_v57 }
0x1b0a   : > { %9707 = vmatprep.subr.mxu0 %v11563_v7 }
0x1b0c   : > { %9694 = vmatmul.mubr.msk.bf16.vlgmr.msra.gmra.mrb[64].mxu0 %vm1678_vm1, %v12681_v56 }
0x1b0d   : > { %9709 = vmatprep.mubr.msk.f32.mxu0 %vm11564_vm0, %v11563_v7 }
0x1bd7   : > { %v4962_v58 = vpop.f32.mrb[60].mxu0  ;;  %v5019_v59 = vpop.f32.mrb[64].mxu1 }
0x1bd8   : > { %5244 = vrot.lane.b32.xlu0 %v5019_v59, %s11565_s5  ;;  %v9687_v60 = vpop.f32.mrb[65].mxu1  ;;  %9698 = vmatpush3.xpose.msk.msra.mxu1 %vm1834_vm2, %v5019_v59  ;;  %v9679_v61 = vpop.f32.mrb[61].mxu0 }
0x1bd9   : > { %5242 = vrot.lane.b32.xlu1 %v4962_v58, %s11565_s5  ;;  %v4965_v41 = vpop.f32.mrb[62].mxu0  ;;  %v5022_v62 = vpop.f32.mrb[66].mxu1  ;;  %9702 = vmatprep.subr.mxu1 %v11563_v7 }
0x1bda   : > { %v9680_v0 = vpop.f32.mrb[63].mxu0  ;;  %v9688_v1 = vpop.f32.mrb[67].mxu1 }
0x1bdb   : > { %9700 = vmatmul.mubr.msk.f32.vlgmr.msra.gmra.mrb[58].mxu1 %vm1834_vm2, %v4962_v58 }
0x1bdc   : > { %5410 = vrot.lane.b32.xlu0 %v5019_v59, %s11566_s22  ;;  %9704 = vmatprep.mubr.msk.f32.mxu1 %vm11564_vm0, %v11563_v7 }
0x1bdd   : > { %5408 = vrot.lane.b32.xlu1 %v4962_v58, %s11566_s22 }
0x1bdf   : > { %v12706_v2 = vpop.f32.mrb[64].mxu0 }
0x1be0   : > { %5575 = vrot.lane.b32.xlu0 %v5019_v59, %s11567_s6  ;;  %v9695_v3 = vpop.f32.mrb[65].mxu0  ;;  %9703 = vmatpush3.msra.mxu1 %v12706_v2 }
0x1be1   : > { %5573 = vrot.lane.b32.xlu1 %v4962_v58, %s11567_s6  ;;  %v5079_v5 = vpop.f32.mrb[66].mxu0  ;;  %9712 = vmatprep.subr.mxu1 %v11563_v7  ;;  %v5941_v3 = vld [vmem:[#allocation28] sm:$0x3] }
0x1be2   : > { %v9696_v6 = vpop.f32.mrb[67].mxu0  ;;  %v10388_v5 = vld [vmem:[#allocation5 + $0x30] sm:$0xff]  }
0x1be3   : > { %v5950_v6 = vrot.slane %v5941_v3, %v12310_v13 }
0x1c4a   : > { %v5245_v9 = vpop.permute.xlu0 %5244 }
0x1c4b   : > { %v5243_v33 = vpop.permute.xlu1 %5242  ;;  %9708 = vmatpush3.xpose.msk.msra.mxu0 %vm1834_vm2, %v5245_v9 }
0x1c4c   : > { %9717 = vmatprep.subr.mxu0 %v11563_v7 }
0x1c4e   : > { %v5411_v8 = vpop.permute.xlu0 %5410  ;;  %9710 = vmatmul.mubr.msk.f32.vlgmr.msra.gmra.mrb[54].mxu0 %vm1834_vm2, %v5243_v33  ;;  %v5945_v33 = vrot.slane %v5941_v3, %v12307_v12 }
0x1c4f   : > { %v5409_v10 = vpop.permute.xlu1 %5408  ;;  %9718 = vmatpush3.xpose.msk.msra.mxu0 %vm1834_vm2, %v5411_v8  ;;  %9719 = vmatprep.mubr.msk.f32.mxu0 %vm11564_vm0, %v11563_v7  ;;  %v10389_v8 = vld [vmem:[#allocation5 + $0x38] sm:$0xff]  }
0x1c50   : > { %9727 = vmatprep.subr.mxu0 %v11563_v7 }
0x1c52   : > { %v5576_v15 = vpop.permute.xlu0 %5575  ;;  %9720 = vmatmul.mubr.msk.f32.vlgmr.msra.gmra.mrb[68].mxu0 %vm1834_vm2, %v5409_v10  ;;  %v5951_v10 = vmul.f32 %v5950_v6, %v12321_v21 }
0x1c53   : > { %9728 = vmatpush3.xpose.msk.msra.mxu0 %vm1834_vm2, %v5576_v15  ;;  %9729 = vmatprep.mubr.msk.f32.mxu0 %vm11564_vm0, %v11563_v7  ;;  %v5574_v17 = vpop.permute.xlu1 %5573  ;;  %v5946_v15 = vmul.f32 %v5945_v33, %v12313_v16 }
0x1c54   : > { %9737 = vmatprep.subr.bf16.mxu0 %v11563_v7 }
0x1c56   : > { %9730 = vmatmul.mubr.msk.f32.vlgmr.msra.gmra.mrb[70].mxu0 %vm1834_vm2, %v5574_v17  ;;  %v10390_v17 = vld [vmem:[%s13176_s11 + $0x40] sm:$0xff]  }
0x1c57   : > { %9741 = vmatprep.mubr.msk.bf16.mxu0 %vm11564_vm0, %v11563_v7 }
0x1cae   : > { %v5154_v18 = vpop.f32.mrb[58].mxu1 }
0x1caf   : > { %v9701_v19 = vpop.f32.mrb[59].mxu1  ;;  %v5158_v22 = vsel %vm1834_vm2, %v5154_v18, -inf }
0x1cb0   : > { %5159 = vmax.xlane.f32.xlu0 %v5158_v22  ;;  %v9083_v19 = vld [vmem:[#allocation29] ss:$0 sm:$0xff]  ;;  %v10391_v22 = vld [vmem:[%s13176_s11 + $0x48] sm:$0xff]  }
0x1d21   : > { %v5316_v23 = vpop.f32.mrb[54].mxu0 }
0x1d22   : > { %v9711_v24 = vpop.f32.mrb[55].mxu0  ;;  %v5320_v25 = vsel %vm1834_vm2, %v5316_v23, -inf }
0x1d23   : > { %5321 = vmax.xlane.f32.xlu1 %v5320_v25  ;;  %v10392_v24 = vld [vmem:[#allocation7 + $0x30] sm:$0xff]   ;;  %v10393_v25 = vld [vmem:[#allocation7 + $0x38] sm:$0xff]  }
0x1d24   : > { %9738 = vmatpush3.bf16.msra.mxu0 %v10392_v24 }
0x1d25   : > { %v5482_v26 = vpop.f32.mrb[68].mxu0  ;;  %9739 = vmatprep.subr.bf16.mxu0 %v11563_v7 }
0x1d26   : > { %v9721_v27 = vpop.f32.mrb[69].mxu0  ;;  %v5486_v29 = vsel %vm1834_vm2, %v5482_v26, -inf }
0x1d27   : > { %5487 = vmax.xlane.f32.xlu0 %v5486_v29 }
0x1d28   : > { %9740 = vmatpush3.bf16.msra.mxu0 %v10393_v25 }
0x1d29   : > { %v5647_v28 = vpop.f32.mrb[70].mxu0  ;;  %9753 = vmatprep.subr.bf16.mxu0 %v11563_v7 }
0x1d2a   : > { %v9731_v31 = vpop.f32.mrb[71].mxu0  ;;  %v5651_v11 = vsel %vm1834_vm2, %v5647_v28, -inf }
0x1d2b   : > { %5652 = vmax.xlane.f32.xlu0 %v5651_v11  ;;  %v1619_v31 = vld [vmem:[%s1608_s2] sm:$0xff] }
0x1d34   : > { %5332 = vrot.lane.b32.xlu1 %v12706_v2, %s11565_s5 }
0x1d3d   : > { %v5160_v14 = vpop.xlane.xlu0 %5159 }
0x1d3e   : > { %v5161_v20 = vsub.f32 %v5154_v18, %v5160_v14  ;;  %v5952_v18 = vadd.f32 %v5951_v10, %v5946_v15 }
0x1d40   : > { %v5162_v34 = vmul.f32 1.442695, %v5161_v20 }
0x1d42   : > { %10488 = vpow2.f32 %v5162_v34 }
0x1d4c   : > { %v10489_v35 = vpop.eup %10488 }
0x1d4d   : > { %v5164_v36 = vsel %vm1834_vm2, %v10489_v35, 0.0 }
0x1d58   : > { %5165 = vadd.xlane.f32.xlu1 %v5164_v36 }
0x1db0   : > { %v5322_v37 = vpop.xlane.xlu1 %5321 }
0x1db1   : > { %v5323_v38 = vsub.f32 %v5316_v23, %v5322_v37  ;;  %v5960_v23 = vadd.f32 %v9083_v19, %v5952_v18 }
0x1db3   : > { %v5324_v39 = vmul.f32 1.442695, %v5323_v38  ;;  %v12769_v16 = vpack.c.bf16 %v5960_v23, %v5960_v23  ;;  %v10397_v23 = vld [vmem:[#allocation3 + $0x48] sm:$0xff]  }
0x1db4   : > { %v5488_v42 = vpop.xlane.xlu0 %5487  ;;  %v5333_v52 = vpop.permute.xlu1 %5332 }
0x1db5   : > { %10490 = vpow2.f32 %v5324_v39  ;;  %v5489_v43 = vsub.f32 %v5482_v26, %v5488_v42 }
0x1db7   : > { %v5490_v44 = vmul.f32 1.442695, %v5489_v43 }
0x1db8   : > { %v5653_v40 = vpop.xlane.xlu0 %5652 }
0x1db9   : > { %10492 = vpow2.f32 %v5490_v44  ;;  %v5654_v45 = vsub.f32 %v5647_v28, %v5653_v40 }
0x1dbb   : > { %v5655_v46 = vmul.f32 1.442695, %v5654_v45 }
0x1dbd   : > { %10494 = vpow2.f32 %v5655_v46 }
0x1dbf   : > { %v10491_v47 = vpop.eup %10490 }
0x1dc0   : > { %v5326_v32 = vsel %vm1834_vm2, %v10491_v47, 0.0 }
0x1dc1   : > { %5327 = vadd.xlane.f32.xlu0 %v5326_v32 }
0x1dc3   : > { %v10493_v48 = vpop.eup %10492 }
0x1dc4   : > { %v5492_v49 = vsel %vm1834_vm2, %v10493_v48, 0.0 }
0x1dc5   : > { %5493 = vadd.xlane.f32.xlu1 %v5492_v49  ;;  %v5912_v49 = vld [vmem:[#allocation31] sm:$0x3] }
0x1dc7   : > { %v10495_v50 = vpop.eup %10494 }
0x1dc8   : > { %v5657_v51 = vsel %vm1834_vm2, %v10495_v50, 0.0 }
0x1dc9   : > { %5658 = vadd.xlane.f32.xlu0 %v5657_v51 }
0x1dd6   : > { %5662 = vrot.lane.b32.xlu1 %v12706_v2, %s11567_s6 }
0x1ddf   : > { %5497 = vrot.lane.b32.xlu0 %v12706_v2, %s11566_s22 }
0x1de5   : > { %v5166_v30 = vpop.xlane.xlu1 %5165 }
0x1de6   : > { %10496 = vrcp.f32 %v5166_v30 }
0x1df0   : > { %v10497_v53 = vpop.eup %10496 }
0x1df1   : > { %v5168_v55 = vmul.f32 %v10497_v53, %v10489_v35 }
0x1df3   : > { %9705 = vmatmul.mubr.msk.f32.vlgmr.msra.gmra.mrb[68].mxu1 %vm1834_vm2, %v5168_v55 }
0x1df4   : > { %9713 = vmatpush3.msra.mxu1 %v5333_v52  ;;  %9714 = vmatprep.mubr.msk.f32.mxu1 %vm11564_vm0, %v11563_v7  ;;  %v5930_v52 = vrot.slane %v5912_v49, %v12310_v13 }
0x1df5   : > { %9722 = vmatprep.subr.mxu1 %v11563_v7 }
0x1e4e   : > { %v5328_v57 = vpop.xlane.xlu0 %5327 }
0x1e4f   : > { %10498 = vrcp.f32 %v5328_v57  ;;  %v9082_v57 = vld [vmem:[#allocation32] ss:$0 sm:$0xff] }
0x1e52   : > { %v5494_v58 = vpop.xlane.xlu1 %5493 }
0x1e53   : > { %10500 = vrcp.f32 %v5494_v58 }
0x1e56   : > { %v5659_v59 = vpop.xlane.xlu0 %5658  ;;  %v5663_v1 = vpop.permute.xlu1 %5662 }
0x1e57   : > { %10502 = vrcp.f32 %v5659_v59 }
0x1e59   : > { %v10499_v60 = vpop.eup %10498 }
0x1e5a   : > { %v5330_v61 = vmul.f32 %v10499_v60, %v10491_v47  ;;  %v5498_v41 = vpop.permute.xlu0 %5497  ;;  %v10394_v47 = vld [vmem:[%s13175_s1 + $0x40] sm:$0xff]  }
0x1e5c   : > { %9715 = vmatmul.mubr.msk.f32.vlgmr.msra.gmra.mrb[70].mxu1 %vm1834_vm2, %v5330_v61 }
0x1e5d   : > { %v10501_v62 = vpop.eup %10500  ;;  %9723 = vmatpush3.msra.mxu1 %v5498_v41  ;;  %9724 = vmatprep.mubr.msk.f32.mxu1 %vm11564_vm0, %v11563_v7  ;;  %v9079_v41 = vld [vmem:[#allocation8 + $0x3] ss:$0 sm:$0xff] }
0x1e5e   : > { %v5496_v0 = vmul.f32 %v10501_v62, %v10493_v48  ;;  %9732 = vmatprep.subr.mxu1 %v11563_v7  ;;  %v10395_v48 = vld [vmem:[%s13175_s1 + $0x48] sm:$0xff]  }
0x1e60   : > { %9725 = vmatmul.mubr.msk.f32.vlgmr.msra.gmra.mrb[72].mxu1 %vm1834_vm2, %v5496_v0 }
0x1e61   : > { %v10503_v2 = vpop.eup %10502  ;;  %9733 = vmatpush3.msra.mxu1 %v5663_v1  ;;  %9734 = vmatprep.mubr.msk.f32.mxu1 %vm11564_vm0, %v11563_v7 }
0x1e62   : > { %v5661_v9 = vmul.f32 %v10503_v2, %v10495_v50  ;;  %9745 = vmatprep.subr.bf16.mxu1 %v11563_v7  ;;  %v5921_v50 = vrot.slane %v5912_v49, %v12307_v12 }
0x1e64   : > { %9735 = vmatmul.mubr.msk.f32.vlgmr.msra.gmra.mrb[74].mxu1 %vm1834_vm2, %v5661_v9 }
0x1e65   : > { %9746 = vmatpush3.bf16.msra.mxu1 %v10388_v5  ;;  %9749 = vmatprep.mubr.msk.bf16.mxu1 %vm11564_vm0, %v11563_v7 }
0x1e66   : > { %9747 = vmatprep.subr.bf16.mxu1 %v11563_v7 }
0x1e69   : > { %9748 = vmatpush3.bf16.msra.mxu1 %v10389_v8 }
0x1e6a   : > { %9761 = vmatprep.subr.bf16.mxu1 %v11563_v7 }
0x1e6c   : > { %9750 = vmatmul.mubr.msk.bf16.vlgmr.msra.gmra.mrb[76].mxu1 %vm1678_vm1, %v12681_v56 }
0x1e6d   : > { %9762 = vmatpush3.bf16.msra.mxu1 %v10390_v17  ;;  %9765 = vmatprep.mubr.msk.bf16.mxu1 %vm11564_vm0, %v11563_v7 }
0x1e6e   : > { %9763 = vmatprep.subr.bf16.mxu1 %v11563_v7 }
0x1e71   : > { %9764 = vmatpush3.bf16.msra.mxu1 %v10391_v22  ;;  %v10396_v22 = vld [vmem:[#allocation3 + $0x40] sm:$0xff]  }
0x1e72   : > { %9777 = vmatprep.subr.mxu1 %v11563_v7 }
0x1e74   : > { %9766 = vmatmul.mubr.msk.bf16.vlgmr.msra.gmra.mrb[80].mxu1 %vm1678_vm1, %v12769_v16 }
0x1e75   : > { %9779 = vmatprep.mubr.msk.f32.mxu1 %vm11564_vm0, %v11563_v7 }
0x1ec6   : > { %v5238_v21 = vpop.f32.mrb[68].mxu1 }
0x1ec7   : > { %v9706_v56 = vpop.f32.mrb[69].mxu1 }
0x1f2f   : > { %v5404_v26 = vpop.f32.mrb[70].mxu1 }
0x1f30   : > { %5739 = vrot.lane.b32.xlu1 %v5404_v26, %s11568_s8  ;;  %v9716_v27 = vpop.f32.mrb[71].mxu1 }
0x1f33   : > { %v5569_v29 = vpop.f32.mrb[72].mxu1 }
0x1f34   : > { %5743 = vrot.lane.b32.xlu0 %v5569_v29, %s11569_s15  ;;  %v9726_v28 = vpop.f32.mrb[73].mxu1 }
0x1f35   : > { %v9080_v28 = vld [vmem:[#allocation10 + $0x3] ss:$0 sm:$0xff] }
0x1f37   : > { %v5734_v11 = vpop.f32.mrb[74].mxu1 }
0x1f38   : > { %5747 = vrot.lane.b32.xlu1 %v5734_v11, %s11570_s26  ;;  %v9736_v14 = vpop.f32.mrb[75].mxu1  ;;  %5915 = vperm.xlu0 %10343, %v1619_v31   ;;  %v9081_v11 = vld [vmem:[#allocation11 + $0x3] ss:$0 sm:$0xff] }
0x1f3c   : > { %5924 = vperm.xlu1 %10344, %v1619_v31   ;;  %10345 = vset.pattern.permute.xlu0 %v11562_v4 }
0x1f3f   : > { %v5865_v20 = vpop.f32.mrb[76].mxu1 }
0x1f40   : > { %v9751_v34 = vpop.f32.mrb[77].mxu1 }
0x1f41   : > { %v5868_v35 = vpop.f32.mrb[78].mxu1 }
0x1f42   : > { %v9752_v36 = vpop.f32.mrb[79].mxu1 }
0x1f47   : > { %v6077_v37 = vpop.f32.mrb[80].mxu1 }
0x1f48   : > { %v9767_v38 = vpop.f32.mrb[81].mxu1  ;;  %9778 = vmatpush3.xpose.msk.msra.mxu1 %vm1834_vm2, %v6077_v37 }
0x1f49   : > { %v6080_v39 = vpop.f32.mrb[82].mxu1  ;;  %9782 = vmatprep.subr.mxu1 %v11563_v7 }
0x1f4a   : > { %v9768_v42 = vpop.f32.mrb[83].mxu1 }
0x1fa2   : > { %v5740_v43 = vpop.permute.xlu1 %5739 }
0x1fa3   : > { %v5750_v40 = vsel %vm1834_vm2, %v5238_v21, %v5740_v43 }
0x1fa6   : > { %v5744_v44 = vpop.permute.xlu0 %5743 }
0x1fa7   : > { %v5751_v4 = vsel %vm2504_vm3, %v5750_v40, %v5744_v44 }
0x1faa   : > { %v5748_v45 = vpop.permute.xlu1 %5747 }
0x1fab   : > { %v5752_v46 = vsel %vm2506_vm4, %v5751_v4, %v5748_v45 }
0x1fac   : > { %v5763_v32 = vpack.c.bf16 %v5752_v46, %v5752_v46 }
0x1fae   : > { %9742 = vmatmul.mubr.msk.bf16.vlgmr.msra.gmra.mrb[72].mxu0 %vm1678_vm1, %v5763_v32 }
0x1faf   : > { %9754 = vmatpush3.bf16.msra.mxu0 %v10394_v47  ;;  %9757 = vmatprep.mubr.msk.bf16.mxu0 %vm11564_vm0, %v11563_v7 }
0x1fb0   : > { %9755 = vmatprep.subr.bf16.mxu0 %v11563_v7 }
0x1fb3   : > { %9756 = vmatpush3.bf16.msra.mxu0 %v10395_v48 }
0x1fb4   : > { %9769 = vmatprep.subr.bf16.mxu0 %v11563_v7 }
0x1fb7   : > { %v12797_v51 = vpop.permute.xlu0 %5915 }
0x1fb8   : > { %v5922_v30 = vmul.f32 %v5921_v50, %v12797_v51 }
0x1fbb   : > { %v12801_v53 = vpop.permute.xlu1 %5924 }
0x1fbc   : > { %v5931_v55 = vmul.f32 %v5930_v52, %v12801_v53 }
0x1fbe   : > { %v5932_v58 = vadd.f32 %v5931_v55, %v5922_v30 }
0x1fc0   : > { %v12804_v59 = vadd.f32 %v9082_v57, %v5932_v58 }
0x1fc2   : > { %v12808_v60 = vpack.c.bf16 %v12804_v59, %v12804_v59 }
0x1fc4   : > { %9758 = vmatmul.mubr.msk.bf16.vlgmr.msra.gmra.mrb[76].mxu0 %vm1678_vm1, %v12808_v60 }
0x1fc5   : > { %9773 = vmatprep.mubr.msk.bf16.mxu0 %vm11564_vm0, %v11563_v7  ;;  %9770 = vmatpush3.bf16.msra.mxu0 %v10396_v22 }
0x1fc6   : > { %9771 = vmatprep.subr.bf16.mxu0 %v11563_v7 }
0x1fc9   : > { %9772 = vmatpush3.bf16.msra.mxu0 %v10397_v23 }
0x1fca   : > { %9787 = vmatprep.subr.mxu0 %v11563_v7 }
0x2081   : > { %v5813_v61 = vpop.f32.mrb[72].mxu0 }
0x2082   : > { %v5866_v62 = vadd.f32 %v5865_v20, %v5813_v61  ;;  %v9743_v0 = vpop.f32.mrb[73].mxu0 }
0x2083   : > { %v5816_v1 = vpop.f32.mrb[74].mxu0 }
0x2084   : > { %v5879_v2 = vadd.f32 %v9079_v41, %v5866_v62  ;;  %v9744_v3 = vpop.f32.mrb[75].mxu0 }
0x2086   : > { %v5880_v5 = vadd.f32 %v5879_v2, %v12677_v54 }
0x2088   : > { %v5885_v6 = vsel %vm1678_vm1, %v5880_v5, 0.0 }
0x2089   : > { %5886 = vadd.xlane.f32.xlu1 %v5885_v6 }
0x2097   : > { %v6016_v9 = vpop.f32.mrb[76].mxu0 }
0x2098   : > { %9780 = vmatmul.mubr.msk.f32.vlgmr.msra.gmra.mrb[84].mxu1 %vm1834_vm2, %v6016_v9  ;;  %v9759_v33 = vpop.f32.mrb[77].mxu0 }
0x2099   : > { %v6019_v8 = vpop.f32.mrb[78].mxu0  ;;  %9784 = vmatprep.mubr.msk.f32.mxu1 %vm11564_vm0, %v11563_v7 }
0x209a   : > { %6304 = vrot.lane.b32.xlu1 %v6016_v9, %s11565_s5  ;;  %v9760_v10 = vpop.f32.mrb[79].mxu0 }
0x209e   : > { %6472 = vrot.lane.b32.xlu1 %v6077_v37, %s11566_s22 }
0x20a2   : > { %6637 = vrot.lane.b32.xlu1 %v6077_v37, %s11567_s6 }
0x2116   : > { %v5887_v15 = vpop.xlane.xlu1 %5886 }
0x2117   : > { %v5888_v54 = vmul.f32 0.03125, %v5887_v15 }
0x2119   : > { %v5889_v17 = vsub.f32 %v5880_v5, %v5888_v54 }
0x211a   : > { %v6305_v35 = vpop.permute.xlu1 %6304 }
0x211b   : > { %v5890_v18 = vmul.f32 %v5889_v17, %v5889_v17 }
0x211d   : > { %v5891_v19 = vsel %vm1678_vm1, %v5890_v18, 0.0 }
0x211e   : > { %5892 = vadd.xlane.f32.xlu0 %v5891_v19 }
0x2134   : > { %6306 = vrot.lane.b32.xlu0 %v6077_v37, %s11565_s5  ;;  %v6473_v37 = vpop.permute.xlu1 %6472 }
0x2138   : > { %6470 = vrot.lane.b32.xlu0 %v6016_v9, %s11566_s22  ;;  %v6638_v39 = vpop.permute.xlu1 %6637 }
0x213c   : > { %6635 = vrot.lane.b32.xlu0 %v6016_v9, %s11567_s6 }
0x216b   : > { %v6216_v21 = vpop.f32.mrb[84].mxu1 }
0x216c   : > { %v6220_v56 = vsel %vm1834_vm2, %v6216_v21, -inf  ;;  %v9781_v24 = vpop.f32.mrb[85].mxu1 }
0x216d   : > { %6221 = vmax.xlane.f32.xlu1 %v6220_v56 }
0x21ab   : > { %v5893_v25 = vpop.xlane.xlu0 %5892 }
0x21ac   : > { %v5894_v26 = vmul.f32 0.03125, %v5893_v25 }
0x21ae   : > { %v5895_v27 = vadd.f32 1e-05, %v5894_v26 }
0x21af   : > { %v6307_v36 = vpop.permute.xlu0 %6306 }
0x21b0   : > { %10504 = vrsqrt.f32 %v5895_v27 }
0x21b3   : > { %v6471_v38 = vpop.permute.xlu0 %6470 }
0x21b7   : > { %v6636_v42 = vpop.permute.xlu0 %6635 }
0x21ba   : > { %v10505_v29 = vpop.eup %10504 }
0x21bb   : > { %v5897_v31 = vmul.f32 %v10505_v29, %v5889_v17 }
0x21bd   : > { %v5904_v14 = vmul.f32 %v9080_v28, %v5897_v31 }
0x21bf   : > { %v5911_v20 = vadd.f32 %v9081_v11, %v5904_v14 }
0x21c1   : > { %v12829_v34 = vpack.c.bf16 %v5911_v20, %v5911_v20  ;;  %v10398_v20 = vld [vmem:[#allocation5 + $0x40] sm:$0xff]  }
0x21c3   : > { %9774 = vmatmul.mubr.msk.bf16.vlgmr.msra.gmra.mrb[80].mxu0 %vm1678_vm1, %v12829_v34 }
0x21c4   : > { %9788 = vmatpush3.xpose.msk.msra.mxu0 %vm1834_vm2, %v6307_v36  ;;  %9789 = vmatprep.mubr.msk.f32.mxu0 %vm11564_vm0, %v11563_v7  ;;  %v10399_v36 = vld [vmem:[#allocation5 + $0x48] sm:$0xff]  }
0x21c5   : > { %9797 = vmatprep.subr.mxu0 %v11563_v7 }
0x21cb   : > { %9790 = vmatmul.mubr.msk.f32.vlgmr.msra.gmra.mrb[84].mxu0 %vm1834_vm2, %v6305_v35 }
0x21cc   : > { %9798 = vmatpush3.xpose.msk.msra.mxu0 %vm1834_vm2, %v6473_v37  ;;  %9799 = vmatprep.mubr.msk.f32.mxu0 %vm11564_vm0, %v11563_v7  ;;  %v10400_v37 = vld [vmem:[%s13176_s11 + $0x50] sm:$0xff]  }
0x21cd   : > { %9807 = vmatprep.subr.mxu0 %v11563_v7 }
0x21cf   : > { %9800 = vmatmul.mubr.msk.f32.vlgmr.msra.gmra.mrb[86].mxu0 %vm1834_vm2, %v6471_v38 }
0x21d0   : > { %9808 = vmatpush3.xpose.msk.msra.mxu0 %vm1834_vm2, %v6638_v39  ;;  %9809 = vmatprep.mubr.msk.f32.mxu0 %vm11564_vm0, %v11563_v7  ;;  %v10401_v39 = vld [vmem:[%s13176_s11 + $0x58] sm:$0xff]  }
0x21d1   : > { %9817 = vmatprep.subr.bf16.mxu0 %v11563_v7 }
0x21d3   : > { %9810 = vmatmul.mubr.msk.f32.vlgmr.msra.gmra.mrb[88].mxu0 %vm1834_vm2, %v6636_v42 }
0x21d4   : > { %9821 = vmatprep.mubr.msk.bf16.mxu0 %vm11564_vm0, %v11563_v7 }
0x21fa   : > { %v6222_v43 = vpop.xlane.xlu1 %6221 }
0x21fb   : > { %v6223_v44 = vsub.f32 %v6216_v21, %v6222_v43  ;;  %v10402_v43 = vld [vmem:[#allocation7 + $0x40] sm:$0xff]  }
0x21fc   : > { %9818 = vmatpush3.bf16.msra.mxu0 %v10402_v43 }
0x21fd   : > { %v6224_v40 = vmul.f32 1.442695, %v6223_v44  ;;  %9819 = vmatprep.subr.bf16.mxu0 %v11563_v7 }
0x21ff   : > { %10506 = vpow2.f32 %v6224_v40 }
0x2209   : > { %v10507_v55 = vpop.eup %10506 }
0x220a   : > { %v6226_v61 = vsel %vm1834_vm2, %v10507_v55, 0.0 }
0x2296   : > { %v6138_v4 = vpop.f32.mrb[80].mxu0 }
0x2297   : > { %v9775_v45 = vpop.f32.mrb[81].mxu0  ;;  %9783 = vmatpush3.msra.mxu1 %v6138_v4 }
0x2298   : > { %v6141_v46 = vpop.f32.mrb[82].mxu0  ;;  %9792 = vmatprep.subr.mxu1 %v11563_v7  ;;  %v10403_v45 = vld [vmem:[#allocation7 + $0x48] sm:$0xff]  }
0x2299   : > { %v9776_v47 = vpop.f32.mrb[83].mxu0  ;;  %9820 = vmatpush3.bf16.msra.mxu0 %v10403_v45 }
0x229a   : > { %9833 = vmatprep.subr.bf16.mxu0 %v11563_v7 }
0x229e   : > { %v6378_v32 = vpop.f32.mrb[84].mxu0 }
0x229f   : > { %v6382_v48 = vsel %vm1834_vm2, %v6378_v32, -inf  ;;  %v9791_v49 = vpop.f32.mrb[85].mxu0 }
0x22a0   : > { %6383 = vmax.xlane.f32.xlu0 %v6382_v48 }
0x22a2   : > { %v6544_v50 = vpop.f32.mrb[86].mxu0 }
0x22a3   : > { %v9801_v52 = vpop.f32.mrb[87].mxu0  ;;  %v6548_v30 = vsel %vm1834_vm2, %v6544_v50, -inf }
0x22a4   : > { %6549 = vmax.xlane.f32.xlu0 %v6548_v30 }
0x22a6   : > { %v6709_v57 = vpop.f32.mrb[88].mxu0 }
0x22a7   : > { %v9811_v58 = vpop.f32.mrb[89].mxu0  ;;  %v6713_v41 = vsel %vm1834_vm2, %v6709_v57, -inf }
0x22a8   : > { %6227 = vadd.xlane.f32.xlu0 %v6226_v61  ;;  %6714 = vmax.xlane.f32.xlu1 %v6713_v41 }
0x232d   : > { %v6384_v62 = vpop.xlane.xlu0 %6383 }
0x232e   : > { %v6385_v0 = vsub.f32 %v6378_v32, %v6384_v62 }
0x2330   : > { %v6386_v1 = vmul.f32 1.442695, %v6385_v0 }
0x2331   : > { %v6550_v2 = vpop.xlane.xlu0 %6549 }
0x2332   : > { %10508 = vpow2.f32 %v6386_v1  ;;  %v6551_v3 = vsub.f32 %v6544_v50, %v6550_v2 }
0x2334   : > { %v6552_v5 = vmul.f32 1.442695, %v6551_v3  ;;  %v9119_v3 = vld [vmem:[#allocation8 + $0x4] ss:$0 sm:$0xff] }
0x2335   : > { %v6228_v6 = vpop.xlane.xlu0 %6227  ;;  %v6715_v17 = vpop.xlane.xlu1 %6714 }
0x2336   : > { %10510 = vpow2.f32 %v6552_v5  ;;  %v6716_v18 = vsub.f32 %v6709_v57, %v6715_v17 }
0x2337   : > { %10512 = vrcp.f32 %v6228_v6 }
0x2338   : > { %v6717_v19 = vmul.f32 1.442695, %v6716_v18 }
0x233a   : > { %10514 = vpow2.f32 %v6717_v19 }
0x233c   : > { %v10509_v9 = vpop.eup %10508 }
0x233d   : > { %v6388_v33 = vsel %vm1834_vm2, %v10509_v9, 0.0 }
0x233e   : > { %6389 = vadd.xlane.f32.xlu1 %v6388_v33 }
0x2340   : > { %v10511_v8 = vpop.eup %10510 }
0x2341   : > { %v10513_v10 = vpop.eup %10512  ;;  %v6554_v15 = vsel %vm1834_vm2, %v10511_v8, 0.0 }
0x2342   : > { %v6230_v54 = vmul.f32 %v10513_v10, %v10507_v55  ;;  %6555 = vadd.xlane.f32.xlu0 %v6554_v15 }
0x2344   : > { %9785 = vmatmul.mubr.msk.f32.vlgmr.msra.gmra.mrb[86].mxu1 %vm1834_vm2, %v6230_v54  ;;  %v10515_v22 = vpop.eup %10514 }
0x2345   : > { %9794 = vmatprep.mubr.msk.f32.mxu1 %vm11564_vm0, %v11563_v7  ;;  %v6719_v23 = vsel %vm1834_vm2, %v10515_v22, 0.0 }
0x234f   : > { %6559 = vrot.lane.b32.xlu1 %v6138_v4, %s11566_s22 }
0x2358   : > { %6394 = vrot.lane.b32.xlu0 %v6138_v4, %s11565_s5 }
0x2373   : > { %6720 = vadd.xlane.f32.xlu1 %v6719_v23  ;;  %v10404_v23 = vld [vmem:[%s13175_s1 + $0x50] sm:$0xff]  }
0x2384   : > { %6724 = vrot.lane.b32.xlu1 %v6138_v4, %s11567_s6 }
0x23cb   : > { %v6390_v21 = vpop.xlane.xlu1 %6389 }
0x23cc   : > { %10516 = vrcp.f32 %v6390_v21  ;;  %v10405_v21 = vld [vmem:[%s13175_s1 + $0x58] sm:$0xff]  }
0x23cf   : > { %v6556_v56 = vpop.xlane.xlu0 %6555  ;;  %v6560_v27 = vpop.permute.xlu1 %6559 }
0x23d0   : > { %10518 = vrcp.f32 %v6556_v56 }
0x23d3   : > { %v6395_v24 = vpop.permute.xlu0 %6394 }
0x23d4   : > { %9793 = vmatpush3.msra.mxu1 %v6395_v24 }
0x23d5   : > { %9802 = vmatprep.subr.mxu1 %v11563_v7 }
0x23d6   : > { %v10517_v25 = vpop.eup %10516 }
0x23d7   : > { %v6392_v26 = vmul.f32 %v10517_v25, %v10509_v9 }
0x23d9   : > { %9795 = vmatmul.mubr.msk.f32.vlgmr.msra.gmra.mrb[88].mxu1 %vm1834_vm2, %v6392_v26  ;;  %v9120_v26 = vld [vmem:[#allocation10 + $0x4] ss:$0 sm:$0xff] }
0x23da   : > { %v10519_v29 = vpop.eup %10518  ;;  %9803 = vmatpush3.msra.mxu1 %v6560_v27  ;;  %9804 = vmatprep.mubr.msk.f32.mxu1 %vm11564_vm0, %v11563_v7 }
0x23db   : > { %v6558_v28 = vmul.f32 %v10519_v29, %v10511_v8  ;;  %9812 = vmatprep.subr.mxu1 %v11563_v7  ;;  %v9121_v29 = vld [vmem:[#allocation11 + $0x4] ss:$0 sm:$0xff] }
0x23dd   : > { %9805 = vmatmul.mubr.msk.f32.vlgmr.msra.gmra.mrb[90].mxu1 %vm1834_vm2, %v6558_v28 }
0x23de   : > { %9814 = vmatprep.mubr.msk.f32.mxu1 %vm11564_vm0, %v11563_v7 }
0x2400   : > { %v6721_v31 = vpop.xlane.xlu1 %6720 }
0x2401   : > { %10520 = vrcp.f32 %v6721_v31 }
0x2404   : > { %v6725_v11 = vpop.permute.xlu1 %6724 }
0x2405   : > { %9813 = vmatpush3.msra.mxu1 %v6725_v11  ;;  %v10406_v11 = vld [vmem:[#allocation3 + $0x50] sm:$0xff]  }
0x2406   : > { %9825 = vmatprep.subr.bf16.mxu1 %v11563_v7 }
0x240b   : > { %v10521_v14 = vpop.eup %10520 }
0x240c   : > { %v6723_v35 = vmul.f32 %v10521_v14, %v10515_v22 }
0x240e   : > { %9815 = vmatmul.mubr.msk.f32.vlgmr.msra.gmra.mrb[92].mxu1 %vm1834_vm2, %v6723_v35 }
0x240f   : > { %9826 = vmatpush3.bf16.msra.mxu1 %v10398_v20  ;;  %9829 = vmatprep.mubr.msk.bf16.mxu1 %vm11564_vm0, %v11563_v7  ;;  %v10407_v20 = vld [vmem:[#allocation3 + $0x58] sm:$0xff]  }
0x2410   : > { %9827 = vmatprep.subr.bf16.mxu1 %v11563_v7 }
0x2413   : > { %9828 = vmatpush3.bf16.msra.mxu1 %v10399_v36 }
0x2414   : > { %9841 = vmatprep.subr.bf16.mxu1 %v11563_v7 }
0x2416   : > { %9830 = vmatmul.mubr.msk.bf16.vlgmr.msra.gmra.mrb[96].mxu1 %vm1678_vm1, %v12808_v60 }
0x2417   : > { %v6300_v38 = vpop.f32.mrb[86].mxu1  ;;  %9842 = vmatpush3.bf16.msra.mxu1 %v10400_v37  ;;  %9845 = vmatprep.mubr.msk.bf16.mxu1 %vm11564_vm0, %v11563_v7 }
0x2418   : > { %v9786_v42 = vpop.f32.mrb[87].mxu1  ;;  %9843 = vmatprep.subr.bf16.mxu1 %v11563_v7 }
0x241b   : > { %9844 = vmatpush3.bf16.msra.mxu1 %v10401_v39 }
0x241c   : > { %9857 = vmatprep.subr.mxu1 %v11563_v7 }
0x241e   : > { %9846 = vmatmul.mubr.msk.bf16.vlgmr.msra.gmra.mrb[100].mxu1 %vm1678_vm1, %v12769_v16 }
0x241f   : > { %9859 = vmatprep.mubr.msk.f32.mxu1 %vm11564_vm0, %v11563_v7 }
0x24ac   : > { %v6466_v60 = vpop.f32.mrb[88].mxu1 }
0x24ad   : > { %6801 = vrot.lane.b32.xlu0 %v6466_v60, %s11568_s8  ;;  %v9796_v44 = vpop.f32.mrb[89].mxu1 }
0x24b0   : > { %v6631_v40 = vpop.f32.mrb[90].mxu1 }
0x24b1   : > { %6805 = vrot.lane.b32.xlu1 %v6631_v40, %s11569_s15  ;;  %v9806_v4 = vpop.f32.mrb[91].mxu1 }
0x24e1   : > { %v6796_v16 = vpop.f32.mrb[92].mxu1 }
0x24e2   : > { %6809 = vrot.lane.b32.xlu0 %v6796_v16, %s11570_s26  ;;  %v9816_v46 = vpop.f32.mrb[93].mxu1 }
0x24e9   : > { %v6927_v47 = vpop.f32.mrb[96].mxu1 }
0x24ea   : > { %v9831_v32 = vpop.f32.mrb[97].mxu1 }
0x24eb   : > { %v6930_v48 = vpop.f32.mrb[98].mxu1 }
0x24ec   : > { %v9832_v49 = vpop.f32.mrb[99].mxu1 }
0x24f1   : > { %v12895_v50 = vpop.f32.mrb[100].mxu1 }
0x24f2   : > { %v9847_v52 = vpop.f32.mrb[101].mxu1  ;;  %9858 = vmatpush3.xpose.msk.msra.mxu1 %vm1834_vm2, %v12895_v50 }
0x24f3   : > { %v7089_v30 = vpop.f32.mrb[102].mxu1  ;;  %9862 = vmatprep.subr.mxu1 %v11563_v7 }
0x24f4   : > { %v9848_v55 = vpop.f32.mrb[103].mxu1 }
0x251f   : > { %v6802_v57 = vpop.permute.xlu0 %6801 }
0x2520   : > { %v6812_v61 = vsel %vm1834_vm2, %v6300_v38, %v6802_v57 }
0x2523   : > { %v6806_v58 = vpop.permute.xlu1 %6805 }
0x2524   : > { %v6813_v41 = vsel %vm2504_vm3, %v6812_v61, %v6806_v58 }
0x2554   : > { %v6810_v62 = vpop.permute.xlu0 %6809 }
0x2555   : > { %v6814_v0 = vsel %vm2506_vm4, %v6813_v41, %v6810_v62 }
0x2556   : > { %v6825_v1 = vpack.c.bf16 %v6814_v0, %v6814_v0 }
0x2558   : > { %9822 = vmatmul.mubr.msk.bf16.vlgmr.msra.gmra.mrb[92].mxu0 %vm1678_vm1, %v6825_v1 }
0x2559   : > { %9837 = vmatprep.mubr.msk.bf16.mxu0 %vm11564_vm0, %v11563_v7  ;;  %9834 = vmatpush3.bf16.msra.mxu0 %v10404_v23 }
0x255a   : > { %9835 = vmatprep.subr.bf16.mxu0 %v11563_v7 }
0x255d   : > { %9836 = vmatpush3.bf16.msra.mxu0 %v10405_v21 }
0x255e   : > { %9849 = vmatprep.subr.bf16.mxu0 %v11563_v7 }
0x262b   : > { %v6875_v2 = vpop.f32.mrb[92].mxu0 }
0x262c   : > { %v6928_v5 = vadd.f32 %v6927_v47, %v6875_v2  ;;  %v9823_v6 = vpop.f32.mrb[93].mxu0 }
0x262d   : > { %v6878_v9 = vpop.f32.mrb[94].mxu0 }
0x262e   : > { %v6941_v33 = vadd.f32 %v9119_v3, %v6928_v5  ;;  %v9824_v8 = vpop.f32.mrb[95].mxu0 }
0x2630   : > { %v6942_v10 = vadd.f32 %v6941_v33, %v12804_v59 }
0x2632   : > { %v6947_v15 = vsel %vm1678_vm1, %v6942_v10, 0.0 }
0x2633   : > { %6948 = vadd.xlane.f32.xlu1 %v6947_v15 }
0x26c0   : > { %v6949_v54 = vpop.xlane.xlu1 %6948 }
0x26c1   : > { %v6950_v17 = vmul.f32 0.03125, %v6949_v54 }
0x26c3   : > { %v6951_v18 = vsub.f32 %v6942_v10, %v6950_v17 }
0x26c5   : > { %v6952_v19 = vmul.f32 %v6951_v18, %v6951_v18 }
0x26c7   : > { %v6953_v22 = vsel %vm1678_vm1, %v6952_v19, 0.0 }
0x26c8   : > { %6954 = vadd.xlane.f32.xlu0 %v6953_v22 }
0x26de   : > { %7311 = vrot.lane.b32.xlu0 %v12895_v50, %s11565_s5 }
0x2755   : > { %v6955_v59 = vpop.xlane.xlu0 %6954 }
0x2756   : > { %v6956_v56 = vmul.f32 0.03125, %v6955_v59 }
0x2758   : > { %v6957_v24 = vadd.f32 1e-05, %v6956_v56 }
0x2759   : > { %v7312_v35 = vpop.permute.xlu0 %7311 }
0x275a   : > { %10522 = vrsqrt.f32 %v6957_v24 }
0x2764   : > { %v10523_v25 = vpop.eup %10522 }
0x2765   : > { %v6959_v27 = vmul.f32 %v10523_v25, %v6951_v18 }
0x2767   : > { %v6966_v28 = vmul.f32 %v9120_v26, %v6959_v27 }
0x2769   : > { %v12915_v31 = vadd.f32 %v9121_v29, %v6966_v28 }
0x276b   : > { %v12919_v14 = vpack.c.bf16 %v12915_v31, %v12915_v31 }
0x276d   : > { %9838 = vmatmul.mubr.msk.bf16.vlgmr.msra.gmra.mrb[96].mxu0 %vm1678_vm1, %v12919_v14 }
0x276e   : > { %9850 = vmatpush3.bf16.msra.mxu0 %v10406_v11  ;;  %9853 = vmatprep.mubr.msk.bf16.mxu0 %vm11564_vm0, %v11563_v7 }
0x276f   : > { %9851 = vmatprep.subr.bf16.mxu0 %v11563_v7 }
0x2772   : > { %9852 = vmatpush3.bf16.msra.mxu0 %v10407_v20 }
0x2773   : > { %9867 = vmatprep.subr.mxu0 %v11563_v7 }
0x2775   : > { %9854 = vmatmul.mubr.msk.bf16.vlgmr.msra.gmra.mrb[100].mxu0 %vm1678_vm1, %v12829_v34 }
0x2776   : > { %9869 = vmatprep.mubr.msk.f32.mxu0 %vm11564_vm0, %v11563_v7 }
0x277b   : > { %9868 = vmatpush3.xpose.msk.msra.mxu0 %vm1834_vm2, %v7312_v35 }
0x277c   : > { %9877 = vmatprep.subr.mxu0 %v11563_v7 }
0x2840   : > { %v7029_v36 = vpop.f32.mrb[96].mxu0 }
0x2841   : > { %7475 = vrot.lane.b32.xlu0 %v7029_v36, %s11566_s22  ;;  %7309 = vrot.lane.b32.xlu1 %v7029_v36, %s11565_s5  ;;  %v9839_v37 = vpop.f32.mrb[97].mxu0 }
0x2842   : > { %9860 = vmatmul.mubr.msk.f32.vlgmr.msra.gmra.mrb[94].mxu1 %vm1834_vm2, %v7029_v36  ;;  %v7032_v38 = vpop.f32.mrb[98].mxu0 }
0x2843   : > { %v9840_v39 = vpop.f32.mrb[99].mxu0  ;;  %9864 = vmatprep.mubr.msk.f32.mxu1 %vm11564_vm0, %v11563_v7 }
0x2844   : > { %v10408_v39 = vld [vmem:[#allocation5 + $0x50] sm:$0xff]  }
0x2845   : > { %7640 = vrot.lane.b32.xlu0 %v7029_v36, %s11567_s6  ;;  %7477 = vrot.lane.b32.xlu1 %v12895_v50, %s11566_s22 }
0x2848   : > { %v12941_v34 = vpop.f32.mrb[100].mxu0 }
0x2849   : > { %7642 = vrot.lane.b32.xlu1 %v12895_v50, %s11567_s6  ;;  %v9855_v42 = vpop.f32.mrb[101].mxu0  ;;  %9863 = vmatpush3.msra.mxu1 %v12941_v34 }
0x284a   : > { %v7146_v43 = vpop.f32.mrb[102].mxu0  ;;  %9872 = vmatprep.subr.mxu1 %v11563_v7  ;;  %v10409_v42 = vld [vmem:[#allocation5 + $0x58] sm:$0xff]  }
0x284b   : > { %v9856_v60 = vpop.f32.mrb[103].mxu0 }
0x28b3   : > { %v7310_v44 = vpop.permute.xlu1 %7309  ;;  %v7476_v4 = vpop.permute.xlu0 %7475 }
0x28b4   : > { %9870 = vmatmul.mubr.msk.f32.vlgmr.msra.gmra.mrb[90].mxu0 %vm1834_vm2, %v7310_v44  ;;  %v10410_v44 = vld [vmem:[#allocation7 + $0x50] sm:$0xff]  }
0x28b5   : > { %9879 = vmatprep.mubr.msk.f32.mxu0 %vm11564_vm0, %v11563_v7 }
0x28b7   : > { %v7478_v40 = vpop.permute.xlu1 %7477  ;;  %v7641_v16 = vpop.permute.xlu0 %7640 }
0x28b8   : > { %9878 = vmatpush3.xpose.msk.msra.mxu0 %vm1834_vm2, %v7478_v40 }
0x28b9   : > { %9887 = vmatprep.subr.mxu0 %v11563_v7 }
0x28bb   : > { %9880 = vmatmul.mubr.msk.f32.vlgmr.msra.gmra.mrb[104].mxu0 %vm1834_vm2, %v7476_v4  ;;  %v7643_v45 = vpop.permute.xlu1 %7642 }
0x28bc   : > { %9888 = vmatpush3.xpose.msk.msra.mxu0 %vm1834_vm2, %v7643_v45  ;;  %9889 = vmatprep.mubr.msk.f32.mxu0 %vm11564_vm0, %v11563_v7 }
0x28bd   : > { %9897 = vmatprep.subr.bf16.mxu0 %v11563_v7 }
0x28bf   : > { %9890 = vmatmul.mubr.msk.f32.vlgmr.msra.gmra.mrb[106].mxu0 %vm1834_vm2, %v7641_v16 }
0x28c0   : > { %9901 = vmatprep.mubr.msk.bf16.mxu0 %vm11564_vm0, %v11563_v7  ;;  %9898 = vmatpush3.bf16.msra.mxu0 %v10410_v44 }
0x28c1   : > { %9899 = vmatprep.subr.bf16.mxu0 %v11563_v7 }
0x2915   : > { %v7221_v46 = vpop.f32.mrb[94].mxu1 }
0x2916   : > { %v9861_v47 = vpop.f32.mrb[95].mxu1  ;;  %v7225_v32 = vsel %vm1834_vm2, %v7221_v46, -inf }
0x2917   : > { %7226 = vmax.xlane.f32.xlu1 %v7225_v32 }
0x2987   : > { %v7383_v48 = vpop.f32.mrb[90].mxu0 }
0x2988   : > { %v9871_v49 = vpop.f32.mrb[91].mxu0  ;;  %v7387_v50 = vsel %vm1834_vm2, %v7383_v48, -inf }
0x2989   : > { %7388 = vmax.xlane.f32.xlu0 %v7387_v50 }
0x298e   : > { %v7549_v52 = vpop.f32.mrb[104].mxu0 }
0x298f   : > { %v9881_v30 = vpop.f32.mrb[105].mxu0  ;;  %v7553_v55 = vsel %vm1834_vm2, %v7549_v52, -inf }
0x2990   : > { %7554 = vmax.xlane.f32.xlu0 %v7553_v55  ;;  %v7979_v55 = vld [vmem:[#allocation34] sm:$0x3] }
0x2992   : > { %v7714_v57 = vpop.f32.mrb[106].mxu0 }
0x2993   : > { %v9891_v58 = vpop.f32.mrb[107].mxu0  ;;  %v7718_v61 = vsel %vm1834_vm2, %v7714_v57, -inf }
0x2994   : > { %7719 = vmax.xlane.f32.xlu1 %v7718_v61 }
0x29a4   : > { %v7227_v41 = vpop.xlane.xlu1 %7226 }
0x29a5   : > { %v7228_v62 = vsub.f32 %v7221_v46, %v7227_v41  ;;  %v10411_v46 = vld [vmem:[#allocation7 + $0x58] sm:$0xff]  }
0x29a6   : > { %9900 = vmatpush3.bf16.msra.mxu0 %v10411_v46  ;;  %v10418_v46 = vld [vmem:[#allocation43] sm:$0xff]  }
0x29a7   : > { %v7229_v0 = vmul.f32 1.442695, %v7228_v62  ;;  %9913 = vmatprep.subr.bf16.mxu0 %v11563_v7  ;;  %v10412_v62 = vld [vmem:[#allocation38] sm:$0xff]  }
0x29a9   : > { %10524 = vpow2.f32 %v7229_v0  ;;  %v7983_v0 = vrot.slane %v7979_v55, %v12307_v12 }
0x29b3   : > { %v10525_v1 = vpop.eup %10524 }
0x29b4   : > { %v7231_v2 = vsel %vm1834_vm2, %v10525_v1, 0.0 }
0x29b5   : > { %7232 = vadd.xlane.f32.xlu0 %v7231_v2 }
0x2a16   : > { %v7389_v3 = vpop.xlane.xlu0 %7388 }
0x2a17   : > { %v7390_v5 = vsub.f32 %v7383_v48, %v7389_v3  ;;  %v10413_v3 = vld [vmem:[#allocation38 + $0x8] sm:$0xff]  }
0x2a19   : > { %v7391_v6 = vmul.f32 1.442695, %v7390_v5  ;;  %v7984_v5 = vmul.f32 %v7983_v0, %v12797_v51 }
0x2a1b   : > { %10526 = vpow2.f32 %v7391_v6 }
0x2a1d   : > { %v7555_v9 = vpop.xlane.xlu0 %7554 }
0x2a1e   : > { %v7556_v33 = vsub.f32 %v7549_v52, %v7555_v9  ;;  %v3874_v9 = vrot.slane %v12603_v63, %v12307_v12  ;;  %v9157_v63 = vld [vmem:[#allocation8 + $0x5] ss:$0 sm:$0xff] }
0x2a20   : > { %v7557_v8 = vmul.f32 1.442695, %v7556_v33  ;;  %v10414_v33 = vld [vmem:[#allocation40] sm:$0xff]  }
0x2a21   : > { %v7720_v19 = vpop.xlane.xlu1 %7719 }
0x2a22   : > { %10528 = vpow2.f32 %v7557_v8  ;;  %v7721_v22 = vsub.f32 %v7714_v57, %v7720_v19  ;;  %v8008_v8 = vpack.c.bf16 %v3874_v9, %v3874_v9 }
0x2a24   : > { %v7722_v23 = vmul.f32 1.442695, %v7721_v22 }
0x2a25   : > { %v10527_v10 = vpop.eup %10526 }
0x2a26   : > { %v7393_v15 = vsel %vm1834_vm2, %v10527_v10, 0.0 }
0x2a27   : > { %7394 = vadd.xlane.f32.xlu1 %v7393_v15  ;;  %v10415_v15 = vld [vmem:[#allocation40 + $0x8] sm:$0xff]  }
0x2a2c   : > { %v10529_v54 = vpop.eup %10528 }
0x2a2d   : > { %v7559_v17 = vsel %vm1834_vm2, %v10529_v54, 0.0 }
0x2a2e   : > { %7560 = vadd.xlane.f32.xlu0 %v7559_v17 }
0x2a38   : > { %7564 = vrot.lane.b32.xlu1 %v12941_v34, %s11566_s22 }
0x2a42   : > { %v7233_v18 = vpop.xlane.xlu0 %7232 }
0x2a43   : > { %10530 = vrcp.f32 %v7233_v18 }
0x2a44   : > { %7399 = vrot.lane.b32.xlu0 %v12941_v34, %s11565_s5  ;;  %10532 = vpow2.f32 %v7722_v23  ;;  %s1615_s5 = scalar_lea.vmem %s11767_s9, %s12282_s23 }
0x2a4d   : > { %v10531_v21 = vpop.eup %10530 }
0x2a4e   : > { %v7235_v59 = vmul.f32 %v10531_v21, %v10525_v1  ;;  %v10533_v56 = vpop.eup %10532  ;;  %v7988_v1 = vrot.slane %v7979_v55, %v12310_v13  ;;  %v9170_v55 = vld [vmem:[#allocation41] ss:$0 sm:$0xff] }
0x2a4f   : > { %v7724_v24 = vsel %vm1834_vm2, %v10533_v56, 0.0 }
0x2a50   : > { %9865 = vmatmul.mubr.msk.f32.vlgmr.msra.gmra.mrb[104].mxu1 %vm1834_vm2, %v7235_v59  ;;  %v7989_v6 = vmul.f32 %v7988_v1, %v12801_v53 }
0x2a51   : > { %9874 = vmatprep.mubr.msk.f32.mxu1 %vm11564_vm0, %v11563_v7 }
0x2a52   : > { %v7990_v13 = vadd.f32 %v7989_v6, %v7984_v5 }
0x2a5c   : > { %7725 = vadd.xlane.f32.xlu1 %v7724_v24 }
0x2a6d   : > { %7729 = vrot.lane.b32.xlu1 %v12941_v34, %s11567_s6 }
0x2ab4   : > { %v7395_v25 = vpop.xlane.xlu1 %7394 }
0x2ab5   : > { %10534 = vrcp.f32 %v7395_v25 }
0x2ab8   : > { %v7565_v11 = vpop.permute.xlu1 %7564 }
0x2abb   : > { %v7561_v26 = vpop.xlane.xlu0 %7560 }
0x2abc   : > { %10536 = vrcp.f32 %v7561_v26 }
0x2abf   : > { %v10535_v27 = vpop.eup %10534  ;;  %v7400_v29 = vpop.permute.xlu0 %7399 }
0x2ac0   : > { %v7397_v28 = vmul.f32 %v10535_v27, %v10527_v10  ;;  %9873 = vmatpush3.msra.mxu1 %v7400_v29  ;;  %v9160_v10 = vld [vmem:[#allocation35] ss:$0 sm:$0xff] }
0x2ac1   : > { %9882 = vmatprep.subr.mxu1 %v11563_v7  ;;  %v7998_v51 = vadd.f32 %v9160_v10, %v7990_v13  ;;  %v10425_v10 = vld [vmem:[#allocation46 + $0x8] sm:$0xff]  }
0x2ac2   : > { %9875 = vmatmul.mubr.msk.f32.vlgmr.msra.gmra.mrb[106].mxu1 %vm1834_vm2, %v7397_v28 }
0x2ac3   : > { %9883 = vmatpush3.msra.mxu1 %v7565_v11  ;;  %9884 = vmatprep.mubr.msk.f32.mxu1 %vm11564_vm0, %v11563_v7  ;;  %v8123_v53 = vpack.c.bf16 %v7998_v51, %v7998_v51  ;;  %v10427_v51 = vld [vmem:[#allocation46 + $0x18] sm:$0xff]  }
0x2ac4   : > { %9892 = vmatprep.subr.mxu1 %v11563_v7 }
0x2ac6   : > { %v10537_v20 = vpop.eup %10536 }
0x2ac7   : > { %v7563_v35 = vmul.f32 %v10537_v20, %v10529_v54 }
0x2ac9   : > { %9885 = vmatmul.mubr.msk.f32.vlgmr.msra.gmra.mrb[108].mxu1 %vm1834_vm2, %v7563_v35 }
0x2aca   : > { %9894 = vmatprep.mubr.msk.f32.mxu1 %vm11564_vm0, %v11563_v7 }
0x2ae9   : > { %v7726_v36 = vpop.xlane.xlu1 %7725 }
0x2aea   : > { %10538 = vrcp.f32 %v7726_v36 }
0x2aed   : > { %v7730_v37 = vpop.permute.xlu1 %7729 }
0x2aee   : > { %9893 = vmatpush3.msra.mxu1 %v7730_v37 }
0x2aef   : > { %9905 = vmatprep.subr.bf16.mxu1 %v11563_v7 }
0x2af4   : > { %v10539_v38 = vpop.eup %10538 }
0x2af5   : > { %v7728_v34 = vmul.f32 %v10539_v38, %v10533_v56  ;;  %v10416_v38 = vld [vmem:[#allocation37] sm:$0xff]  }
0x2af7   : > { %9895 = vmatmul.mubr.msk.f32.vlgmr.msra.gmra.mrb[110].mxu1 %vm1834_vm2, %v7728_v34 }
0x2af8   : > { %9906 = vmatpush3.bf16.msra.mxu1 %v10408_v39  ;;  %9909 = vmatprep.mubr.msk.bf16.mxu1 %vm11564_vm0, %v11563_v7 }
0x2af9   : > { %9907 = vmatprep.subr.bf16.mxu1 %v11563_v7 }
0x2afc   : > { %9908 = vmatpush3.bf16.msra.mxu1 %v10409_v42 }
0x2afd   : > { %9921 = vmatprep.subr.bf16.mxu1 %v11563_v7 }
0x2aff   : > { %9910 = vmatmul.mubr.msk.bf16.vlgmr.msra.gmra.mrb[112].mxu1 %vm1678_vm1, %v12919_v14 }
0x2b00   : > { %9925 = vmatprep.mubr.msk.bf16.mxu1 %vm11564_vm0, %v11563_v7  ;;  %9922 = vmatpush3.bf16.msra.mxu1 %v10416_v38 }
0x2b01   : > { %9923 = vmatprep.subr.bf16.mxu1 %v11563_v7 }
0x2b23   : > { %v7305_v43 = vpop.f32.mrb[104].mxu1 }
0x2b24   : > { %v9866_v60 = vpop.f32.mrb[105].mxu1 }
0x2b25   : > { %v9158_v60 = vld [vmem:[#allocation10 + $0x5] ss:$0 sm:$0xff] }
0x2b95   : > { %v7471_v40 = vpop.f32.mrb[106].mxu1 }
0x2b96   : > { %7806 = vrot.lane.b32.xlu0 %v7471_v40, %s11568_s8  ;;  %v9876_v4 = vpop.f32.mrb[107].mxu1  ;;  %v9159_v40 = vld [vmem:[#allocation11 + $0x5] ss:$0 sm:$0xff] }
0x2b9c   : > { %v7636_v45 = vpop.f32.mrb[108].mxu1 }
0x2b9d   : > { %7810 = vrot.lane.b32.xlu1 %v7636_v45, %s11569_s15  ;;  %v9886_v16 = vpop.f32.mrb[109].mxu1 }
0x2bca   : > { %v7801_v14 = vpop.f32.mrb[110].mxu1 }
0x2bcb   : > { %7814 = vrot.lane.b32.xlu0 %v7801_v14, %s11570_s26  ;;  %v9896_v47 = vpop.f32.mrb[111].mxu1  ;;  %v10419_v14 = vld [vmem:[#allocation43 + $0x8] sm:$0xff]  }
0x2bcc   : > { %v10420_v47 = vld [vmem:[#allocation43 + $0x10] sm:$0xff]  }
0x2bd2   : > { %v7932_v32 = vpop.f32.mrb[112].mxu1 }
0x2bd3   : > { %v9911_v48 = vpop.f32.mrb[113].mxu1 }
0x2bd4   : > { %v7935_v49 = vpop.f32.mrb[114].mxu1  ;;  %v10422_v48 = vld [vmem:[#allocation43 + $0x20] sm:$0xff]  }
0x2bd5   : > { %v9912_v50 = vpop.f32.mrb[115].mxu1  ;;  %v10423_v49 = vld [vmem:[#allocation43 + $0x28] sm:$0xff]  }
0x2c08   : > { %v7807_v52 = vpop.permute.xlu0 %7806 }
0x2c09   : > { %v7817_v57 = vsel %vm1834_vm2, %v7305_v43, %v7807_v52 }
0x2c0f   : > { %v7811_v30 = vpop.permute.xlu1 %7810 }
0x2c10   : > { %v7818_v58 = vsel %vm2504_vm3, %v7817_v57, %v7811_v30 }
0x2c3d   : > { %v7815_v61 = vpop.permute.xlu0 %7814 }
0x2c3e   : > { %v7819_v41 = vsel %vm2506_vm4, %v7818_v58, %v7815_v61 }
0x2c3f   : > { %v7830_v2 = vpack.c.bf16 %v7819_v41, %v7819_v41 }
0x2c41   : > { %9902 = vmatmul.mubr.msk.bf16.vlgmr.msra.gmra.mrb[108].mxu0 %vm1678_vm1, %v7830_v2 }
0x2c42   : > { %9914 = vmatpush3.bf16.msra.mxu0 %v10412_v62  ;;  %9917 = vmatprep.mubr.msk.bf16.mxu0 %vm11564_vm0, %v11563_v7 }
0x2c43   : > { %9915 = vmatprep.subr.bf16.mxu0 %v11563_v7 }
0x2c46   : > { %9916 = vmatpush3.bf16.msra.mxu0 %v10413_v3 }
0x2c47   : > { %9929 = vmatprep.subr.bf16.mxu0 %v11563_v7 }
0x2c49   : > { %9918 = vmatmul.mubr.msk.bf16.vlgmr.msra.gmra.mrb[112].mxu0 %vm1678_vm1, %v8008_v8  ;;  %v10424_v8 = vld [vmem:[#allocation46] sm:$0xff]  }
0x2c4a   : > { %9930 = vmatpush3.bf16.msra.mxu0 %v10414_v33  ;;  %9933 = vmatprep.mubr.msk.bf16.mxu0 %vm11564_vm0, %v11563_v7 }
0x2c4b   : > { %9931 = vmatprep.subr.bf16.mxu0 %v11563_v7 }
0x2c4e   : > { %9932 = vmatpush3.bf16.msra.mxu0 %v10415_v15  ;;  %v10426_v15 = vld [vmem:[#allocation46 + $0x10] sm:$0xff]  }
0x2c4f   : > { %9953 = vmatprep.subr.bf16.mxu0 %v11563_v7 }
0x2c51   : > { %9934 = vmatmul.mubr.msk.bf16.vlgmr.msra.gmra.mrb[116].mxu0 %vm1678_vm1, %v8123_v53  ;;  %v10428_v53 = vld [vmem:[#allocation46 + $0x20] sm:$0xff]  }
0x2c52   : > { %9965 = vmatprep.mubr.msk.bf16.mxu0 %vm11564_vm0, %v11563_v7  ;;  %9954 = vmatpush3.bf16.msra.mxu0 %v10424_v8 }
0x2c53   : > { %9955 = vmatprep.subr.bf16.mxu0 %v11563_v7 }
0x2c56   : > { %9956 = vmatpush3.bf16.msra.mxu0 %v10425_v10 }
0x2c57   : > { %9957 = vmatprep.subr.bf16.mxu0 %v11563_v7 }
0x2c5a   : > { %9958 = vmatpush3.bf16.msra.mxu0 %v10426_v15 }
0x2c5b   : > { %9959 = vmatprep.subr.bf16.mxu0 %v11563_v7 }
0x2c5e   : > { %9960 = vmatpush3.bf16.msra.mxu0 %v10427_v51 }
0x2c5f   : > { %9961 = vmatprep.subr.bf16.mxu0 %v11563_v7 }
0x2c62   : > { %9962 = vmatpush3.bf16.msra.mxu0 %v10428_v53 }
0x2c63   : > { %9963 = vmatprep.subr.bf16.mxu0 %v11563_v7 }
0x2d14   : > { %v7880_v12 = vpop.f32.mrb[108].mxu0 }
0x2d15   : > { %v7933_v54 = vadd.f32 %v7932_v32, %v7880_v12  ;;  %v9903_v17 = vpop.f32.mrb[109].mxu0  ;;  %v10421_v32 = vld [vmem:[#allocation43 + $0x18] sm:$0xff]  }
0x2d16   : > { %v7883_v18 = vpop.f32.mrb[110].mxu0  ;;  %v10429_v12 = vld [vmem:[#allocation46 + $0x28] sm:$0xff]  }
0x2d17   : > { %v7946_v19 = vadd.f32 %v9157_v63, %v7933_v54  ;;  %v9904_v22 = vpop.f32.mrb[111].mxu0  ;;  %9964 = vmatpush3.bf16.msra.mxu0 %v10429_v12  ;;  %v9171_v63 = vld [vmem:[#allocation44] ss:$0 sm:$0xff] }
0x2d19   : > { %v7947_v23 = vadd.f32 %v7946_v19, %v12915_v31  ;;  %v10417_v31 = vld [vmem:[#allocation37 + $0x8] sm:$0xff]  }
0x2d1a   : > { %9924 = vmatpush3.bf16.msra.mxu1 %v10417_v31 }
0x2d1b   : > { %v7952_v21 = vsel %vm1678_vm1, %v7947_v23, 0.0  ;;  %9937 = vmatprep.subr.bf16.mxu1 %v11563_v7 }
0x2d1c   : > { %7953 = vadd.xlane.f32.xlu1 %v7952_v21  ;;  %v8058_v59 = vpop.f32.mrb[112].mxu0 }
0x2d1d   : > { %v9919_v56 = vpop.f32.mrb[113].mxu0 }
0x2d1e   : > { %v8061_v24 = vpop.f32.mrb[114].mxu0 }
0x2d1f   : > { %v9920_v25 = vpop.f32.mrb[115].mxu0 }
0x2d24   : > { %v8173_v26 = vpop.f32.mrb[116].mxu0 }
0x2d25   : > { %v9935_v27 = vpop.f32.mrb[117].mxu0 }
0x2d26   : > { %v8176_v29 = vpop.f32.mrb[118].mxu0 }
0x2d27   : > { %v9936_v28 = vpop.f32.mrb[119].mxu0 }
0x2da9   : > { %v7954_v11 = vpop.xlane.xlu1 %7953 }
0x2daa   : > { %v7955_v20 = vmul.f32 0.03125, %v7954_v11 }
0x2dac   : > { %v7956_v35 = vsub.f32 %v7947_v23, %v7955_v20 }
0x2dae   : > { %v7957_v36 = vmul.f32 %v7956_v35, %v7956_v35 }
0x2db0   : > { %v7958_v37 = vsel %vm1678_vm1, %v7957_v36, 0.0 }
0x2db1   : > { %7959 = vadd.xlane.f32.xlu0 %v7958_v37 }
0x2e3e   : > { %v7960_v39 = vpop.xlane.xlu0 %7959 }
0x2e3f   : > { %v7961_v34 = vmul.f32 0.03125, %v7960_v39 }
0x2e41   : > { %v7962_v42 = vadd.f32 1e-05, %v7961_v34 }
0x2e43   : > { %10540 = vrsqrt.f32 %v7962_v42 }
0x2e4d   : > { %v10541_v43 = vpop.eup %10540 }
0x2e4e   : > { %v7964_v44 = vmul.f32 %v10541_v43, %v7956_v35 }
0x2e50   : > { %v7971_v4 = vmul.f32 %v9158_v60, %v7964_v44 }
0x2e52   : > { %v7978_v45 = vadd.f32 %v9159_v40, %v7971_v4  ;;  %v9187_v40 = vld [vmem:[#allocation49] ss:$0 sm:$0xff] }
0x2e54   : > { %v8003_v16 = vpack.c.bf16 %v7978_v45, %v7978_v45 }
0x2e56   : > { %9926 = vmatmul.mubr.msk.bf16.vlgmr.msra.gmra.mrb[116].mxu1 %vm1678_vm1, %v8003_v16 }
0x2e57   : > { %9949 = vmatprep.mubr.msk.bf16.mxu1 %vm11564_vm0, %v11563_v7  ;;  %9938 = vmatpush3.bf16.msra.mxu1 %v10418_v46  ;;  %v9188_v46 = vld [vmem:[#allocation2] ss:$0 sm:$0xff] }
0x2e58   : > { %9939 = vmatprep.subr.bf16.mxu1 %v11563_v7 }
0x2e5b   : > { %9940 = vmatpush3.bf16.msra.mxu1 %v10419_v14 }
0x2e5c   : > { %9941 = vmatprep.subr.bf16.mxu1 %v11563_v7 }
0x2e5f   : > { %9942 = vmatpush3.bf16.msra.mxu1 %v10420_v47 }
0x2e60   : > { %9943 = vmatprep.subr.bf16.mxu1 %v11563_v7 }
0x2e63   : > { %9944 = vmatpush3.bf16.msra.mxu1 %v10421_v32 }
0x2e64   : > { %9945 = vmatprep.subr.bf16.mxu1 %v11563_v7 }
0x2e67   : > { %9946 = vmatpush3.bf16.msra.mxu1 %v10422_v48 }
0x2e68   : > { %9947 = vmatprep.subr.bf16.mxu1 %v11563_v7  ;;  %v9179_v7 = vld [vmem:[#allocation47] ss:$0 sm:$0xff] }
0x2e6b   : > { %9948 = vmatpush3.bf16.msra.mxu1 %v10423_v49 }
0x2f29   : > { %v8113_v50 = vpop.f32.mrb[116].mxu1 }
0x2f2a   : > { %v8114_v52 = vadd.f32 %v8113_v50, %v8058_v59  ;;  %v9927_v30 = vpop.f32.mrb[117].mxu1 }
0x2f2b   : > { %v8116_v57 = vpop.f32.mrb[118].mxu1 }
0x2f2c   : > { %v8179_v58 = vadd.f32 %v8173_v26, %v8114_v52  ;;  %v9928_v61 = vpop.f32.mrb[119].mxu1 }
0x2f2e   : > { %v8187_v41 = vadd.f32 %v9170_v55, %v8179_v58 }
0x2f30   : > { %v8189_v62 = vmul.f32 0.044715, %v8187_v41  ;;  %v8188_v6 = vmul.f32 0.5, %v8187_v41 }
0x2f32   : > { %v8190_v0 = vmul.f32 %v8189_v62, %v8187_v41 }
0x2f34   : > { %v8191_v1 = vmul.f32 %v8190_v0, %v8187_v41 }
0x2f36   : > { %v8192_v2 = vadd.f32 %v8191_v1, %v8187_v41 }
0x2f38   : > { %v8193_v3 = vmul.f32 0.7978846, %v8192_v2 }
0x2f3a   : > { %10542 = vtanh.f32 %v8193_v3 }
0x2f44   : > { %v10543_v5 = vpop.eup %10542 }
0x2f45   : > { %v8195_v9 = vadd.f32 1.0, %v10543_v5 }
0x2f47   : > { %v8196_v33 = vmul.f32 %v8195_v9, %v8188_v6 }
0x2f49   : > { %v8209_v13 = vpack.c.bf16 %v8196_v33, %v8196_v33 }
0x2f4b   : > { %9950 = vmatmul.mubr.msk.bf16.vlgmr.msra.gmra.mrb[120].mxu1 %vm8253_vm5, %v8209_v13 }
0x301e   : > { %v8291_v54 = vpop.f32.mrb[120].mxu1 }
0x301f   : > { %v8292_v17 = vadd.f32 %v9171_v63, %v8291_v54  ;;  %v9951_v18 = vpop.f32.mrb[121].mxu1 }
0x3020   : > { %v8294_v19 = vpop.f32.mrb[122].mxu1 }
0x3021   : > { %v8298_v22 = vmul.f32 0.044715, %v8292_v17  ;;  %v9952_v23 = vpop.f32.mrb[123].mxu1  ;;  %v8297_v26 = vmul.f32 0.5, %v8292_v17 }
0x3023   : > { %v8299_v21 = vmul.f32 %v8298_v22, %v8292_v17 }
0x3025   : > { %v8300_v59 = vmul.f32 %v8299_v21, %v8292_v17 }
0x3027   : > { %v8301_v56 = vadd.f32 %v8300_v59, %v8292_v17 }
0x3029   : > { %v8302_v24 = vmul.f32 0.7978846, %v8301_v56 }
0x302b   : > { %10544 = vtanh.f32 %v8302_v24 }
0x3035   : > { %v10545_v25 = vpop.eup %10544 }
0x3036   : > { %v8304_v27 = vadd.f32 1.0, %v10545_v25 }
0x3038   : > { %v8305_v29 = vmul.f32 %v8304_v27, %v8297_v26 }
0x303a   : > { %v8318_v28 = vpack.c.bf16 %v8305_v29, %v8305_v29 }
0x303c   : > { %9966 = vmatmul.mubr.msk.bf16.vlgmr.msra.gmra.mrb[120].mxu0 %vm8253_vm5, %v8318_v28 }
0x310f   : > { %v8399_v11 = vpop.f32.mrb[120].mxu0 }
0x3110   : > { %v8400_v20 = vadd.f32 %v9179_v7, %v8399_v11  ;;  %v9967_v35 = vpop.f32.mrb[121].mxu0 }
0x3111   : > { %v8402_v36 = vpop.f32.mrb[122].mxu0 }
0x3112   : > { %v8406_v37 = vmul.f32 0.044715, %v8400_v20  ;;  %v9968_v38 = vpop.f32.mrb[123].mxu0  ;;  %v8405_v60 = vmul.f32 0.5, %v8400_v20 }
0x3114   : > { %v8407_v31 = vmul.f32 %v8406_v37, %v8400_v20 }
0x3116   : > { %v8408_v39 = vmul.f32 %v8407_v31, %v8400_v20 }
0x3118   : > { %v8409_v34 = vadd.f32 %v8408_v39, %v8400_v20 }
0x311a   : > { %v8410_v42 = vmul.f32 0.7978846, %v8409_v34 }
0x311c   : > { %10546 = vtanh.f32 %v8410_v42 }
0x3126   : > { %v10547_v43 = vpop.eup %10546 }
0x3127   : > { %v8412_v44 = vadd.f32 1.0, %v10547_v43 }
0x3129   : > { %v8413_v4 = vmul.f32 %v8412_v44, %v8405_v60 }
0x312b   : > { %v8421_v45 = vmul.f32 %v9187_v40, %v8413_v4 }
0x312d   : > { %v8422_v16 = vsel %vm8253_vm5, %v8421_v45, 0.0 }
0x312e   : > { %8423 = vadd.xlane.f32.xlu0 %v8422_v16 }
0x31bb   : > { %v8424_v14 = vpop.xlane.xlu0 %8423 }
0x31bc   : > { %v8432_v47 = vadd.f32 %v9188_v46, %v8424_v14 }
0x31be   : > { %8434 = vst.msk [vmem:[%s1615_s5] sm:$0xff] %vm8433_vm6, %v8432_v47 }
0x31bf PF: > { %s105_s0 = sadd.s32 1, %s11486_s0  }
0x31c0   : > { %p102_p5 = scmp.ge.s32.totalorder %s105_s0, 4  }
0x31c2   :  { %104 = sbr.rel (!%p102_p5) target bundleno = 85 (0x55), region = 414 }
0x31c9   :  { %8454 = vsyncpa [#allocation4], 1 }
0x31ca   :  { %8456 = vsyncpa [#allocation4 + $0x1], 1 }
0x31cb   :  { %8457 = vsyncpa [#allocation6], 1 }
0x31cc   :  { %8458 = vsyncpa [#allocation9], 1 }
0x31cd   :  { %8459 = vsyncpa [#allocation12], 1 }
0x31ce   :  { %8460 = vsyncpa [#allocation15], 1 }
0x31cf   :  { %8461 = vsyncpa [#allocation18], 1 }
0x31d0   :  { %8462 = vsyncpa [#allocation21], 1 }
0x31d1   :  { %8463 = vsyncpa [#allocation24], 1 }
0x31d2   :  { %8464 = vsyncpa [#allocation27], 1 }
0x31d3   :  { %8465 = vsyncpa [#allocation30], 1 }
0x31d4   :  { %8466 = vsyncpa [#allocation33], 1 }
0x31d5   :  { %8467 = vsyncpa [#allocation36], 1 }
0x31d6   :  { %8468 = vsyncpa [#allocation39], 1 }
0x31d7   :  { %8469 = vsyncpa [#allocation42], 1 }
0x31d8   :  { %8470 = vsyncpa [#allocation45], 1 }
0x31d9   :  { %8471 = vsyncpa [#allocation48], 1 }

</bundles_post_ra>
